<compile_context>
chip_gen: v7x
topology: tpu7x:2x2x1
jax: 0.10.0
libtpu: 0.0.40
codegen_flags: <defaults>
</compile_context>

<pallas_src>
import functools

import jax
import jax.numpy as jnp
from jax import lax
from jax.experimental import pallas as pl
from jax.experimental.pallas import tpu as pltpu


def _convlstm_kernel(p_ref, w_ref, b_ref, wci_ref, wcf_ref, wco_ref, c_ref,
                     out_ref, *, Ch, precision):
    # One deep-contraction MXU matmul for all taps / channels / four gates:
    #   (4*Ch, KKC) @ (KKC, L) -> (4*Ch, L),  L = lane-chunk width (>=128).
    gates = jnp.dot(w_ref[...], p_ref[...],
                    preferred_element_type=jnp.float32,
                    precision=precision) + b_ref[...]          # bias: (4*Ch, 1)

    c_prev = c_ref[...].astype(jnp.float32)                    # (Ch, L)

    # Gate rows: [0:Ch]=i, [Ch:2Ch]=f, [2Ch:3Ch]=c, [3Ch:4Ch]=o.
    # All slices are sublane slices at multiples of 8 (Ch % 8 == 0); every
    # element-wise slab is fully lane-dense (last dim L >= 128), so sigmoid /
    # tanh hit the EUP at full lane utilization.
    ci = jax.nn.sigmoid(gates[0 * Ch:1 * Ch, :] + c_prev * wci_ref[...])
    cf = jax.nn.sigmoid(gates[1 * Ch:2 * Ch, :] + c_prev * wcf_ref[...])
    cc = cf * c_prev + ci * jnp.tanh(gates[2 * Ch:3 * Ch, :])
    co = jax.nn.sigmoid(gates[3 * Ch:4 * Ch, :] + cc * wco_ref[...])
    ch = co * jnp.tanh(cc)

    # Two unmasked, lane-dense sublane-slice stores (no lane-dim concat).
    out_ref[0:Ch, :] = ch.astype(out_ref.dtype)
    out_ref[Ch:2 * Ch, :] = cc.astype(out_ref.dtype)


def _pick_lane_chunks(total_lanes, kkc, itemsize):
    """Number of lane-chunks for the grid.

    At least 2 on v7x (2 TensorCores per chip), and enough chunks to keep each
    (KKC, chunk) patches block under ~8 MiB so double-buffering fits v7x's
    64 MiB VMEM with headroom.  Each chunk must be a multiple of 128 lanes.
    """
    try:
        kind = jax.devices()[0].device_kind.lower()
        n = 2 if "v7" in kind else 1
    except Exception:  # be defensive; 1 chunk is always legal
        n = 1

    def ok(m):
        return total_lanes % m == 0 and (total_lanes // m) % 128 == 0

    if not ok(n):
        n = 1
    budget = 8 << 20
    while ok(2 * n) and (total_lanes // n) * kkc * itemsize > budget:
        n *= 2
    return n


def convlstm_cell_forward(x, h, c, params, *, use_bf16=False):
    """ConvLSTMCell.forward.  x: (B,Cin,H,W); h,c: (B,Ch,H,W) -> (ch, cc) NCHW."""
    B, Cin, H, W = x.shape
    Ch = h.shape[1]
    K = params["wx"].shape[0]
    P = (K - 1) // 2
    HW = H * W
    L = B * HW                       # fused batch*spatial lane dim
    C = Cin + Ch
    KKC = K * K * C

    # ---- wrapper-side im2col (HW-on-lanes layout) --------------------------
    # NCHW -> NHWC, concat x|h on channels, zero-pad spatial ("same" conv).
    x_nhwc = jnp.transpose(x, (0, 2, 3, 1))
    h_nhwc = jnp.transpose(h, (0, 2, 3, 1))
    xh = jnp.concatenate([x_nhwc, h_nhwc], axis=-1)
    xh = jnp.pad(xh, ((0, 0), (P, P), (P, P), (0, 0)))
    # Taps ordered (dy, dx, channel) to match the fused-weight reshape below.
    taps = [xh[:, dy:dy + H, dx:dx + W, :]
            for dy in range(K) for dx in range(K)]
    patches = jnp.concatenate(taps, axis=-1).reshape(B, HW, KKC)
    # Lanes ordered [b0 pixels, b1 pixels, ...]: (KKC, B*HW).
    patches = jnp.transpose(patches, (2, 0, 1)).reshape(KKC, L)

    # Fused conv weight, transposed so gates come out with HW on lanes:
    # (K,K,Cin+Ch,4*Ch) -> (KKC, 4*Ch) -> (4*Ch, KKC).
    w_t = jnp.concatenate([params["wx"], params["wh"]],
                          axis=2).reshape(KKC, 4 * Ch).T
    bias = params["bias"].reshape(4 * Ch, 1)

    # Peephole weights (per-spatial, shared across batch) and cell state as
    # (channels, B*HW) slabs.
    def peep_rows(a):                                   # (Ch,H,W) -> (Ch, B*HW)
        return jnp.tile(a.reshape(Ch, HW), (1, B))
    wci = peep_rows(params["wci"])
    wcf = peep_rows(params["wcf"])
    wco = peep_rows(params["wco"])
    c_rows = jnp.transpose(c, (1, 0, 2, 3)).reshape(Ch, L)

    if use_bf16:
        # bf16 operands: ~3x less MXU time, half the patches DMA; relaxed parity.
        patches = patches.astype(jnp.bfloat16)
        w_t = w_t.astype(jnp.bfloat16)
        precision = None
    else:
        # Exact f32 parity with the reference (both sides use HIGHEST).
        precision = lax.Precision.HIGHEST

    n_chunks = _pick_lane_chunks(L, KKC, patches.dtype.itemsize)
    CHUNK = L // n_chunks

    kernel = functools.partial(_convlstm_kernel, Ch=Ch, precision=precision)
    bcast = lambda shape: pl.BlockSpec(shape, lambda i: (0, 0))       # shared
    lanes = lambda rows: pl.BlockSpec((rows, CHUNK), lambda i: (0, i))  # chunked

    out = pl.pallas_call(
        kernel,
        out_shape=jax.ShapeDtypeStruct((2 * Ch, L), x.dtype),
        grid_spec=pltpu.PrefetchScalarGridSpec(
            num_scalar_prefetch=0,
            grid=(n_chunks,),
            in_specs=[
                lanes(KKC),             # patches       (KKC, chunk)
                bcast((4 * Ch, KKC)),   # fused weightT (4*Ch, KKC)
                bcast((4 * Ch, 1)),     # bias (i|f|c|o)
                lanes(Ch),              # Wci           (Ch, chunk)
                lanes(Ch),              # Wcf
                lanes(Ch),              # Wco
                lanes(Ch),              # c_prev
            ],
            out_specs=lanes(2 * Ch),    # [ch rows | cc rows]  (2*Ch, chunk)
        ),
        compiler_params=pltpu.CompilerParams(
            dimension_semantics=("parallel",)),   # 2 chunks -> both v7x TCs
    )(patches, w_t, bias, wci, wcf, wco, c_rows)

    # (2*Ch, B*HW) -> ch, cc in NCHW.
    out = out.reshape(2 * Ch, B, H, W)
    ch_out = jnp.transpose(out[:Ch], (1, 0, 2, 3))
    cc_out = jnp.transpose(out[Ch:], (1, 0, 2, 3))
    return ch_out, cc_out


def make_params(key, Cin, Ch, K, H, W):
    """Deterministic synthetic parameters (HWIO conv weights, gates fused i|f|c|o)."""
    ks = jax.random.split(key, 12)
    s = 0.1
    wx = jnp.concatenate(
        [s * jax.random.normal(ks[i], (K, K, Cin, Ch), jnp.float32) for i in range(4)],
        axis=-1)                                           # (K,K,Cin,4*Ch)
    wh = jnp.concatenate(
        [s * jax.random.normal(ks[4 + i], (K, K, Ch, Ch), jnp.float32) for i in range(4)],
        axis=-1)                                           # (K,K,Ch,4*Ch)
    bias = jnp.concatenate(
        [s * jax.random.normal(ks[8 + i], (Ch,), jnp.float32) for i in range(4)])
    kp = jax.random.split(jax.random.fold_in(key, 123), 3)
    wci = s * jax.random.normal(kp[0], (Ch, H, W), jnp.float32)
    wcf = s * jax.random.normal(kp[1], (Ch, H, W), jnp.float32)
    wco = s * jax.random.normal(kp[2], (Ch, H, W), jnp.float32)
    return dict(wx=wx, wh=wh, bias=bias, wci=wci, wcf=wcf, wco=wco)


def _reference_forward(x, h, c, params, K):
    """Plain-JAX reference (lax.conv) of the exact PyTorch forward semantics."""
    P = (K - 1) // 2
    Ch = h.shape[1]
    dn = ("NCHW", "HWIO", "NCHW")

    def conv(inp, w_hwio):
        return lax.conv_general_dilated(inp, w_hwio, (1, 1), [(P, P), (P, P)],
                                        dimension_numbers=dn,
                                        precision=lax.Precision.HIGHEST)

    wx, wh, b = params["wx"], params["wh"], params["bias"]
    wci = params["wci"][None]      # (1, Ch, H, W)
    wcf = params["wcf"][None]
    wco = params["wco"][None]

    def gate(i):
        sl = slice(i * Ch, (i + 1) * Ch)
        return (conv(x, wx[..., sl]) + conv(h, wh[..., sl])
                + b[sl][None, :, None, None])

    ci = jax.nn.sigmoid(gate(0) + c * wci)
    cf = jax.nn.sigmoid(gate(1) + c * wcf)
    cc = cf * c + ci * jnp.tanh(gate(2))
    co = jax.nn.sigmoid(gate(3) + cc * wco)
    ch = co * jnp.tanh(cc)
    return ch, cc


if __name__ == "__main__":
    B, Cin, H, W = 2, 4, 16, 16
    Ch, K = 32, 3            # hidden_channels (even), kernel_size

    key = jax.random.PRNGKey(0)
    kx, kh, kc, kp = jax.random.split(key, 4)
    x = jax.random.normal(kx, (B, Cin, H, W), jnp.float32)
    h = jax.random.normal(kh, (B, Ch, H, W), jnp.float32)
    c = jax.random.normal(kc, (B, Ch, H, W), jnp.float32)
    params = make_params(kp, Cin, Ch, K, H, W)

    ch_out, cc_out = convlstm_cell_forward(x, h, c, params)
    jax.block_until_ready((ch_out, cc_out))

    ch_ref, cc_ref = _reference_forward(x, h, c, params, K)
    assert ch_out.shape == (B, Ch, H, W) and cc_out.shape == (B, Ch, H, W)
    assert jnp.allclose(ch_out, ch_ref, atol=1e-5, rtol=1e-5)
    assert jnp.allclose(cc_out, cc_ref, atol=1e-5, rtol=1e-5)

    print("KERNEL_OK")
</pallas_src>

<mosaic_0001>
module attributes {stable_mosaic.version = 11 : i64} {
  func.func @_convlstm_kernel(%arg0: i32, %arg1: memref<324x512xf32, #tpu.memory_space<vmem>>, %arg2: memref<128x324xf32, #tpu.memory_space<vmem>>, %arg3: memref<128x1xf32, #tpu.memory_space<vmem>>, %arg4: memref<32x512xf32, #tpu.memory_space<vmem>>, %arg5: memref<32x512xf32, #tpu.memory_space<vmem>>, %arg6: memref<32x512xf32, #tpu.memory_space<vmem>>, %arg7: memref<32x512xf32, #tpu.memory_space<vmem>>, %arg8: memref<64x512xf32, #tpu.memory_space<vmem>>) attributes {dimension_semantics = [#tpu.dimension_semantics<parallel>], iteration_bounds = array<i64: 1>, scalar_prefetch = 0 : i64, scratch_operands = 0 : i64, tpu.core_type = #tpu.core_type<tc>, window_params = [{transform_indices = @transform_0, window_bounds = array<i64: 324, 512>}, {pipeline_mode = #tpu.pipeline_mode<synchronous>, transform_indices = @transform_1, window_bounds = array<i64: 128, 324>}, {pipeline_mode = #tpu.pipeline_mode<synchronous>, transform_indices = @transform_2, window_bounds = array<i64: 128, 1>}, {transform_indices = @transform_3, window_bounds = array<i64: 32, 512>}, {transform_indices = @transform_4, window_bounds = array<i64: 32, 512>}, {transform_indices = @transform_5, window_bounds = array<i64: 32, 512>}, {transform_indices = @transform_6, window_bounds = array<i64: 32, 512>}, {transform_indices = @transform_7, window_bounds = array<i64: 64, 512>}]} {
    %c0 = arith.constant 0 : index
    %c0_0 = arith.constant 0 : index
    %0 = vector.load %arg2[%c0, %c0_0] : memref<128x324xf32, #tpu.memory_space<vmem>>, vector<128x324xf32>
    %c0_1 = arith.constant 0 : index
    %c0_2 = arith.constant 0 : index
    %1 = vector.load %arg1[%c0_1, %c0_2] : memref<324x512xf32, #tpu.memory_space<vmem>>, vector<324x512xf32>
    %cst = arith.constant dense<0.000000e+00> : vector<128x512xf32>
    %2 = tpu.matmul %0, %1, %cst {dimension_numbers = #tpu.dot_dimension_numbers<[1], [0], [0], [1], [0, 0, 1, 1], [], []>, precision = #tpu.contract_precision<fp32>} : vector<128x324xf32>, vector<324x512xf32>, vector<128x512xf32> -> vector<128x512xf32>
    %c0_3 = arith.constant 0 : index
    %c0_4 = arith.constant 0 : index
    %3 = vector.load %arg3[%c0_3, %c0_4] : memref<128x1xf32, #tpu.memory_space<vmem>>, vector<128x1xf32>
    %4 = vector.broadcast %3 : vector<128x1xf32> to vector<128x512xf32>
    %5 = arith.addf %2, %4 : vector<128x512xf32>
    %c0_5 = arith.constant 0 : index
    %c0_6 = arith.constant 0 : index
    %6 = vector.load %arg7[%c0_5, %c0_6] : memref<32x512xf32, #tpu.memory_space<vmem>>, vector<32x512xf32>
    %7 = vector.extract_strided_slice %5 {offsets = [0, 0], sizes = [32, 512], strides = [1, 1]} : vector<128x512xf32> to vector<32x512xf32>
    %c0_7 = arith.constant 0 : index
    %c0_8 = arith.constant 0 : index
    %8 = vector.load %arg4[%c0_7, %c0_8] : memref<32x512xf32, #tpu.memory_space<vmem>>, vector<32x512xf32>
    %9 = arith.mulf %6, %8 : vector<32x512xf32>
    %10 = arith.addf %7, %9 : vector<32x512xf32>
    %11 = arith.negf %10 : vector<32x512xf32>
    %12 = math.exp %11 : vector<32x512xf32>
    %cst_9 = arith.constant 1.000000e+00 : f32
    %13 = vector.broadcast %cst_9 : f32 to vector<32x512xf32>
    %14 = arith.addf %13, %12 : vector<32x512xf32>
    %15 = arith.divf %13, %14 : vector<32x512xf32>
    %16 = vector.extract_strided_slice %5 {offsets = [32, 0], sizes = [32, 512], strides = [1, 1]} : vector<128x512xf32> to vector<32x512xf32>
    %c0_10 = arith.constant 0 : index
    %c0_11 = arith.constant 0 : index
    %17 = vector.load %arg5[%c0_10, %c0_11] : memref<32x512xf32, #tpu.memory_space<vmem>>, vector<32x512xf32>
    %18 = arith.mulf %6, %17 : vector<32x512xf32>
    %19 = arith.addf %16, %18 : vector<32x512xf32>
    %20 = arith.negf %19 : vector<32x512xf32>
    %21 = math.exp %20 : vector<32x512xf32>
    %cst_12 = arith.constant 1.000000e+00 : f32
    %22 = vector.broadcast %cst_12 : f32 to vector<32x512xf32>
    %23 = arith.addf %22, %21 : vector<32x512xf32>
    %24 = arith.divf %22, %23 : vector<32x512xf32>
    %25 = arith.mulf %24, %6 : vector<32x512xf32>
    %26 = vector.extract_strided_slice %5 {offsets = [64, 0], sizes = [32, 512], strides = [1, 1]} : vector<128x512xf32> to vector<32x512xf32>
    %27 = math.tanh %26 : vector<32x512xf32>
    %28 = arith.mulf %15, %27 : vector<32x512xf32>
    %29 = arith.addf %25, %28 : vector<32x512xf32>
    %30 = vector.extract_strided_slice %5 {offsets = [96, 0], sizes = [32, 512], strides = [1, 1]} : vector<128x512xf32> to vector<32x512xf32>
    %c0_13 = arith.constant 0 : index
    %c0_14 = arith.constant 0 : index
    %31 = vector.load %arg6[%c0_13, %c0_14] : memref<32x512xf32, #tpu.memory_space<vmem>>, vector<32x512xf32>
    %32 = arith.mulf %29, %31 : vector<32x512xf32>
    %33 = arith.addf %30, %32 : vector<32x512xf32>
    %34 = arith.negf %33 : vector<32x512xf32>
    %35 = math.exp %34 : vector<32x512xf32>
    %cst_15 = arith.constant 1.000000e+00 : f32
    %36 = vector.broadcast %cst_15 : f32 to vector<32x512xf32>
    %37 = arith.addf %36, %35 : vector<32x512xf32>
    %38 = arith.divf %36, %37 : vector<32x512xf32>
    %39 = math.tanh %29 : vector<32x512xf32>
    %40 = arith.mulf %38, %39 : vector<32x512xf32>
    %c0_16 = arith.constant 0 : index
    %c0_17 = arith.constant 0 : index
    %41 = vector.load %arg8[%c0_16, %c0_17] : memref<64x512xf32, #tpu.memory_space<vmem>>, vector<32x512xf32>
    tpu.vector_store %arg8[%c0_16, %c0_17], %40 {strides = array<i32>} : memref<64x512xf32, #tpu.memory_space<vmem>>, vector<32x512xf32>,
    %c32 = arith.constant 32 : index
    %c0_18 = arith.constant 0 : index
    %42 = vector.load %arg8[%c32, %c0_18] : memref<64x512xf32, #tpu.memory_space<vmem>>, vector<32x512xf32>
    tpu.vector_store %arg8[%c32, %c0_18], %29 {strides = array<i32>} : memref<64x512xf32, #tpu.memory_space<vmem>>, vector<32x512xf32>,
    return
  }
  func.func @transform_0(%arg0: i32) -> (i32, i32) {
    %c0_i32 = arith.constant 0 : i32
    %c0_i32_0 = arith.constant 0 : i32
    return %c0_i32, %arg0 : i32, i32
  }
  func.func @transform_1(%arg0: i32) -> (i32, i32) {
    %c0_i32 = arith.constant 0 : i32
    %c0_i32_0 = arith.constant 0 : i32
    %c0_i32_1 = arith.constant 0 : i32
    return %c0_i32, %c0_i32_0 : i32, i32
  }
  func.func @transform_2(%arg0: i32) -> (i32, i32) {
    %c0_i32 = arith.constant 0 : i32
    %c0_i32_0 = arith.constant 0 : i32
    %c0_i32_1 = arith.constant 0 : i32
    return %c0_i32, %c0_i32_0 : i32, i32
  }
  func.func @transform_3(%arg0: i32) -> (i32, i32) {
    %c0_i32 = arith.constant 0 : i32
    %c0_i32_0 = arith.constant 0 : i32
    return %c0_i32, %arg0 : i32, i32
  }
  func.func @transform_4(%arg0: i32) -> (i32, i32) {
    %c0_i32 = arith.constant 0 : i32
    %c0_i32_0 = arith.constant 0 : i32
    return %c0_i32, %arg0 : i32, i32
  }
  func.func @transform_5(%arg0: i32) -> (i32, i32) {
    %c0_i32 = arith.constant 0 : i32
    %c0_i32_0 = arith.constant 0 : i32
    return %c0_i32, %arg0 : i32, i32
  }
  func.func @transform_6(%arg0: i32) -> (i32, i32) {
    %c0_i32 = arith.constant 0 : i32
    %c0_i32_0 = arith.constant 0 : i32
    return %c0_i32, %arg0 : i32, i32
  }
  func.func @transform_7(%arg0: i32) -> (i32, i32) {
    %c0_i32 = arith.constant 0 : i32
    %c0_i32_0 = arith.constant 0 : i32
    return %c0_i32, %arg0 : i32, i32
  }
}

</mosaic_0001>

<bundles_post_ra>
// kernel: tpu_custom_call.1
= control target key start
LH: loop header
LB: loop body
LE: loop exit
PB: predicated region body
PF: predicated region fallthrough
CT: control target
= control target key end

     0   :  { %12 = vsyncpa [#allocation3], 0  ;;  %s14672_s0 = inlined_call_operand.hbm [shape: f32[324,512], index: 0, kind: input, shape index: {}]   ;;  %s14673_s1 = inlined_call_operand.vmem [shape: f32[128,324], index: 1, kind: input, shape index: {}]   ;;  %s14674_s2 = inlined_call_operand.vmem [shape: f32[128,1], index: 2, kind: input, shape index: {}]   ;;  %s14675_s3 = inlined_call_operand.vmem [shape: f32[32,512], index: 3, kind: input, shape index: {}]   ;;  %s14676_s4 = inlined_call_operand.vmem [shape: f32[32,512], index: 4, kind: input, shape index: {}]   ;;  %s14677_s5 = inlined_call_operand.vmem [shape: f32[32,512], index: 5, kind: input, shape index: {}]   ;;  %s14678_s6 = inlined_call_operand.vmem [shape: f32[32,512], index: 6, kind: input, shape index: {}]   ;;  %s14679_s7 = inlined_call_operand.hbm [shape: f32[64,512], index: 7, kind: output, shape index: {}]  }
   0x1   :  { %13 = vsyncpa [#allocation4], 0  ;;  %s10336_s24 = smov [#allocation2]   ;;  %s10288_s28 = scalar_lea.hbm %s14672_s0, 20992 }
   0x2   :  { %s19_s25 = sshll.u32 %s10336_s24, 4  ;;  %p10289_p0 = scmp.ne.s32.totalorder %s14672_s0, %s10288_s28  ;;  %s20_s25 = int_to_ptr.vmem [resolvable:$true] %s19_s25 }
   0x3   :  { %p10292_p1 = scmp.lt.u32.totalorder %s10288_s28, %s14672_s0 }
   0x5   :  { %p10294_p2 = pnand %p10292_p1, %p10289_p0 }
   0x7   :  { %10297 = shalt.err (!%p10294_p2)
}
   0x8   :  { %s10298_s10 = scalar_lea.vmem %s20_s25, 20992  ;;  %p10303_p4 = scmp.lt.s32.totalorder %s20_s25, %s20_s25 }
   0x9   :  { %p10299_p3 = scmp.ne.s32.totalorder %s20_s25, %s10298_s10  ;;  %p10304_p5 = scmp.lt.s32.totalorder %s10298_s10, %s10298_s10 }
   0xb   :  { %p10305_p6 = por %p10304_p5, %p10303_p4 }
   0xd   :  { %p10306_p7 = pnand %p10305_p6, %p10299_p3 }
   0xf   :  { %10309 = shalt.err (!%p10306_p7)
}
  0x10   :  { %s10337_s11 = smov 512   ;;  %s10338_s12 = smov 32  }
  0x11   :  { %25 = dma.hbm_to_vmem [thread:$0]  %s14672_s0, 20992, %s20_s25, [#allocation3], %s10337_s11, %s10337_s11, %s10338_s12  }
  0x12   :  { %10332 = dma.done.wait [#allocation3], 20992  }
  0x13   :  { %10333 = vsyncadd [#allocation3], 4294946304  ;;  %v90_v0 = vld [vmem:[#allocation2 + $0x8] sm:$0xff]  ;;  %v92_v2 = vld [vmem:[#allocation2 + $0x18] sm:$0xff]  ;;  %vm398_vm0 = vcmask 1043456   ;;  %vm349_vm1 = vcmask 556032  }
  0x14   :  { %v94_v1 = vld [vmem:[#allocation2 + $0x28] sm:$0xff]  ;;  %v411_v3 = vand.u32 4294901760, %v90_v0  ;;  %v96_v5 = vld [vmem:[#allocation2 + $0x38] sm:$0xff]  ;;  %v4033_v6 = vand.u32 4294901760, %v92_v2  ;;  %v89_v7 = vld [vmem:[#allocation2] sm:$0xff] }
  0x15   :  { %v415_v4 = vand.u32 4294901760, %v94_v1  ;;  %v93_v8 = vld [vmem:[#allocation2 + $0x20] sm:$0xff]  ;;  %v4037_v9 = vand.u32 4294901760, %v96_v5  ;;  %v413_v10 = vand.u32 4294901760, %v89_v7  ;;  %v91_v12 = vld [vmem:[#allocation2 + $0x10] sm:$0xff]  ;;  %v98_v14 = vld [vmem:[#allocation2 + $0x48] sm:$0xff] }
  0x16   :  { %v417_v11 = vand.u32 4294901760, %v93_v8  ;;  %v95_v13 = vld [vmem:[#allocation2 + $0x30] sm:$0xff]  ;;  %v10399_v16 = vsub.f32 %v90_v0, %v411_v3  ;;  %v10403_v18 = vsub.f32 %v92_v2, %v4033_v6  ;;  %v102_v19 = vld [vmem:[#allocation2 + $0x68] sm:$0xff]  ;;  %v100_v20 = vld [vmem:[#allocation2 + $0x58] sm:$0xff]  ;;  %v4035_v28 = vand.u32 4294901760, %v91_v12 }
  0x17   :  { %v10397_v15 = vpack.c.bf16 %v415_v4, %v411_v3  ;;  %v10401_v17 = vsub.f32 %v94_v1, %v415_v4  ;;  %v104_v21 = vld [vmem:[#allocation2 + $0x78] sm:$0xff]  ;;  %v10405_v22 = vpack.c.bf16 %v4037_v9, %v4033_v6  ;;  %v10407_v23 = vsub.f32 %v96_v5, %v4037_v9  ;;  %v97_v26 = vld [vmem:[#allocation2 + $0x40] sm:$0xff]  ;;  %v99_v36 = vld [vmem:[#allocation2 + $0x50] sm:$0xff] }
  0x18   :  { %15520 = vst [vmem:[#allocation10_spill] sm:$0xff] %v10403_v18  ;;  %v10409_v24 = vpack.c.bf16 %v417_v11, %v413_v10  ;;  %v10411_v25 = vsub.f32 %v89_v7, %v413_v10  ;;  %v10414_v27 = vsub.f32 %v93_v8, %v417_v11  ;;  %v4039_v29 = vand.u32 4294901760, %v95_v13  ;;  %v101_v31 = vld [vmem:[#allocation2 + $0x60] sm:$0xff]  ;;  %v103_v37 = vld [vmem:[#allocation2 + $0x70] sm:$0xff]  ;;  %v106_v42 = vld [vmem:[#allocation2 + $0x88] sm:$0xff] }
  0x19   :  { %15518 = vst [vmem:[#allocation8_spill] sm:$0xff] %v10397_v15  ;;  %15519 = vst [vmem:[#allocation9_spill] sm:$0xff] %v10401_v17  ;;  %8297 = vmatprep.subr.bf16.mxu0 %v10397_v15  ;;  %v419_v30 = vand.u32 4294901760, %v98_v14  ;;  %8777 = vmatprep.subr.bf16.mxu1 %v10405_v22  ;;  %v423_v32 = vand.u32 4294901760, %v102_v19  ;;  %v4041_v33 = vand.u32 4294901760, %v100_v20  ;;  %v4045_v34 = vand.u32 4294901760, %v104_v21 }
  0x1a   :  { %15521 = vst [vmem:[#allocation11_spill] sm:$0xff] %v10405_v22  ;;  %15522 = vst [vmem:[#allocation12_spill] sm:$0xff] %v10407_v23  ;;  %8299 = vmatpush1.bf16.msra.mxu0 %v10409_v24  ;;  %v421_v35 = vand.u32 4294901760, %v97_v26  ;;  %v10418_v38 = vpack.c.bf16 %v4039_v29, %v4035_v28  ;;  %v10420_v39 = vsub.f32 %v91_v12, %v4035_v28  ;;  %v110_v43 = vld [vmem:[#allocation2 + $0xa8] sm:$0xff]  ;;  %v108_v44 = vld [vmem:[#allocation2 + $0x98] sm:$0xff]  ;;  %v425_v51 = vand.u32 4294901760, %v101_v31 }
  0x1b   :  { %15523 = vst [vmem:[#allocation13_spill] sm:$0xff] %v10409_v24  ;;  %15524 = vst [vmem:[#allocation14_spill] sm:$0xff] %v10411_v25  ;;  %v10422_v40 = vsub.f32 %v95_v13, %v4039_v29  ;;  %v10424_v41 = vsub.f32 %v98_v14, %v419_v30  ;;  %v10426_v45 = vpack.c.bf16 %v423_v32, %v419_v30  ;;  %v112_v49 = vld [vmem:[#allocation2 + $0xb8] sm:$0xff]  ;;  %v4043_v53 = vand.u32 4294901760, %v99_v36  ;;  %v105_v58 = vld [vmem:[#allocation2 + $0x80] sm:$0xff] }
  0x1c   :  { %15525 = vst [vmem:[#allocation15_spill] sm:$0xff] %v10414_v27  ;;  %15526 = vst [vmem:[#allocation16_spill] sm:$0xff] %v10418_v38  ;;  %v10428_v46 = vsub.f32 %v102_v19, %v423_v32  ;;  %v10430_v47 = vpack.c.bf16 %v4045_v34, %v4041_v33  ;;  %v10432_v48 = vsub.f32 %v100_v20, %v4041_v33  ;;  %8779 = vmatpush1.bf16.msra.mxu1 %v10418_v38  ;;  %v109_v59 = vld [vmem:[#allocation2 + $0xa0] sm:$0xff]  ;;  %v107_v0 = vld [vmem:[#allocation2 + $0x90] sm:$0xff] }
  0x1d   :  { %15527 = vst [vmem:[#allocation17_spill] sm:$0xff] %v10420_v39  ;;  %15528 = vst [vmem:[#allocation18_spill] sm:$0xff] %v10422_v40  ;;  %v10435_v50 = vsub.f32 %v104_v21, %v4045_v34  ;;  %v10437_v52 = vsub.f32 %v97_v26, %v421_v35  ;;  %8301 = vmatprep.subr.bf16.mxu0 %v10426_v45  ;;  %v4047_v54 = vand.u32 4294901760, %v103_v37  ;;  %v427_v55 = vand.u32 4294901760, %v106_v42  ;;  %v111_v1 = vld [vmem:[#allocation2 + $0xb0] sm:$0xff]  ;;  %v114_v2 = vld [vmem:[#allocation2 + $0xc8] sm:$0xff] }
  0x1e   :  { %15529 = vst [vmem:[#allocation19_spill] sm:$0xff] %v10424_v41  ;;  %15530 = vst [vmem:[#allocation20_spill] sm:$0xff] %v10426_v45  ;;  %8781 = vmatprep.subr.bf16.mxu1 %v10430_v47  ;;  %v431_v56 = vand.u32 4294901760, %v110_v43  ;;  %v4049_v57 = vand.u32 4294901760, %v108_v44  ;;  %v10441_v60 = vpack.c.bf16 %v425_v51, %v421_v35  ;;  %v10443_v61 = vsub.f32 %v101_v31, %v425_v51  ;;  %v118_v7 = vld [vmem:[#allocation2 + $0xe8] sm:$0xff]  ;;  %v116_v8 = vld [vmem:[#allocation2 + $0xd8] sm:$0xff] }
  0x1f   :  { %15531 = vst [vmem:[#allocation21_spill] sm:$0xff] %v10428_v46  ;;  %15532 = vst [vmem:[#allocation22_spill] sm:$0xff] %v10430_v47  ;;  %v10445_v62 = vsub.f32 %v99_v36, %v4043_v53  ;;  %v4053_v63 = vand.u32 4294901760, %v112_v49  ;;  %v10447_v3 = vpack.c.bf16 %v4047_v54, %v4043_v53  ;;  %v10449_v4 = vsub.f32 %v103_v37, %v4047_v54  ;;  %v120_v9 = vld [vmem:[#allocation2 + $0xf8] sm:$0xff]  ;;  %v113_v31 = vld [vmem:[#allocation2 + $0xc0] sm:$0xff] }
  0x20   :  { %15533 = vst [vmem:[#allocation23_spill] sm:$0xff] %v10432_v48  ;;  %15534 = vst [vmem:[#allocation24_spill] sm:$0xff] %v10435_v50  ;;  %v10451_v5 = vpack.c.bf16 %v431_v56, %v427_v55  ;;  %v10453_v6 = vsub.f32 %v106_v42, %v427_v55  ;;  %8303 = vmatpush1.bf16.msra.mxu0 %v10441_v60  ;;  %v10456_v10 = vsub.f32 %v110_v43, %v431_v56  ;;  %v117_v36 = vld [vmem:[#allocation2 + $0xe0] sm:$0xff]  ;;  %v115_v37 = vld [vmem:[#allocation2 + $0xd0] sm:$0xff] }
  0x21   :  { %15535 = vst [vmem:[#allocation25_spill] sm:$0xff] %v10437_v52  ;;  %15536 = vst [vmem:[#allocation26_spill] sm:$0xff] %v10441_v60  ;;  %v10458_v11 = vpack.c.bf16 %v4053_v63, %v4049_v57  ;;  %v10460_v12 = vsub.f32 %v108_v44, %v4049_v57  ;;  %v10462_v13 = vsub.f32 %v112_v49, %v4053_v63  ;;  %8783 = vmatpush1.bf16.msra.mxu1 %v10447_v3  ;;  %v119_v42 = vld [vmem:[#allocation2 + $0xf0] sm:$0xff]  ;;  %v122_v53 = vld [vmem:[#allocation2 + $0x108] sm:$0xff] }
  0x22   :  { %15537 = vst [vmem:[#allocation27_spill] sm:$0xff] %v10443_v61  ;;  %15538 = vst [vmem:[#allocation28_spill] sm:$0xff] %v10445_v62  ;;  %8305 = vmatprep.subr.bf16.mxu0 %v10451_v5  ;;  %v429_v14 = vand.u32 4294901760, %v105_v58  ;;  %v433_v19 = vand.u32 4294901760, %v109_v59  ;;  %v4051_v20 = vand.u32 4294901760, %v107_v0  ;;  %v4055_v21 = vand.u32 4294901760, %v111_v1 }
  0x23   :  { %15539 = vst [vmem:[#allocation29_spill] sm:$0xff] %v10447_v3  ;;  %15540 = vst [vmem:[#allocation30_spill] sm:$0xff] %v10449_v4  ;;  %8785 = vmatprep.subr.bf16.mxu1 %v10458_v11  ;;  %v435_v26 = vand.u32 4294901760, %v114_v2  ;;  %v439_v28 = vand.u32 4294901760, %v118_v7  ;;  %v4057_v29 = vand.u32 4294901760, %v116_v8  ;;  %v4061_v30 = vand.u32 4294901760, %v120_v9 }
  0x24   :  { %15541 = vst [vmem:[#allocation31_spill] sm:$0xff] %v10451_v5  ;;  %15542 = vst [vmem:[#allocation32_spill] sm:$0xff] %v10453_v6  ;;  %v10467_v32 = vpack.c.bf16 %v433_v19, %v429_v14  ;;  %v10469_v33 = vsub.f32 %v105_v58, %v429_v14  ;;  %v10471_v34 = vsub.f32 %v109_v59, %v433_v19  ;;  %v126_v54 = vld [vmem:[#allocation2 + $0x128] sm:$0xff]  ;;  %v124_v55 = vld [vmem:[#allocation2 + $0x118] sm:$0xff]  ;;  %v437_v59 = vand.u32 4294901760, %v113_v31 }
  0x25   :  { %15543 = vst [vmem:[#allocation33_spill] sm:$0xff] %v10456_v10  ;;  %15544 = vst [vmem:[#allocation34_spill] sm:$0xff] %v10458_v11  ;;  %v10473_v35 = vpack.c.bf16 %v4055_v21, %v4051_v20  ;;  %v10475_v43 = vsub.f32 %v107_v0, %v4051_v20  ;;  %v10477_v44 = vsub.f32 %v111_v1, %v4055_v21  ;;  %v441_v0 = vand.u32 4294901760, %v117_v36  ;;  %v128_v14 = vld [vmem:[#allocation2 + $0x138] sm:$0xff]  ;;  %v134_v11 = vld [vmem:[#allocation2 + $0x168] sm:$0xff] }
  0x26   :  { %15545 = vst [vmem:[#allocation35_spill] sm:$0xff] %v10460_v12  ;;  %15546 = vst [vmem:[#allocation36_spill] sm:$0xff] %v10462_v13  ;;  %v10479_v49 = vpack.c.bf16 %v439_v28, %v435_v26  ;;  %v10481_v51 = vsub.f32 %v114_v2, %v435_v26  ;;  %8307 = vmatpush1.bf16.msra.mxu0 %v10467_v32  ;;  %v10485_v56 = vsub.f32 %v118_v7, %v439_v28  ;;  %v121_v26 = vld [vmem:[#allocation2 + $0x100] sm:$0xff]  ;;  %v132_v47 = vld [vmem:[#allocation2 + $0x158] sm:$0xff] }
  0x27   :  { %15547 = vst [vmem:[#allocation37_spill] sm:$0xff] %v10467_v32  ;;  %15548 = vst [vmem:[#allocation38_spill] sm:$0xff] %v10469_v33  ;;  %8787 = vmatpush1.bf16.msra.mxu1 %v10473_v35  ;;  %v10487_v57 = vpack.c.bf16 %v4061_v30, %v4057_v29  ;;  %v10489_v58 = vsub.f32 %v116_v8, %v4057_v29  ;;  %v10492_v63 = vsub.f32 %v120_v9, %v4061_v30  ;;  %v125_v28 = vld [vmem:[#allocation2 + $0x120] sm:$0xff]  ;;  %v123_v8 = vld [vmem:[#allocation2 + $0x110] sm:$0xff] }
  0x28   :  { %15549 = vst [vmem:[#allocation39_spill] sm:$0xff] %v10471_v34  ;;  %15550 = vst [vmem:[#allocation40_spill] sm:$0xff] %v10473_v35  ;;  %8309 = vmatprep.subr.bf16.mxu0 %v10479_v49  ;;  %v4059_v1 = vand.u32 4294901760, %v115_v37  ;;  %v4063_v2 = vand.u32 4294901760, %v119_v42  ;;  %v10495_v19 = vsub.f32 %v113_v31, %v437_v59  ;;  %v443_v20 = vand.u32 4294901760, %v122_v53  ;;  %v130_v32 = vld [vmem:[#allocation2 + $0x148] sm:$0xff] }
  0x29   :  { %15551 = vst [vmem:[#allocation41_spill] sm:$0xff] %v10475_v43  ;;  %15552 = vst [vmem:[#allocation42_spill] sm:$0xff] %v10477_v44  ;;  %8789 = vmatprep.subr.bf16.mxu1 %v10487_v57  ;;  %v447_v7 = vand.u32 4294901760, %v126_v54  ;;  %v4065_v21 = vand.u32 4294901760, %v124_v55  ;;  %v10497_v29 = vpack.c.bf16 %v441_v0, %v437_v59  ;;  %v10499_v35 = vsub.f32 %v117_v36, %v441_v0  ;;  %v131_v45 = vld [vmem:[#allocation2 + $0x150] sm:$0xff] }
  0x2a   :  { %15553 = vst [vmem:[#allocation43_spill] sm:$0xff] %v10479_v49  ;;  %15554 = vst [vmem:[#allocation44_spill] sm:$0xff] %v10481_v51  ;;  %v10501_v9 = vpack.c.bf16 %v4063_v2, %v4059_v1  ;;  %v10503_v30 = vsub.f32 %v115_v37, %v4059_v1  ;;  %v127_v49 = vld [vmem:[#allocation2 + $0x130] sm:$0xff]  ;;  %v10509_v5 = vsub.f32 %v122_v53, %v443_v20  ;;  %v4069_v36 = vand.u32 4294901760, %v128_v14  ;;  %v136_v53 = vld [vmem:[#allocation2 + $0x178] sm:$0xff] }
  0x2b   :  { %15555 = vst [vmem:[#allocation45_spill] sm:$0xff] %v10485_v56  ;;  %15556 = vst [vmem:[#allocation46_spill] sm:$0xff] %v10487_v57  ;;  %v10505_v57 = vsub.f32 %v119_v42, %v4063_v2  ;;  %v10507_v31 = vpack.c.bf16 %v447_v7, %v443_v20  ;;  %v10511_v3 = vsub.f32 %v126_v54, %v447_v7  ;;  %8311 = vmatpush1.bf16.msra.mxu0 %v10497_v29  ;;  %v135_v15 = vld [vmem:[#allocation2 + $0x170] sm:$0xff] }
  0x2c   :  { %15557 = vst [vmem:[#allocation47_spill] sm:$0xff] %v10489_v58  ;;  %15558 = vst [vmem:[#allocation48_spill] sm:$0xff] %v10492_v63  ;;  %8791 = vmatpush1.bf16.msra.mxu1 %v10501_v9  ;;  %v10515_v59 = vsub.f32 %v124_v55, %v4065_v21  ;;  %v445_v37 = vand.u32 4294901760, %v121_v26  ;;  %v449_v0 = vand.u32 4294901760, %v125_v28  ;;  %v4067_v1 = vand.u32 4294901760, %v123_v8  ;;  %v129_v55 = vld [vmem:[#allocation2 + $0x140] sm:$0xff] }
  0x2d   :  { %15559 = vst [vmem:[#allocation49_spill] sm:$0xff] %v10495_v19  ;;  %15560 = vst [vmem:[#allocation50_spill] sm:$0xff] %v10497_v29  ;;  %8313 = vmatprep.subr.bf16.mxu0 %v10507_v31  ;;  %v4071_v42 = vand.u32 4294901760, %v127_v49  ;;  %v451_v2 = vand.u32 4294901760, %v130_v32  ;;  %v455_v60 = vand.u32 4294901760, %v134_v11  ;;  %v10518_v20 = vpack.c.bf16 %v4069_v36, %v4065_v21  ;;  %v133_v29 = vld [vmem:[#allocation2 + $0x160] sm:$0xff] }
  0x2e   :  { %15561 = vst [vmem:[#allocation51_spill] sm:$0xff] %v10499_v35  ;;  %15562 = vst [vmem:[#allocation52_spill] sm:$0xff] %v10501_v9  ;;  %v10520_v54 = vsub.f32 %v128_v14, %v4069_v36  ;;  %v10522_v7 = vpack.c.bf16 %v449_v0, %v445_v37  ;;  %v10524_v9 = vsub.f32 %v121_v26, %v445_v37  ;;  %v138_v21 = vld [vmem:[#allocation2 + $0x188] sm:$0xff]  ;;  %v453_v37 = vand.u32 4294901760, %v129_v55 }
  0x2f   :  { %15563 = vst [vmem:[#allocation53_spill] sm:$0xff] %v10503_v30  ;;  %15564 = vst [vmem:[#allocation54_spill] sm:$0xff] %v10505_v57  ;;  %v10526_v38 = vsub.f32 %v125_v28, %v449_v0  ;;  %v10530_v24 = vsub.f32 %v123_v8, %v4067_v1  ;;  %v10532_v22 = vsub.f32 %v127_v49, %v4071_v42  ;;  %8793 = vmatprep.subr.bf16.mxu1 %v10518_v20 }
  0x30   :  { %15565 = vst [vmem:[#allocation55_spill] sm:$0xff] %v10507_v31  ;;  %15566 = vst [vmem:[#allocation56_spill] sm:$0xff] %v10509_v5  ;;  %v10528_v31 = vpack.c.bf16 %v4071_v42, %v4067_v1  ;;  %8315 = vmatpush1.bf16.msra.mxu0 %v10522_v7  ;;  %v10536_v14 = vpack.c.bf16 %v455_v60, %v451_v2  ;;  %v10538_v26 = vsub.f32 %v130_v32, %v451_v2 }
  0x31   :  { %15567 = vst [vmem:[#allocation57_spill] sm:$0xff] %v10511_v3  ;;  %15568 = vst [vmem:[#allocation58_spill] sm:$0xff] %v10515_v59  ;;  %v142_v59 = vld [vmem:[#allocation2 + $0x1a8] sm:$0xff]  ;;  %v10540_v36 = vsub.f32 %v134_v11, %v455_v60  ;;  %v4073_v28 = vand.u32 4294901760, %v132_v47  ;;  %v4077_v8 = vand.u32 4294901760, %v136_v53  ;;  %v457_v49 = vand.u32 4294901760, %v133_v29 }
  0x32   :  { %15569 = vst [vmem:[#allocation59_spill] sm:$0xff] %v10518_v20  ;;  %15570 = vst [vmem:[#allocation60_spill] sm:$0xff] %v10520_v54  ;;  %8795 = vmatpush1.bf16.msra.mxu1 %v10528_v31  ;;  %v4075_v0 = vand.u32 4294901760, %v131_v45  ;;  %8317 = vmatprep.subr.bf16.mxu0 %v10536_v14  ;;  %v4079_v42 = vand.u32 4294901760, %v135_v15  ;;  %v459_v20 = vand.u32 4294901760, %v138_v21  ;;  %v10552_v2 = vsub.f32 %v129_v55, %v453_v37  ;;  %v150_v54 = vld [vmem:[#allocation2 + $0x1e8] sm:$0xff] }
  0x33   :  { %15571 = vst [vmem:[#allocation61_spill] sm:$0xff] %v10522_v7  ;;  %15572 = vst [vmem:[#allocation62_spill] sm:$0xff] %v10524_v9  ;;  %v10544_v1 = vsub.f32 %v132_v47, %v4073_v28  ;;  %v463_v7 = vand.u32 4294901760, %v142_v59  ;;  %v10546_v32 = vpack.c.bf16 %v4077_v8, %v4073_v28  ;;  %v10548_v60 = vsub.f32 %v136_v53, %v4077_v8  ;;  %v143_v9 = vld [vmem:[#allocation2 + $0x1b0] sm:$0xff]  ;;  %v146_v28 = vld [vmem:[#allocation2 + $0x1c8] sm:$0xff] }
  0x34   :  { %15573 = vst [vmem:[#allocation63_spill] sm:$0xff] %v10526_v38  ;;  %15574 = vst [vmem:[#allocation64_spill] sm:$0xff] %v10528_v31  ;;  %v10550_v11 = vpack.c.bf16 %v457_v49, %v453_v37  ;;  %v137_v31 = vld [vmem:[#allocation2 + $0x180] sm:$0xff]  ;;  %v10554_v38 = vsub.f32 %v133_v29, %v457_v49  ;;  %v10556_v47 = vpack.c.bf16 %v4079_v42, %v4075_v0 }
  0x35   :  { %15575 = vst [vmem:[#allocation65_spill] sm:$0xff] %v10530_v24  ;;  %15576 = vst [vmem:[#allocation66_spill] sm:$0xff] %v10532_v22  ;;  %v140_v22 = vld [vmem:[#allocation2 + $0x198] sm:$0xff]  ;;  %8797 = vmatprep.subr.bf16.mxu1 %v10546_v32  ;;  %v10564_v53 = vpack.c.bf16 %v463_v7, %v459_v20  ;;  %v10566_v55 = vsub.f32 %v138_v21, %v459_v20  ;;  %v10568_v8 = vsub.f32 %v142_v59, %v463_v7 }
  0x36   :  { %15577 = vst [vmem:[#allocation67_spill] sm:$0xff] %v10536_v14  ;;  %15578 = vst [vmem:[#allocation68_spill] sm:$0xff] %v10538_v26  ;;  %v144_v24 = vld [vmem:[#allocation2 + $0x1b8] sm:$0xff]  ;;  %v139_v26 = vld [vmem:[#allocation2 + $0x190] sm:$0xff]  ;;  %v10558_v14 = vsub.f32 %v131_v45, %v4075_v0  ;;  %8319 = vmatpush1.bf16.msra.mxu0 %v10550_v11  ;;  %v4081_v29 = vand.u32 4294901760, %v140_v22  ;;  %8799 = vmatpush1.bf16.msra.mxu1 %v10556_v47  ;;  %v461_v37 = vand.u32 4294901760, %v137_v31 }
  0x37   :  { %15579 = vst [vmem:[#allocation69_spill] sm:$0xff] %v10540_v36  ;;  %15580 = vst [vmem:[#allocation70_spill] sm:$0xff] %v10544_v1  ;;  %v141_v36 = vld [vmem:[#allocation2 + $0x1a0] sm:$0xff]  ;;  %v10560_v1 = vsub.f32 %v135_v15, %v4079_v42  ;;  %v4085_v45 = vand.u32 4294901760, %v144_v24  ;;  %v4083_v49 = vand.u32 4294901760, %v139_v26  ;;  %8321 = vmatprep.subr.bf16.mxu0 %v10564_v53  ;;  %v4087_v42 = vand.u32 4294901760, %v143_v9 }
  0x38   :  { %15581 = vst [vmem:[#allocation71_spill] sm:$0xff] %v10546_v32  ;;  %15582 = vst [vmem:[#allocation72_spill] sm:$0xff] %v10548_v60  ;;  %v465_v15 = vand.u32 4294901760, %v141_v36  ;;  %v10572_v0 = vsub.f32 %v140_v22, %v4081_v29  ;;  %v467_v32 = vand.u32 4294901760, %v146_v28  ;;  %v10580_v21 = vsub.f32 %v137_v31, %v461_v37  ;;  %v158_v60 = vld [vmem:[#allocation2 + $0x228] sm:$0xff] }
  0x39   :  { %15583 = vst [vmem:[#allocation73_spill] sm:$0xff] %v10550_v11  ;;  %15584 = vst [vmem:[#allocation74_spill] sm:$0xff] %v10552_v2  ;;  %v471_v11 = vand.u32 4294901760, %v150_v54  ;;  %v10574_v20 = vpack.c.bf16 %v4085_v45, %v4081_v29  ;;  %v10576_v59 = vsub.f32 %v144_v24, %v4085_v45  ;;  %v10584_v22 = vpack.c.bf16 %v4087_v42, %v4083_v49  ;;  %v151_v2 = vld [vmem:[#allocation2 + $0x1f0] sm:$0xff]  ;;  %v154_v29 = vld [vmem:[#allocation2 + $0x208] sm:$0xff] }
  0x3a   :  { %15585 = vst [vmem:[#allocation75_spill] sm:$0xff] %v10554_v38  ;;  %15586 = vst [vmem:[#allocation76_spill] sm:$0xff] %v10556_v47  ;;  %v10578_v7 = vpack.c.bf16 %v465_v15, %v461_v37  ;;  %v145_v47 = vld [vmem:[#allocation2 + $0x1c0] sm:$0xff]  ;;  %v10582_v38 = vsub.f32 %v141_v36, %v465_v15  ;;  %v10594_v31 = vsub.f32 %v146_v28, %v467_v32 }
  0x3b   :  { %15587 = vst [vmem:[#allocation77_spill] sm:$0xff] %v10558_v14  ;;  %15588 = vst [vmem:[#allocation78_spill] sm:$0xff] %v10560_v1  ;;  %v148_v1 = vld [vmem:[#allocation2 + $0x1d8] sm:$0xff]  ;;  %8801 = vmatprep.subr.bf16.mxu1 %v10574_v20  ;;  %v10592_v24 = vpack.c.bf16 %v471_v11, %v467_v32  ;;  %v10596_v45 = vsub.f32 %v150_v54, %v471_v11  ;;  %v469_v37 = vand.u32 4294901760, %v145_v47 }
  0x3c   :  { %15589 = vst [vmem:[#allocation79_spill] sm:$0xff] %v10564_v53  ;;  %15590 = vst [vmem:[#allocation80_spill] sm:$0xff] %v10566_v55  ;;  %v152_v14 = vld [vmem:[#allocation2 + $0x1f8] sm:$0xff]  ;;  %v147_v55 = vld [vmem:[#allocation2 + $0x1d0] sm:$0xff]  ;;  %v10586_v53 = vsub.f32 %v139_v26, %v4083_v49  ;;  %8323 = vmatpush1.bf16.msra.mxu0 %v10578_v7  ;;  %v4089_v36 = vand.u32 4294901760, %v148_v1  ;;  %8803 = vmatpush1.bf16.msra.mxu1 %v10584_v22 }
  0x3d   :  { %15591 = vst [vmem:[#allocation81_spill] sm:$0xff] %v10568_v8  ;;  %15592 = vst [vmem:[#allocation82_spill] sm:$0xff] %v10572_v0  ;;  %v149_v8 = vld [vmem:[#allocation2 + $0x1e0] sm:$0xff]  ;;  %v10588_v0 = vsub.f32 %v143_v9, %v4087_v42  ;;  %v4093_v26 = vand.u32 4294901760, %v152_v14  ;;  %v4091_v15 = vand.u32 4294901760, %v147_v55  ;;  %8325 = vmatprep.subr.bf16.mxu0 %v10592_v24  ;;  %v4095_v42 = vand.u32 4294901760, %v151_v2 }
  0x3e   :  { %15593 = vst [vmem:[#allocation83_spill] sm:$0xff] %v10574_v20  ;;  %15594 = vst [vmem:[#allocation84_spill] sm:$0xff] %v10576_v59  ;;  %v473_v9 = vand.u32 4294901760, %v149_v8  ;;  %v10600_v49 = vsub.f32 %v148_v1, %v4089_v36  ;;  %v475_v20 = vand.u32 4294901760, %v154_v29  ;;  %v10608_v28 = vsub.f32 %v145_v47, %v469_v37  ;;  %v166_v59 = vld [vmem:[#allocation2 + $0x268] sm:$0xff] }
  0x3f   :  { %15595 = vst [vmem:[#allocation85_spill] sm:$0xff] %v10578_v7  ;;  %15596 = vst [vmem:[#allocation86_spill] sm:$0xff] %v10580_v21  ;;  %v479_v7 = vand.u32 4294901760, %v158_v60  ;;  %v10602_v32 = vpack.c.bf16 %v4093_v26, %v4089_v36  ;;  %v10604_v54 = vsub.f32 %v152_v14, %v4093_v26  ;;  %v10612_v1 = vpack.c.bf16 %v4095_v42, %v4091_v15  ;;  %v159_v21 = vld [vmem:[#allocation2 + $0x230] sm:$0xff]  ;;  %v162_v36 = vld [vmem:[#allocation2 + $0x248] sm:$0xff] }
  0x40   :  { %15597 = vst [vmem:[#allocation87_spill] sm:$0xff] %v10582_v38  ;;  %15598 = vst [vmem:[#allocation88_spill] sm:$0xff] %v10584_v22  ;;  %v10606_v11 = vpack.c.bf16 %v473_v9, %v469_v37  ;;  %v153_v22 = vld [vmem:[#allocation2 + $0x200] sm:$0xff]  ;;  %v10610_v38 = vsub.f32 %v149_v8, %v473_v9  ;;  %v10622_v47 = vsub.f32 %v154_v29, %v475_v20 }
  0x41   :  { %15599 = vst [vmem:[#allocation89_spill] sm:$0xff] %v10586_v53  ;;  %15600 = vst [vmem:[#allocation90_spill] sm:$0xff] %v10588_v0  ;;  %v156_v0 = vld [vmem:[#allocation2 + $0x218] sm:$0xff]  ;;  %8805 = vmatprep.subr.bf16.mxu1 %v10602_v32  ;;  %v10620_v14 = vpack.c.bf16 %v479_v7, %v475_v20  ;;  %v10624_v26 = vsub.f32 %v158_v60, %v479_v7  ;;  %v477_v37 = vand.u32 4294901760, %v153_v22 }
  0x42   :  { %15601 = vst [vmem:[#allocation91_spill] sm:$0xff] %v10592_v24  ;;  %15602 = vst [vmem:[#allocation92_spill] sm:$0xff] %v10594_v31  ;;  %v160_v53 = vld [vmem:[#allocation2 + $0x238] sm:$0xff]  ;;  %v155_v31 = vld [vmem:[#allocation2 + $0x210] sm:$0xff]  ;;  %v10614_v24 = vsub.f32 %v147_v55, %v4091_v15  ;;  %8327 = vmatpush1.bf16.msra.mxu0 %v10606_v11  ;;  %v4097_v8 = vand.u32 4294901760, %v156_v0  ;;  %8807 = vmatpush1.bf16.msra.mxu1 %v10612_v1 }
  0x43   :  { %15603 = vst [vmem:[#allocation93_spill] sm:$0xff] %v10596_v45  ;;  %15604 = vst [vmem:[#allocation94_spill] sm:$0xff] %v10600_v49  ;;  %v157_v45 = vld [vmem:[#allocation2 + $0x220] sm:$0xff]  ;;  %v10616_v49 = vsub.f32 %v151_v2, %v4095_v42  ;;  %v4101_v55 = vand.u32 4294901760, %v160_v53  ;;  %v4099_v9 = vand.u32 4294901760, %v155_v31  ;;  %8329 = vmatprep.subr.bf16.mxu0 %v10620_v14  ;;  %v4103_v42 = vand.u32 4294901760, %v159_v21 }
  0x44   :  { %15605 = vst [vmem:[#allocation95_spill] sm:$0xff] %v10602_v32  ;;  %15606 = vst [vmem:[#allocation96_spill] sm:$0xff] %v10604_v54  ;;  %v481_v2 = vand.u32 4294901760, %v157_v45  ;;  %v10628_v15 = vsub.f32 %v156_v0, %v4097_v8  ;;  %v483_v32 = vand.u32 4294901760, %v162_v36  ;;  %v10636_v29 = vsub.f32 %v153_v22, %v477_v37  ;;  %v174_v54 = vld [vmem:[#allocation2 + $0x2a8] sm:$0xff] }
  0x45   :  { %15607 = vst [vmem:[#allocation97_spill] sm:$0xff] %v10606_v11  ;;  %15608 = vst [vmem:[#allocation98_spill] sm:$0xff] %v10608_v28  ;;  %v487_v11 = vand.u32 4294901760, %v166_v59  ;;  %v10630_v20 = vpack.c.bf16 %v4101_v55, %v4097_v8  ;;  %v10632_v60 = vsub.f32 %v160_v53, %v4101_v55  ;;  %v10640_v0 = vpack.c.bf16 %v4103_v42, %v4099_v9  ;;  %v167_v28 = vld [vmem:[#allocation2 + $0x270] sm:$0xff]  ;;  %v170_v8 = vld [vmem:[#allocation2 + $0x288] sm:$0xff] }
  0x46   :  { %15609 = vst [vmem:[#allocation99_spill] sm:$0xff] %v10610_v38  ;;  %15610 = vst [vmem:[#allocation100_spill] sm:$0xff] %v10612_v1  ;;  %v10634_v7 = vpack.c.bf16 %v481_v2, %v477_v37  ;;  %v161_v1 = vld [vmem:[#allocation2 + $0x240] sm:$0xff]  ;;  %v10638_v38 = vsub.f32 %v157_v45, %v481_v2  ;;  %v10650_v22 = vsub.f32 %v162_v36, %v483_v32 }
  0x47   :  { %15611 = vst [vmem:[#allocation101_spill] sm:$0xff] %v10614_v24  ;;  %15612 = vst [vmem:[#allocation102_spill] sm:$0xff] %v10616_v49  ;;  %v164_v49 = vld [vmem:[#allocation2 + $0x258] sm:$0xff]  ;;  %8809 = vmatprep.subr.bf16.mxu1 %v10630_v20  ;;  %v10648_v53 = vpack.c.bf16 %v487_v11, %v483_v32  ;;  %v10652_v55 = vsub.f32 %v166_v59, %v487_v11  ;;  %v485_v37 = vand.u32 4294901760, %v161_v1 }
  0x48   :  { %15613 = vst [vmem:[#allocation103_spill] sm:$0xff] %v10620_v14  ;;  %15614 = vst [vmem:[#allocation104_spill] sm:$0xff] %v10622_v47  ;;  %v168_v24 = vld [vmem:[#allocation2 + $0x278] sm:$0xff]  ;;  %v163_v47 = vld [vmem:[#allocation2 + $0x250] sm:$0xff]  ;;  %v10642_v14 = vsub.f32 %v155_v31, %v4099_v9  ;;  %8331 = vmatpush1.bf16.msra.mxu0 %v10634_v7  ;;  %v4105_v45 = vand.u32 4294901760, %v164_v49  ;;  %8811 = vmatpush1.bf16.msra.mxu1 %v10640_v0 }
  0x49   :  { %15615 = vst [vmem:[#allocation105_spill] sm:$0xff] %v10624_v26  ;;  %15616 = vst [vmem:[#allocation106_spill] sm:$0xff] %v10628_v15  ;;  %v165_v26 = vld [vmem:[#allocation2 + $0x260] sm:$0xff]  ;;  %v10644_v15 = vsub.f32 %v159_v21, %v4103_v42  ;;  %v4109_v31 = vand.u32 4294901760, %v168_v24  ;;  %v4107_v2 = vand.u32 4294901760, %v163_v47  ;;  %8333 = vmatprep.subr.bf16.mxu0 %v10648_v53  ;;  %v4111_v42 = vand.u32 4294901760, %v167_v28 }
  0x4a   :  { %15617 = vst [vmem:[#allocation107_spill] sm:$0xff] %v10630_v20  ;;  %15618 = vst [vmem:[#allocation108_spill] sm:$0xff] %v10632_v60  ;;  %v489_v21 = vand.u32 4294901760, %v165_v26  ;;  %v10656_v9 = vsub.f32 %v164_v49, %v4105_v45  ;;  %v491_v20 = vand.u32 4294901760, %v170_v8  ;;  %v10664_v36 = vsub.f32 %v161_v1, %v485_v37  ;;  %v182_v60 = vld [vmem:[#allocation2 + $0x2e8] sm:$0xff] }
  0x4b   :  { %15619 = vst [vmem:[#allocation109_spill] sm:$0xff] %v10634_v7  ;;  %15620 = vst [vmem:[#allocation110_spill] sm:$0xff] %v10636_v29  ;;  %v495_v7 = vand.u32 4294901760, %v174_v54  ;;  %v10658_v32 = vpack.c.bf16 %v4109_v31, %v4105_v45  ;;  %v10660_v59 = vsub.f32 %v168_v24, %v4109_v31  ;;  %v10668_v49 = vpack.c.bf16 %v4111_v42, %v4107_v2  ;;  %v175_v29 = vld [vmem:[#allocation2 + $0x2b0] sm:$0xff]  ;;  %v178_v45 = vld [vmem:[#allocation2 + $0x2c8] sm:$0xff] }
  0x4c   :  { %15621 = vst [vmem:[#allocation111_spill] sm:$0xff] %v10638_v38  ;;  %15622 = vst [vmem:[#allocation112_spill] sm:$0xff] %v10640_v0  ;;  %v10662_v11 = vpack.c.bf16 %v489_v21, %v485_v37  ;;  %v169_v0 = vld [vmem:[#allocation2 + $0x280] sm:$0xff]  ;;  %v10666_v38 = vsub.f32 %v165_v26, %v489_v21  ;;  %v10678_v1 = vsub.f32 %v170_v8, %v491_v20 }
  0x4d   :  { %15623 = vst [vmem:[#allocation113_spill] sm:$0xff] %v10642_v14  ;;  %15624 = vst [vmem:[#allocation114_spill] sm:$0xff] %v10644_v15  ;;  %v172_v15 = vld [vmem:[#allocation2 + $0x298] sm:$0xff]  ;;  %8813 = vmatprep.subr.bf16.mxu1 %v10658_v32  ;;  %v10676_v24 = vpack.c.bf16 %v495_v7, %v491_v20  ;;  %v10680_v31 = vsub.f32 %v174_v54, %v495_v7  ;;  %v493_v37 = vand.u32 4294901760, %v169_v0 }
  0x4e   :  { %15625 = vst [vmem:[#allocation115_spill] sm:$0xff] %v10648_v53  ;;  %15626 = vst [vmem:[#allocation116_spill] sm:$0xff] %v10650_v22  ;;  %v176_v14 = vld [vmem:[#allocation2 + $0x2b8] sm:$0xff]  ;;  %v171_v22 = vld [vmem:[#allocation2 + $0x290] sm:$0xff]  ;;  %v10670_v53 = vsub.f32 %v163_v47, %v4107_v2  ;;  %8335 = vmatpush1.bf16.msra.mxu0 %v10662_v11  ;;  %v4113_v26 = vand.u32 4294901760, %v172_v15  ;;  %8815 = vmatpush1.bf16.msra.mxu1 %v10668_v49 }
  0x4f   :  { %15627 = vst [vmem:[#allocation117_spill] sm:$0xff] %v10652_v55  ;;  %15628 = vst [vmem:[#allocation118_spill] sm:$0xff] %v10656_v9  ;;  %v173_v55 = vld [vmem:[#allocation2 + $0x2a0] sm:$0xff]  ;;  %v10672_v9 = vsub.f32 %v167_v28, %v4111_v42  ;;  %v4117_v47 = vand.u32 4294901760, %v176_v14  ;;  %v4115_v21 = vand.u32 4294901760, %v171_v22  ;;  %8337 = vmatprep.subr.bf16.mxu0 %v10676_v24  ;;  %v4119_v42 = vand.u32 4294901760, %v175_v29 }
  0x50   :  { %15629 = vst [vmem:[#allocation119_spill] sm:$0xff] %v10658_v32  ;;  %15630 = vst [vmem:[#allocation120_spill] sm:$0xff] %v10660_v59  ;;  %v497_v28 = vand.u32 4294901760, %v173_v55  ;;  %v10684_v2 = vsub.f32 %v172_v15, %v4113_v26  ;;  %v499_v32 = vand.u32 4294901760, %v178_v45  ;;  %v10692_v8 = vsub.f32 %v169_v0, %v493_v37  ;;  %v190_v59 = vld [vmem:[#allocation2 + $0x328] sm:$0xff] }
  0x51   :  { %15631 = vst [vmem:[#allocation121_spill] sm:$0xff] %v10662_v11  ;;  %15632 = vst [vmem:[#allocation122_spill] sm:$0xff] %v10664_v36  ;;  %v503_v11 = vand.u32 4294901760, %v182_v60  ;;  %v10686_v20 = vpack.c.bf16 %v4117_v47, %v4113_v26  ;;  %v10688_v54 = vsub.f32 %v176_v14, %v4117_v47  ;;  %v10696_v15 = vpack.c.bf16 %v4119_v42, %v4115_v21  ;;  %v183_v36 = vld [vmem:[#allocation2 + $0x2f0] sm:$0xff]  ;;  %v186_v26 = vld [vmem:[#allocation2 + $0x308] sm:$0xff] }
  0x52   :  { %15633 = vst [vmem:[#allocation123_spill] sm:$0xff] %v10666_v38  ;;  %15634 = vst [vmem:[#allocation124_spill] sm:$0xff] %v10668_v49  ;;  %v10690_v7 = vpack.c.bf16 %v497_v28, %v493_v37  ;;  %v177_v49 = vld [vmem:[#allocation2 + $0x2c0] sm:$0xff]  ;;  %v10694_v38 = vsub.f32 %v173_v55, %v497_v28  ;;  %v10706_v0 = vsub.f32 %v178_v45, %v499_v32 }
  0x53   :  { %15635 = vst [vmem:[#allocation125_spill] sm:$0xff] %v10670_v53  ;;  %15636 = vst [vmem:[#allocation126_spill] sm:$0xff] %v10672_v9  ;;  %v180_v9 = vld [vmem:[#allocation2 + $0x2d8] sm:$0xff]  ;;  %8817 = vmatprep.subr.bf16.mxu1 %v10686_v20  ;;  %v10704_v14 = vpack.c.bf16 %v503_v11, %v499_v32  ;;  %v10708_v47 = vsub.f32 %v182_v60, %v503_v11  ;;  %v501_v37 = vand.u32 4294901760, %v177_v49 }
  0x54   :  { %15637 = vst [vmem:[#allocation127_spill] sm:$0xff] %v10676_v24  ;;  %15638 = vst [vmem:[#allocation128_spill] sm:$0xff] %v10678_v1  ;;  %v184_v53 = vld [vmem:[#allocation2 + $0x2f8] sm:$0xff]  ;;  %v179_v1 = vld [vmem:[#allocation2 + $0x2d0] sm:$0xff]  ;;  %v10698_v24 = vsub.f32 %v171_v22, %v4115_v21  ;;  %8339 = vmatpush1.bf16.msra.mxu0 %v10690_v7  ;;  %v4121_v55 = vand.u32 4294901760, %v180_v9  ;;  %8819 = vmatpush1.bf16.msra.mxu1 %v10696_v15 }
  0x55   :  { %15639 = vst [vmem:[#allocation129_spill] sm:$0xff] %v10680_v31  ;;  %15640 = vst [vmem:[#allocation130_spill] sm:$0xff] %v10684_v2  ;;  %v181_v31 = vld [vmem:[#allocation2 + $0x2e0] sm:$0xff]  ;;  %v10700_v2 = vsub.f32 %v175_v29, %v4119_v42  ;;  %v4125_v22 = vand.u32 4294901760, %v184_v53  ;;  %v4123_v28 = vand.u32 4294901760, %v179_v1  ;;  %8341 = vmatprep.subr.bf16.mxu0 %v10704_v14  ;;  %v4127_v42 = vand.u32 4294901760, %v183_v36 }
  0x56   :  { %15641 = vst [vmem:[#allocation131_spill] sm:$0xff] %v10686_v20  ;;  %15642 = vst [vmem:[#allocation132_spill] sm:$0xff] %v10688_v54  ;;  %v505_v29 = vand.u32 4294901760, %v181_v31  ;;  %v10712_v21 = vsub.f32 %v180_v9, %v4121_v55  ;;  %v507_v20 = vand.u32 4294901760, %v186_v26  ;;  %v10720_v45 = vsub.f32 %v177_v49, %v501_v37  ;;  %v198_v54 = vld [vmem:[#allocation2 + $0x368] sm:$0xff] }
  0x57   :  { %15643 = vst [vmem:[#allocation133_spill] sm:$0xff] %v10690_v7  ;;  %15644 = vst [vmem:[#allocation134_spill] sm:$0xff] %v10692_v8  ;;  %v511_v7 = vand.u32 4294901760, %v190_v59  ;;  %v10714_v32 = vpack.c.bf16 %v4125_v22, %v4121_v55  ;;  %v10716_v60 = vsub.f32 %v184_v53, %v4125_v22  ;;  %v10724_v9 = vpack.c.bf16 %v4127_v42, %v4123_v28  ;;  %v191_v8 = vld [vmem:[#allocation2 + $0x330] sm:$0xff]  ;;  %v194_v55 = vld [vmem:[#allocation2 + $0x348] sm:$0xff] }
  0x58   :  { %15645 = vst [vmem:[#allocation135_spill] sm:$0xff] %v10694_v38  ;;  %15646 = vst [vmem:[#allocation136_spill] sm:$0xff] %v10696_v15  ;;  %v10718_v11 = vpack.c.bf16 %v505_v29, %v501_v37  ;;  %v185_v15 = vld [vmem:[#allocation2 + $0x300] sm:$0xff]  ;;  %v10722_v38 = vsub.f32 %v181_v31, %v505_v29  ;;  %v10734_v49 = vsub.f32 %v186_v26, %v507_v20 }
  0x59   :  { %15647 = vst [vmem:[#allocation137_spill] sm:$0xff] %v10698_v24  ;;  %15648 = vst [vmem:[#allocation138_spill] sm:$0xff] %v10700_v2  ;;  %v188_v2 = vld [vmem:[#allocation2 + $0x318] sm:$0xff]  ;;  %8821 = vmatprep.subr.bf16.mxu1 %v10714_v32  ;;  %v10732_v53 = vpack.c.bf16 %v511_v7, %v507_v20  ;;  %v10736_v22 = vsub.f32 %v190_v59, %v511_v7  ;;  %v509_v37 = vand.u32 4294901760, %v185_v15 }
  0x5a   :  { %15649 = vst [vmem:[#allocation139_spill] sm:$0xff] %v10704_v14  ;;  %15650 = vst [vmem:[#allocation140_spill] sm:$0xff] %v10706_v0  ;;  %v192_v24 = vld [vmem:[#allocation2 + $0x338] sm:$0xff]  ;;  %v187_v0 = vld [vmem:[#allocation2 + $0x310] sm:$0xff]  ;;  %v10726_v14 = vsub.f32 %v179_v1, %v4123_v28  ;;  %8343 = vmatpush1.bf16.msra.mxu0 %v10718_v11  ;;  %v4129_v31 = vand.u32 4294901760, %v188_v2  ;;  %8823 = vmatpush1.bf16.msra.mxu1 %v10724_v9 }
  0x5b   :  { %15651 = vst [vmem:[#allocation141_spill] sm:$0xff] %v10708_v47  ;;  %15652 = vst [vmem:[#allocation142_spill] sm:$0xff] %v10712_v21  ;;  %v189_v47 = vld [vmem:[#allocation2 + $0x320] sm:$0xff]  ;;  %v10728_v21 = vsub.f32 %v183_v36, %v4127_v42  ;;  %v4133_v1 = vand.u32 4294901760, %v192_v24  ;;  %v4131_v29 = vand.u32 4294901760, %v187_v0  ;;  %8345 = vmatprep.subr.bf16.mxu0 %v10732_v53  ;;  %v4135_v42 = vand.u32 4294901760, %v191_v8 }
  0x5c   :  { %15653 = vst [vmem:[#allocation143_spill] sm:$0xff] %v10714_v32  ;;  %15654 = vst [vmem:[#allocation144_spill] sm:$0xff] %v10716_v60  ;;  %v513_v36 = vand.u32 4294901760, %v189_v47  ;;  %v10740_v28 = vsub.f32 %v188_v2, %v4129_v31  ;;  %v515_v32 = vand.u32 4294901760, %v194_v55  ;;  %v10748_v26 = vsub.f32 %v185_v15, %v509_v37  ;;  %v206_v60 = vld [vmem:[#allocation2 + $0x3a8] sm:$0xff] }
  0x5d   :  { %15655 = vst [vmem:[#allocation145_spill] sm:$0xff] %v10718_v11  ;;  %15656 = vst [vmem:[#allocation146_spill] sm:$0xff] %v10720_v45  ;;  %v519_v11 = vand.u32 4294901760, %v198_v54  ;;  %v10742_v20 = vpack.c.bf16 %v4133_v1, %v4129_v31  ;;  %v10744_v59 = vsub.f32 %v192_v24, %v4133_v1  ;;  %v10752_v2 = vpack.c.bf16 %v4135_v42, %v4131_v29  ;;  %v199_v45 = vld [vmem:[#allocation2 + $0x370] sm:$0xff]  ;;  %v202_v31 = vld [vmem:[#allocation2 + $0x388] sm:$0xff] }
  0x5e   :  { %15657 = vst [vmem:[#allocation147_spill] sm:$0xff] %v10722_v38  ;;  %15658 = vst [vmem:[#allocation148_spill] sm:$0xff] %v10724_v9  ;;  %v10746_v7 = vpack.c.bf16 %v513_v36, %v509_v37  ;;  %v193_v9 = vld [vmem:[#allocation2 + $0x340] sm:$0xff]  ;;  %v10750_v38 = vsub.f32 %v189_v47, %v513_v36  ;;  %v10762_v15 = vsub.f32 %v194_v55, %v515_v32 }
  0x5f   :  { %15659 = vst [vmem:[#allocation149_spill] sm:$0xff] %v10726_v14  ;;  %15660 = vst [vmem:[#allocation150_spill] sm:$0xff] %v10728_v21  ;;  %v196_v21 = vld [vmem:[#allocation2 + $0x358] sm:$0xff]  ;;  %8825 = vmatprep.subr.bf16.mxu1 %v10742_v20  ;;  %v10760_v24 = vpack.c.bf16 %v519_v11, %v515_v32  ;;  %v10764_v1 = vsub.f32 %v198_v54, %v519_v11  ;;  %v517_v37 = vand.u32 4294901760, %v193_v9 }
  0x60   :  { %15661 = vst [vmem:[#allocation151_spill] sm:$0xff] %v10732_v53  ;;  %15662 = vst [vmem:[#allocation152_spill] sm:$0xff] %v10734_v49  ;;  %v200_v14 = vld [vmem:[#allocation2 + $0x378] sm:$0xff]  ;;  %v195_v49 = vld [vmem:[#allocation2 + $0x350] sm:$0xff]  ;;  %v10754_v53 = vsub.f32 %v187_v0, %v4131_v29  ;;  %8347 = vmatpush1.bf16.msra.mxu0 %v10746_v7  ;;  %v4137_v47 = vand.u32 4294901760, %v196_v21  ;;  %8827 = vmatpush1.bf16.msra.mxu1 %v10752_v2 }
  0x61   :  { %15663 = vst [vmem:[#allocation153_spill] sm:$0xff] %v10736_v22  ;;  %15664 = vst [vmem:[#allocation154_spill] sm:$0xff] %v10740_v28  ;;  %v197_v22 = vld [vmem:[#allocation2 + $0x360] sm:$0xff]  ;;  %v10756_v28 = vsub.f32 %v191_v8, %v4135_v42  ;;  %v4141_v0 = vand.u32 4294901760, %v200_v14  ;;  %v4139_v36 = vand.u32 4294901760, %v195_v49  ;;  %8349 = vmatprep.subr.bf16.mxu0 %v10760_v24  ;;  %v4143_v42 = vand.u32 4294901760, %v199_v45 }
  0x62   :  { %15665 = vst [vmem:[#allocation155_spill] sm:$0xff] %v10742_v20  ;;  %15666 = vst [vmem:[#allocation156_spill] sm:$0xff] %v10744_v59  ;;  %v521_v8 = vand.u32 4294901760, %v197_v22  ;;  %v10768_v29 = vsub.f32 %v196_v21, %v4137_v47  ;;  %v523_v20 = vand.u32 4294901760, %v202_v31  ;;  %v10776_v55 = vsub.f32 %v193_v9, %v517_v37  ;;  %v214_v59 = vld [vmem:[#allocation2 + $0x3e8] sm:$0xff] }
  0x63   :  { %15667 = vst [vmem:[#allocation157_spill] sm:$0xff] %v10746_v7  ;;  %15668 = vst [vmem:[#allocation158_spill] sm:$0xff] %v10748_v26  ;;  %v527_v7 = vand.u32 4294901760, %v206_v60  ;;  %v10770_v32 = vpack.c.bf16 %v4141_v0, %v4137_v47  ;;  %v10772_v54 = vsub.f32 %v200_v14, %v4141_v0  ;;  %v10780_v21 = vpack.c.bf16 %v4143_v42, %v4139_v36  ;;  %v207_v26 = vld [vmem:[#allocation2 + $0x3b0] sm:$0xff]  ;;  %v210_v47 = vld [vmem:[#allocation2 + $0x3c8] sm:$0xff] }
  0x64   :  { %15669 = vst [vmem:[#allocation159_spill] sm:$0xff] %v10750_v38  ;;  %15670 = vst [vmem:[#allocation160_spill] sm:$0xff] %v10752_v2  ;;  %v10774_v11 = vpack.c.bf16 %v521_v8, %v517_v37  ;;  %v201_v2 = vld [vmem:[#allocation2 + $0x380] sm:$0xff]  ;;  %v10778_v38 = vsub.f32 %v197_v22, %v521_v8  ;;  %v10790_v9 = vsub.f32 %v202_v31, %v523_v20 }
  0x65   :  { %15671 = vst [vmem:[#allocation161_spill] sm:$0xff] %v10754_v53  ;;  %15672 = vst [vmem:[#allocation162_spill] sm:$0xff] %v10756_v28  ;;  %v204_v28 = vld [vmem:[#allocation2 + $0x398] sm:$0xff]  ;;  %8829 = vmatprep.subr.bf16.mxu1 %v10770_v32  ;;  %v10788_v14 = vpack.c.bf16 %v527_v7, %v523_v20  ;;  %v10792_v0 = vsub.f32 %v206_v60, %v527_v7  ;;  %v525_v37 = vand.u32 4294901760, %v201_v2 }
  0x66   :  { %15673 = vst [vmem:[#allocation163_spill] sm:$0xff] %v10760_v24  ;;  %15674 = vst [vmem:[#allocation164_spill] sm:$0xff] %v10762_v15  ;;  %v208_v53 = vld [vmem:[#allocation2 + $0x3b8] sm:$0xff]  ;;  %v203_v15 = vld [vmem:[#allocation2 + $0x390] sm:$0xff]  ;;  %v10782_v24 = vsub.f32 %v195_v49, %v4139_v36  ;;  %8351 = vmatpush1.bf16.msra.mxu0 %v10774_v11  ;;  %v4145_v22 = vand.u32 4294901760, %v204_v28  ;;  %8831 = vmatpush1.bf16.msra.mxu1 %v10780_v21 }
  0x67   :  { %15675 = vst [vmem:[#allocation165_spill] sm:$0xff] %v10764_v1  ;;  %15676 = vst [vmem:[#allocation166_spill] sm:$0xff] %v10768_v29  ;;  %v205_v1 = vld [vmem:[#allocation2 + $0x3a0] sm:$0xff]  ;;  %v10784_v29 = vsub.f32 %v199_v45, %v4143_v42  ;;  %v4149_v49 = vand.u32 4294901760, %v208_v53  ;;  %v4147_v8 = vand.u32 4294901760, %v203_v15  ;;  %8353 = vmatprep.subr.bf16.mxu0 %v10788_v14  ;;  %v4151_v42 = vand.u32 4294901760, %v207_v26 }
  0x68   :  { %15677 = vst [vmem:[#allocation167_spill] sm:$0xff] %v10770_v32  ;;  %15678 = vst [vmem:[#allocation168_spill] sm:$0xff] %v10772_v54  ;;  %v529_v45 = vand.u32 4294901760, %v205_v1  ;;  %v10796_v36 = vsub.f32 %v204_v28, %v4145_v22  ;;  %v531_v32 = vand.u32 4294901760, %v210_v47  ;;  %v10804_v31 = vsub.f32 %v201_v2, %v525_v37  ;;  %v41_v2 = vld [vmem:[%s14673_s1] sm:$0xff] }
  0x69   :  { %15679 = vst [vmem:[#allocation169_spill] sm:$0xff] %v10774_v11  ;;  %15680 = vst [vmem:[#allocation170_spill] sm:$0xff] %v10776_v55  ;;  %v535_v11 = vand.u32 4294901760, %v214_v59  ;;  %v10798_v20 = vpack.c.bf16 %v4149_v49, %v4145_v22  ;;  %v10800_v60 = vsub.f32 %v208_v53, %v4149_v49  ;;  %v10808_v28 = vpack.c.bf16 %v4151_v42, %v4147_v8  ;;  %v215_v55 = vld [vmem:[#allocation2 + $0x3f0] sm:$0xff]  ;;  %v42_v53 = vld [vmem:[%s14673_s1 + $0x8] sm:$0xff] }
  0x6a   :  { %15681 = vst [vmem:[#allocation171_spill] sm:$0xff] %v10778_v38  ;;  %15682 = vst [vmem:[#allocation172_spill] sm:$0xff] %v10780_v21  ;;  %v10802_v7 = vpack.c.bf16 %v529_v45, %v525_v37  ;;  %v209_v21 = vld [vmem:[#allocation2 + $0x3c0] sm:$0xff]  ;;  %v10806_v38 = vsub.f32 %v205_v1, %v529_v45  ;;  %v10824_v22 = vsub.f32 %v210_v47, %v531_v32 }
  0x6b   :  { %15683 = vst [vmem:[#allocation173_spill] sm:$0xff] %v10782_v24  ;;  %15684 = vst [vmem:[#allocation174_spill] sm:$0xff] %v10784_v29  ;;  %v212_v29 = vld [vmem:[#allocation2 + $0x3d8] sm:$0xff]  ;;  %8833 = vmatprep.subr.bf16.mxu1 %v10798_v20  ;;  %v10822_v1 = vpack.c.bf16 %v535_v11, %v531_v32  ;;  %v533_v37 = vand.u32 4294901760, %v209_v21 }
  0x6c   :  { %15685 = vst [vmem:[#allocation175_spill] sm:$0xff] %v10788_v14  ;;  %15686 = vst [vmem:[#allocation176_spill] sm:$0xff] %v10790_v9  ;;  %v216_v24 = vld [vmem:[#allocation2 + $0x3f8] sm:$0xff]  ;;  %v211_v9 = vld [vmem:[#allocation2 + $0x3d0] sm:$0xff]  ;;  %v10810_v14 = vsub.f32 %v203_v15, %v4147_v8  ;;  %8355 = vmatpush1.bf16.msra.mxu0 %v10802_v7  ;;  %v10826_v15 = vsub.f32 %v214_v59, %v535_v11  ;;  %8835 = vmatpush1.bf16.msra.mxu1 %v10808_v28 }
  0x6d   :  { %15687 = vst [vmem:[#allocation177_spill] sm:$0xff] %v10792_v0  ;;  %15688 = vst [vmem:[#allocation178_spill] sm:$0xff] %v10796_v36  ;;  %v213_v0 = vld [vmem:[#allocation2 + $0x3e0] sm:$0xff]  ;;  %v10812_v36 = vsub.f32 %v207_v26, %v4151_v42  ;;  %v4153_v26 = vand.u32 4294901760, %v212_v29  ;;  %v4157_v49 = vand.u32 4294901760, %v216_v24  ;;  %v4155_v8 = vand.u32 4294901760, %v211_v9  ;;  %8357 = vmatprep.subr.bf16.mxu0 %v10822_v1 }
  0x6e   :  { %15689 = vst [vmem:[#allocation179_spill] sm:$0xff] %v10798_v20  ;;  %15690 = vst [vmem:[#allocation180_spill] sm:$0xff] %v10800_v60  ;;  %v537_v45 = vand.u32 4294901760, %v213_v0  ;;  %v4159_v20 = vand.u32 4294901760, %v215_v55  ;;  %v10842_v47 = vsub.f32 %v209_v21, %v533_v37  ;;  %v14888_v21 = vand.u32 4294901760, %v10399_v16 }
  0x6f   :  { %15691 = vst [vmem:[#allocation181_spill] sm:$0xff] %v10802_v7  ;;  %15692 = vst [vmem:[#allocation182_spill] sm:$0xff] %v10804_v31  ;;  %v10830_v42 = vsub.f32 %v212_v29, %v4153_v26  ;;  %v10834_v7 = vand.u32 4294901760, %v41_v2  ;;  %v10836_v32 = vpack.c.bf16 %v4157_v49, %v4153_v26  ;;  %v10838_v59 = vsub.f32 %v216_v24, %v4157_v49 }
  0x70   :  { %15693 = vst [vmem:[#allocation183_spill] sm:$0xff] %v10808_v28  ;;  %15694 = vst [vmem:[#allocation184_spill] sm:$0xff] %v10812_v36  ;;  %v10832_v36 = vand.u32 4294901760, %v42_v53  ;;  %v10840_v11 = vpack.c.bf16 %v537_v45, %v533_v37  ;;  %v10844_v28 = vsub.f32 %v213_v0, %v537_v45  ;;  %v10850_v29 = vsub.f32 %v215_v55, %v4159_v20 }
  0x71   :  { %15695 = vst [vmem:[#allocation185_spill] sm:$0xff] %v10822_v1  ;;  %15696 = vst [vmem:[#allocation186_spill] sm:$0xff] %v10826_v15  ;;  %v10846_v15 = vpack.c.bf16 %v4159_v20, %v4155_v8  ;;  %v10848_v1 = vsub.f32 %v211_v9, %v4155_v8  ;;  %8837 = vmatprep.subr.bf16.mxu1 %v10836_v32  ;;  %v10858_v24 = vsub.f32 %v41_v2, %v10834_v7 }
  0x72   :  { %15697 = vst [vmem:[#allocation187_spill] sm:$0xff] %v10832_v36  ;;  %15698 = vst [vmem:[#allocation188_spill] sm:$0xff] %v10834_v7  ;;  %8359 = vmatpush1.bf16.msra.mxu0 %v10840_v11  ;;  %v10855_v26 = vsub.f32 %v42_v53, %v10832_v36  ;;  %v14891_v0 = vand.u32 4294901760, %v10401_v17  ;;  %v14894_v9 = vand.u32 4294901760, %v10403_v18  ;;  %v14895_v55 = vand.u32 4294901760, %v10407_v23 }
  0x73   :  { %15699 = vst [vmem:[#allocation189_spill] sm:$0xff] %v10836_v32  ;;  %15700 = vst [vmem:[#allocation190_spill] sm:$0xff] %v10840_v11  ;;  %8839 = vmatpush1.bf16.msra.mxu1 %v10846_v15  ;;  %v14902_v20 = vand.u32 4294901760, %v10411_v25  ;;  %v10871_v2 = vand.u32 4294901760, %v10858_v24  ;;  %v799_v37 = vsub.f32 %v10399_v16, %v14888_v21  ;;  %v15710_v11 = vand.u32 4294901760, %v10414_v27 }
  0x74   :  { %15701 = vst [vmem:[#allocation191_spill] sm:$0xff] %v10842_v47  ;;  %15702 = vst [vmem:[#allocation192_spill] sm:$0xff] %v10844_v28  ;;  %v10868_v53 = vand.u32 4294901760, %v10855_v26  ;;  %v811_v45 = vsub.f32 %v10401_v17, %v14891_v0  ;;  %v4421_v8 = vsub.f32 %v10403_v18, %v14894_v9  ;;  %v4433_v49 = vsub.f32 %v10407_v23, %v14895_v55  ;;  %v45_v55 = vld [vmem:[%s14673_s1 + $0x20] sm:$0xff] }
  0x75   :  { %15703 = vst [vmem:[#allocation193_spill] sm:$0xff] %v10846_v15  ;;  %15704 = vst [vmem:[#allocation194_spill] sm:$0xff] %v10848_v1  ;;  %v805_v15 = vsub.f32 %v10411_v25, %v14902_v20  ;;  %v817_v21 = vsub.f32 %v10414_v27, %v15710_v11  ;;  %v548_v0 = vsub.f32 %v10858_v24, %v10871_v2  ;;  %v800_v7 = vand.u32 4294901760, %v799_v37  ;;  %v44_v11 = vld [vmem:[%s14673_s1 + $0x18] sm:$0xff] }
  0x76   :  { %15705 = vst [vmem:[#allocation195_spill] sm:$0xff] %v10850_v29  ;;  %15706 = vst [vmem:[#allocation196_spill] sm:$0xff] %v10855_v26  ;;  %v542_v32 = vsub.f32 %v10855_v26, %v10868_v53  ;;  %v812_v9 = vand.u32 4294901760, %v811_v45  ;;  %v4422_v23 = vand.u32 4294901760, %v4421_v8  ;;  %v4434_v18 = vand.u32 4294901760, %v4433_v49 }
  0x77   :  { %15707 = vst [vmem:[#allocation197_spill] sm:$0xff] %v10858_v24  ;;  %15708 = vst [vmem:[#allocation198_spill] sm:$0xff] %v10868_v53  ;;  %v806_v17 = vand.u32 4294901760, %v805_v15  ;;  %v818_v20 = vand.u32 4294901760, %v817_v21  ;;  %v549_v25 = vand.u32 4294901760, %v548_v0  ;;  %v14920_v26 = vand.u32 4294901760, %v10420_v39 }
  0x78   :  { %15709 = vst [vmem:[#allocation199_spill] sm:$0xff] %v10871_v2  ;;  %v543_v27 = vand.u32 4294901760, %v542_v32  ;;  %v8360_v53 = vpack.c.bf16 %v812_v9, %v800_v7  ;;  %v8840_v2 = vpack.c.bf16 %v4434_v18, %v4422_v23  ;;  %v14917_v45 = vand.u32 4294901760, %v10422_v40 }
  0x79   :  { %v8362_v37 = vpack.c.bf16 %v818_v20, %v806_v17  ;;  %v10903_v24 = vand.u32 4294901760, %v45_v55  ;;  %v4427_v15 = vsub.f32 %v10420_v39, %v14920_v26  ;;  %v10908_v21 = vand.u32 4294901760, %v44_v11 }
  0x7a   :  { %544 = vmatprep.mubr.f32.mxu0 %v543_v27  ;;  %4166 = vmatprep.mubr.f32.mxu1 %v543_v27  ;;  %v14916_v32 = vand.u32 4294901760, %v10424_v41  ;;  %v14915_v7 = vand.u32 4294901760, %v10428_v46  ;;  %v4439_v17 = vsub.f32 %v10422_v40, %v14917_v45  ;;  %v14918_v23 = vand.u32 4294901760, %v10432_v48 }
  0x7b   :  { %15711 = vst [vmem:[#allocation200_spill] sm:$0xff] %v10903_v24  ;;  %15712 = vst [vmem:[#allocation201_spill] sm:$0xff] %v10908_v21  ;;  %550 = vmatmul.mubr.f32.vlgmr.msra.gmra.mrb[0].mxu0 %v549_v25  ;;  %8361 = vmatprep.subr.bf16.mxu0 %v8360_v53  ;;  %v10916_v18 = vsub.f32 %v45_v55, %v10903_v24  ;;  %v14919_v27 = vand.u32 4294901760, %v10435_v50  ;;  %v4428_v0 = vand.u32 4294901760, %v4427_v15 }
  0x7c   :  { %4172 = vmatmul.mubr.f32.vlgmr.msra.gmra.mrb[0].mxu1 %v549_v25  ;;  %8841 = vmatprep.subr.bf16.mxu1 %v8840_v2  ;;  %v10921_v9 = vsub.f32 %v44_v11, %v10908_v21  ;;  %v823_v20 = vsub.f32 %v10424_v41, %v14916_v32  ;;  %v835_v49 = vsub.f32 %v10428_v46, %v14915_v7  ;;  %v4440_v55 = vand.u32 4294901760, %v4439_v17 }
  0x7d   :  { %15713 = vst [vmem:[#allocation202_spill] sm:$0xff] %v10916_v18  ;;  %8363 = vmatpush1.bf16.msra.mxu0 %v8362_v37  ;;  %v10930_v53 = vand.u32 4294901760, %v10916_v18  ;;  %v4445_v25 = vsub.f32 %v10432_v48, %v14918_v23  ;;  %v4457_v2 = vsub.f32 %v10435_v50, %v14919_v27  ;;  %v14925_v7 = vand.u32 4294901760, %v10437_v52  ;;  %v48_v23 = vld [vmem:[%s14673_s1 + $0x38] sm:$0xff] }
  0x7e   :  { %15714 = vst [vmem:[#allocation203_spill] sm:$0xff] %v10921_v9  ;;  %v10939_v8 = vand.u32 4294901760, %v10921_v9  ;;  %v824_v11 = vand.u32 4294901760, %v823_v20  ;;  %v836_v15 = vand.u32 4294901760, %v835_v49  ;;  %v8842_v37 = vpack.c.bf16 %v4440_v55, %v4428_v0  ;;  %v47_v0 = vld [vmem:[%s14673_s1 + $0x30] sm:$0xff] }
  0x7f   :  { %15715 = vst [vmem:[#allocation204_spill] sm:$0xff] %v10930_v53  ;;  %v558_v17 = vsub.f32 %v10916_v18, %v10930_v53  ;;  %v4446_v32 = vand.u32 4294901760, %v4445_v25  ;;  %v4458_v45 = vand.u32 4294901760, %v4457_v2  ;;  %v829_v20 = vsub.f32 %v10437_v52, %v14925_v7 }
  0x80   :  { %15716 = vst [vmem:[#allocation205_spill] sm:$0xff] %v10939_v8  ;;  %v564_v27 = vsub.f32 %v10921_v9, %v10939_v8  ;;  %v8364_v26 = vpack.c.bf16 %v836_v15, %v824_v11  ;;  %v14927_v49 = vand.u32 4294901760, %v10443_v61  ;;  %8843 = vmatpush1.bf16.msra.mxu1 %v8842_v37  ;;  %v14926_v2 = vand.u32 4294901760, %v10445_v62 }
  0x81   :  { %v559_v55 = vand.u32 4294901760, %v558_v17  ;;  %v8844_v25 = vpack.c.bf16 %v4458_v45, %v4446_v32  ;;  %v14930_v53 = vand.u32 4294901760, %v10449_v4  ;;  %v830_v11 = vand.u32 4294901760, %v829_v20 }
  0x82   :  { %v565_v18 = vand.u32 4294901760, %v564_v27  ;;  %8365 = vmatprep.subr.bf16.mxu0 %v8364_v26  ;;  %v841_v15 = vsub.f32 %v10443_v61, %v14927_v49  ;;  %v10961_v7 = vand.u32 4294901760, %v48_v23  ;;  %v4451_v37 = vsub.f32 %v10445_v62, %v14926_v2 }
  0x83   :  { %560 = vmatprep.mubr.f32.mxu0 %v559_v55  ;;  %4182 = vmatprep.mubr.f32.mxu1 %v559_v55  ;;  %v4463_v45 = vsub.f32 %v10449_v4, %v14930_v53  ;;  %v10969_v32 = vand.u32 4294901760, %v47_v0  ;;  %v14933_v26 = vand.u32 4294901760, %v10453_v6  ;;  %v14936_v20 = vand.u32 4294901760, %v10456_v10 }
  0x84   :  { %15717 = vst [vmem:[#allocation206_spill] sm:$0xff] %v10961_v7  ;;  %566 = vmatmul.mubr.f32.gmra.mrb[2].mxu0 %v565_v18  ;;  %4188 = vmatmul.mubr.f32.gmra.mrb[2].mxu1 %v565_v18  ;;  %v842_v27 = vand.u32 4294901760, %v841_v15  ;;  %v10973_v17 = vsub.f32 %v48_v23, %v10961_v7  ;;  %v14937_v55 = vand.u32 4294901760, %v10460_v12  ;;  %v4452_v2 = vand.u32 4294901760, %v4451_v37 }
  0x85   :  { %15718 = vst [vmem:[#allocation207_spill] sm:$0xff] %v10969_v32  ;;  %8845 = vmatprep.subr.bf16.mxu1 %v8844_v25  ;;  %v4464_v49 = vand.u32 4294901760, %v4463_v45  ;;  %v10978_v8 = vsub.f32 %v47_v0, %v10969_v32  ;;  %v847_v53 = vsub.f32 %v10453_v6, %v14933_v26  ;;  %v859_v23 = vsub.f32 %v10456_v10, %v14936_v20 }
  0x86   :  { %15719 = vst [vmem:[#allocation208_spill] sm:$0xff] %v10973_v17  ;;  %v8366_v9 = vpack.c.bf16 %v842_v27, %v830_v11  ;;  %v10984_v18 = vand.u32 4294901760, %v10973_v17  ;;  %v4469_v25 = vsub.f32 %v10460_v12, %v14937_v55  ;;  %v14938_v45 = vand.u32 4294901760, %v10462_v13 }
  0x87   :  { %15720 = vst [vmem:[#allocation209_spill] sm:$0xff] %v10978_v8  ;;  %v8846_v15 = vpack.c.bf16 %v4464_v49, %v4452_v2  ;;  %v10993_v0 = vand.u32 4294901760, %v10978_v8  ;;  %v848_v37 = vand.u32 4294901760, %v847_v53  ;;  %v860_v27 = vand.u32 4294901760, %v859_v23  ;;  %v50_v23 = vld [vmem:[%s14673_s1 + $0x48] sm:$0xff] }
  0x88   :  { %15721 = vst [vmem:[#allocation210_spill] sm:$0xff] %v10984_v18  ;;  %8367 = vmatpush1.bf16.msra.mxu0 %v8366_v9  ;;  %v574_v11 = vsub.f32 %v10973_v17, %v10984_v18  ;;  %v4470_v26 = vand.u32 4294901760, %v4469_v25  ;;  %v14947_v32 = vand.u32 4294901760, %v10469_v33  ;;  %v4481_v49 = vsub.f32 %v10462_v13, %v14938_v45  ;;  %v51_v9 = vld [vmem:[%s14673_s1 + $0x50] sm:$0xff] }
  0x89   :  { %15722 = vst [vmem:[#allocation211_spill] sm:$0xff] %v10993_v0  ;;  %8847 = vmatpush1.bf16.msra.mxu1 %v8846_v15  ;;  %v580_v20 = vsub.f32 %v10978_v8, %v10993_v0  ;;  %v8368_v15 = vpack.c.bf16 %v860_v27, %v848_v37  ;;  %v14950_v45 = vand.u32 4294901760, %v10477_v44  ;;  %v15723_v2 = vand.u32 4294901760, %v10471_v34 }
  0x8a   :  { %v575_v25 = vand.u32 4294901760, %v574_v11  ;;  %v853_v55 = vsub.f32 %v10469_v33, %v14947_v32  ;;  %v4482_v53 = vand.u32 4294901760, %v4481_v49  ;;  %v15724_v8 = vand.u32 4294901760, %v10475_v43 }
  0x8b   :  { %v581_v0 = vand.u32 4294901760, %v580_v20  ;;  %v865_v18 = vsub.f32 %v10471_v34, %v15723_v2  ;;  %v4487_v37 = vsub.f32 %v10477_v44, %v14950_v45  ;;  %v11025_v27 = vand.u32 4294901760, %v51_v9  ;;  %8369 = vmatprep.subr.bf16.mxu0 %v8368_v15 }
  0x8c   :  { %v4475_v17 = vsub.f32 %v10475_v43, %v15724_v8  ;;  %576 = vmatprep.mubr.f32.mxu0 %v575_v25  ;;  %4198 = vmatprep.mubr.f32.mxu1 %v575_v25  ;;  %v854_v11 = vand.u32 4294901760, %v853_v55  ;;  %v11027_v32 = vand.u32 4294901760, %v50_v23  ;;  %v8848_v20 = vpack.c.bf16 %v4482_v53, %v4470_v26 }
  0x8d   :  { %15725 = vst [vmem:[#allocation212_spill] sm:$0xff] %v11025_v27  ;;  %582 = vmatmul.mubr.f32.gmra.mrb[4].mxu0 %v581_v0  ;;  %v866_v49 = vand.u32 4294901760, %v865_v18  ;;  %v14956_v7 = vand.u32 4294901760, %v10481_v51  ;;  %4204 = vmatmul.mubr.f32.gmra.mrb[4].mxu1 %v581_v0  ;;  %v4488_v8 = vand.u32 4294901760, %v4487_v37  ;;  %v11031_v25 = vsub.f32 %v51_v9, %v11025_v27 }
  0x8e   :  { %15726 = vst [vmem:[#allocation213_spill] sm:$0xff] %v11027_v32  ;;  %v4476_v2 = vand.u32 4294901760, %v4475_v17  ;;  %v11034_v55 = vsub.f32 %v50_v23, %v11027_v32  ;;  %v14953_v45 = vand.u32 4294901760, %v10485_v56  ;;  %8849 = vmatprep.subr.bf16.mxu1 %v8848_v20  ;;  %v14954_v17 = vand.u32 4294901760, %v10489_v58 }
  0x8f   :  { %15727 = vst [vmem:[#allocation214_spill] sm:$0xff] %v11031_v25  ;;  %v8370_v44 = vpack.c.bf16 %v866_v49, %v854_v11  ;;  %v871_v26 = vsub.f32 %v10481_v51, %v14956_v7  ;;  %v14955_v18 = vand.u32 4294901760, %v10492_v63  ;;  %v11043_v53 = vand.u32 4294901760, %v11031_v25  ;;  %v53_v7 = vld [vmem:[%s14673_s1 + $0x60] sm:$0xff] }
  0x90   :  { %15728 = vst [vmem:[#allocation215_spill] sm:$0xff] %v11034_v55  ;;  %v8850_v0 = vpack.c.bf16 %v4488_v8, %v4476_v2  ;;  %v11046_v9 = vand.u32 4294901760, %v11034_v55  ;;  %v883_v23 = vsub.f32 %v10485_v56, %v14953_v45  ;;  %v4493_v11 = vsub.f32 %v10489_v58, %v14954_v17 }
  0x91   :  { %15729 = vst [vmem:[#allocation216_spill] sm:$0xff] %v11043_v53  ;;  %8371 = vmatpush1.bf16.msra.mxu0 %v8370_v44  ;;  %v872_v15 = vand.u32 4294901760, %v871_v26  ;;  %v4505_v37 = vsub.f32 %v10492_v63, %v14955_v18  ;;  %v14963_v20 = vand.u32 4294901760, %v10495_v19  ;;  %v590_v49 = vsub.f32 %v11031_v25, %v11043_v53 }
  0x92   :  { %15730 = vst [vmem:[#allocation217_spill] sm:$0xff] %v11046_v9  ;;  %8851 = vmatpush1.bf16.msra.mxu1 %v8850_v0  ;;  %v596_v2 = vsub.f32 %v11034_v55, %v11046_v9  ;;  %v884_v8 = vand.u32 4294901760, %v883_v23  ;;  %v14971_v44 = vand.u32 4294901760, %v10499_v35  ;;  %v4494_v26 = vand.u32 4294901760, %v4493_v11  ;;  %v54_v0 = vld [vmem:[%s14673_s1 + $0x68] sm:$0xff] }
  0x93   :  { %v4506_v45 = vand.u32 4294901760, %v4505_v37  ;;  %v877_v17 = vsub.f32 %v10495_v19, %v14963_v20  ;;  %v14970_v18 = vand.u32 4294901760, %v10503_v30  ;;  %v591_v9 = vand.u32 4294901760, %v590_v49 }
  0x94   :  { %v597_v23 = vand.u32 4294901760, %v596_v2  ;;  %v8372_v53 = vpack.c.bf16 %v884_v8, %v872_v15  ;;  %v889_v11 = vsub.f32 %v10499_v35, %v14971_v44  ;;  %v14972_v25 = vand.u32 4294901760, %v10505_v57  ;;  %v15733_v8 = vld [vmem:[#allocation58_spill] sm:$0xff]  ;;  %v15736_v44 = vld [vmem:[#allocation60_spill] sm:$0xff] }
  0x95   :  { %v8852_v37 = vpack.c.bf16 %v4506_v45, %v4494_v26  ;;  %v878_v55 = vand.u32 4294901760, %v877_v17  ;;  %v4499_v20 = vsub.f32 %v10503_v30, %v14970_v18  ;;  %592 = vmatprep.mubr.f32.mxu0 %v591_v9  ;;  %4214 = vmatprep.mubr.f32.mxu1 %v591_v9  ;;  %v11080_v27 = vand.u32 4294901760, %v54_v0 }
  0x96   :  { %v890_v32 = vand.u32 4294901760, %v889_v11  ;;  %v11082_v49 = vand.u32 4294901760, %v53_v7  ;;  %v14973_v15 = vand.u32 4294901760, %v10509_v5  ;;  %598 = vmatmul.mubr.f32.gmra.mrb[6].mxu0 %v597_v23  ;;  %8373 = vmatprep.subr.bf16.mxu0 %v8372_v53  ;;  %v4511_v45 = vsub.f32 %v10505_v57, %v14972_v25 }
  0x97   :  { %15731 = vst [vmem:[#allocation218_spill] sm:$0xff] %v11080_v27  ;;  %v4500_v2 = vand.u32 4294901760, %v4499_v20  ;;  %v14976_v17 = vand.u32 4294901760, %v10511_v3  ;;  %4220 = vmatmul.mubr.f32.gmra.mrb[6].mxu1 %v597_v23  ;;  %8853 = vmatprep.subr.bf16.mxu1 %v8852_v37  ;;  %v11091_v11 = vsub.f32 %v54_v0, %v11080_v27  ;;  %v14982_v53 = vand.u32 4294901760, %v15736_v44  ;;  %v15740_v37 = vld [vmem:[#allocation62_spill] sm:$0xff] }
  0x98   :  { %15732 = vst [vmem:[#allocation219_spill] sm:$0xff] %v11082_v49  ;;  %v8374_v9 = vpack.c.bf16 %v890_v32, %v878_v55  ;;  %v11094_v18 = vsub.f32 %v53_v7, %v11082_v49  ;;  %v4512_v20 = vand.u32 4294901760, %v4511_v45  ;;  %v895_v25 = vsub.f32 %v10509_v5, %v14973_v15 }
  0x99   :  { %15734 = vst [vmem:[#allocation220_spill] sm:$0xff] %v11091_v11  ;;  %v907_v26 = vsub.f32 %v10511_v3, %v14976_v17  ;;  %v15737_v23 = vand.u32 4294901760, %v15733_v8  ;;  %v11107_v55 = vand.u32 4294901760, %v11091_v11  ;;  %v4529_v0 = vsub.f32 %v15736_v44, %v14982_v53  ;;  %v57_v53 = vld [vmem:[%s14673_s1 + $0x80] sm:$0xff]  ;;  %v15743_v44 = vld [vmem:[#allocation66_spill] sm:$0xff] }
  0x9a   :  { %15735 = vst [vmem:[#allocation221_spill] sm:$0xff] %v11094_v18  ;;  %8375 = vmatpush1.bf16.msra.mxu0 %v8374_v9  ;;  %v11110_v7 = vand.u32 4294901760, %v11094_v18  ;;  %v14992_v45 = vand.u32 4294901760, %v15740_v37  ;;  %v8854_v15 = vpack.c.bf16 %v4512_v20, %v4500_v2  ;;  %v896_v49 = vand.u32 4294901760, %v895_v25  ;;  %v15741_v25 = vld [vmem:[#allocation63_spill] sm:$0xff]  ;;  %v15742_v20 = vld [vmem:[#allocation65_spill] sm:$0xff] }
  0x9b   :  { %v4517_v32 = vsub.f32 %v15733_v8, %v15737_v23  ;;  %15738 = vst [vmem:[#allocation222_spill] sm:$0xff] %v11107_v55  ;;  %v908_v17 = vand.u32 4294901760, %v907_v26  ;;  %v606_v23 = vsub.f32 %v11091_v11, %v11107_v55  ;;  %v4530_v8 = vand.u32 4294901760, %v4529_v0  ;;  %v56_v0 = vld [vmem:[%s14673_s1 + $0x78] sm:$0xff] }
  0x9c   :  { %15739 = vst [vmem:[#allocation223_spill] sm:$0xff] %v11110_v7  ;;  %v612_v9 = vsub.f32 %v11094_v18, %v11110_v7  ;;  %v901_v3 = vsub.f32 %v15740_v37, %v14992_v45  ;;  %8855 = vmatpush1.bf16.msra.mxu1 %v8854_v15  ;;  %v14994_v26 = vand.u32 4294901760, %v15741_v25  ;;  %v15000_v55 = vand.u32 4294901760, %v15743_v44 }
  0x9d   :  { %v4518_v27 = vand.u32 4294901760, %v4517_v32  ;;  %v8376_v2 = vpack.c.bf16 %v908_v17, %v896_v49  ;;  %v14996_v32 = vand.u32 4294901760, %v15742_v20  ;;  %v607_v7 = vand.u32 4294901760, %v606_v23 }
  0x9e   :  { %v613_v18 = vand.u32 4294901760, %v612_v9  ;;  %v902_v45 = vand.u32 4294901760, %v901_v3  ;;  %v913_v15 = vsub.f32 %v15741_v25, %v14994_v26  ;;  %v4535_v17 = vsub.f32 %v15743_v44, %v15000_v55  ;;  %v15746_v3 = vld [vmem:[#allocation68_spill] sm:$0xff] }
  0x9f   :  { %v8856_v11 = vpack.c.bf16 %v4530_v8, %v4518_v27  ;;  %8377 = vmatprep.subr.bf16.mxu0 %v8376_v2  ;;  %v4523_v49 = vsub.f32 %v15742_v20, %v14996_v32  ;;  %v11141_v37 = vand.u32 4294901760, %v57_v53  ;;  %608 = vmatprep.mubr.f32.mxu0 %v607_v7  ;;  %v11143_v23 = vand.u32 4294901760, %v56_v0  ;;  %v15747_v8 = vld [vmem:[#allocation69_spill] sm:$0xff]  ;;  %v15748_v2 = vld [vmem:[#allocation70_spill] sm:$0xff] }
  0xa0   :  { %4230 = vmatprep.mubr.f32.mxu1 %v607_v7  ;;  %v15005_v27 = vand.u32 4294901760, %v15746_v3  ;;  %v15007_v9 = vand.u32 4294901760, %v15747_v8  ;;  %614 = vmatmul.mubr.f32.gmra.mrb[8].mxu0 %v613_v18  ;;  %v914_v25 = vand.u32 4294901760, %v913_v15  ;;  %v4536_v20 = vand.u32 4294901760, %v4535_v17 }
  0xa1   :  { %15744 = vst [vmem:[#allocation224_spill] sm:$0xff] %v11141_v37  ;;  %15745 = vst [vmem:[#allocation225_spill] sm:$0xff] %v11143_v23  ;;  %4236 = vmatmul.mubr.f32.gmra.mrb[8].mxu1 %v613_v18  ;;  %v4524_v32 = vand.u32 4294901760, %v4523_v49  ;;  %v11149_v5 = vsub.f32 %v57_v53, %v11141_v37  ;;  %8857 = vmatprep.subr.bf16.mxu1 %v8856_v11  ;;  %v11152_v55 = vsub.f32 %v56_v0, %v11143_v23  ;;  %v15753_v11 = vld [vmem:[#allocation72_spill] sm:$0xff] }
  0xa2   :  { %v919_v7 = vsub.f32 %v15746_v3, %v15005_v27  ;;  %v931_v26 = vsub.f32 %v15747_v8, %v15007_v9  ;;  %v15751_v18 = vand.u32 4294901760, %v15748_v2  ;;  %v8378_v49 = vpack.c.bf16 %v914_v25, %v902_v45  ;;  %v15755_v25 = vld [vmem:[#allocation74_spill] sm:$0xff] }
  0xa3   :  { %15749 = vst [vmem:[#allocation226_spill] sm:$0xff] %v11149_v5  ;;  %15750 = vst [vmem:[#allocation227_spill] sm:$0xff] %v11152_v55  ;;  %v8858_v17 = vpack.c.bf16 %v4536_v20, %v4524_v32  ;;  %v11164_v53 = vand.u32 4294901760, %v11149_v5  ;;  %v15011_v0 = vand.u32 4294901760, %v15753_v11  ;;  %v11168_v23 = vand.u32 4294901760, %v11152_v55  ;;  %v15756_v32 = vld [vmem:[#allocation75_spill] sm:$0xff] }
  0xa4   :  { %v4541_v15 = vsub.f32 %v15748_v2, %v15751_v18  ;;  %v920_v37 = vand.u32 4294901760, %v919_v7  ;;  %v932_v27 = vand.u32 4294901760, %v931_v26  ;;  %8379 = vmatpush1.bf16.msra.mxu0 %v8378_v49  ;;  %v60_v2 = vld [vmem:[%s14673_s1 + $0x98] sm:$0xff]  ;;  %v15759_v18 = vand.u32 4294901760, %v15755_v25 }
  0xa5   :  { %15752 = vst [vmem:[#allocation228_spill] sm:$0xff] %v11164_v53  ;;  %15754 = vst [vmem:[#allocation229_spill] sm:$0xff] %v11168_v23  ;;  %8859 = vmatpush1.bf16.msra.mxu1 %v8858_v17  ;;  %v622_v9 = vsub.f32 %v11149_v5, %v11164_v53  ;;  %v4553_v45 = vsub.f32 %v15753_v11, %v15011_v0  ;;  %v628_v26 = vsub.f32 %v11152_v55, %v11168_v23  ;;  %v15758_v17 = vld [vmem:[#allocation78_spill] sm:$0xff] }
  0xa6   :  { %v4542_v3 = vand.u32 4294901760, %v4541_v15  ;;  %v8380_v7 = vpack.c.bf16 %v932_v27, %v920_v37  ;;  %v15757_v15 = vld [vmem:[#allocation77_spill] sm:$0xff]  ;;  %v15024_v53 = vand.u32 4294901760, %v15758_v17  ;;  %v59_v0 = vld [vmem:[%s14673_s1 + $0x90] sm:$0xff]  ;;  %v925_v11 = vsub.f32 %v15755_v25, %v15759_v18 }
  0xa7   :  { %v15022_v49 = vand.u32 4294901760, %v15757_v15  ;;  %v623_v5 = vand.u32 4294901760, %v622_v9  ;;  %v4554_v20 = vand.u32 4294901760, %v4553_v45  ;;  %v15760_v8 = vand.u32 4294901760, %v15756_v32 }
  0xa8   :  { %v629_v23 = vand.u32 4294901760, %v628_v26  ;;  %8381 = vmatprep.subr.bf16.mxu0 %v8380_v7  ;;  %v4559_v27 = vsub.f32 %v15758_v17, %v15024_v53  ;;  %v11199_v9 = vand.u32 4294901760, %v60_v2  ;;  %v926_v18 = vand.u32 4294901760, %v925_v11  ;;  %v15767_v11 = vld [vmem:[#allocation82_spill] sm:$0xff] }
  0xa9   :  { %v937_v44 = vsub.f32 %v15756_v32, %v15760_v8  ;;  %v4547_v37 = vsub.f32 %v15757_v15, %v15022_v49  ;;  %624 = vmatprep.mubr.f32.mxu0 %v623_v5  ;;  %4246 = vmatprep.mubr.f32.mxu1 %v623_v5  ;;  %v8860_v45 = vpack.c.bf16 %v4554_v20, %v4542_v3  ;;  %v11201_v25 = vand.u32 4294901760, %v59_v0  ;;  %v15764_v49 = vld [vmem:[#allocation80_spill] sm:$0xff]  ;;  %v15766_v5 = vld [vmem:[#allocation81_spill] sm:$0xff] }
  0xaa   :  { %15761 = vst [vmem:[#allocation230_spill] sm:$0xff] %v11199_v9  ;;  %630 = vmatmul.mubr.f32.gmra.mrb[10].mxu0 %v629_v23  ;;  %4252 = vmatmul.mubr.f32.gmra.mrb[10].mxu1 %v629_v23  ;;  %v4560_v26 = vand.u32 4294901760, %v4559_v27  ;;  %v11204_v7 = vsub.f32 %v60_v2, %v11199_v9  ;;  %v15027_v15 = vand.u32 4294901760, %v15764_v49  ;;  %v15030_v3 = vand.u32 4294901760, %v15766_v5  ;;  %v15769_v2 = vld [vmem:[#allocation84_spill] sm:$0xff] }
  0xab   :  { %v938_v55 = vand.u32 4294901760, %v937_v44  ;;  %15762 = vst [vmem:[#allocation231_spill] sm:$0xff] %v11201_v25  ;;  %v4548_v8 = vand.u32 4294901760, %v4547_v37  ;;  %8861 = vmatprep.subr.bf16.mxu1 %v8860_v45  ;;  %v11208_v17 = vsub.f32 %v59_v0, %v11201_v25  ;;  %v15034_v44 = vand.u32 4294901760, %v15767_v11  ;;  %v15771_v45 = vld [vmem:[#allocation86_spill] sm:$0xff] }
  0xac   :  { %15763 = vst [vmem:[#allocation232_spill] sm:$0xff] %v11204_v7  ;;  %v11213_v32 = vand.u32 4294901760, %v11204_v7  ;;  %v943_v23 = vsub.f32 %v15764_v49, %v15027_v15  ;;  %v15037_v37 = vand.u32 4294901760, %v15769_v2  ;;  %v955_v0 = vsub.f32 %v15766_v5, %v15030_v3  ;;  %v15772_v15 = vld [vmem:[#allocation87_spill] sm:$0xff] }
  0xad   :  { %v8382_v53 = vpack.c.bf16 %v938_v55, %v926_v18  ;;  %15765 = vst [vmem:[#allocation233_spill] sm:$0xff] %v11208_v17  ;;  %v8862_v20 = vpack.c.bf16 %v4560_v26, %v4548_v8  ;;  %v11220_v55 = vand.u32 4294901760, %v11208_v17  ;;  %v4565_v27 = vsub.f32 %v15767_v11, %v15034_v44 }
  0xae   :  { %15768 = vst [vmem:[#allocation234_spill] sm:$0xff] %v11213_v32  ;;  %v15045_v18 = vand.u32 4294901760, %v15771_v45  ;;  %v638_v8 = vsub.f32 %v11204_v7, %v11213_v32  ;;  %v944_v26 = vand.u32 4294901760, %v943_v23  ;;  %v15048_v25 = vand.u32 4294901760, %v15772_v15  ;;  %v15773_v7 = vld [vmem:[#allocation89_spill] sm:$0xff] }
  0xaf   :  { %8383 = vmatpush1.bf16.msra.mxu0 %v8382_v53  ;;  %15770 = vst [vmem:[#allocation235_spill] sm:$0xff] %v11220_v55  ;;  %8863 = vmatpush1.bf16.msra.mxu1 %v8862_v20  ;;  %v4577_v53 = vsub.f32 %v15769_v2, %v15037_v37  ;;  %v644_v3 = vsub.f32 %v11208_v17, %v11220_v55  ;;  %v956_v9 = vand.u32 4294901760, %v955_v0  ;;  %v4566_v5 = vand.u32 4294901760, %v4565_v27  ;;  %v63_v20 = vld [vmem:[%s14673_s1 + $0xb0] sm:$0xff]  ;;  %v62_v0 = vld [vmem:[%s14673_s1 + $0xa8] sm:$0xff] }
  0xb0   :  { %v949_v44 = vsub.f32 %v15771_v45, %v15045_v18  ;;  %v639_v23 = vand.u32 4294901760, %v638_v8  ;;  %v961_v37 = vsub.f32 %v15772_v15, %v15048_v25  ;;  %v15050_v2 = vand.u32 4294901760, %v15773_v7  ;;  %v15774_v18 = vld [vmem:[#allocation90_spill] sm:$0xff]  ;;  %v15778_v15 = vld [vmem:[#allocation93_spill] sm:$0xff] }
  0xb1   :  { %v4578_v32 = vand.u32 4294901760, %v4577_v53  ;;  %v645_v27 = vand.u32 4294901760, %v644_v3  ;;  %v8384_v55 = vpack.c.bf16 %v956_v9, %v944_v26  ;;  %v15053_v45 = vand.u32 4294901760, %v15774_v18 }
  0xb2   :  { %v950_v17 = vand.u32 4294901760, %v949_v44  ;;  %640 = vmatprep.mubr.f32.mxu0 %v639_v23  ;;  %4262 = vmatprep.mubr.f32.mxu1 %v639_v23  ;;  %v962_v8 = vand.u32 4294901760, %v961_v37  ;;  %v4571_v53 = vsub.f32 %v15773_v7, %v15050_v2  ;;  %v11254_v25 = vand.u32 4294901760, %v63_v20  ;;  %v15777_v44 = vld [vmem:[#allocation92_spill] sm:$0xff]  ;;  %v15780_v2 = vld [vmem:[#allocation94_spill] sm:$0xff] }
  0xb3   :  { %v8864_v11 = vpack.c.bf16 %v4578_v32, %v4566_v5  ;;  %646 = vmatmul.mubr.f32.gmra.mrb[12].mxu0 %v645_v27  ;;  %8385 = vmatprep.subr.bf16.mxu0 %v8384_v55  ;;  %v4583_v3 = vsub.f32 %v15774_v18, %v15053_v45  ;;  %v11259_v9 = vand.u32 4294901760, %v62_v0  ;;  %v15056_v26 = vand.u32 4294901760, %v15777_v44 }
  0xb4   :  { %15775 = vst [vmem:[#allocation236_spill] sm:$0xff] %v11254_v25  ;;  %v15059_v23 = vand.u32 4294901760, %v15778_v15  ;;  %4268 = vmatmul.mubr.f32.gmra.mrb[12].mxu1 %v645_v27  ;;  %v8386_v32 = vpack.c.bf16 %v962_v8, %v950_v17  ;;  %v4572_v5 = vand.u32 4294901760, %v4571_v53  ;;  %v11264_v37 = vsub.f32 %v63_v20, %v11254_v25  ;;  %v15783_v20 = vld [vmem:[#allocation96_spill] sm:$0xff] }
  0xb5   :  { %15776 = vst [vmem:[#allocation237_spill] sm:$0xff] %v11259_v9  ;;  %8865 = vmatprep.subr.bf16.mxu1 %v8864_v11  ;;  %v15061_v7 = vand.u32 4294901760, %v15780_v2  ;;  %v4584_v55 = vand.u32 4294901760, %v4583_v3  ;;  %v11268_v49 = vsub.f32 %v62_v0, %v11259_v9  ;;  %v967_v45 = vsub.f32 %v15777_v44, %v15056_v26  ;;  %v15784_v0 = vld [vmem:[#allocation98_spill] sm:$0xff] }
  0xb6   :  { %15779 = vst [vmem:[#allocation238_spill] sm:$0xff] %v11264_v37  ;;  %v979_v27 = vsub.f32 %v15778_v15, %v15059_v23  ;;  %8387 = vmatpush1.bf16.msra.mxu0 %v8386_v32  ;;  %v11277_v17 = vand.u32 4294901760, %v11264_v37  ;;  %v15066_v8 = vand.u32 4294901760, %v15783_v20  ;;  %v15069_v53 = vand.u32 4294901760, %v15784_v0 }
  0xb7   :  { %15781 = vst [vmem:[#allocation239_spill] sm:$0xff] %v11268_v49  ;;  %v4589_v11 = vsub.f32 %v15780_v2, %v15061_v7  ;;  %v8866_v3 = vpack.c.bf16 %v4584_v55, %v4572_v5  ;;  %v11285_v9 = vand.u32 4294901760, %v11268_v49  ;;  %v968_v26 = vand.u32 4294901760, %v967_v45  ;;  %v66_v5 = vld [vmem:[%s14673_s1 + $0xc8] sm:$0xff] }
  0xb8   :  { %15782 = vst [vmem:[#allocation240_spill] sm:$0xff] %v11277_v17  ;;  %v980_v25 = vand.u32 4294901760, %v979_v27  ;;  %v654_v32 = vsub.f32 %v11264_v37, %v11277_v17  ;;  %v4601_v15 = vsub.f32 %v15783_v20, %v15066_v8  ;;  %v973_v7 = vsub.f32 %v15784_v0, %v15069_v53  ;;  %v15786_v27 = vld [vmem:[#allocation99_spill] sm:$0xff]  ;;  %v65_v8 = vld [vmem:[%s14673_s1 + $0xc0] sm:$0xff]  ;;  %v15788_v0 = vld [vmem:[#allocation102_spill] sm:$0xff] }
  0xb9   :  { %15785 = vst [vmem:[#allocation241_spill] sm:$0xff] %v11285_v9  ;;  %v4590_v23 = vand.u32 4294901760, %v4589_v11  ;;  %8867 = vmatpush1.bf16.msra.mxu1 %v8866_v3  ;;  %v660_v45 = vsub.f32 %v11268_v49, %v11285_v9  ;;  %v15075_v17 = vand.u32 4294901760, %v15786_v27  ;;  %v15787_v11 = vld [vmem:[#allocation101_spill] sm:$0xff]  ;;  %v15080_v44 = vand.u32 4294901760, %v15788_v0 }
  0xba   :  { %v8388_v55 = vpack.c.bf16 %v980_v25, %v968_v26  ;;  %v15078_v37 = vand.u32 4294901760, %v15787_v11  ;;  %v655_v20 = vand.u32 4294901760, %v654_v32  ;;  %v4602_v2 = vand.u32 4294901760, %v4601_v15  ;;  %v15791_v32 = vld [vmem:[#allocation104_spill] sm:$0xff] }
  0xbb   :  { %v974_v53 = vand.u32 4294901760, %v973_v7  ;;  %v661_v18 = vand.u32 4294901760, %v660_v45  ;;  %v985_v3 = vsub.f32 %v15786_v27, %v15075_v17  ;;  %v11312_v26 = vand.u32 4294901760, %v66_v5 }
  0xbc   :  { %8389 = vmatprep.subr.bf16.mxu0 %v8388_v55  ;;  %v4595_v25 = vsub.f32 %v15787_v11, %v15078_v37  ;;  %656 = vmatprep.mubr.f32.mxu0 %v655_v20  ;;  %v8868_v9 = vpack.c.bf16 %v4602_v2, %v4590_v23  ;;  %v4607_v15 = vsub.f32 %v15788_v0, %v15080_v44  ;;  %v11317_v7 = vand.u32 4294901760, %v65_v8  ;;  %v15793_v37 = vld [vmem:[#allocation105_spill] sm:$0xff]  ;;  %v15795_v44 = vld [vmem:[#allocation106_spill] sm:$0xff] }
  0xbd   :  { %15789 = vst [vmem:[#allocation242_spill] sm:$0xff] %v11312_v26  ;;  %4278 = vmatprep.mubr.f32.mxu1 %v655_v20  ;;  %v15083_v45 = vand.u32 4294901760, %v15791_v32  ;;  %662 = vmatmul.mubr.f32.gmra.mrb[14].mxu0 %v661_v18  ;;  %v986_v55 = vand.u32 4294901760, %v985_v3  ;;  %v11321_v49 = vsub.f32 %v66_v5, %v11312_v26  ;;  %v15084_v11 = vand.u32 4294901760, %v15793_v37  ;;  %v15797_v3 = vld [vmem:[#allocation108_spill] sm:$0xff] }
  0xbe   :  { %15790 = vst [vmem:[#allocation243_spill] sm:$0xff] %v11317_v7  ;;  %4284 = vmatmul.mubr.f32.gmra.mrb[14].mxu1 %v661_v18  ;;  %v4596_v17 = vand.u32 4294901760, %v4595_v25  ;;  %8869 = vmatprep.subr.bf16.mxu1 %v8868_v9  ;;  %v4608_v20 = vand.u32 4294901760, %v4607_v15  ;;  %v11325_v2 = vsub.f32 %v65_v8, %v11317_v7  ;;  %v15091_v0 = vand.u32 4294901760, %v15795_v44  ;;  %v15799_v7 = vld [vmem:[#allocation110_spill] sm:$0xff] }
  0xbf   :  { %15792 = vst [vmem:[#allocation244_spill] sm:$0xff] %v11321_v49  ;;  %v991_v23 = vsub.f32 %v15791_v32, %v15083_v45  ;;  %v8390_v27 = vpack.c.bf16 %v986_v55, %v974_v53  ;;  %v11332_v18 = vand.u32 4294901760, %v11321_v49  ;;  %v1003_v5 = vsub.f32 %v15793_v37, %v15084_v11  ;;  %v15801_v32 = vld [vmem:[#allocation113_spill] sm:$0xff] }
  0xc0   :  { %15794 = vst [vmem:[#allocation245_spill] sm:$0xff] %v11325_v2  ;;  %v15092_v9 = vand.u32 4294901760, %v15797_v3  ;;  %v8870_v25 = vpack.c.bf16 %v4608_v20, %v4596_v17  ;;  %v11339_v8 = vand.u32 4294901760, %v11325_v2  ;;  %v4613_v45 = vsub.f32 %v15795_v44, %v15091_v0 }
  0xc1   :  { %15796 = vst [vmem:[#allocation246_spill] sm:$0xff] %v11332_v18  ;;  %v992_v15 = vand.u32 4294901760, %v991_v23  ;;  %8391 = vmatpush1.bf16.msra.mxu0 %v8390_v27  ;;  %v670_v53 = vsub.f32 %v11321_v49, %v11332_v18  ;;  %v1004_v55 = vand.u32 4294901760, %v1003_v5  ;;  %v15800_v23 = vld [vmem:[#allocation111_spill] sm:$0xff]  ;;  %v69_v27 = vld [vmem:[%s14673_s1 + $0xe0] sm:$0xff] }
  0xc2   :  { %15798 = vst [vmem:[#allocation247_spill] sm:$0xff] %v11339_v8  ;;  %v4625_v11 = vsub.f32 %v15797_v3, %v15092_v9  ;;  %8871 = vmatpush1.bf16.msra.mxu1 %v8870_v25  ;;  %v676_v17 = vsub.f32 %v11325_v2, %v11339_v8  ;;  %v4614_v20 = vand.u32 4294901760, %v4613_v45  ;;  %v15103_v37 = vand.u32 4294901760, %v15800_v23  ;;  %v68_v5 = vld [vmem:[%s14673_s1 + $0xd8] sm:$0xff]  ;;  %v15804_v3 = vld [vmem:[#allocation114_spill] sm:$0xff] }
  0xc3   :  { %v671_v9 = vand.u32 4294901760, %v670_v53  ;;  %v8392_v18 = vpack.c.bf16 %v1004_v55, %v992_v15  ;;  %v15802_v25 = vand.u32 4294901760, %v15799_v7  ;;  %v15803_v2 = vand.u32 4294901760, %v15801_v32 }
  0xc4   :  { %v4626_v26 = vand.u32 4294901760, %v4625_v11  ;;  %v677_v45 = vand.u32 4294901760, %v676_v17  ;;  %v1009_v0 = vsub.f32 %v15800_v23, %v15103_v37  ;;  %v15106_v44 = vand.u32 4294901760, %v15804_v3  ;;  %v15807_v23 = vld [vmem:[#allocation116_spill] sm:$0xff] }
  0xc5   :  { %v997_v8 = vsub.f32 %v15799_v7, %v15802_v25  ;;  %v4619_v49 = vsub.f32 %v15801_v32, %v15803_v2  ;;  %672 = vmatprep.mubr.f32.mxu0 %v671_v9  ;;  %4294 = vmatprep.mubr.f32.mxu1 %v671_v9  ;;  %v11370_v11 = vand.u32 4294901760, %v69_v27  ;;  %v11372_v55 = vand.u32 4294901760, %v68_v5  ;;  %v15811_v32 = vld [vmem:[#allocation118_spill] sm:$0xff] }
  0xc6   :  { %v8872_v53 = vpack.c.bf16 %v4626_v26, %v4614_v20  ;;  %678 = vmatmul.mubr.f32.gmra.mrb[16].mxu0 %v677_v45  ;;  %8393 = vmatprep.subr.bf16.mxu0 %v8392_v18  ;;  %v1010_v17 = vand.u32 4294901760, %v1009_v0  ;;  %v4631_v37 = vsub.f32 %v15804_v3, %v15106_v44  ;;  %v15109_v2 = vand.u32 4294901760, %v15807_v23  ;;  %v15812_v3 = vld [vmem:[#allocation120_spill] sm:$0xff] }
  0xc7   :  { %v998_v15 = vand.u32 4294901760, %v997_v8  ;;  %15805 = vst [vmem:[#allocation248_spill] sm:$0xff] %v11370_v11  ;;  %15806 = vst [vmem:[#allocation249_spill] sm:$0xff] %v11372_v55  ;;  %v4620_v25 = vand.u32 4294901760, %v4619_v49  ;;  %4300 = vmatmul.mubr.f32.gmra.mrb[16].mxu1 %v677_v45  ;;  %v11379_v9 = vsub.f32 %v69_v27, %v11370_v11  ;;  %v11382_v26 = vsub.f32 %v68_v5, %v11372_v55  ;;  %v15810_v8 = vld [vmem:[#allocation117_spill] sm:$0xff] }
  0xc8   :  { %8873 = vmatprep.subr.bf16.mxu1 %v8872_v53  ;;  %v15115_v20 = vand.u32 4294901760, %v15810_v8  ;;  %v15120_v18 = vand.u32 4294901760, %v15811_v32  ;;  %v4632_v49 = vand.u32 4294901760, %v4631_v37  ;;  %v1015_v44 = vsub.f32 %v15807_v23, %v15109_v2  ;;  %v15815_v2 = vld [vmem:[#allocation122_spill] sm:$0xff] }
  0xc9   :  { %15808 = vst [vmem:[#allocation250_spill] sm:$0xff] %v11379_v9  ;;  %15809 = vst [vmem:[#allocation251_spill] sm:$0xff] %v11382_v26  ;;  %v8394_v0 = vpack.c.bf16 %v1010_v17, %v998_v15  ;;  %v15119_v7 = vand.u32 4294901760, %v15812_v3  ;;  %v11391_v45 = vand.u32 4294901760, %v11379_v9  ;;  %v11394_v27 = vand.u32 4294901760, %v11382_v26 }
  0xca   :  { %v1027_v5 = vsub.f32 %v15810_v8, %v15115_v20  ;;  %v4637_v37 = vsub.f32 %v15811_v32, %v15120_v18  ;;  %v8874_v53 = vpack.c.bf16 %v4632_v49, %v4620_v25  ;;  %v1016_v15 = vand.u32 4294901760, %v1015_v44  ;;  %v15816_v25 = vld [vmem:[#allocation123_spill] sm:$0xff]  ;;  %v15817_v49 = vld [vmem:[#allocation125_spill] sm:$0xff] }
  0xcb   :  { %15813 = vst [vmem:[#allocation252_spill] sm:$0xff] %v11391_v45  ;;  %15814 = vst [vmem:[#allocation253_spill] sm:$0xff] %v11394_v27  ;;  %8395 = vmatpush1.bf16.msra.mxu0 %v8394_v0  ;;  %v4649_v17 = vsub.f32 %v15812_v3, %v15119_v7  ;;  %v15129_v55 = vand.u32 4294901760, %v15815_v2  ;;  %v686_v11 = vsub.f32 %v11379_v9, %v11391_v45  ;;  %v15131_v0 = vand.u32 4294901760, %v15816_v25  ;;  %v72_v18 = vld [vmem:[%s14673_s1 + $0xf8] sm:$0xff]  ;;  %v15823_v3 = vld [vmem:[#allocation130_spill] sm:$0xff] }
  0xcc   :  { %v692_v23 = vsub.f32 %v11382_v26, %v11394_v27  ;;  %v1028_v20 = vand.u32 4294901760, %v1027_v5  ;;  %v4638_v8 = vand.u32 4294901760, %v4637_v37  ;;  %8875 = vmatpush1.bf16.msra.mxu1 %v8874_v53  ;;  %v15134_v7 = vand.u32 4294901760, %v15817_v49  ;;  %v71_v27 = vld [vmem:[%s14673_s1 + $0xf0] sm:$0xff] }
  0xcd   :  { %v4650_v57 = vand.u32 4294901760, %v4649_v17  ;;  %v1021_v44 = vsub.f32 %v15815_v2, %v15129_v55  ;;  %v687_v5 = vand.u32 4294901760, %v686_v11  ;;  %v15818_v17 = vld [vmem:[#allocation126_spill] sm:$0xff]  ;;  %v1033_v55 = vsub.f32 %v15816_v25, %v15131_v0  ;;  %v15822_v0 = vld [vmem:[#allocation129_spill] sm:$0xff] }
  0xce   :  { %v693_v37 = vand.u32 4294901760, %v692_v23  ;;  %v8396_v53 = vpack.c.bf16 %v1028_v20, %v1016_v15  ;;  %v15136_v45 = vand.u32 4294901760, %v15818_v17  ;;  %v4643_v2 = vsub.f32 %v15817_v49, %v15134_v7 }
  0xcf   :  { %v8876_v26 = vpack.c.bf16 %v4650_v57, %v4638_v8  ;;  %v1022_v9 = vand.u32 4294901760, %v1021_v44  ;;  %688 = vmatprep.mubr.f32.mxu0 %v687_v5  ;;  %4310 = vmatprep.mubr.f32.mxu1 %v687_v5  ;;  %v11431_v23 = vand.u32 4294901760, %v72_v18  ;;  %v11433_v20 = vand.u32 4294901760, %v71_v27  ;;  %v15821_v57 = vld [vmem:[#allocation128_spill] sm:$0xff] }
  0xd0   :  { %v4655_v11 = vsub.f32 %v15818_v17, %v15136_v45  ;;  %v15141_v8 = vand.u32 4294901760, %v15821_v57  ;;  %694 = vmatmul.mubr.f32.gmra.mrb[18].mxu0 %v693_v37  ;;  %8397 = vmatprep.subr.bf16.mxu0 %v8396_v53  ;;  %v1034_v15 = vand.u32 4294901760, %v1033_v55  ;;  %v4644_v44 = vand.u32 4294901760, %v4643_v2 }
  0xd1   :  { %15819 = vst [vmem:[#allocation254_spill] sm:$0xff] %v11431_v23  ;;  %15820 = vst [vmem:[#allocation255_spill] sm:$0xff] %v11433_v20  ;;  %v15140_v25 = vand.u32 4294901760, %v15822_v0  ;;  %v15144_v7 = vand.u32 4294901760, %v15823_v3  ;;  %4316 = vmatmul.mubr.f32.gmra.mrb[18].mxu1 %v693_v37  ;;  %8877 = vmatprep.subr.bf16.mxu1 %v8876_v26  ;;  %v11439_v49 = vsub.f32 %v72_v18, %v11431_v23  ;;  %v15826_v26 = vld [vmem:[#allocation132_spill] sm:$0xff] }
  0xd2   :  { %v4656_v5 = vand.u32 4294901760, %v4655_v11  ;;  %v11442_v45 = vsub.f32 %v71_v27, %v11433_v20  ;;  %v1039_v17 = vsub.f32 %v15821_v57, %v15141_v8  ;;  %v8398_v53 = vpack.c.bf16 %v1034_v15, %v1022_v9  ;;  %v15829_v8 = vld [vmem:[#allocation134_spill] sm:$0xff] }
  0xd3   :  { %15824 = vst [vmem:[#allocation256_spill] sm:$0xff] %v11439_v49  ;;  %v1051_v55 = vsub.f32 %v15822_v0, %v15140_v25  ;;  %v4661_v2 = vsub.f32 %v15823_v3, %v15144_v7  ;;  %v15147_v37 = vand.u32 4294901760, %v15826_v26  ;;  %v11455_v11 = vand.u32 4294901760, %v11439_v49  ;;  %v15830_v7 = vld [vmem:[#allocation135_spill] sm:$0xff]  ;;  %v15831_v0 = vld [vmem:[#allocation137_spill] sm:$0xff] }
  0xd4   :  { %15825 = vst [vmem:[#allocation257_spill] sm:$0xff] %v11442_v45  ;;  %v8878_v18 = vpack.c.bf16 %v4656_v5, %v4644_v44  ;;  %v11458_v27 = vand.u32 4294901760, %v11442_v45  ;;  %v1040_v20 = vand.u32 4294901760, %v1039_v17  ;;  %8399 = vmatpush1.bf16.msra.mxu0 %v8398_v53  ;;  %v15157_v23 = vand.u32 4294901760, %v15829_v8  ;;  %v75_v53 = vld [vmem:[%s14673_s1 + $0x110] sm:$0xff] }
  0xd5   :  { %15827 = vst [vmem:[#allocation258_spill] sm:$0xff] %v11455_v11  ;;  %v1052_v9 = vand.u32 4294901760, %v1051_v55  ;;  %v4662_v15 = vand.u32 4294901760, %v4661_v2  ;;  %v4673_v25 = vsub.f32 %v15826_v26, %v15147_v37  ;;  %v702_v44 = vsub.f32 %v11439_v49, %v11455_v11  ;;  %v15832_v37 = vld [vmem:[#allocation138_spill] sm:$0xff] }
  0xd6   :  { %15828 = vst [vmem:[#allocation259_spill] sm:$0xff] %v11458_v27  ;;  %8879 = vmatpush1.bf16.msra.mxu1 %v8878_v18  ;;  %v708_v5 = vsub.f32 %v11442_v45, %v11458_v27  ;;  %v1045_v18 = vsub.f32 %v15829_v8, %v15157_v23  ;;  %v15161_v26 = vand.u32 4294901760, %v15832_v37  ;;  %v74_v27 = vld [vmem:[%s14673_s1 + $0x108] sm:$0xff]  ;;  %v15833_v17 = vand.u32 4294901760, %v15830_v7 }
  0xd7   :  { %v8400_v55 = vpack.c.bf16 %v1052_v9, %v1040_v20  ;;  %v4674_v2 = vand.u32 4294901760, %v4673_v25  ;;  %v703_v11 = vand.u32 4294901760, %v702_v44  ;;  %v15834_v49 = vand.u32 4294901760, %v15831_v0 }
  0xd8   :  { %v709_v3 = vand.u32 4294901760, %v708_v5  ;;  %v1057_v45 = vsub.f32 %v15830_v7, %v15833_v17  ;;  %v1046_v9 = vand.u32 4294901760, %v1045_v18  ;;  %v4679_v23 = vsub.f32 %v15832_v37, %v15161_v26  ;;  %v15837_v17 = vld [vmem:[#allocation140_spill] sm:$0xff]  ;;  %v15840_v18 = vld [vmem:[#allocation142_spill] sm:$0xff] }
  0xd9   :  { %v4667_v25 = vsub.f32 %v15831_v0, %v15834_v49  ;;  %8401 = vmatprep.subr.bf16.mxu0 %v8400_v55  ;;  %v8880_v20 = vpack.c.bf16 %v4674_v2, %v4662_v15  ;;  %v11489_v8 = vand.u32 4294901760, %v75_v53  ;;  %704 = vmatprep.mubr.f32.mxu0 %v703_v11  ;;  %v11491_v57 = vand.u32 4294901760, %v74_v27  ;;  %v15839_v55 = vld [vmem:[#allocation141_spill] sm:$0xff] }
  0xda   :  { %4326 = vmatprep.mubr.f32.mxu1 %v703_v11  ;;  %v1058_v44 = vand.u32 4294901760, %v1057_v45  ;;  %v15164_v7 = vand.u32 4294901760, %v15837_v17  ;;  %710 = vmatmul.mubr.f32.gmra.mrb[20].mxu0 %v709_v3  ;;  %v4680_v49 = vand.u32 4294901760, %v4679_v23  ;;  %v15165_v2 = vand.u32 4294901760, %v15839_v55 }
  0xdb   :  { %15835 = vst [vmem:[#allocation260_spill] sm:$0xff] %v11489_v8  ;;  %v4668_v5 = vand.u32 4294901760, %v4667_v25  ;;  %15836 = vst [vmem:[#allocation261_spill] sm:$0xff] %v11491_v57  ;;  %4332 = vmatmul.mubr.f32.gmra.mrb[20].mxu1 %v709_v3  ;;  %v11495_v15 = vsub.f32 %v75_v53, %v11489_v8  ;;  %v15171_v26 = vand.u32 4294901760, %v15840_v18  ;;  %8881 = vmatprep.subr.bf16.mxu1 %v8880_v20  ;;  %v15842_v25 = vld [vmem:[#allocation144_spill] sm:$0xff]  ;;  %v15846_v8 = vld [vmem:[#allocation147_spill] sm:$0xff] }
  0xdc   :  { %v8402_v37 = vpack.c.bf16 %v1058_v44, %v1046_v9  ;;  %v11500_v11 = vsub.f32 %v74_v27, %v11491_v57  ;;  %v1063_v45 = vsub.f32 %v15837_v17, %v15164_v7  ;;  %v15173_v0 = vand.u32 4294901760, %v15842_v25 }
  0xdd   :  { %15838 = vst [vmem:[#allocation140_spill] sm:$0xff] %v11495_v15  ;;  %v8882_v3 = vpack.c.bf16 %v4680_v49, %v4668_v5  ;;  %v11507_v23 = vand.u32 4294901760, %v11495_v15  ;;  %v1075_v53 = vsub.f32 %v15839_v55, %v15165_v2  ;;  %v4685_v20 = vsub.f32 %v15840_v18, %v15171_v26  ;;  %v15845_v5 = vld [vmem:[#allocation146_spill] sm:$0xff]  ;;  %v15847_v18 = vld [vmem:[#allocation149_spill] sm:$0xff] }
  0xde   :  { %15841 = vst [vmem:[#allocation262_spill] sm:$0xff] %v11500_v11  ;;  %8403 = vmatpush1.bf16.msra.mxu0 %v8402_v37  ;;  %v11516_v27 = vand.u32 4294901760, %v11500_v11  ;;  %v1064_v9 = vand.u32 4294901760, %v1063_v45  ;;  %v4697_v44 = vsub.f32 %v15842_v25, %v15173_v0  ;;  %v15182_v49 = vand.u32 4294901760, %v15845_v5 }
  0xdf   :  { %15843 = vst [vmem:[#allocation263_spill] sm:$0xff] %v11507_v23  ;;  %8883 = vmatpush1.bf16.msra.mxu1 %v8882_v3  ;;  %v718_v7 = vsub.f32 %v11495_v15, %v11507_v23  ;;  %v1076_v2 = vand.u32 4294901760, %v1075_v53  ;;  %v4686_v57 = vand.u32 4294901760, %v4685_v20  ;;  %v15187_v0 = vand.u32 4294901760, %v15847_v18  ;;  %v78_v3 = vld [vmem:[%s14673_s1 + $0x128] sm:$0xff]  ;;  %v77_v53 = vld [vmem:[%s14673_s1 + $0x120] sm:$0xff] }
  0xe0   :  { %15844 = vst [vmem:[#allocation264_spill] sm:$0xff] %v11516_v27  ;;  %v724_v37 = vsub.f32 %v11500_v11, %v11516_v27  ;;  %v4698_v26 = vand.u32 4294901760, %v4697_v44  ;;  %v1069_v45 = vsub.f32 %v15845_v5, %v15182_v49  ;;  %v15848_v23 = vand.u32 4294901760, %v15846_v8  ;;  %v15849_v27 = vld [vmem:[#allocation150_spill] sm:$0xff] }
  0xe1   :  { %v719_v20 = vand.u32 4294901760, %v718_v7  ;;  %v8404_v32 = vpack.c.bf16 %v1076_v2, %v1064_v9  ;;  %v15189_v11 = vand.u32 4294901760, %v15849_v27  ;;  %v4691_v25 = vsub.f32 %v15847_v18, %v15187_v0 }
  0xe2   :  { %v1081_v44 = vsub.f32 %v15846_v8, %v15848_v23  ;;  %v725_v15 = vand.u32 4294901760, %v724_v37  ;;  %v8884_v49 = vpack.c.bf16 %v4698_v26, %v4686_v57  ;;  %v1070_v5 = vand.u32 4294901760, %v1069_v45  ;;  %v15852_v57 = vld [vmem:[#allocation152_spill] sm:$0xff]  ;;  %v15853_v37 = vld [vmem:[#allocation153_spill] sm:$0xff]  ;;  %v15854_v8 = vld [vmem:[#allocation154_spill] sm:$0xff] }
  0xe3   :  { %720 = vmatprep.mubr.f32.mxu0 %v719_v20  ;;  %4342 = vmatprep.mubr.f32.mxu1 %v719_v20  ;;  %v4703_v7 = vsub.f32 %v15849_v27, %v15189_v11  ;;  %v11547_v2 = vand.u32 4294901760, %v78_v3  ;;  %v11549_v9 = vand.u32 4294901760, %v77_v53  ;;  %v4692_v23 = vand.u32 4294901760, %v4691_v25 }
  0xe4   :  { %v1082_v55 = vand.u32 4294901760, %v1081_v44  ;;  %726 = vmatmul.mubr.f32.gmra.mrb[22].mxu0 %v725_v15  ;;  %8405 = vmatprep.subr.bf16.mxu0 %v8404_v32  ;;  %v15190_v26 = vand.u32 4294901760, %v15852_v57  ;;  %v15196_v45 = vand.u32 4294901760, %v15853_v37  ;;  %v15197_v0 = vand.u32 4294901760, %v15854_v8 }
  0xe5   :  { %15850 = vst [vmem:[#allocation265_spill] sm:$0xff] %v11547_v2  ;;  %15851 = vst [vmem:[#allocation266_spill] sm:$0xff] %v11549_v9  ;;  %4348 = vmatmul.mubr.f32.gmra.mrb[22].mxu1 %v725_v15  ;;  %8885 = vmatprep.subr.bf16.mxu1 %v8884_v49  ;;  %v4704_v44 = vand.u32 4294901760, %v4703_v7  ;;  %v11555_v18 = vsub.f32 %v78_v3, %v11547_v2  ;;  %v11558_v11 = vsub.f32 %v77_v53, %v11549_v9  ;;  %v15860_v7 = vld [vmem:[#allocation158_spill] sm:$0xff] }
  0xe6   :  { %v8406_v20 = vpack.c.bf16 %v1082_v55, %v1070_v5  ;;  %v1087_v32 = vsub.f32 %v15852_v57, %v15190_v26  ;;  %v1099_v25 = vsub.f32 %v15853_v37, %v15196_v45  ;;  %v4709_v15 = vsub.f32 %v15854_v8, %v15197_v0  ;;  %v15857_v55 = vld [vmem:[#allocation156_spill] sm:$0xff]  ;;  %v15861_v0 = vld [vmem:[#allocation159_spill] sm:$0xff] }
  0xe7   :  { %15855 = vst [vmem:[#allocation267_spill] sm:$0xff] %v11555_v18  ;;  %15856 = vst [vmem:[#allocation268_spill] sm:$0xff] %v11558_v11  ;;  %v15199_v5 = vand.u32 4294901760, %v15857_v55  ;;  %v8886_v49 = vpack.c.bf16 %v4704_v44, %v4692_v23  ;;  %v11571_v3 = vand.u32 4294901760, %v11555_v18  ;;  %v11574_v53 = vand.u32 4294901760, %v11558_v11 }
  0xe8   :  { %8407 = vmatpush1.bf16.msra.mxu0 %v8406_v20  ;;  %v15210_v26 = vand.u32 4294901760, %v15860_v7  ;;  %v1088_v9 = vand.u32 4294901760, %v1087_v32  ;;  %v1100_v2 = vand.u32 4294901760, %v1099_v25  ;;  %v4710_v57 = vand.u32 4294901760, %v4709_v15  ;;  %v81_v32 = vld [vmem:[%s14673_s1 + $0x140] sm:$0xff] }
  0xe9   :  { %15858 = vst [vmem:[#allocation269_spill] sm:$0xff] %v11571_v3  ;;  %15859 = vst [vmem:[#allocation270_spill] sm:$0xff] %v11574_v53  ;;  %v4721_v45 = vsub.f32 %v15857_v55, %v15199_v5  ;;  %8887 = vmatpush1.bf16.msra.mxu1 %v8886_v49  ;;  %v734_v20 = vsub.f32 %v11555_v18, %v11571_v3  ;;  %v740_v23 = vsub.f32 %v11558_v11, %v11574_v53  ;;  %v15862_v5 = vld [vmem:[#allocation161_spill] sm:$0xff]  ;;  %v15863_v55 = vld [vmem:[#allocation162_spill] sm:$0xff] }
  0xea   :  { %v1093_v44 = vsub.f32 %v15860_v7, %v15210_v26  ;;  %v15213_v8 = vand.u32 4294901760, %v15861_v0  ;;  %v8408_v25 = vpack.c.bf16 %v1100_v2, %v1088_v9  ;;  %v15214_v49 = vand.u32 4294901760, %v15862_v5  ;;  %v80_v53 = vld [vmem:[%s14673_s1 + $0x138] sm:$0xff] }
  0xeb   :  { %v4722_v15 = vand.u32 4294901760, %v4721_v45  ;;  %v15216_v37 = vand.u32 4294901760, %v15863_v55  ;;  %v735_v3 = vand.u32 4294901760, %v734_v20  ;;  %v741_v11 = vand.u32 4294901760, %v740_v23 }
  0xec   :  { %v1094_v18 = vand.u32 4294901760, %v1093_v44  ;;  %v1105_v26 = vsub.f32 %v15861_v0, %v15213_v8  ;;  %8409 = vmatprep.subr.bf16.mxu0 %v8408_v25  ;;  %v4715_v2 = vsub.f32 %v15862_v5, %v15214_v49  ;;  %v11605_v45 = vand.u32 4294901760, %v81_v32  ;;  %v15866_v44 = vld [vmem:[#allocation164_spill] sm:$0xff]  ;;  %v15867_v8 = vld [vmem:[#allocation165_spill] sm:$0xff]  ;;  %v15869_v5 = vld [vmem:[#allocation166_spill] sm:$0xff] }
  0xed   :  { %v8888_v7 = vpack.c.bf16 %v4722_v15, %v4710_v57  ;;  %v4727_v9 = vsub.f32 %v15863_v55, %v15216_v37  ;;  %736 = vmatprep.mubr.f32.mxu0 %v735_v3  ;;  %4358 = vmatprep.mubr.f32.mxu1 %v735_v3  ;;  %v11607_v23 = vand.u32 4294901760, %v80_v53  ;;  %v15218_v27 = vand.u32 4294901760, %v15866_v44 }
  0xee   :  { %15864 = vst [vmem:[#allocation159_spill] sm:$0xff] %v11605_v45  ;;  %v1106_v20 = vand.u32 4294901760, %v1105_v26  ;;  %v15221_v25 = vand.u32 4294901760, %v15867_v8  ;;  %742 = vmatmul.mubr.f32.gmra.mrb[24].mxu0 %v741_v11  ;;  %4364 = vmatmul.mubr.f32.gmra.mrb[24].mxu1 %v741_v11  ;;  %v4716_v57 = vand.u32 4294901760, %v4715_v2  ;;  %v11612_v49 = vsub.f32 %v81_v32, %v11605_v45 }
  0xef   :  { %15865 = vst [vmem:[#allocation271_spill] sm:$0xff] %v11607_v23  ;;  %v4728_v15 = vand.u32 4294901760, %v4727_v9  ;;  %v15222_v37 = vand.u32 4294901760, %v15869_v5  ;;  %8889 = vmatprep.subr.bf16.mxu1 %v8888_v7  ;;  %v11616_v3 = vsub.f32 %v80_v53, %v11607_v23  ;;  %v1111_v26 = vsub.f32 %v15866_v44, %v15218_v27  ;;  %v15873_v27 = vld [vmem:[#allocation170_spill] sm:$0xff] }
  0xf0   :  { %15868 = vst [vmem:[#allocation272_spill] sm:$0xff] %v11612_v49  ;;  %v8410_v55 = vpack.c.bf16 %v1106_v20, %v1094_v18  ;;  %v1123_v11 = vsub.f32 %v15867_v8, %v15221_v25  ;;  %v11625_v9 = vand.u32 4294901760, %v11612_v49  ;;  %v15227_v18 = vand.u32 4294901760, %v10772_v54  ;;  %v15877_v8 = vld [vmem:[#allocation174_spill] sm:$0xff] }
  0xf1   :  { %15870 = vst [vmem:[#allocation273_spill] sm:$0xff] %v11616_v3  ;;  %v8890_v2 = vpack.c.bf16 %v4728_v15, %v4716_v57  ;;  %v4733_v7 = vsub.f32 %v15869_v5, %v15222_v37  ;;  %v11632_v53 = vand.u32 4294901760, %v11616_v3  ;;  %v1112_v32 = vand.u32 4294901760, %v1111_v26  ;;  %v15874_v37 = vld [vmem:[#allocation171_spill] sm:$0xff] }
  0xf2   :  { %15871 = vst [vmem:[#allocation274_spill] sm:$0xff] %v11625_v9  ;;  %8411 = vmatpush1.bf16.msra.mxu0 %v8410_v55  ;;  %v1124_v20 = vand.u32 4294901760, %v1123_v11  ;;  %v15237_v23 = vand.u32 4294901760, %v15873_v27  ;;  %v750_v57 = vsub.f32 %v11612_v49, %v11625_v9  ;;  %v4745_v25 = vsub.f32 %v10772_v54, %v15227_v18  ;;  %v84_v55 = vld [vmem:[%s14673_s1 + $0x158] sm:$0xff]  ;;  %v15875_v9 = vld [vmem:[#allocation173_spill] sm:$0xff]  ;;  %v83_v18 = vld [vmem:[%s14673_s1 + $0x150] sm:$0xff] }
  0xf3   :  { %15872 = vst [vmem:[#allocation275_spill] sm:$0xff] %v11632_v53  ;;  %8891 = vmatpush1.bf16.msra.mxu1 %v8890_v2  ;;  %v4734_v15 = vand.u32 4294901760, %v4733_v7  ;;  %v756_v26 = vsub.f32 %v11616_v3, %v11632_v53  ;;  %v15240_v7 = vand.u32 4294901760, %v15875_v9  ;;  %v15876_v54 = vand.u32 4294901760, %v15874_v37 }
  0xf4   :  { %v8412_v11 = vpack.c.bf16 %v1124_v20, %v1112_v32  ;;  %v1117_v2 = vsub.f32 %v15873_v27, %v15237_v23  ;;  %v751_v49 = vand.u32 4294901760, %v750_v57  ;;  %v4746_v45 = vand.u32 4294901760, %v4745_v25 }
  0xf5   :  { %v1129_v5 = vsub.f32 %v15874_v37, %v15876_v54  ;;  %v15243_v44 = vand.u32 4294901760, %v15877_v8  ;;  %v757_v53 = vand.u32 4294901760, %v756_v26  ;;  %v4739_v20 = vsub.f32 %v15875_v9, %v15240_v7  ;;  %v15882_v9 = vld [vmem:[#allocation177_spill] sm:$0xff] }
  0xf6   :  { %8413 = vmatprep.subr.bf16.mxu0 %v8412_v11  ;;  %v1118_v32 = vand.u32 4294901760, %v1117_v2  ;;  %v11660_v23 = vand.u32 4294901760, %v84_v55  ;;  %752 = vmatprep.mubr.f32.mxu0 %v751_v49  ;;  %v8892_v3 = vpack.c.bf16 %v4746_v45, %v4734_v15  ;;  %v11665_v54 = vand.u32 4294901760, %v83_v18  ;;  %v15881_v2 = vld [vmem:[#allocation176_spill] sm:$0xff]  ;;  %v15884_v15 = vld [vmem:[#allocation178_spill] sm:$0xff] }
  0xf7   :  { %4374 = vmatprep.mubr.f32.mxu1 %v751_v49  ;;  %v1130_v57 = vand.u32 4294901760, %v1129_v5  ;;  %v4751_v25 = vsub.f32 %v15877_v8, %v15243_v44  ;;  %758 = vmatmul.mubr.f32.gmra.mrb[26].mxu0 %v757_v53  ;;  %v4740_v26 = vand.u32 4294901760, %v4739_v20  ;;  %v15245_v7 = vand.u32 4294901760, %v15881_v2 }
  0xf8   :  { %15878 = vst [vmem:[#allocation170_spill] sm:$0xff] %v11660_v23  ;;  %15879 = vst [vmem:[#allocation276_spill] sm:$0xff] %v11665_v54  ;;  %4380 = vmatmul.mubr.f32.gmra.mrb[26].mxu1 %v757_v53  ;;  %v11668_v11 = vsub.f32 %v84_v55, %v11660_v23  ;;  %v15248_v37 = vand.u32 4294901760, %v15882_v9  ;;  %8893 = vmatprep.subr.bf16.mxu1 %v8892_v3  ;;  %v11673_v5 = vsub.f32 %v83_v18, %v11665_v54 }
  0xf9   :  { %v8414_v49 = vpack.c.bf16 %v1130_v57, %v1118_v32  ;;  %v4752_v45 = vand.u32 4294901760, %v4751_v25  ;;  %v15249_v44 = vand.u32 4294901760, %v15884_v15  ;;  %v1135_v53 = vsub.f32 %v15881_v2, %v15245_v7 }
  0xfa   :  { %15880 = vst [vmem:[#allocation277_spill] sm:$0xff] %v11668_v11  ;;  %15883 = vst [vmem:[#allocation176_spill] sm:$0xff] %v11673_v5  ;;  %v11677_v8 = vand.u32 4294901760, %v11668_v11  ;;  %v1147_v55 = vsub.f32 %v15882_v9, %v15248_v37  ;;  %v15250_v3 = vand.u32 4294901760, %v10800_v60  ;;  %v11687_v18 = vand.u32 4294901760, %v11673_v5 }
  0xfb   :  { %8415 = vmatpush1.bf16.msra.mxu0 %v8414_v49  ;;  %v8894_v32 = vpack.c.bf16 %v4752_v45, %v4740_v26  ;;  %v4757_v20 = vsub.f32 %v15884_v15, %v15249_v44  ;;  %v15257_v57 = vand.u32 4294901760, %v10804_v31  ;;  %v1136_v7 = vand.u32 4294901760, %v1135_v53  ;;  %v87_v53 = vld [vmem:[%s14673_s1 + $0x170] sm:$0xff] }
  0xfc   :  { %15885 = vst [vmem:[#allocation177_spill] sm:$0xff] %v11677_v8  ;;  %15886 = vst [vmem:[#allocation178_spill] sm:$0xff] %v11687_v18  ;;  %v766_v25 = vsub.f32 %v11668_v11, %v11677_v8  ;;  %v1148_v54 = vand.u32 4294901760, %v1147_v55  ;;  %v4769_v37 = vsub.f32 %v10800_v60, %v15250_v3  ;;  %v772_v26 = vsub.f32 %v11673_v5, %v11687_v18  ;;  %v86_v55 = vld [vmem:[%s14673_s1 + $0x168] sm:$0xff]  ;;  %v15887_v11 = vld [vmem:[#allocation184_spill] sm:$0xff] }
  0xfd   :  { %8895 = vmatpush1.bf16.msra.mxu1 %v8894_v32  ;;  %v4758_v49 = vand.u32 4294901760, %v4757_v20  ;;  %v1141_v45 = vsub.f32 %v10804_v31, %v15257_v57  ;;  %v15267_v44 = vand.u32 4294901760, %v10806_v38  ;;  %v15266_v18 = vand.u32 4294901760, %v10810_v14 }
  0xfe   :  { %v767_v3 = vand.u32 4294901760, %v766_v25  ;;  %v8416_v32 = vpack.c.bf16 %v1148_v54, %v1136_v7  ;;  %v4770_v8 = vand.u32 4294901760, %v4769_v37  ;;  %v773_v20 = vand.u32 4294901760, %v772_v26 }
  0xff   :  { %v1142_v5 = vand.u32 4294901760, %v1141_v45  ;;  %v1153_v57 = vsub.f32 %v10806_v38, %v15267_v44  ;;  %v15268_v23 = vand.u32 4294901760, %v15887_v11  ;;  %v4763_v60 = vsub.f32 %v10810_v14, %v15266_v18  ;;  %v15890_v45 = vld [vmem:[#allocation186_spill] sm:$0xff] }
 0x100   :  { %768 = vmatprep.mubr.f32.mxu0 %v767_v3  ;;  %4390 = vmatprep.mubr.f32.mxu1 %v767_v3  ;;  %v8896_v31 = vpack.c.bf16 %v4770_v8, %v4758_v49  ;;  %v11718_v25 = vand.u32 4294901760, %v87_v53  ;;  %v11720_v37 = vand.u32 4294901760, %v86_v55  ;;  %v15269_v26 = vand.u32 4294901760, %v10824_v22 }
 0x101   :  { %774 = vmatmul.mubr.f32.gmra.mrb[28].mxu0 %v773_v20  ;;  %8417 = vmatprep.subr.bf16.mxu0 %v8416_v32  ;;  %v1154_v7 = vand.u32 4294901760, %v1153_v57  ;;  %v4775_v54 = vsub.f32 %v15887_v11, %v15268_v23  ;;  %v15270_v3 = vand.u32 4294901760, %v15890_v45  ;;  %v4764_v8 = vand.u32 4294901760, %v4763_v60 }
 0x102   :  { %15888 = vst [vmem:[#allocation184_spill] sm:$0xff] %v11718_v25  ;;  %15889 = vst [vmem:[#allocation278_spill] sm:$0xff] %v11720_v37  ;;  %4396 = vmatmul.mubr.f32.gmra.mrb[28].mxu1 %v773_v20  ;;  %8897 = vmatprep.subr.bf16.mxu1 %v8896_v31  ;;  %v11728_v49 = vsub.f32 %v87_v53, %v11718_v25  ;;  %v11731_v18 = vsub.f32 %v86_v55, %v11720_v37  ;;  %v15276_v32 = vand.u32 4294901760, %v10830_v42 }
 0x103   :  { %v8418_v57 = vpack.c.bf16 %v1154_v7, %v1142_v5  ;;  %v4776_v44 = vand.u32 4294901760, %v4775_v54  ;;  %v1159_v23 = vsub.f32 %v10824_v22, %v15269_v26  ;;  %v1171_v20 = vsub.f32 %v15890_v45, %v15270_v3 }
 0x104   :  { %v11741_v60 = vand.u32 4294901760, %v11728_v49  ;;  %v11744_v31 = vand.u32 4294901760, %v11731_v18  ;;  %v4781_v53 = vsub.f32 %v10830_v42, %v15276_v32  ;;  %v15285_v5 = vand.u32 4294901760, %v10838_v59 }
 0x105   :  { %8419 = vmatpush1.bf16.msra.mxu0 %v8418_v57  ;;  %v8898_v55 = vpack.c.bf16 %v4776_v44, %v4764_v8  ;;  %v1160_v7 = vand.u32 4294901760, %v1159_v23  ;;  %v1172_v54 = vand.u32 4294901760, %v1171_v20  ;;  %v15282_v26 = vand.u32 4294901760, %v10842_v47 }
 0x106   :  { %15891 = vst [vmem:[#allocation279_spill] sm:$0xff] %v11741_v60  ;;  %15892 = vst [vmem:[#allocation280_spill] sm:$0xff] %v11744_v31  ;;  %v782_v3 = vsub.f32 %v11728_v49, %v11741_v60  ;;  %v788_v37 = vsub.f32 %v11731_v18, %v11744_v31  ;;  %v4782_v25 = vand.u32 4294901760, %v4781_v53  ;;  %v4793_v45 = vsub.f32 %v10838_v59, %v15285_v5  ;;  %v15897_v5 = vld [vmem:[#allocation15_spill] sm:$0xff] }
 0x107   :  { %8899 = vmatpush1.bf16.msra.mxu1 %v8898_v55  ;;  %v8420_v32 = vpack.c.bf16 %v1172_v54, %v1160_v7  ;;  %v1165_v23 = vsub.f32 %v10842_v47, %v15282_v26  ;;  %v15281_v44 = vand.u32 4294901760, %v10844_v28  ;;  %v15283_v8 = vand.u32 4294901760, %v10848_v1 }
 0x108   :  { %v783_v57 = vand.u32 4294901760, %v782_v3  ;;  %v789_v20 = vand.u32 4294901760, %v788_v37  ;;  %v4794_v60 = vand.u32 4294901760, %v4793_v45  ;;  %v15284_v31 = vand.u32 4294901760, %v10850_v29 }
 0x109   :  { %8421 = vmatprep.subr.bf16.mxu0 %v8420_v32  ;;  %v1166_v53 = vand.u32 4294901760, %v1165_v23  ;;  %v1177_v55 = vsub.f32 %v10844_v28, %v15281_v44  ;;  %v4787_v7 = vsub.f32 %v10848_v1, %v15283_v8  ;;  %v15893_v23 = vld [vmem:[#allocation9_spill] sm:$0xff] }
 0x10a   :  { %784 = vmatprep.mubr.f32.mxu0 %v783_v57  ;;  %4406 = vmatprep.mubr.f32.mxu1 %v783_v57  ;;  %v8900_v54 = vpack.c.bf16 %v4794_v60, %v4782_v25  ;;  %v4799_v37 = vsub.f32 %v10850_v29, %v15284_v31  ;;  %v8424_v44 = vpack.c.bf16 %v15893_v23, %v10399_v16  ;;  %v15894_v57 = vld [vmem:[#allocation10_spill] sm:$0xff]  ;;  %v15895_v25 = vld [vmem:[#allocation12_spill] sm:$0xff] }
 0x10b   :  { %790 = vmatmul.mubr.f32.gmra.mrb[30].mxu0 %v789_v20  ;;  %4412 = vmatmul.mubr.f32.gmra.mrb[30].mxu1 %v789_v20  ;;  %v1178_v45 = vand.u32 4294901760, %v1177_v55  ;;  %v4788_v3 = vand.u32 4294901760, %v4787_v7  ;;  %v8904_v60 = vpack.c.bf16 %v15895_v25, %v15894_v57  ;;  %v15896_v31 = vld [vmem:[#allocation14_spill] sm:$0xff]  ;;  %v8906_v55 = vpack.c.bf16 %v10422_v40, %v10420_v39 }
 0x10c   :  { %8901 = vmatprep.subr.bf16.mxu1 %v8900_v54  ;;  %v4800_v32 = vand.u32 4294901760, %v4799_v37  ;;  %1181 = vmatprep.mubr.f32.mxu0 %v10832_v36  ;;  %v8426_v20 = vpack.c.bf16 %v15897_v5, %v15896_v31  ;;  %v8428_v7 = vpack.c.bf16 %v10428_v46, %v10424_v41  ;;  %v8908_v54 = vpack.c.bf16 %v10435_v50, %v10432_v48  ;;  %v15927_v50 = vld [vmem:[#allocation173_spill] sm:$0xff]  ;;  %v15935_v46 = vld [vmem:[#allocation218_spill] sm:$0xff]  ;;  %v15940_v5 = vld [vmem:[#allocation219_spill] sm:$0xff] }
 0x10d   :  { %v8422_v26 = vpack.c.bf16 %v1178_v45, %v1166_v53  ;;  %4803 = vmatprep.mubr.f32.mxu1 %v10832_v36  ;;  %v15898_v53 = vld [vmem:[#allocation188_spill] sm:$0xff]  ;;  %v8912_v37 = vpack.c.bf16 %v10462_v13, %v10460_v12  ;;  %v8434_v45 = vpack.c.bf16 %v10471_v34, %v10469_v33  ;;  %v15914_v33 = vld [vmem:[#allocation153_spill] sm:$0xff]  ;;  %v15915_v12 = vld [vmem:[#allocation207_spill] sm:$0xff] }
 0x10e   :  { %v8902_v8 = vpack.c.bf16 %v4800_v32, %v4788_v3  ;;  %v15899_v3 = vld [vmem:[#allocation42_spill] sm:$0xff]  ;;  %v15924_v13 = vld [vmem:[#allocation168_spill] sm:$0xff]  ;;  %v15932_v41 = vld [vmem:[#allocation213_spill] sm:$0xff] }
 0x10f   :  { %8423 = vmatpush1.bf16.msra.mxu0 %v8422_v26  ;;  %v8430_v26 = vpack.c.bf16 %v10443_v61, %v10437_v52  ;;  %v8914_v32 = vpack.c.bf16 %v15899_v3, %v10475_v43  ;;  %v15903_v3 = vld [vmem:[#allocation206_spill] sm:$0xff]  ;;  %v15950_v31 = vld [vmem:[#allocation225_spill] sm:$0xff] }
 0x110   :  { %8903 = vmatpush1.bf16.msra.mxu1 %v8902_v8  ;;  %8425 = vmatprep.subr.bf16.mxu0 %v8424_v44  ;;  %v8910_v44 = vpack.c.bf16 %v10449_v4, %v10445_v62  ;;  %v8432_v8 = vpack.c.bf16 %v10456_v10, %v10453_v6  ;;  %v15904_v43 = vld [vmem:[#allocation58_spill] sm:$0xff]  ;;  %v15938_v6 = vld [vmem:[#allocation68_spill] sm:$0xff] }
 0x111   :  { %8905 = vmatprep.subr.bf16.mxu1 %v8904_v60  ;;  %v8436_v60 = vpack.c.bf16 %v10485_v56, %v10481_v51  ;;  %v15905_v56 = vld [vmem:[#allocation60_spill] sm:$0xff]  ;;  %v15918_v10 = vld [vmem:[#allocation158_spill] sm:$0xff] }
 0x112   :  { %1183 = vmatmul.mubr.f32.vlgmr.msra.gmra.mrb[0].mxu0 %v15898_v53  ;;  %v8920_v51 = vpack.c.bf16 %v15905_v56, %v15904_v43  ;;  %v15916_v56 = vld [vmem:[#allocation154_spill] sm:$0xff]  ;;  %v15926_v43 = vld [vmem:[#allocation212_spill] sm:$0xff] }
 0x113   :  { %4805 = vmatmul.mubr.f32.vlgmr.msra.gmra.mrb[0].mxu1 %v15898_v53  ;;  %8427 = vmatpush1.bf16.msra.mxu0 %v8426_v20  ;;  %v8916_v20 = vpack.c.bf16 %v10492_v63, %v10489_v58  ;;  %v15901_v53 = vld [vmem:[#allocation56_spill] sm:$0xff]  ;;  %v15906_v63 = vld [vmem:[#allocation141_spill] sm:$0xff]  ;;  %v15923_v62 = vld [vmem:[#allocation166_spill] sm:$0xff] }
 0x114   :  { %8907 = vmatpush1.bf16.msra.mxu1 %v8906_v55  ;;  %1189 = vmatprep.mubr.f32.mxu0 %v10903_v24  ;;  %v8438_v55 = vpack.c.bf16 %v10499_v35, %v10495_v19  ;;  %v15909_v35 = vld [vmem:[#allocation146_spill] sm:$0xff]  ;;  %v15911_v19 = vld [vmem:[#allocation149_spill] sm:$0xff]  ;;  %v15917_v58 = vld [vmem:[#allocation156_spill] sm:$0xff] }
 0x115   :  { %4811 = vmatprep.mubr.f32.mxu1 %v10903_v24  ;;  %8429 = vmatprep.subr.bf16.mxu0 %v8428_v7  ;;  %v15900_v7 = vld [vmem:[#allocation54_spill] sm:$0xff] }
 0x116   :  { %1191 = vmatmul.mubr.f32.gmra.mrb[2].mxu0 %v10908_v21  ;;  %8909 = vmatprep.subr.bf16.mxu1 %v8908_v54  ;;  %v8918_v24 = vpack.c.bf16 %v15900_v7, %v10503_v30  ;;  %v15902_v54 = vld [vmem:[#allocation57_spill] sm:$0xff]  ;;  %v15910_v7 = vld [vmem:[#allocation147_spill] sm:$0xff]  ;;  %v15921_v30 = vld [vmem:[#allocation164_spill] sm:$0xff] }
 0x117   :  { %4813 = vmatmul.mubr.f32.gmra.mrb[2].mxu1 %v10908_v21  ;;  %8431 = vmatpush1.bf16.msra.mxu0 %v8430_v26  ;;  %v8440_v36 = vpack.c.bf16 %v15902_v54, %v15901_v53  ;;  %v15907_v21 = vld [vmem:[#allocation142_spill] sm:$0xff]  ;;  %v15908_v26 = vld [vmem:[#allocation144_spill] sm:$0xff] }
 0x118   :  { %8911 = vmatpush1.bf16.msra.mxu1 %v8910_v44  ;;  %1197 = vmatprep.mubr.f32.mxu0 %v15903_v3  ;;  %v15912_v54 = vld [vmem:[#allocation150_spill] sm:$0xff]  ;;  %v15913_v53 = vld [vmem:[#allocation152_spill] sm:$0xff]  ;;  %v15922_v44 = vld [vmem:[#allocation165_spill] sm:$0xff] }
 0x119   :  { %4819 = vmatprep.mubr.f32.mxu1 %v15903_v3  ;;  %8433 = vmatprep.subr.bf16.mxu0 %v8432_v8  ;;  %v15919_v3 = vld [vmem:[#allocation161_spill] sm:$0xff]  ;;  %v15920_v8 = vld [vmem:[#allocation162_spill] sm:$0xff] }
 0x11a   :  { %1199 = vmatmul.mubr.f32.gmra.mrb[4].mxu0 %v15915_v12  ;;  %8913 = vmatprep.subr.bf16.mxu1 %v8912_v37  ;;  %v15925_v37 = vld [vmem:[#allocation171_spill] sm:$0xff]  ;;  %v15928_v34 = vld [vmem:[#allocation174_spill] sm:$0xff] }
 0x11b   :  { %4821 = vmatmul.mubr.f32.gmra.mrb[4].mxu1 %v15915_v12  ;;  %8435 = vmatpush1.bf16.msra.mxu0 %v8434_v45  ;;  %v15929_v45 = vld [vmem:[#allocation180_spill] sm:$0xff]  ;;  %v15930_v4 = vld [vmem:[#allocation182_spill] sm:$0xff]  ;;  %v15939_v12 = vld [vmem:[#allocation69_spill] sm:$0xff] }
 0x11c   :  { %8915 = vmatpush1.bf16.msra.mxu1 %v8914_v32  ;;  %1205 = vmatprep.mubr.f32.mxu0 %v15926_v43  ;;  %v15931_v52 = vld [vmem:[#allocation186_spill] sm:$0xff]  ;;  %v15934_v32 = vld [vmem:[#allocation63_spill] sm:$0xff]  ;;  %v8444_v39 = vpack.c.bf16 %v15939_v12, %v15938_v6  ;;  %v15948_v12 = vld [vmem:[#allocation80_spill] sm:$0xff] }
 0x11d   :  { %4827 = vmatprep.mubr.f32.mxu1 %v15926_v43  ;;  %8437 = vmatprep.subr.bf16.mxu0 %v8436_v60  ;;  %v15933_v61 = vld [vmem:[#allocation62_spill] sm:$0xff]  ;;  %v15936_v43 = vld [vmem:[#allocation65_spill] sm:$0xff] }
 0x11e   :  { %1207 = vmatmul.mubr.f32.gmra.mrb[6].mxu0 %v15932_v41  ;;  %8917 = vmatprep.subr.bf16.mxu1 %v8916_v20  ;;  %v8442_v48 = vpack.c.bf16 %v15934_v32, %v15933_v61  ;;  %v15937_v20 = vld [vmem:[#allocation66_spill] sm:$0xff]  ;;  %v15944_v32 = vld [vmem:[#allocation75_spill] sm:$0xff] }
 0x11f   :  { %4829 = vmatmul.mubr.f32.gmra.mrb[6].mxu1 %v15932_v41  ;;  %8439 = vmatpush1.bf16.msra.mxu0 %v8438_v55  ;;  %v8922_v40 = vpack.c.bf16 %v15937_v20, %v15936_v43  ;;  %v15941_v60 = vld [vmem:[#allocation70_spill] sm:$0xff]  ;;  %v15942_v55 = vld [vmem:[#allocation72_spill] sm:$0xff] }
 0x120   :  { %8919 = vmatpush1.bf16.msra.mxu1 %v8918_v24  ;;  %1213 = vmatprep.mubr.f32.mxu0 %v15935_v46  ;;  %v8924_v41 = vpack.c.bf16 %v15942_v55, %v15941_v60  ;;  %v15943_v24 = vld [vmem:[#allocation74_spill] sm:$0xff]  ;;  %v15945_v20 = vld [vmem:[#allocation224_spill] sm:$0xff]  ;;  %v15960_v60 = vld [vmem:[#allocation231_spill] sm:$0xff] }
 0x121   :  { %4835 = vmatprep.mubr.f32.mxu1 %v15935_v46  ;;  %8441 = vmatprep.subr.bf16.mxu0 %v8440_v36  ;;  %v8446_v61 = vpack.c.bf16 %v15944_v32, %v15943_v24  ;;  %v15946_v46 = vld [vmem:[#allocation77_spill] sm:$0xff]  ;;  %v15947_v36 = vld [vmem:[#allocation78_spill] sm:$0xff]  ;;  %v15954_v32 = vld [vmem:[#allocation87_spill] sm:$0xff] }
 0x122   :  { %1215 = vmatmul.mubr.f32.gmra.mrb[8].mxu0 %v15940_v5  ;;  %8921 = vmatprep.subr.bf16.mxu1 %v8920_v51  ;;  %v8926_v43 = vpack.c.bf16 %v15947_v36, %v15946_v46  ;;  %v15949_v51 = vld [vmem:[#allocation81_spill] sm:$0xff]  ;;  %v15955_v36 = vld [vmem:[#allocation230_spill] sm:$0xff] }
 0x123   :  { %4837 = vmatmul.mubr.f32.gmra.mrb[8].mxu1 %v15940_v5  ;;  %8443 = vmatpush1.bf16.msra.mxu0 %v8442_v48  ;;  %v8448_v6 = vpack.c.bf16 %v15949_v51, %v15948_v12  ;;  %v15951_v5 = vld [vmem:[#allocation82_spill] sm:$0xff]  ;;  %v15952_v48 = vld [vmem:[#allocation84_spill] sm:$0xff] }
 0x124   :  { %8923 = vmatpush1.bf16.msra.mxu1 %v8922_v40  ;;  %1221 = vmatprep.mubr.f32.mxu0 %v15945_v20  ;;  %v8928_v55 = vpack.c.bf16 %v15952_v48, %v15951_v5  ;;  %v15953_v40 = vld [vmem:[#allocation86_spill] sm:$0xff]  ;;  %v15958_v51 = vld [vmem:[#allocation92_spill] sm:$0xff]  ;;  %v15970_v5 = vld [vmem:[#allocation237_spill] sm:$0xff] }
 0x125   :  { %4843 = vmatprep.mubr.f32.mxu1 %v15945_v20  ;;  %8445 = vmatprep.subr.bf16.mxu0 %v8444_v39  ;;  %v8450_v24 = vpack.c.bf16 %v15954_v32, %v15953_v40  ;;  %v15956_v20 = vld [vmem:[#allocation89_spill] sm:$0xff]  ;;  %v15957_v39 = vld [vmem:[#allocation90_spill] sm:$0xff]  ;;  %v15964_v32 = vld [vmem:[#allocation99_spill] sm:$0xff] }
 0x126   :  { %1223 = vmatmul.mubr.f32.gmra.mrb[10].mxu0 %v15950_v31  ;;  %8925 = vmatprep.subr.bf16.mxu1 %v8924_v41  ;;  %v8930_v46 = vpack.c.bf16 %v15957_v39, %v15956_v20  ;;  %v15959_v41 = vld [vmem:[#allocation93_spill] sm:$0xff]  ;;  %v15965_v39 = vld [vmem:[#allocation236_spill] sm:$0xff] }
 0x127   :  { %4845 = vmatmul.mubr.f32.gmra.mrb[10].mxu1 %v15950_v31  ;;  %8447 = vmatpush1.bf16.msra.mxu0 %v8446_v61  ;;  %v8452_v12 = vpack.c.bf16 %v15959_v41, %v15958_v51  ;;  %v15961_v31 = vld [vmem:[#allocation94_spill] sm:$0xff]  ;;  %v15962_v61 = vld [vmem:[#allocation96_spill] sm:$0xff] }
 0x128   :  { %8927 = vmatpush1.bf16.msra.mxu1 %v8926_v43  ;;  %1229 = vmatprep.mubr.f32.mxu0 %v15955_v36  ;;  %v8932_v48 = vpack.c.bf16 %v15962_v61, %v15961_v31  ;;  %v15963_v43 = vld [vmem:[#allocation98_spill] sm:$0xff]  ;;  %v15968_v41 = vld [vmem:[#allocation104_spill] sm:$0xff]  ;;  %v15980_v31 = vld [vmem:[#allocation243_spill] sm:$0xff] }
 0x129   :  { %4851 = vmatprep.mubr.f32.mxu1 %v15955_v36  ;;  %8449 = vmatprep.subr.bf16.mxu0 %v8448_v6  ;;  %v8454_v40 = vpack.c.bf16 %v15964_v32, %v15963_v43  ;;  %v15966_v36 = vld [vmem:[#allocation101_spill] sm:$0xff]  ;;  %v15967_v6 = vld [vmem:[#allocation102_spill] sm:$0xff]  ;;  %v15974_v32 = vld [vmem:[#allocation111_spill] sm:$0xff] }
 0x12a   :  { %1231 = vmatmul.mubr.f32.gmra.mrb[12].mxu0 %v15960_v60  ;;  %8929 = vmatprep.subr.bf16.mxu1 %v8928_v55  ;;  %v8934_v20 = vpack.c.bf16 %v15967_v6, %v15966_v36  ;;  %v15969_v55 = vld [vmem:[#allocation105_spill] sm:$0xff]  ;;  %v15975_v6 = vld [vmem:[#allocation242_spill] sm:$0xff] }
 0x12b   :  { %4853 = vmatmul.mubr.f32.gmra.mrb[12].mxu1 %v15960_v60  ;;  %8451 = vmatpush1.bf16.msra.mxu0 %v8450_v24  ;;  %v8456_v51 = vpack.c.bf16 %v15969_v55, %v15968_v41  ;;  %v15971_v60 = vld [vmem:[#allocation106_spill] sm:$0xff]  ;;  %v15972_v24 = vld [vmem:[#allocation108_spill] sm:$0xff] }
 0x12c   :  { %8931 = vmatpush1.bf16.msra.mxu1 %v8930_v46  ;;  %1237 = vmatprep.mubr.f32.mxu0 %v15965_v39  ;;  %v8936_v61 = vpack.c.bf16 %v15972_v24, %v15971_v60  ;;  %v15973_v46 = vld [vmem:[#allocation110_spill] sm:$0xff]  ;;  %v15978_v55 = vld [vmem:[#allocation116_spill] sm:$0xff]  ;;  %v15990_v60 = vld [vmem:[#allocation249_spill] sm:$0xff] }
 0x12d   :  { %4859 = vmatprep.mubr.f32.mxu1 %v15965_v39  ;;  %8453 = vmatprep.subr.bf16.mxu0 %v8452_v12  ;;  %v8458_v43 = vpack.c.bf16 %v15974_v32, %v15973_v46  ;;  %v15976_v39 = vld [vmem:[#allocation113_spill] sm:$0xff]  ;;  %v15977_v12 = vld [vmem:[#allocation114_spill] sm:$0xff]  ;;  %v15984_v32 = vld [vmem:[#allocation123_spill] sm:$0xff] }
 0x12e   :  { %1239 = vmatmul.mubr.f32.gmra.mrb[14].mxu0 %v15970_v5  ;;  %8933 = vmatprep.subr.bf16.mxu1 %v8932_v48  ;;  %v8938_v36 = vpack.c.bf16 %v15977_v12, %v15976_v39  ;;  %v15979_v48 = vld [vmem:[#allocation117_spill] sm:$0xff]  ;;  %v15985_v12 = vld [vmem:[#allocation248_spill] sm:$0xff] }
 0x12f   :  { %4861 = vmatmul.mubr.f32.gmra.mrb[14].mxu1 %v15970_v5  ;;  %8455 = vmatpush1.bf16.msra.mxu0 %v8454_v40  ;;  %v8460_v41 = vpack.c.bf16 %v15979_v48, %v15978_v55  ;;  %v15981_v5 = vld [vmem:[#allocation118_spill] sm:$0xff]  ;;  %v15982_v40 = vld [vmem:[#allocation120_spill] sm:$0xff] }
 0x130   :  { %8935 = vmatpush1.bf16.msra.mxu1 %v8934_v20  ;;  %1245 = vmatprep.mubr.f32.mxu0 %v15975_v6  ;;  %v8940_v24 = vpack.c.bf16 %v15982_v40, %v15981_v5  ;;  %v15983_v20 = vld [vmem:[#allocation122_spill] sm:$0xff]  ;;  %v15988_v48 = vld [vmem:[#allocation128_spill] sm:$0xff] }
 0x131   :  { %4867 = vmatprep.mubr.f32.mxu1 %v15975_v6  ;;  %8457 = vmatprep.subr.bf16.mxu0 %v8456_v51  ;;  %v8462_v46 = vpack.c.bf16 %v15984_v32, %v15983_v20  ;;  %v15986_v6 = vld [vmem:[#allocation125_spill] sm:$0xff]  ;;  %v15987_v51 = vld [vmem:[#allocation126_spill] sm:$0xff]  ;;  %v15994_v32 = vld [vmem:[#allocation135_spill] sm:$0xff] }
 0x132   :  { %1247 = vmatmul.mubr.f32.gmra.mrb[16].mxu0 %v15980_v31  ;;  %8937 = vmatprep.subr.bf16.mxu1 %v8936_v61  ;;  %v8942_v39 = vpack.c.bf16 %v15987_v51, %v15986_v6  ;;  %v15989_v61 = vld [vmem:[#allocation129_spill] sm:$0xff]  ;;  %v15995_v51 = vld [vmem:[#allocation254_spill] sm:$0xff] }
 0x133   :  { %4869 = vmatmul.mubr.f32.gmra.mrb[16].mxu1 %v15980_v31  ;;  %8459 = vmatpush1.bf16.msra.mxu0 %v8458_v43  ;;  %v8464_v55 = vpack.c.bf16 %v15989_v61, %v15988_v48  ;;  %v15991_v31 = vld [vmem:[#allocation130_spill] sm:$0xff]  ;;  %v15992_v43 = vld [vmem:[#allocation132_spill] sm:$0xff]  ;;  %v15998_v61 = vld [vmem:[#allocation255_spill] sm:$0xff] }
 0x134   :  { %8939 = vmatpush1.bf16.msra.mxu1 %v8938_v36  ;;  %1253 = vmatprep.mubr.f32.mxu0 %v15985_v12  ;;  %v8944_v40 = vpack.c.bf16 %v15992_v43, %v15991_v31  ;;  %v15993_v36 = vld [vmem:[#allocation134_spill] sm:$0xff] }
 0x135   :  { %4875 = vmatprep.mubr.f32.mxu1 %v15985_v12  ;;  %8461 = vmatprep.subr.bf16.mxu0 %v8460_v41  ;;  %v8466_v20 = vpack.c.bf16 %v15994_v32, %v15993_v36  ;;  %v15996_v12 = vld [vmem:[#allocation137_spill] sm:$0xff]  ;;  %v15997_v41 = vld [vmem:[#allocation138_spill] sm:$0xff] }
 0x136   :  { %1255 = vmatmul.mubr.f32.gmra.mrb[18].mxu0 %v15990_v60  ;;  %8941 = vmatprep.subr.bf16.mxu1 %v8940_v24  ;;  %v8946_v6 = vpack.c.bf16 %v15997_v41, %v15996_v12  ;;  %v15999_v24 = vld [vmem:[#allocation260_spill] sm:$0xff] }
 0x137   :  { %4877 = vmatmul.mubr.f32.gmra.mrb[18].mxu1 %v15990_v60  ;;  %8463 = vmatpush1.bf16.msra.mxu0 %v8462_v46  ;;  %v16001_v46 = vld [vmem:[#allocation261_spill] sm:$0xff]  ;;  %v16039_v60 = vld [vmem:[#allocation26_spill] sm:$0xff] }
 0x138   :  { %8943 = vmatpush1.bf16.msra.mxu1 %v8942_v39  ;;  %1261 = vmatprep.mubr.f32.mxu0 %v15995_v51  ;;  %v16000_v39 = vpack.c.bf16 %v15906_v63, %v15837_v17 }
 0x139   :  { %4883 = vmatprep.mubr.f32.mxu1 %v15995_v51  ;;  %8465 = vmatprep.subr.bf16.mxu0 %v8464_v55  ;;  %v16002_v55 = vpack.c.bf16 %v15908_v26, %v15907_v21  ;;  %v16037_v51 = vld [vmem:[#allocation203_spill] sm:$0xff] }
 0x13a   :  { %1263 = vmatmul.mubr.f32.gmra.mrb[20].mxu0 %v15998_v61  ;;  %8945 = vmatprep.subr.bf16.mxu1 %v8944_v40  ;;  %v16003_v40 = vpack.c.bf16 %v15910_v7, %v15909_v35 }
 0x13b   :  { %4885 = vmatmul.mubr.f32.gmra.mrb[20].mxu1 %v15998_v61  ;;  %8467 = vmatpush1.bf16.msra.mxu0 %v8466_v20  ;;  %v16005_v20 = vld [vmem:[#allocation265_spill] sm:$0xff]  ;;  %v16032_v61 = vld [vmem:[#allocation11_spill] sm:$0xff] }
 0x13c   :  { %8947 = vmatpush1.bf16.msra.mxu1 %v8946_v6  ;;  %1269 = vmatprep.mubr.f32.mxu0 %v15999_v24  ;;  %v16004_v6 = vpack.c.bf16 %v15912_v54, %v15911_v19 }
 0x13d   :  { %4891 = vmatprep.mubr.f32.mxu1 %v15999_v24  ;;  %8469 = vmatprep.subr.bf16.mxu0 %v16000_v39  ;;  %v16006_v39 = vpack.c.bf16 %v15914_v33, %v15913_v53  ;;  %v16007_v24 = vld [vmem:[#allocation266_spill] sm:$0xff] }
 0x13e   :  { %1271 = vmatmul.mubr.f32.gmra.mrb[22].mxu0 %v16001_v46  ;;  %8949 = vmatprep.subr.bf16.mxu1 %v16002_v55  ;;  %v16008_v55 = vpack.c.bf16 %v15917_v58, %v15916_v56 }
 0x13f   :  { %4893 = vmatmul.mubr.f32.gmra.mrb[22].mxu1 %v16001_v46  ;;  %8471 = vmatpush1.bf16.msra.mxu0 %v16003_v40  ;;  %v16009_v40 = vpack.c.bf16 %v15861_v0, %v15918_v10  ;;  %v16013_v46 = vld [vmem:[#allocation271_spill] sm:$0xff] }
 0x140   :  { %8951 = vmatpush1.bf16.msra.mxu1 %v16004_v6  ;;  %1277 = vmatprep.mubr.f32.mxu0 %v16005_v20  ;;  %v16010_v6 = vpack.c.bf16 %v15920_v8, %v15919_v3 }
 0x141   :  { %4899 = vmatprep.mubr.f32.mxu1 %v16005_v20  ;;  %8473 = vmatprep.subr.bf16.mxu0 %v16006_v39  ;;  %v16011_v20 = vld [vmem:[#allocation159_spill] sm:$0xff]  ;;  %v16012_v39 = vpack.c.bf16 %v15922_v44, %v15921_v30 }
 0x142   :  { %1279 = vmatmul.mubr.f32.gmra.mrb[24].mxu0 %v16007_v24  ;;  %8953 = vmatprep.subr.bf16.mxu1 %v16008_v55  ;;  %v16014_v55 = vpack.c.bf16 %v15924_v13, %v15923_v62 }
 0x143   :  { %4901 = vmatmul.mubr.f32.gmra.mrb[24].mxu1 %v16007_v24  ;;  %8475 = vmatpush1.bf16.msra.mxu0 %v16009_v40  ;;  %v16015_v40 = vpack.c.bf16 %v15925_v37, %v15873_v27  ;;  %v16019_v24 = vld [vmem:[#allocation276_spill] sm:$0xff] }
 0x144   :  { %8955 = vmatpush1.bf16.msra.mxu1 %v16010_v6  ;;  %1285 = vmatprep.mubr.f32.mxu0 %v16011_v20  ;;  %v16016_v6 = vpack.c.bf16 %v15928_v34, %v15927_v50 }
 0x145   :  { %4907 = vmatprep.mubr.f32.mxu1 %v16011_v20  ;;  %8477 = vmatprep.subr.bf16.mxu0 %v16012_v39  ;;  %v16017_v20 = vld [vmem:[#allocation170_spill] sm:$0xff]  ;;  %v16018_v39 = vpack.c.bf16 %v15882_v9, %v15881_v2 }
 0x146   :  { %1287 = vmatmul.mubr.f32.gmra.mrb[26].mxu0 %v16013_v46  ;;  %8957 = vmatprep.subr.bf16.mxu1 %v16014_v55  ;;  %v16020_v55 = vpack.c.bf16 %v15929_v45, %v15884_v15 }
 0x147   :  { %4909 = vmatmul.mubr.f32.gmra.mrb[26].mxu1 %v16013_v46  ;;  %8479 = vmatpush1.bf16.msra.mxu0 %v16015_v40  ;;  %v16021_v40 = vpack.c.bf16 %v10806_v38, %v15930_v4  ;;  %v16025_v46 = vld [vmem:[#allocation278_spill] sm:$0xff] }
 0x148   :  { %8959 = vmatpush1.bf16.msra.mxu1 %v16016_v6  ;;  %1293 = vmatprep.mubr.f32.mxu0 %v16017_v20  ;;  %v16022_v6 = vpack.c.bf16 %v15887_v11, %v10810_v14 }
 0x149   :  { %4915 = vmatprep.mubr.f32.mxu1 %v16017_v20  ;;  %8481 = vmatprep.subr.bf16.mxu0 %v16018_v39  ;;  %v16023_v20 = vld [vmem:[#allocation184_spill] sm:$0xff]  ;;  %v16024_v39 = vpack.c.bf16 %v15931_v52, %v10824_v22 }
 0x14a   :  { %1295 = vmatmul.mubr.f32.gmra.mrb[28].mxu0 %v16019_v24  ;;  %8961 = vmatprep.subr.bf16.mxu1 %v16020_v55  ;;  %v16026_v55 = vpack.c.bf16 %v10838_v59, %v10830_v42 }
 0x14b   :  { %4917 = vmatmul.mubr.f32.gmra.mrb[28].mxu1 %v16019_v24  ;;  %8483 = vmatpush1.bf16.msra.mxu0 %v16021_v40  ;;  %v16027_v40 = vpack.c.bf16 %v10844_v28, %v10842_v47  ;;  %v16031_v24 = vld [vmem:[#allocation197_spill] sm:$0xff] }
 0x14c   :  { %8963 = vmatpush1.bf16.msra.mxu1 %v16022_v6  ;;  %1301 = vmatprep.mubr.f32.mxu0 %v16023_v20  ;;  %v16028_v6 = vpack.c.bf16 %v10850_v29, %v10848_v1  ;;  %v16134_v1 = vld [vmem:[#allocation18_spill] sm:$0xff] }
 0x14d   :  { %4923 = vmatprep.mubr.f32.mxu1 %v16023_v20  ;;  %8485 = vmatprep.subr.bf16.mxu0 %v16024_v39  ;;  %v16029_v20 = vld [vmem:[#allocation196_spill] sm:$0xff] }
 0x14e   :  { %1303 = vmatmul.mubr.f32.gmra.mrb[30].mxu0 %v16025_v46  ;;  %8965 = vmatprep.subr.bf16.mxu1 %v16026_v55  ;;  %v16030_v39 = vld [vmem:[#allocation8_spill] sm:$0xff]  ;;  %v16033_v55 = vld [vmem:[#allocation13_spill] sm:$0xff] }
 0x14f   :  { %4925 = vmatmul.mubr.f32.gmra.mrb[30].mxu1 %v16025_v46  ;;  %8487 = vmatpush1.bf16.msra.mxu0 %v16027_v40  ;;  %v16034_v46 = vld [vmem:[#allocation16_spill] sm:$0xff]  ;;  %v16035_v40 = vld [vmem:[#allocation202_spill] sm:$0xff] }
 0x150   :  { %8967 = vmatpush1.bf16.msra.mxu1 %v16028_v6  ;;  %1503 = vmatprep.mubr.f32.mxu0 %v16029_v20  ;;  %v16036_v6 = vld [vmem:[#allocation20_spill] sm:$0xff] }
 0x151   :  { %5125 = vmatprep.mubr.f32.mxu1 %v16029_v20  ;;  %8489 = vmatprep.subr.bf16.mxu0 %v16030_v39  ;;  %v16038_v20 = vld [vmem:[#allocation22_spill] sm:$0xff]  ;;  %v16128_v39 = vld [vmem:[#allocation15_spill] sm:$0xff] }
 0x152   :  { %1506 = vmatmul.mubr.f32.vlgmr.msra.gmra.mrb[0].mxu0 %v16031_v24  ;;  %8969 = vmatprep.subr.bf16.mxu1 %v16032_v61  ;;  %v16040_v61 = vld [vmem:[#allocation29_spill] sm:$0xff] }
 0x153   :  { %5128 = vmatmul.mubr.f32.vlgmr.msra.gmra.mrb[0].mxu1 %v16031_v24  ;;  %8491 = vmatpush1.bf16.msra.mxu0 %v16033_v55  ;;  %v16041_v24 = vld [vmem:[#allocation208_spill] sm:$0xff]  ;;  %v16043_v55 = vld [vmem:[#allocation209_spill] sm:$0xff] }
 0x154   :  { %8971 = vmatpush1.bf16.msra.mxu1 %v16034_v46  ;;  %1513 = vmatprep.mubr.f32.mxu0 %v16035_v40  ;;  %v16042_v46 = vld [vmem:[#allocation31_spill] sm:$0xff] }
 0x155   :  { %5135 = vmatprep.mubr.f32.mxu1 %v16035_v40  ;;  %8493 = vmatprep.subr.bf16.mxu0 %v16036_v6  ;;  %v16044_v40 = vld [vmem:[#allocation34_spill] sm:$0xff]  ;;  %v16045_v6 = vld [vmem:[#allocation37_spill] sm:$0xff] }
 0x156   :  { %1516 = vmatmul.mubr.f32.gmra.mrb[2].mxu0 %v16037_v51  ;;  %8973 = vmatprep.subr.bf16.mxu1 %v16038_v20  ;;  %v16046_v20 = vld [vmem:[#allocation40_spill] sm:$0xff] }
 0x157   :  { %5138 = vmatmul.mubr.f32.gmra.mrb[2].mxu1 %v16037_v51  ;;  %8495 = vmatpush1.bf16.msra.mxu0 %v16039_v60  ;;  %v16047_v51 = vld [vmem:[#allocation214_spill] sm:$0xff]  ;;  %v16049_v60 = vld [vmem:[#allocation215_spill] sm:$0xff] }
 0x158   :  { %8975 = vmatpush1.bf16.msra.mxu1 %v16040_v61  ;;  %1523 = vmatprep.mubr.f32.mxu0 %v16041_v24  ;;  %v16048_v61 = vld [vmem:[#allocation43_spill] sm:$0xff] }
 0x159   :  { %5145 = vmatprep.mubr.f32.mxu1 %v16041_v24  ;;  %8497 = vmatprep.subr.bf16.mxu0 %v16042_v46  ;;  %v16050_v24 = vld [vmem:[#allocation46_spill] sm:$0xff] }
 0x15a   :  { %1526 = vmatmul.mubr.f32.gmra.mrb[4].mxu0 %v16043_v55  ;;  %8977 = vmatprep.subr.bf16.mxu1 %v16044_v40  ;;  %v16051_v46 = vld [vmem:[#allocation50_spill] sm:$0xff]  ;;  %v16052_v40 = vld [vmem:[#allocation52_spill] sm:$0xff] }
 0x15b   :  { %5148 = vmatmul.mubr.f32.gmra.mrb[4].mxu1 %v16043_v55  ;;  %8499 = vmatpush1.bf16.msra.mxu0 %v16045_v6  ;;  %v16053_v55 = vld [vmem:[#allocation220_spill] sm:$0xff]  ;;  %v16055_v6 = vld [vmem:[#allocation221_spill] sm:$0xff] }
 0x15c   :  { %8979 = vmatpush1.bf16.msra.mxu1 %v16046_v20  ;;  %1533 = vmatprep.mubr.f32.mxu0 %v16047_v51  ;;  %v16054_v20 = vld [vmem:[#allocation55_spill] sm:$0xff] }
 0x15d   :  { %5155 = vmatprep.mubr.f32.mxu1 %v16047_v51  ;;  %8501 = vmatprep.subr.bf16.mxu0 %v16048_v61  ;;  %v16056_v51 = vld [vmem:[#allocation59_spill] sm:$0xff]  ;;  %v16057_v61 = vld [vmem:[#allocation61_spill] sm:$0xff] }
 0x15e   :  { %1536 = vmatmul.mubr.f32.gmra.mrb[6].mxu0 %v16049_v60  ;;  %8981 = vmatprep.subr.bf16.mxu1 %v16050_v24  ;;  %v16058_v24 = vld [vmem:[#allocation64_spill] sm:$0xff] }
 0x15f   :  { %5158 = vmatmul.mubr.f32.gmra.mrb[6].mxu1 %v16049_v60  ;;  %8503 = vmatpush1.bf16.msra.mxu0 %v16051_v46  ;;  %v16059_v60 = vld [vmem:[#allocation226_spill] sm:$0xff]  ;;  %v16061_v46 = vld [vmem:[#allocation227_spill] sm:$0xff] }
 0x160   :  { %8983 = vmatpush1.bf16.msra.mxu1 %v16052_v40  ;;  %1543 = vmatprep.mubr.f32.mxu0 %v16053_v55  ;;  %v16060_v40 = vld [vmem:[#allocation67_spill] sm:$0xff] }
 0x161   :  { %5165 = vmatprep.mubr.f32.mxu1 %v16053_v55  ;;  %8505 = vmatprep.subr.bf16.mxu0 %v16054_v20  ;;  %v16062_v55 = vld [vmem:[#allocation71_spill] sm:$0xff]  ;;  %v16063_v20 = vld [vmem:[#allocation73_spill] sm:$0xff] }
 0x162   :  { %1546 = vmatmul.mubr.f32.gmra.mrb[8].mxu0 %v16055_v6  ;;  %8985 = vmatprep.subr.bf16.mxu1 %v16056_v51  ;;  %v16064_v51 = vld [vmem:[#allocation76_spill] sm:$0xff] }
 0x163   :  { %5168 = vmatmul.mubr.f32.gmra.mrb[8].mxu1 %v16055_v6  ;;  %8507 = vmatpush1.bf16.msra.mxu0 %v16057_v61  ;;  %v16065_v6 = vld [vmem:[#allocation232_spill] sm:$0xff]  ;;  %v16067_v61 = vld [vmem:[#allocation233_spill] sm:$0xff] }
 0x164   :  { %8987 = vmatpush1.bf16.msra.mxu1 %v16058_v24  ;;  %1553 = vmatprep.mubr.f32.mxu0 %v16059_v60  ;;  %v16066_v24 = vld [vmem:[#allocation79_spill] sm:$0xff] }
 0x165   :  { %5175 = vmatprep.mubr.f32.mxu1 %v16059_v60  ;;  %8509 = vmatprep.subr.bf16.mxu0 %v16060_v40  ;;  %v16068_v60 = vld [vmem:[#allocation83_spill] sm:$0xff]  ;;  %v16069_v40 = vld [vmem:[#allocation85_spill] sm:$0xff] }
 0x166   :  { %1556 = vmatmul.mubr.f32.gmra.mrb[10].mxu0 %v16061_v46  ;;  %8989 = vmatprep.subr.bf16.mxu1 %v16062_v55  ;;  %v16070_v55 = vld [vmem:[#allocation88_spill] sm:$0xff] }
 0x167   :  { %5178 = vmatmul.mubr.f32.gmra.mrb[10].mxu1 %v16061_v46  ;;  %8511 = vmatpush1.bf16.msra.mxu0 %v16063_v20  ;;  %v16071_v46 = vld [vmem:[#allocation238_spill] sm:$0xff]  ;;  %v16073_v20 = vld [vmem:[#allocation239_spill] sm:$0xff] }
 0x168   :  { %8991 = vmatpush1.bf16.msra.mxu1 %v16064_v51  ;;  %1563 = vmatprep.mubr.f32.mxu0 %v16065_v6  ;;  %v16072_v51 = vld [vmem:[#allocation91_spill] sm:$0xff] }
 0x169   :  { %5185 = vmatprep.mubr.f32.mxu1 %v16065_v6  ;;  %8513 = vmatprep.subr.bf16.mxu0 %v16066_v24  ;;  %v16074_v6 = vld [vmem:[#allocation95_spill] sm:$0xff]  ;;  %v16075_v24 = vld [vmem:[#allocation97_spill] sm:$0xff] }
 0x16a   :  { %1566 = vmatmul.mubr.f32.gmra.mrb[12].mxu0 %v16067_v61  ;;  %8993 = vmatprep.subr.bf16.mxu1 %v16068_v60  ;;  %v16076_v60 = vld [vmem:[#allocation100_spill] sm:$0xff] }
 0x16b   :  { %5188 = vmatmul.mubr.f32.gmra.mrb[12].mxu1 %v16067_v61  ;;  %8515 = vmatpush1.bf16.msra.mxu0 %v16069_v40  ;;  %v16077_v61 = vld [vmem:[#allocation244_spill] sm:$0xff]  ;;  %v16079_v40 = vld [vmem:[#allocation245_spill] sm:$0xff] }
 0x16c   :  { %8995 = vmatpush1.bf16.msra.mxu1 %v16070_v55  ;;  %1573 = vmatprep.mubr.f32.mxu0 %v16071_v46  ;;  %v16078_v55 = vld [vmem:[#allocation103_spill] sm:$0xff] }
 0x16d   :  { %5195 = vmatprep.mubr.f32.mxu1 %v16071_v46  ;;  %8517 = vmatprep.subr.bf16.mxu0 %v16072_v51  ;;  %v16080_v46 = vld [vmem:[#allocation107_spill] sm:$0xff]  ;;  %v16081_v51 = vld [vmem:[#allocation109_spill] sm:$0xff] }
 0x16e   :  { %1576 = vmatmul.mubr.f32.gmra.mrb[14].mxu0 %v16073_v20  ;;  %8997 = vmatprep.subr.bf16.mxu1 %v16074_v6  ;;  %v16082_v6 = vld [vmem:[#allocation112_spill] sm:$0xff] }
 0x16f   :  { %5198 = vmatmul.mubr.f32.gmra.mrb[14].mxu1 %v16073_v20  ;;  %8519 = vmatpush1.bf16.msra.mxu0 %v16075_v24  ;;  %v16083_v20 = vld [vmem:[#allocation250_spill] sm:$0xff]  ;;  %v16085_v24 = vld [vmem:[#allocation251_spill] sm:$0xff] }
 0x170   :  { %8999 = vmatpush1.bf16.msra.mxu1 %v16076_v60  ;;  %1583 = vmatprep.mubr.f32.mxu0 %v16077_v61  ;;  %v16084_v60 = vld [vmem:[#allocation115_spill] sm:$0xff] }
 0x171   :  { %5205 = vmatprep.mubr.f32.mxu1 %v16077_v61  ;;  %8521 = vmatprep.subr.bf16.mxu0 %v16078_v55  ;;  %v16086_v61 = vld [vmem:[#allocation119_spill] sm:$0xff]  ;;  %v16087_v55 = vld [vmem:[#allocation121_spill] sm:$0xff] }
 0x172   :  { %1586 = vmatmul.mubr.f32.gmra.mrb[16].mxu0 %v16079_v40  ;;  %9001 = vmatprep.subr.bf16.mxu1 %v16080_v46  ;;  %v16088_v46 = vld [vmem:[#allocation124_spill] sm:$0xff] }
 0x173   :  { %5208 = vmatmul.mubr.f32.gmra.mrb[16].mxu1 %v16079_v40  ;;  %8523 = vmatpush1.bf16.msra.mxu0 %v16081_v51  ;;  %v16089_v40 = vld [vmem:[#allocation256_spill] sm:$0xff]  ;;  %v16091_v51 = vld [vmem:[#allocation257_spill] sm:$0xff] }
 0x174   :  { %9003 = vmatpush1.bf16.msra.mxu1 %v16082_v6  ;;  %1593 = vmatprep.mubr.f32.mxu0 %v16083_v20  ;;  %v16090_v6 = vld [vmem:[#allocation127_spill] sm:$0xff] }
 0x175   :  { %5215 = vmatprep.mubr.f32.mxu1 %v16083_v20  ;;  %8525 = vmatprep.subr.bf16.mxu0 %v16084_v60  ;;  %v16092_v20 = vld [vmem:[#allocation131_spill] sm:$0xff]  ;;  %v16093_v60 = vld [vmem:[#allocation133_spill] sm:$0xff] }
 0x176   :  { %1596 = vmatmul.mubr.f32.gmra.mrb[18].mxu0 %v16085_v24  ;;  %9005 = vmatprep.subr.bf16.mxu1 %v16086_v61  ;;  %v16094_v61 = vld [vmem:[#allocation136_spill] sm:$0xff] }
 0x177   :  { %5218 = vmatmul.mubr.f32.gmra.mrb[18].mxu1 %v16085_v24  ;;  %8527 = vmatpush1.bf16.msra.mxu0 %v16087_v55  ;;  %v16095_v24 = vld [vmem:[#allocation140_spill] sm:$0xff]  ;;  %v16097_v55 = vld [vmem:[#allocation262_spill] sm:$0xff] }
 0x178   :  { %9007 = vmatpush1.bf16.msra.mxu1 %v16088_v46  ;;  %1603 = vmatprep.mubr.f32.mxu0 %v16089_v40  ;;  %v16096_v46 = vld [vmem:[#allocation139_spill] sm:$0xff] }
 0x179   :  { %5225 = vmatprep.mubr.f32.mxu1 %v16089_v40  ;;  %8529 = vmatprep.subr.bf16.mxu0 %v16090_v6  ;;  %v16098_v40 = vld [vmem:[#allocation143_spill] sm:$0xff]  ;;  %v16099_v6 = vld [vmem:[#allocation145_spill] sm:$0xff] }
 0x17a   :  { %1606 = vmatmul.mubr.f32.gmra.mrb[20].mxu0 %v16091_v51  ;;  %9009 = vmatprep.subr.bf16.mxu1 %v16092_v20  ;;  %v16100_v20 = vld [vmem:[#allocation148_spill] sm:$0xff] }
 0x17b   :  { %5228 = vmatmul.mubr.f32.gmra.mrb[20].mxu1 %v16091_v51  ;;  %8531 = vmatpush1.bf16.msra.mxu0 %v16093_v60  ;;  %v16101_v51 = vld [vmem:[#allocation267_spill] sm:$0xff]  ;;  %v16103_v60 = vld [vmem:[#allocation268_spill] sm:$0xff] }
 0x17c   :  { %9011 = vmatpush1.bf16.msra.mxu1 %v16094_v61  ;;  %1613 = vmatprep.mubr.f32.mxu0 %v16095_v24  ;;  %v16102_v61 = vld [vmem:[#allocation151_spill] sm:$0xff] }
 0x17d   :  { %5235 = vmatprep.mubr.f32.mxu1 %v16095_v24  ;;  %8533 = vmatprep.subr.bf16.mxu0 %v16096_v46  ;;  %v16104_v24 = vld [vmem:[#allocation155_spill] sm:$0xff]  ;;  %v16105_v46 = vld [vmem:[#allocation157_spill] sm:$0xff] }
 0x17e   :  { %1616 = vmatmul.mubr.f32.gmra.mrb[22].mxu0 %v16097_v55  ;;  %9013 = vmatprep.subr.bf16.mxu1 %v16098_v40  ;;  %v16106_v40 = vld [vmem:[#allocation160_spill] sm:$0xff] }
 0x17f   :  { %5238 = vmatmul.mubr.f32.gmra.mrb[22].mxu1 %v16097_v55  ;;  %8535 = vmatpush1.bf16.msra.mxu0 %v16099_v6  ;;  %v16107_v55 = vld [vmem:[#allocation272_spill] sm:$0xff]  ;;  %v16109_v6 = vld [vmem:[#allocation273_spill] sm:$0xff] }
 0x180   :  { %9015 = vmatpush1.bf16.msra.mxu1 %v16100_v20  ;;  %1623 = vmatprep.mubr.f32.mxu0 %v16101_v51  ;;  %v16108_v20 = vld [vmem:[#allocation163_spill] sm:$0xff] }
 0x181   :  { %5245 = vmatprep.mubr.f32.mxu1 %v16101_v51  ;;  %8537 = vmatprep.subr.bf16.mxu0 %v16102_v61  ;;  %v16110_v51 = vld [vmem:[#allocation167_spill] sm:$0xff]  ;;  %v16111_v61 = vld [vmem:[#allocation169_spill] sm:$0xff] }
 0x182   :  { %1626 = vmatmul.mubr.f32.gmra.mrb[24].mxu0 %v16103_v60  ;;  %9017 = vmatprep.subr.bf16.mxu1 %v16104_v24  ;;  %v16112_v24 = vld [vmem:[#allocation172_spill] sm:$0xff] }
 0x183   :  { %5248 = vmatmul.mubr.f32.gmra.mrb[24].mxu1 %v16103_v60  ;;  %8539 = vmatpush1.bf16.msra.mxu0 %v16105_v46  ;;  %v16113_v60 = vld [vmem:[#allocation277_spill] sm:$0xff]  ;;  %v16115_v46 = vld [vmem:[#allocation176_spill] sm:$0xff] }
 0x184   :  { %9019 = vmatpush1.bf16.msra.mxu1 %v16106_v40  ;;  %1633 = vmatprep.mubr.f32.mxu0 %v16107_v55  ;;  %v16114_v40 = vld [vmem:[#allocation175_spill] sm:$0xff] }
 0x185   :  { %5255 = vmatprep.mubr.f32.mxu1 %v16107_v55  ;;  %8541 = vmatprep.subr.bf16.mxu0 %v16108_v20  ;;  %v16116_v55 = vld [vmem:[#allocation179_spill] sm:$0xff]  ;;  %v16117_v20 = vld [vmem:[#allocation181_spill] sm:$0xff] }
 0x186   :  { %1636 = vmatmul.mubr.f32.gmra.mrb[26].mxu0 %v16109_v6  ;;  %9021 = vmatprep.subr.bf16.mxu1 %v16110_v51  ;;  %v16118_v51 = vld [vmem:[#allocation183_spill] sm:$0xff] }
 0x187   :  { %5258 = vmatmul.mubr.f32.gmra.mrb[26].mxu1 %v16109_v6  ;;  %8543 = vmatpush1.bf16.msra.mxu0 %v16111_v61  ;;  %v16119_v6 = vld [vmem:[#allocation185_spill] sm:$0xff]  ;;  %v16125_v61 = vld [vmem:[#allocation190_spill] sm:$0xff] }
 0x188   :  { %9023 = vmatpush1.bf16.msra.mxu1 %v16112_v24  ;;  %1643 = vmatprep.mubr.f32.mxu0 %v16113_v60 }
 0x189   :  { %5265 = vmatprep.mubr.f32.mxu1 %v16113_v60  ;;  %8545 = vmatprep.subr.bf16.mxu0 %v16114_v40  ;;  %v16120_v60 = vand.u32 4294901760, %v10399_v16  ;;  %v16121_v40 = vand.u32 4294901760, %v15893_v23  ;;  %v16129_v16 = vand.u32 4294901760, %v16128_v39  ;;  %v16130_v23 = vld [vmem:[#allocation193_spill] sm:$0xff]  ;;  %v16141_v39 = vld [vmem:[#allocation23_spill] sm:$0xff] }
 0x18a   :  { %1646 = vmatmul.mubr.f32.gmra.mrb[28].mxu0 %v16115_v46  ;;  %9025 = vmatprep.subr.bf16.mxu1 %v16116_v55  ;;  %v16122_v55 = vld [vmem:[#allocation189_spill] sm:$0xff] }
 0x18b   :  { %5268 = vmatmul.mubr.f32.gmra.mrb[28].mxu1 %v16115_v46  ;;  %8547 = vmatpush1.bf16.msra.mxu0 %v16117_v20  ;;  %v8552_v24 = vpack.c.bf16 %v16121_v40, %v16120_v60  ;;  %v16123_v46 = vand.u32 4294901760, %v15894_v57  ;;  %v16124_v20 = vand.u32 4294901760, %v15895_v25  ;;  %v16131_v40 = vld [vmem:[#allocation198_spill] sm:$0xff]  ;;  %v16132_v60 = vld [vmem:[#allocation17_spill] sm:$0xff]  ;;  %v16135_v57 = vand.u32 4294901760, %v16134_v1 }
 0x18c   :  { %9027 = vmatpush1.bf16.msra.mxu1 %v16118_v51  ;;  %1653 = vmatprep.mubr.f32.mxu0 %v11728_v49  ;;  %v16145_v1 = vld [vmem:[#allocation25_spill] sm:$0xff] }
 0x18d   :  { %5275 = vmatprep.mubr.f32.mxu1 %v11728_v49  ;;  %8549 = vmatprep.subr.bf16.mxu0 %v16119_v6  ;;  %v9032_v51 = vpack.c.bf16 %v16124_v20, %v16123_v46  ;;  %v16126_v49 = vld [vmem:[#allocation14_spill] sm:$0xff]  ;;  %v16138_v20 = vld [vmem:[#allocation21_spill] sm:$0xff] }
 0x18e   :  { %1656 = vmatmul.mubr.f32.gmra.mrb[30].mxu0 %v11731_v18  ;;  %9029 = vmatprep.subr.bf16.mxu1 %v16122_v55  ;;  %v16127_v6 = vand.u32 4294901760, %v16126_v49  ;;  %v16133_v55 = vand.u32 4294901760, %v16132_v60  ;;  %v16139_v46 = vand.u32 4294901760, %v16138_v20  ;;  %v16152_v20 = vld [vmem:[#allocation30_spill] sm:$0xff] }
 0x18f   :  { %5278 = vmatmul.mubr.f32.gmra.mrb[30].mxu1 %v11731_v18  ;;  %8551 = vmatpush1.bf16.msra.mxu0 %v16125_v61  ;;  %v16136_v18 = vld [vmem:[#allocation19_spill] sm:$0xff] }
 0x190   :  { %v8554_v29 = vpack.c.bf16 %v16129_v16, %v16127_v6  ;;  %9031 = vmatpush1.bf16.msra.mxu1 %v16130_v23  ;;  %1793 = vmatprep.mubr.f32.mxu0 %v16131_v40  ;;  %v9034_v28 = vpack.c.bf16 %v16135_v57, %v16133_v55  ;;  %v16137_v25 = vand.u32 4294901760, %v16136_v18  ;;  %v16140_v61 = vld [vmem:[#allocation199_spill] sm:$0xff]  ;;  %v16142_v6 = vand.u32 4294901760, %v16141_v39  ;;  %v16143_v16 = vld [vmem:[#allocation24_spill] sm:$0xff] }
 0x191   :  { %5415 = vmatprep.mubr.f32.mxu1 %v16131_v40  ;;  %8553 = vmatprep.subr.bf16.mxu0 %v8552_v24  ;;  %v16144_v23 = vand.u32 4294901760, %v16143_v16  ;;  %v16146_v55 = vand.u32 4294901760, %v16145_v1  ;;  %v16147_v40 = vld [vmem:[#allocation27_spill] sm:$0xff]  ;;  %v16149_v57 = vld [vmem:[#allocation204_spill] sm:$0xff]  ;;  %v16158_v16 = vld [vmem:[#allocation205_spill] sm:$0xff] }
 0x192   :  { %v8556_v49 = vpack.c.bf16 %v16139_v46, %v16137_v25  ;;  %1797 = vmatmul.mubr.f32.vlgmr.msra.gmra.mrb[0].mxu0 %v16140_v61  ;;  %9033 = vmatprep.subr.bf16.mxu1 %v9032_v51  ;;  %v16148_v24 = vand.u32 4294901760, %v16147_v40  ;;  %v16150_v18 = vld [vmem:[#allocation28_spill] sm:$0xff]  ;;  %v16153_v51 = vand.u32 4294901760, %v16152_v20  ;;  %v16159_v1 = vld [vmem:[#allocation35_spill] sm:$0xff] }
 0x193   :  { %v9036_v47 = vpack.c.bf16 %v16144_v23, %v16142_v6  ;;  %5419 = vmatmul.mubr.f32.vlgmr.msra.gmra.mrb[0].mxu1 %v16140_v61  ;;  %8555 = vmatpush1.bf16.msra.mxu0 %v8554_v29  ;;  %v16151_v25 = vand.u32 4294901760, %v16150_v18  ;;  %v16154_v23 = vld [vmem:[#allocation32_spill] sm:$0xff]  ;;  %v16156_v61 = vld [vmem:[#allocation33_spill] sm:$0xff]  ;;  %v16163_v18 = vld [vmem:[#allocation38_spill] sm:$0xff] }
 0x194   :  { %v8558_v60 = vpack.c.bf16 %v16148_v24, %v16146_v55  ;;  %9035 = vmatpush1.bf16.msra.mxu1 %v9034_v28  ;;  %1805 = vmatprep.mubr.f32.mxu0 %v16149_v57  ;;  %v16155_v39 = vand.u32 4294901760, %v16154_v23  ;;  %v16157_v29 = vand.u32 4294901760, %v16156_v61  ;;  %v16160_v28 = vand.u32 4294901760, %v16159_v1  ;;  %v16161_v55 = vld [vmem:[#allocation36_spill] sm:$0xff]  ;;  %v16168_v23 = vld [vmem:[#allocation41_spill] sm:$0xff]  ;;  %v16170_v61 = vld [vmem:[#allocation42_spill] sm:$0xff] }
 0x195   :  { %v9038_v46 = vpack.c.bf16 %v16153_v51, %v16151_v25  ;;  %5427 = vmatprep.mubr.f32.mxu1 %v16149_v57  ;;  %8557 = vmatprep.subr.bf16.mxu0 %v8556_v49  ;;  %v16162_v40 = vand.u32 4294901760, %v16161_v55  ;;  %v16164_v25 = vand.u32 4294901760, %v16163_v18  ;;  %v16165_v57 = vld [vmem:[#allocation39_spill] sm:$0xff]  ;;  %v16167_v51 = vld [vmem:[#allocation210_spill] sm:$0xff]  ;;  %v16172_v1 = vld [vmem:[#allocation44_spill] sm:$0xff] }
 0x196   :  { %v8560_v6 = vpack.c.bf16 %v16157_v29, %v16155_v39  ;;  %1809 = vmatmul.mubr.f32.gmra.mrb[2].mxu0 %v16158_v16  ;;  %9037 = vmatprep.subr.bf16.mxu1 %v9036_v47  ;;  %v16166_v49 = vand.u32 4294901760, %v16165_v57  ;;  %v16169_v39 = vand.u32 4294901760, %v16168_v23  ;;  %v16171_v47 = vand.u32 4294901760, %v16170_v61  ;;  %v16177_v18 = vld [vmem:[#allocation47_spill] sm:$0xff]  ;;  %v16181_v23 = vld [vmem:[#allocation49_spill] sm:$0xff] }
 0x197   :  { %v9040_v24 = vpack.c.bf16 %v16162_v40, %v16160_v28  ;;  %5431 = vmatmul.mubr.f32.gmra.mrb[2].mxu1 %v16158_v16  ;;  %8559 = vmatpush1.bf16.msra.mxu0 %v8558_v60  ;;  %v16173_v28 = vand.u32 4294901760, %v16172_v1  ;;  %v16174_v16 = vld [vmem:[#allocation45_spill] sm:$0xff]  ;;  %v16176_v40 = vld [vmem:[#allocation211_spill] sm:$0xff] }
 0x198   :  { %v8562_v20 = vpack.c.bf16 %v16166_v49, %v16164_v25  ;;  %9039 = vmatpush1.bf16.msra.mxu1 %v9038_v46  ;;  %1817 = vmatprep.mubr.f32.mxu0 %v16167_v51  ;;  %v9042_v29 = vpack.c.bf16 %v16171_v47, %v16169_v39  ;;  %v16175_v60 = vand.u32 4294901760, %v16174_v16  ;;  %v16178_v46 = vand.u32 4294901760, %v16177_v18  ;;  %v16179_v25 = vld [vmem:[#allocation48_spill] sm:$0xff]  ;;  %v16186_v1 = vld [vmem:[#allocation53_spill] sm:$0xff]  ;;  %v16188_v16 = vld [vmem:[#allocation54_spill] sm:$0xff] }
 0x199   :  { %5439 = vmatprep.mubr.f32.mxu1 %v16167_v51  ;;  %8561 = vmatprep.subr.bf16.mxu0 %v8560_v6  ;;  %v16180_v57 = vand.u32 4294901760, %v16179_v25  ;;  %v16182_v39 = vand.u32 4294901760, %v16181_v23  ;;  %v16183_v51 = vld [vmem:[#allocation51_spill] sm:$0xff]  ;;  %v16185_v47 = vld [vmem:[#allocation216_spill] sm:$0xff]  ;;  %v16195_v23 = vld [vmem:[#allocation58_spill] sm:$0xff] }
 0x19a   :  { %v8564_v55 = vpack.c.bf16 %v16175_v60, %v16173_v28  ;;  %1821 = vmatmul.mubr.f32.gmra.mrb[4].mxu0 %v16176_v40  ;;  %9041 = vmatprep.subr.bf16.mxu1 %v9040_v24  ;;  %v16184_v6 = vand.u32 4294901760, %v16183_v51  ;;  %v16187_v28 = vand.u32 4294901760, %v16186_v1  ;;  %v16189_v24 = vand.u32 4294901760, %v16188_v16  ;;  %v16190_v18 = vld [vmem:[#allocation56_spill] sm:$0xff]  ;;  %v16199_v1 = vld [vmem:[#allocation62_spill] sm:$0xff] }
 0x19b   :  { %v9044_v49 = vpack.c.bf16 %v16180_v57, %v16178_v46  ;;  %5443 = vmatmul.mubr.f32.gmra.mrb[4].mxu1 %v16176_v40  ;;  %8563 = vmatpush1.bf16.msra.mxu0 %v8562_v20  ;;  %v16191_v46 = vand.u32 4294901760, %v16190_v18  ;;  %v16192_v40 = vld [vmem:[#allocation57_spill] sm:$0xff] }
 0x19c   :  { %v8566_v61 = vpack.c.bf16 %v16184_v6, %v16182_v39  ;;  %9043 = vmatpush1.bf16.msra.mxu1 %v9042_v29  ;;  %1829 = vmatprep.mubr.f32.mxu0 %v16185_v47  ;;  %v9046_v60 = vpack.c.bf16 %v16189_v24, %v16187_v28  ;;  %v16193_v20 = vand.u32 4294901760, %v16192_v40  ;;  %v16194_v57 = vld [vmem:[#allocation217_spill] sm:$0xff]  ;;  %v16196_v29 = vand.u32 4294901760, %v16195_v23  ;;  %v16197_v39 = vld [vmem:[#allocation60_spill] sm:$0xff]  ;;  %v16203_v24 = vld [vmem:[#allocation222_spill] sm:$0xff] }
 0x19d   :  { %5451 = vmatprep.mubr.f32.mxu1 %v16185_v47  ;;  %8565 = vmatprep.subr.bf16.mxu0 %v8564_v55  ;;  %v16198_v51 = vand.u32 4294901760, %v16197_v39  ;;  %v16200_v28 = vand.u32 4294901760, %v16199_v1  ;;  %v16201_v47 = vld [vmem:[#allocation63_spill] sm:$0xff]  ;;  %v16204_v18 = vld [vmem:[#allocation65_spill] sm:$0xff]  ;;  %v16206_v40 = vld [vmem:[#allocation66_spill] sm:$0xff] }
 0x19e   :  { %v8568_v25 = vpack.c.bf16 %v16193_v20, %v16191_v46  ;;  %1833 = vmatmul.mubr.f32.gmra.mrb[6].mxu0 %v16194_v57  ;;  %9045 = vmatprep.subr.bf16.mxu1 %v9044_v49  ;;  %v16202_v55 = vand.u32 4294901760, %v16201_v47  ;;  %v16205_v46 = vand.u32 4294901760, %v16204_v18  ;;  %v16207_v49 = vand.u32 4294901760, %v16206_v40  ;;  %v16208_v23 = vld [vmem:[#allocation68_spill] sm:$0xff]  ;;  %v16213_v1 = vld [vmem:[#allocation70_spill] sm:$0xff] }
 0x19f   :  { %v9048_v6 = vpack.c.bf16 %v16198_v51, %v16196_v29  ;;  %5455 = vmatmul.mubr.f32.gmra.mrb[6].mxu1 %v16194_v57  ;;  %8567 = vmatpush1.bf16.msra.mxu0 %v8566_v61  ;;  %v16209_v29 = vand.u32 4294901760, %v16208_v23  ;;  %v16210_v57 = vld [vmem:[#allocation69_spill] sm:$0xff]  ;;  %v16212_v51 = vld [vmem:[#allocation223_spill] sm:$0xff]  ;;  %v16217_v18 = vld [vmem:[#allocation74_spill] sm:$0xff] }
 0x1a0   :  { %v8570_v16 = vpack.c.bf16 %v16202_v55, %v16200_v28  ;;  %9047 = vmatpush1.bf16.msra.mxu1 %v9046_v60  ;;  %1841 = vmatprep.mubr.f32.mxu0 %v16203_v24  ;;  %v9050_v20 = vpack.c.bf16 %v16207_v49, %v16205_v46  ;;  %v16211_v61 = vand.u32 4294901760, %v16210_v57  ;;  %v16214_v60 = vand.u32 4294901760, %v16213_v1  ;;  %v16215_v28 = vld [vmem:[#allocation72_spill] sm:$0xff]  ;;  %v16222_v23 = vld [vmem:[#allocation77_spill] sm:$0xff]  ;;  %v16224_v57 = vld [vmem:[#allocation78_spill] sm:$0xff] }
 0x1a1   :  { %5463 = vmatprep.mubr.f32.mxu1 %v16203_v24  ;;  %8569 = vmatprep.subr.bf16.mxu0 %v8568_v25  ;;  %v16216_v47 = vand.u32 4294901760, %v16215_v28  ;;  %v16218_v46 = vand.u32 4294901760, %v16217_v18  ;;  %v16219_v24 = vld [vmem:[#allocation75_spill] sm:$0xff]  ;;  %v16221_v49 = vld [vmem:[#allocation228_spill] sm:$0xff]  ;;  %v16231_v18 = vld [vmem:[#allocation82_spill] sm:$0xff] }
 0x1a2   :  { %v8572_v39 = vpack.c.bf16 %v16211_v61, %v16209_v29  ;;  %1845 = vmatmul.mubr.f32.gmra.mrb[8].mxu0 %v16212_v51  ;;  %9049 = vmatprep.subr.bf16.mxu1 %v9048_v6  ;;  %v16220_v25 = vand.u32 4294901760, %v16219_v24  ;;  %v16223_v29 = vand.u32 4294901760, %v16222_v23  ;;  %v16225_v6 = vand.u32 4294901760, %v16224_v57  ;;  %v16226_v1 = vld [vmem:[#allocation80_spill] sm:$0xff]  ;;  %v16235_v23 = vld [vmem:[#allocation86_spill] sm:$0xff] }
 0x1a3   :  { %v9052_v55 = vpack.c.bf16 %v16216_v47, %v16214_v60  ;;  %5467 = vmatmul.mubr.f32.gmra.mrb[8].mxu1 %v16212_v51  ;;  %8571 = vmatpush1.bf16.msra.mxu0 %v8570_v16  ;;  %v16227_v60 = vand.u32 4294901760, %v16226_v1  ;;  %v16228_v51 = vld [vmem:[#allocation81_spill] sm:$0xff] }
 0x1a4   :  { %v8574_v40 = vpack.c.bf16 %v16220_v25, %v16218_v46  ;;  %9051 = vmatpush1.bf16.msra.mxu1 %v9050_v20  ;;  %1853 = vmatprep.mubr.f32.mxu0 %v16221_v49  ;;  %v9054_v61 = vpack.c.bf16 %v16225_v6, %v16223_v29  ;;  %v16229_v16 = vand.u32 4294901760, %v16228_v51  ;;  %v16230_v47 = vld [vmem:[#allocation229_spill] sm:$0xff]  ;;  %v16232_v20 = vand.u32 4294901760, %v16231_v18  ;;  %v16233_v46 = vld [vmem:[#allocation84_spill] sm:$0xff]  ;;  %v16239_v6 = vld [vmem:[#allocation234_spill] sm:$0xff] }
 0x1a5   :  { %5475 = vmatprep.mubr.f32.mxu1 %v16221_v49  ;;  %8573 = vmatprep.subr.bf16.mxu0 %v8572_v39  ;;  %v16234_v24 = vand.u32 4294901760, %v16233_v46  ;;  %v16236_v29 = vand.u32 4294901760, %v16235_v23  ;;  %v16237_v49 = vld [vmem:[#allocation87_spill] sm:$0xff]  ;;  %v16240_v1 = vld [vmem:[#allocation89_spill] sm:$0xff]  ;;  %v16242_v51 = vld [vmem:[#allocation90_spill] sm:$0xff] }
 0x1a6   :  { %v8576_v28 = vpack.c.bf16 %v16229_v16, %v16227_v60  ;;  %1857 = vmatmul.mubr.f32.gmra.mrb[10].mxu0 %v16230_v47  ;;  %9053 = vmatprep.subr.bf16.mxu1 %v9052_v55  ;;  %v16238_v39 = vand.u32 4294901760, %v16237_v49  ;;  %v16241_v60 = vand.u32 4294901760, %v16240_v1  ;;  %v16243_v55 = vand.u32 4294901760, %v16242_v51  ;;  %v16244_v18 = vld [vmem:[#allocation92_spill] sm:$0xff]  ;;  %v16249_v23 = vld [vmem:[#allocation94_spill] sm:$0xff] }
 0x1a7   :  { %v9056_v25 = vpack.c.bf16 %v16234_v24, %v16232_v20  ;;  %5479 = vmatmul.mubr.f32.gmra.mrb[10].mxu1 %v16230_v47  ;;  %8575 = vmatpush1.bf16.msra.mxu0 %v8574_v40  ;;  %v16245_v20 = vand.u32 4294901760, %v16244_v18  ;;  %v16246_v47 = vld [vmem:[#allocation93_spill] sm:$0xff]  ;;  %v16248_v24 = vld [vmem:[#allocation235_spill] sm:$0xff]  ;;  %v16253_v1 = vld [vmem:[#allocation98_spill] sm:$0xff] }
 0x1a8   :  { %v8578_v57 = vpack.c.bf16 %v16238_v39, %v16236_v29  ;;  %9055 = vmatpush1.bf16.msra.mxu1 %v9054_v61  ;;  %1865 = vmatprep.mubr.f32.mxu0 %v16239_v6  ;;  %v9058_v16 = vpack.c.bf16 %v16243_v55, %v16241_v60  ;;  %v16247_v40 = vand.u32 4294901760, %v16246_v47  ;;  %v16250_v61 = vand.u32 4294901760, %v16249_v23  ;;  %v16251_v29 = vld [vmem:[#allocation96_spill] sm:$0xff]  ;;  %v16258_v18 = vld [vmem:[#allocation101_spill] sm:$0xff]  ;;  %v16260_v47 = vld [vmem:[#allocation102_spill] sm:$0xff] }
 0x1a9   :  { %5487 = vmatprep.mubr.f32.mxu1 %v16239_v6  ;;  %8577 = vmatprep.subr.bf16.mxu0 %v8576_v28  ;;  %v16252_v49 = vand.u32 4294901760, %v16251_v29  ;;  %v16254_v60 = vand.u32 4294901760, %v16253_v1  ;;  %v16255_v6 = vld [vmem:[#allocation99_spill] sm:$0xff]  ;;  %v16257_v55 = vld [vmem:[#allocation240_spill] sm:$0xff]  ;;  %v16267_v1 = vld [vmem:[#allocation106_spill] sm:$0xff] }
 0x1aa   :  { %v8580_v46 = vpack.c.bf16 %v16247_v40, %v16245_v20  ;;  %1869 = vmatmul.mubr.f32.gmra.mrb[12].mxu0 %v16248_v24  ;;  %9057 = vmatprep.subr.bf16.mxu1 %v9056_v25  ;;  %v16256_v28 = vand.u32 4294901760, %v16255_v6  ;;  %v16259_v20 = vand.u32 4294901760, %v16258_v18  ;;  %v16261_v25 = vand.u32 4294901760, %v16260_v47  ;;  %v16262_v23 = vld [vmem:[#allocation104_spill] sm:$0xff]  ;;  %v16271_v18 = vld [vmem:[#allocation110_spill] sm:$0xff] }
 0x1ab   :  { %v9060_v39 = vpack.c.bf16 %v16252_v49, %v16250_v61  ;;  %5491 = vmatmul.mubr.f32.gmra.mrb[12].mxu1 %v16248_v24  ;;  %8579 = vmatpush1.bf16.msra.mxu0 %v8578_v57  ;;  %v16263_v61 = vand.u32 4294901760, %v16262_v23  ;;  %v16264_v24 = vld [vmem:[#allocation105_spill] sm:$0xff] }
 0x1ac   :  { %v8582_v51 = vpack.c.bf16 %v16256_v28, %v16254_v60  ;;  %9059 = vmatpush1.bf16.msra.mxu1 %v9058_v16  ;;  %1877 = vmatprep.mubr.f32.mxu0 %v16257_v55  ;;  %v9062_v40 = vpack.c.bf16 %v16261_v25, %v16259_v20  ;;  %v16265_v57 = vand.u32 4294901760, %v16264_v24  ;;  %v16266_v49 = vld [vmem:[#allocation241_spill] sm:$0xff]  ;;  %v16268_v16 = vand.u32 4294901760, %v16267_v1  ;;  %v16269_v60 = vld [vmem:[#allocation108_spill] sm:$0xff]  ;;  %v16275_v25 = vld [vmem:[#allocation246_spill] sm:$0xff] }
 0x1ad   :  { %5499 = vmatprep.mubr.f32.mxu1 %v16257_v55  ;;  %8581 = vmatprep.subr.bf16.mxu0 %v8580_v46  ;;  %v16270_v6 = vand.u32 4294901760, %v16269_v60  ;;  %v16272_v20 = vand.u32 4294901760, %v16271_v18  ;;  %v16273_v55 = vld [vmem:[#allocation111_spill] sm:$0xff]  ;;  %v16276_v23 = vld [vmem:[#allocation113_spill] sm:$0xff]  ;;  %v16278_v24 = vld [vmem:[#allocation114_spill] sm:$0xff] }
 0x1ae   :  { %v8584_v29 = vpack.c.bf16 %v16265_v57, %v16263_v61  ;;  %1881 = vmatmul.mubr.f32.gmra.mrb[14].mxu0 %v16266_v49  ;;  %9061 = vmatprep.subr.bf16.mxu1 %v9060_v39  ;;  %v16274_v46 = vand.u32 4294901760, %v16273_v55  ;;  %v16277_v61 = vand.u32 4294901760, %v16276_v23  ;;  %v16279_v39 = vand.u32 4294901760, %v16278_v24  ;;  %v16280_v1 = vld [vmem:[#allocation116_spill] sm:$0xff] }
 0x1af   :  { %v9064_v28 = vpack.c.bf16 %v16270_v6, %v16268_v16  ;;  %5503 = vmatmul.mubr.f32.gmra.mrb[14].mxu1 %v16266_v49  ;;  %8583 = vmatpush1.bf16.msra.mxu0 %v8582_v51  ;;  %v16281_v16 = vand.u32 4294901760, %v16280_v1  ;;  %v16282_v49 = vld [vmem:[#allocation117_spill] sm:$0xff]  ;;  %v16284_v6 = vld [vmem:[#allocation247_spill] sm:$0xff]  ;;  %v16286_v18 = vld [vmem:[#allocation120_spill] sm:$0xff] }
 0x1b0   :  { %v8586_v47 = vpack.c.bf16 %v16274_v46, %v16272_v20  ;;  %9063 = vmatpush1.bf16.msra.mxu1 %v9062_v40  ;;  %1889 = vmatprep.mubr.f32.mxu0 %v16275_v25  ;;  %v9066_v57 = vpack.c.bf16 %v16279_v39, %v16277_v61  ;;  %v16283_v51 = vand.u32 4294901760, %v16282_v49  ;;  %v16285_v40 = vand.u32 4294901760, %v15981_v5  ;;  %v16288_v46 = vld [vmem:[#allocation122_spill] sm:$0xff]  ;;  %v16292_v24 = vld [vmem:[#allocation252_spill] sm:$0xff]  ;;  %v16293_v39 = vld [vmem:[#allocation125_spill] sm:$0xff] }
 0x1b1   :  { %5511 = vmatprep.mubr.f32.mxu1 %v16275_v25  ;;  %8585 = vmatprep.subr.bf16.mxu0 %v8584_v29  ;;  %v16287_v20 = vand.u32 4294901760, %v16286_v18  ;;  %v16289_v23 = vand.u32 4294901760, %v16288_v46  ;;  %v16290_v25 = vld [vmem:[#allocation123_spill] sm:$0xff]  ;;  %v16294_v1 = vand.u32 4294901760, %v16293_v39  ;;  %v16297_v5 = vand.u32 4294901760, %v15988_v48  ;;  %v16305_v48 = vld [vmem:[#allocation258_spill] sm:$0xff] }
 0x1b2   :  { %v8588_v60 = vpack.c.bf16 %v16283_v51, %v16281_v16  ;;  %1893 = vmatmul.mubr.f32.gmra.mrb[16].mxu0 %v16284_v6  ;;  %9065 = vmatprep.subr.bf16.mxu1 %v9064_v28  ;;  %v16291_v29 = vand.u32 4294901760, %v16290_v25  ;;  %v16295_v16 = vld [vmem:[#allocation126_spill] sm:$0xff]  ;;  %v16298_v51 = vld [vmem:[#allocation129_spill] sm:$0xff]  ;;  %v16302_v18 = vand.u32 4294901760, %v15992_v43  ;;  %v16303_v46 = vand.u32 4294901760, %v15993_v36  ;;  %v16310_v36 = vld [vmem:[#allocation259_spill] sm:$0xff] }
 0x1b3   :  { %v9068_v55 = vpack.c.bf16 %v16287_v20, %v16285_v40  ;;  %5515 = vmatmul.mubr.f32.gmra.mrb[16].mxu1 %v16284_v6  ;;  %8587 = vmatpush1.bf16.msra.mxu0 %v8586_v47  ;;  %v16296_v28 = vand.u32 4294901760, %v16295_v16  ;;  %v16299_v47 = vand.u32 4294901760, %v16298_v51  ;;  %v16300_v40 = vld [vmem:[#allocation253_spill] sm:$0xff]  ;;  %v16306_v25 = vand.u32 4294901760, %v15996_v12 }
 0x1b4   :  { %v8590_v61 = vpack.c.bf16 %v16291_v29, %v16289_v23  ;;  %9067 = vmatpush1.bf16.msra.mxu1 %v9066_v57  ;;  %1901 = vmatprep.mubr.f32.mxu0 %v16292_v24  ;;  %v16301_v57 = vand.u32 4294901760, %v15991_v31  ;;  %v16308_v31 = vand.u32 4294901760, %v15837_v17  ;;  %v16309_v43 = vand.u32 4294901760, %v15906_v63  ;;  %v16315_v17 = vld [vmem:[#allocation263_spill] sm:$0xff] }
 0x1b5   :  { %v9070_v49 = vpack.c.bf16 %v16296_v28, %v16294_v1  ;;  %5523 = vmatprep.mubr.f32.mxu1 %v16292_v24  ;;  %8589 = vmatprep.subr.bf16.mxu0 %v8588_v60  ;;  %v8592_v6 = vpack.c.bf16 %v16299_v47, %v16297_v5  ;;  %v16304_v60 = vand.u32 4294901760, %v15994_v32  ;;  %v16311_v32 = vand.u32 4294901760, %v15907_v21 }
 0x1b6   :  { %1905 = vmatmul.mubr.f32.gmra.mrb[18].mxu0 %v16300_v40  ;;  %9069 = vmatprep.subr.bf16.mxu1 %v9068_v55  ;;  %v9072_v20 = vpack.c.bf16 %v16302_v18, %v16301_v57  ;;  %v16307_v55 = vand.u32 4294901760, %v15997_v41  ;;  %v16312_v24 = vand.u32 4294901760, %v15908_v26  ;;  %v16313_v12 = vand.u32 4294901760, %v15909_v35  ;;  %v16320_v35 = vld [vmem:[#allocation264_spill] sm:$0xff] }
 0x1b7   :  { %5527 = vmatmul.mubr.f32.gmra.mrb[18].mxu1 %v16300_v40  ;;  %8591 = vmatpush1.bf16.msra.mxu0 %v8590_v61  ;;  %v8594_v23 = vpack.c.bf16 %v16304_v60, %v16303_v46  ;;  %v8596_v61 = vpack.c.bf16 %v16309_v43, %v16308_v31  ;;  %v16314_v41 = vand.u32 4294901760, %v15910_v7  ;;  %v16316_v63 = vand.u32 4294901760, %v15911_v19 }
 0x1b8   :  { %9071 = vmatpush1.bf16.msra.mxu1 %v9070_v49  ;;  %1913 = vmatprep.mubr.f32.mxu0 %v16305_v48  ;;  %v9074_v29 = vpack.c.bf16 %v16307_v55, %v16306_v25  ;;  %v9076_v39 = vpack.c.bf16 %v16312_v24, %v16311_v32  ;;  %v16317_v16 = vand.u32 4294901760, %v15912_v54  ;;  %v16318_v21 = vand.u32 4294901760, %v15913_v53  ;;  %v16325_v53 = vld [vmem:[#allocation269_spill] sm:$0xff]  ;;  %v16355_v24 = vld [vmem:[#allocation192_spill] sm:$0xff] }
 0x1b9   :  { %5535 = vmatprep.mubr.f32.mxu1 %v16305_v48  ;;  %8593 = vmatprep.subr.bf16.mxu0 %v8592_v6  ;;  %v8598_v1 = vpack.c.bf16 %v16314_v41, %v16313_v12  ;;  %v16319_v26 = vand.u32 4294901760, %v15914_v33  ;;  %v16321_v7 = vand.u32 4294901760, %v15916_v56  ;;  %v16322_v5 = vand.u32 4294901760, %v15917_v58 }
 0x1ba   :  { %1917 = vmatmul.mubr.f32.gmra.mrb[20].mxu0 %v16310_v36  ;;  %9073 = vmatprep.subr.bf16.mxu1 %v9072_v20  ;;  %v9078_v28 = vpack.c.bf16 %v16317_v16, %v16316_v63  ;;  %v16323_v19 = vand.u32 4294901760, %v15918_v10  ;;  %v16324_v54 = vand.u32 4294901760, %v15861_v0  ;;  %v16326_v33 = vand.u32 4294901760, %v15919_v3  ;;  %v16330_v10 = vld [vmem:[#allocation270_spill] sm:$0xff]  ;;  %v16364_v16 = vld [vmem:[#allocation8_spill] sm:$0xff] }
 0x1bb   :  { %5539 = vmatmul.mubr.f32.gmra.mrb[20].mxu1 %v16310_v36  ;;  %8595 = vmatpush1.bf16.msra.mxu0 %v8594_v23  ;;  %v8600_v49 = vpack.c.bf16 %v16319_v26, %v16318_v21  ;;  %v9080_v51 = vpack.c.bf16 %v16322_v5, %v16321_v7  ;;  %v16327_v6 = vand.u32 4294901760, %v15920_v8  ;;  %v16328_v56 = vand.u32 4294901760, %v15921_v30  ;;  %v16335_v30 = vld [vmem:[#allocation274_spill] sm:$0xff]  ;;  %v16366_v21 = vld [vmem:[#allocation11_spill] sm:$0xff]  ;;  %v16367_v26 = vld [vmem:[#allocation13_spill] sm:$0xff] }
 0x1bc   :  { %9075 = vmatpush1.bf16.msra.mxu1 %v9074_v29  ;;  %1925 = vmatprep.mubr.f32.mxu0 %v16315_v17  ;;  %v8602_v47 = vpack.c.bf16 %v16324_v54, %v16323_v19  ;;  %v16329_v58 = vand.u32 4294901760, %v15922_v44  ;;  %v16331_v0 = vand.u32 4294901760, %v15923_v62  ;;  %v16332_v18 = vand.u32 4294901760, %v15924_v13  ;;  %v16370_v7 = vld [vmem:[#allocation20_spill] sm:$0xff]  ;;  %v16371_v5 = vld [vmem:[#allocation201_spill] sm:$0xff]  ;;  %v16373_v19 = vld [vmem:[#allocation26_spill] sm:$0xff] }
 0x1bd   :  { %5547 = vmatprep.mubr.f32.mxu1 %v16315_v17  ;;  %8597 = vmatprep.subr.bf16.mxu0 %v8596_v61  ;;  %v9082_v40 = vpack.c.bf16 %v16327_v6, %v16326_v33  ;;  %v16333_v3 = vand.u32 4294901760, %v15873_v27  ;;  %v16334_v8 = vand.u32 4294901760, %v15925_v37  ;;  %v16336_v44 = vand.u32 4294901760, %v15927_v50  ;;  %v16340_v27 = vld [vmem:[#allocation275_spill] sm:$0xff]  ;;  %v16374_v54 = vld [vmem:[#allocation29_spill] sm:$0xff]  ;;  %v16378_v6 = vld [vmem:[#allocation34_spill] sm:$0xff] }
 0x1be   :  { %1929 = vmatmul.mubr.f32.gmra.mrb[22].mxu0 %v16320_v35  ;;  %9077 = vmatprep.subr.bf16.mxu1 %v9076_v39  ;;  %v8604_v57 = vpack.c.bf16 %v16329_v58, %v16328_v56  ;;  %v9084_v20 = vpack.c.bf16 %v16332_v18, %v16331_v0  ;;  %v16337_v60 = vand.u32 4294901760, %v15928_v34  ;;  %v16338_v62 = vand.u32 4294901760, %v15881_v2  ;;  %v16345_v2 = vld [vmem:[#allocation177_spill] sm:$0xff]  ;;  %v16377_v33 = vld [vmem:[#allocation207_spill] sm:$0xff]  ;;  %v16380_v56 = vld [vmem:[#allocation40_spill] sm:$0xff] }
 0x1bf   :  { %5551 = vmatmul.mubr.f32.gmra.mrb[22].mxu1 %v16320_v35  ;;  %8599 = vmatpush1.bf16.msra.mxu0 %v8598_v1  ;;  %v8606_v46 = vpack.c.bf16 %v16334_v8, %v16333_v3  ;;  %v16339_v13 = vand.u32 4294901760, %v15882_v9  ;;  %v16341_v37 = vand.u32 4294901760, %v15884_v15  ;;  %v16342_v25 = vand.u32 4294901760, %v15929_v45  ;;  %v16360_v1 = vld [vmem:[#allocation195_spill] sm:$0xff]  ;;  %v16369_v35 = vld [vmem:[#allocation200_spill] sm:$0xff]  ;;  %v16384_v0 = vld [vmem:[#allocation46_spill] sm:$0xff] }
 0x1c0   :  { %9079 = vmatpush1.bf16.msra.mxu1 %v9078_v28  ;;  %1937 = vmatprep.mubr.f32.mxu0 %v16325_v53  ;;  %v9086_v23 = vpack.c.bf16 %v16337_v60, %v16336_v44  ;;  %v16343_v50 = vand.u32 4294901760, %v15930_v4  ;;  %v16344_v34 = vand.u32 4294901760, %v10806_v38  ;;  %v16346_v9 = vand.u32 4294901760, %v10810_v14  ;;  %v16350_v4 = vld [vmem:[#allocation178_spill] sm:$0xff]  ;;  %v16353_v14 = vld [vmem:[#allocation191_spill] sm:$0xff]  ;;  %v16365_v28 = vld [vmem:[#allocation188_spill] sm:$0xff] }
 0x1c1   :  { %5559 = vmatprep.mubr.f32.mxu1 %v16325_v53  ;;  %8601 = vmatprep.subr.bf16.mxu0 %v8600_v49  ;;  %v8608_v48 = vpack.c.bf16 %v16339_v13, %v16338_v62  ;;  %v9088_v55 = vpack.c.bf16 %v16342_v25, %v16341_v37  ;;  %v16347_v31 = vand.u32 4294901760, %v15887_v11  ;;  %v16348_v15 = vand.u32 4294901760, %v10824_v22  ;;  %v16357_v22 = vld [vmem:[#allocation279_spill] sm:$0xff]  ;;  %v16368_v49 = vld [vmem:[#allocation16_spill] sm:$0xff]  ;;  %v16385_v18 = vld [vmem:[#allocation50_spill] sm:$0xff] }
 0x1c2   :  { %1941 = vmatmul.mubr.f32.gmra.mrb[24].mxu0 %v16330_v10  ;;  %9081 = vmatprep.subr.bf16.mxu1 %v9080_v51  ;;  %v8610_v29 = vpack.c.bf16 %v16344_v34, %v16343_v50  ;;  %v16349_v45 = vand.u32 4294901760, %v15931_v52  ;;  %v16351_v38 = vand.u32 4294901760, %v10830_v42  ;;  %v16352_v36 = vand.u32 4294901760, %v10838_v59  ;;  %v16358_v52 = vld [vmem:[#allocation194_spill] sm:$0xff]  ;;  %v16362_v42 = vld [vmem:[#allocation280_spill] sm:$0xff]  ;;  %v16363_v59 = vld [vmem:[#allocation187_spill] sm:$0xff] }
 0x1c3   :  { %5563 = vmatmul.mubr.f32.gmra.mrb[24].mxu1 %v16330_v10  ;;  %8603 = vmatpush1.bf16.msra.mxu0 %v8602_v47  ;;  %v9090_v43 = vpack.c.bf16 %v16347_v31, %v16346_v9  ;;  %v16354_v11 = vand.u32 4294901760, %v16353_v14  ;;  %v16356_v39 = vand.u32 4294901760, %v16355_v24  ;;  %v16359_v41 = vand.u32 4294901760, %v16358_v52  ;;  %v16372_v51 = vld [vmem:[#allocation22_spill] sm:$0xff]  ;;  %v16376_v53 = vld [vmem:[#allocation31_spill] sm:$0xff]  ;;  %v16381_v58 = vld [vmem:[#allocation212_spill] sm:$0xff] }
 0x1c4   :  { %9083 = vmatpush1.bf16.msra.mxu1 %v9082_v40  ;;  %1949 = vmatprep.mubr.f32.mxu0 %v16335_v30  ;;  %v8612_v61 = vpack.c.bf16 %v16349_v45, %v16348_v15  ;;  %v9092_v32 = vpack.c.bf16 %v16352_v36, %v16351_v38  ;;  %v16361_v17 = vand.u32 4294901760, %v16360_v1  ;;  %v16375_v47 = vld [vmem:[#allocation206_spill] sm:$0xff]  ;;  %v16379_v40 = vld [vmem:[#allocation37_spill] sm:$0xff]  ;;  %v16388_v8 = vld [vmem:[#allocation55_spill] sm:$0xff] }
 0x1c5   :  { %5571 = vmatprep.mubr.f32.mxu1 %v16335_v30  ;;  %8605 = vmatprep.subr.bf16.mxu0 %v8604_v57  ;;  %v8614_v12 = vpack.c.bf16 %v16356_v39, %v16354_v11  ;;  %v16382_v57 = vld [vmem:[#allocation43_spill] sm:$0xff]  ;;  %v16383_v10 = vld [vmem:[#allocation213_spill] sm:$0xff]  ;;  %v16387_v3 = vld [vmem:[#allocation218_spill] sm:$0xff] }
 0x1c6   :  { %1953 = vmatmul.mubr.f32.gmra.mrb[26].mxu0 %v16340_v27  ;;  %9085 = vmatprep.subr.bf16.mxu1 %v9084_v20  ;;  %v9094_v63 = vpack.c.bf16 %v16361_v17, %v16359_v41  ;;  %v16386_v20 = vld [vmem:[#allocation52_spill] sm:$0xff]  ;;  %v16390_v30 = vld [vmem:[#allocation59_spill] sm:$0xff]  ;;  %v16391_v44 = vld [vmem:[#allocation61_spill] sm:$0xff] }
 0x1c7   :  { %5575 = vmatmul.mubr.f32.gmra.mrb[26].mxu1 %v16340_v27  ;;  %8607 = vmatpush1.bf16.msra.mxu0 %v8606_v46  ;;  %v16389_v46 = vld [vmem:[#allocation219_spill] sm:$0xff]  ;;  %v16392_v60 = vld [vmem:[#allocation64_spill] sm:$0xff]  ;;  %v16395_v13 = vld [vmem:[#allocation225_spill] sm:$0xff] }
 0x1c8   :  { %9087 = vmatpush1.bf16.msra.mxu1 %v9086_v23  ;;  %1961 = vmatprep.mubr.f32.mxu0 %v16345_v2  ;;  %v16393_v23 = vld [vmem:[#allocation224_spill] sm:$0xff]  ;;  %v16394_v62 = vld [vmem:[#allocation67_spill] sm:$0xff]  ;;  %v16397_v27 = vld [vmem:[#allocation73_spill] sm:$0xff] }
 0x1c9   :  { %5583 = vmatprep.mubr.f32.mxu1 %v16345_v2  ;;  %8609 = vmatprep.subr.bf16.mxu0 %v8608_v48  ;;  %v16396_v48 = vld [vmem:[#allocation71_spill] sm:$0xff]  ;;  %v16398_v37 = vld [vmem:[#allocation76_spill] sm:$0xff]  ;;  %v16399_v25 = vld [vmem:[#allocation230_spill] sm:$0xff] }
 0x1ca   :  { %1965 = vmatmul.mubr.f32.gmra.mrb[28].mxu0 %v16350_v4  ;;  %9089 = vmatprep.subr.bf16.mxu1 %v9088_v55  ;;  %v16400_v55 = vld [vmem:[#allocation79_spill] sm:$0xff]  ;;  %v16404_v2 = vld [vmem:[#allocation88_spill] sm:$0xff]  ;;  %v16409_v45 = vld [vmem:[#allocation97_spill] sm:$0xff] }
 0x1cb   :  { %5587 = vmatmul.mubr.f32.gmra.mrb[28].mxu1 %v16350_v4  ;;  %8611 = vmatpush1.bf16.msra.mxu0 %v8610_v29  ;;  %v16401_v50 = vld [vmem:[#allocation231_spill] sm:$0xff]  ;;  %v16403_v29 = vld [vmem:[#allocation85_spill] sm:$0xff]  ;;  %v16405_v9 = vld [vmem:[#allocation236_spill] sm:$0xff] }
 0x1cc   :  { %9091 = vmatpush1.bf16.msra.mxu1 %v9090_v43  ;;  %1973 = vmatprep.mubr.f32.mxu0 %v16357_v22  ;;  %v16402_v34 = vld [vmem:[#allocation83_spill] sm:$0xff]  ;;  %v16407_v43 = vld [vmem:[#allocation237_spill] sm:$0xff]  ;;  %v16411_v4 = vld [vmem:[#allocation242_spill] sm:$0xff] }
 0x1cd   :  { %5595 = vmatprep.mubr.f32.mxu1 %v16357_v22  ;;  %8613 = vmatprep.subr.bf16.mxu0 %v8612_v61  ;;  %v16406_v31 = vld [vmem:[#allocation91_spill] sm:$0xff]  ;;  %v16410_v61 = vld [vmem:[#allocation100_spill] sm:$0xff]  ;;  %v16415_v14 = vld [vmem:[#allocation109_spill] sm:$0xff] }
 0x1ce   :  { %1977 = vmatmul.mubr.f32.gmra.mrb[30].mxu0 %v16362_v42  ;;  %9093 = vmatprep.subr.bf16.mxu1 %v9092_v32  ;;  %v16408_v15 = vld [vmem:[#allocation95_spill] sm:$0xff]  ;;  %v16416_v11 = vld [vmem:[#allocation112_spill] sm:$0xff]  ;;  %v16421_v52 = vld [vmem:[#allocation121_spill] sm:$0xff] }
 0x1cf   :  { %5599 = vmatmul.mubr.f32.gmra.mrb[30].mxu1 %v16362_v42  ;;  %8615 = vmatpush1.bf16.msra.mxu0 %v8614_v12  ;;  %v16412_v38 = vld [vmem:[#allocation103_spill] sm:$0xff]  ;;  %v16417_v24 = vld [vmem:[#allocation248_spill] sm:$0xff]  ;;  %v16419_v12 = vld [vmem:[#allocation249_spill] sm:$0xff] }
 0x1d0   :  { %9095 = vmatpush1.bf16.msra.mxu1 %v9094_v63  ;;  %2240 = vmatprep.mubr.f32.mxu0 %v16363_v59  ;;  %v16413_v36 = vld [vmem:[#allocation243_spill] sm:$0xff]  ;;  %v16422_v41 = vld [vmem:[#allocation124_spill] sm:$0xff]  ;;  %v16423_v1 = vld [vmem:[#allocation254_spill] sm:$0xff] }
 0x1d1   :  { %5862 = vmatprep.mubr.f32.mxu1 %v16363_v59  ;;  %8617 = vmatprep.subr.bf16.mxu0 %v16364_v16  ;;  %v16414_v32 = vld [vmem:[#allocation107_spill] sm:$0xff]  ;;  %v16427_v16 = vld [vmem:[#allocation133_spill] sm:$0xff] }
 0x1d2   :  { %2242 = vmatmul.mubr.f32.vlgmr.msra.gmra.mrb[0].mxu0 %v16365_v28  ;;  %9097 = vmatprep.subr.bf16.mxu1 %v16366_v21  ;;  %v16418_v39 = vld [vmem:[#allocation115_spill] sm:$0xff]  ;;  %v16428_v21 = vld [vmem:[#allocation136_spill] sm:$0xff] }
 0x1d3   :  { %5864 = vmatmul.mubr.f32.vlgmr.msra.gmra.mrb[0].mxu1 %v16365_v28  ;;  %8619 = vmatpush1.bf16.msra.mxu0 %v16367_v26  ;;  %v16420_v22 = vld [vmem:[#allocation119_spill] sm:$0xff]  ;;  %v16429_v26 = vld [vmem:[#allocation260_spill] sm:$0xff] }
 0x1d4   :  { %9099 = vmatpush1.bf16.msra.mxu1 %v16368_v49  ;;  %2248 = vmatprep.mubr.f32.mxu0 %v16369_v35  ;;  %v16424_v17 = vld [vmem:[#allocation127_spill] sm:$0xff] }
 0x1d5   :  { %5870 = vmatprep.mubr.f32.mxu1 %v16369_v35  ;;  %8621 = vmatprep.subr.bf16.mxu0 %v16370_v7  ;;  %v16425_v63 = vld [vmem:[#allocation255_spill] sm:$0xff]  ;;  %v16431_v7 = vld [vmem:[#allocation261_spill] sm:$0xff] }
 0x1d6   :  { %2250 = vmatmul.mubr.f32.gmra.mrb[2].mxu0 %v16371_v5  ;;  %9101 = vmatprep.subr.bf16.mxu1 %v16372_v51  ;;  %v16426_v42 = vld [vmem:[#allocation131_spill] sm:$0xff] }
 0x1d7   :  { %5872 = vmatmul.mubr.f32.gmra.mrb[2].mxu1 %v16371_v5  ;;  %8623 = vmatpush1.bf16.msra.mxu0 %v16373_v19  ;;  %v16430_v49 = vld [vmem:[#allocation139_spill] sm:$0xff]  ;;  %v16433_v19 = vld [vmem:[#allocation145_spill] sm:$0xff] }
 0x1d8   :  { %9103 = vmatpush1.bf16.msra.mxu1 %v16374_v54  ;;  %2256 = vmatprep.mubr.f32.mxu0 %v16375_v47  ;;  %v16432_v51 = vld [vmem:[#allocation143_spill] sm:$0xff]  ;;  %v16434_v54 = vld [vmem:[#allocation148_spill] sm:$0xff] }
 0x1d9   :  { %5878 = vmatprep.mubr.f32.mxu1 %v16375_v47  ;;  %8625 = vmatprep.subr.bf16.mxu0 %v16376_v53  ;;  %v16435_v53 = vld [vmem:[#allocation265_spill] sm:$0xff] }
 0x1da   :  { %2258 = vmatmul.mubr.f32.gmra.mrb[4].mxu0 %v16377_v33  ;;  %9105 = vmatprep.subr.bf16.mxu1 %v16378_v6  ;;  %v16436_v6 = vld [vmem:[#allocation151_spill] sm:$0xff] }
 0x1db   :  { %5880 = vmatmul.mubr.f32.gmra.mrb[4].mxu1 %v16377_v33  ;;  %8627 = vmatpush1.bf16.msra.mxu0 %v16379_v40  ;;  %v16437_v40 = vld [vmem:[#allocation266_spill] sm:$0xff] }
 0x1dc   :  { %9107 = vmatpush1.bf16.msra.mxu1 %v16380_v56  ;;  %2264 = vmatprep.mubr.f32.mxu0 %v16381_v58  ;;  %v16438_v56 = vld [vmem:[#allocation155_spill] sm:$0xff] }
 0x1dd   :  { %5886 = vmatprep.mubr.f32.mxu1 %v16381_v58  ;;  %8629 = vmatprep.subr.bf16.mxu0 %v16382_v57  ;;  %v16439_v57 = vld [vmem:[#allocation157_spill] sm:$0xff] }
 0x1de   :  { %2266 = vmatmul.mubr.f32.gmra.mrb[6].mxu0 %v16383_v10  ;;  %9109 = vmatprep.subr.bf16.mxu1 %v16384_v0  ;;  %v218_v0 = vld [vmem:[#allocation2 + $0x408] sm:$0xff] }
 0x1df   :  { %5888 = vmatmul.mubr.f32.gmra.mrb[6].mxu1 %v16383_v10  ;;  %8631 = vmatpush1.bf16.msra.mxu0 %v16385_v18  ;;  %v222_v18 = vld [vmem:[#allocation2 + $0x428] sm:$0xff] }
 0x1e0   :  { %9111 = vmatpush1.bf16.msra.mxu1 %v16386_v20  ;;  %2272 = vmatprep.mubr.f32.mxu0 %v16387_v3  ;;  %v16440_v20 = vld [vmem:[#allocation160_spill] sm:$0xff] }
 0x1e1   :  { %5894 = vmatprep.mubr.f32.mxu1 %v16387_v3  ;;  %8633 = vmatprep.subr.bf16.mxu0 %v16388_v8  ;;  %v16441_v8 = vld [vmem:[#allocation159_spill] sm:$0xff] }
 0x1e2   :  { %2274 = vmatmul.mubr.f32.gmra.mrb[8].mxu0 %v16389_v46  ;;  %9113 = vmatprep.subr.bf16.mxu1 %v16390_v30  ;;  %v220_v30 = vld [vmem:[#allocation2 + $0x418] sm:$0xff] }
 0x1e3   :  { %5896 = vmatmul.mubr.f32.gmra.mrb[8].mxu1 %v16389_v46  ;;  %8635 = vmatpush1.bf16.msra.mxu0 %v16391_v44  ;;  %v224_v44 = vld [vmem:[#allocation2 + $0x438] sm:$0xff] }
 0x1e4   :  { %9115 = vmatpush1.bf16.msra.mxu1 %v16392_v60  ;;  %2280 = vmatprep.mubr.f32.mxu0 %v16393_v23  ;;  %v16442_v60 = vld [vmem:[#allocation163_spill] sm:$0xff] }
 0x1e5   :  { %5902 = vmatprep.mubr.f32.mxu1 %v16393_v23  ;;  %8637 = vmatprep.subr.bf16.mxu0 %v16394_v62  ;;  %v217_v62 = vld [vmem:[#allocation2 + $0x400] sm:$0xff] }
 0x1e6   :  { %2282 = vmatmul.mubr.f32.gmra.mrb[10].mxu0 %v16395_v13  ;;  %9117 = vmatprep.subr.bf16.mxu1 %v16396_v48  ;;  %v221_v48 = vld [vmem:[#allocation2 + $0x420] sm:$0xff] }
 0x1e7   :  { %5904 = vmatmul.mubr.f32.gmra.mrb[10].mxu1 %v16395_v13  ;;  %8639 = vmatpush1.bf16.msra.mxu0 %v16397_v27  ;;  %v16443_v27 = vld [vmem:[#allocation271_spill] sm:$0xff] }
 0x1e8   :  { %9119 = vmatpush1.bf16.msra.mxu1 %v16398_v37  ;;  %2288 = vmatprep.mubr.f32.mxu0 %v16399_v25  ;;  %v16444_v37 = vld [vmem:[#allocation167_spill] sm:$0xff] }
 0x1e9   :  { %5910 = vmatprep.mubr.f32.mxu1 %v16399_v25  ;;  %8641 = vmatprep.subr.bf16.mxu0 %v16400_v55  ;;  %v2625_v55 = vand.u32 4294901760, %v218_v0 }
 0x1ea   :  { %2290 = vmatmul.mubr.f32.gmra.mrb[12].mxu0 %v16401_v50  ;;  %9121 = vmatprep.subr.bf16.mxu1 %v16402_v34  ;;  %v2629_v34 = vand.u32 4294901760, %v222_v18 }
 0x1eb   :  { %5912 = vmatmul.mubr.f32.gmra.mrb[12].mxu1 %v16401_v50  ;;  %8643 = vmatpush1.bf16.msra.mxu0 %v16403_v29  ;;  %v16445_v29 = vld [vmem:[#allocation169_spill] sm:$0xff] }
 0x1ec   :  { %9123 = vmatpush1.bf16.msra.mxu1 %v16404_v2  ;;  %2296 = vmatprep.mubr.f32.mxu0 %v16405_v9  ;;  %v6247_v2 = vand.u32 4294901760, %v220_v30 }
 0x1ed   :  { %5918 = vmatprep.mubr.f32.mxu1 %v16405_v9  ;;  %8645 = vmatprep.subr.bf16.mxu0 %v16406_v31  ;;  %v6251_v31 = vand.u32 4294901760, %v224_v44 }
 0x1ee   :  { %2298 = vmatmul.mubr.f32.gmra.mrb[14].mxu0 %v16407_v43  ;;  %9125 = vmatprep.subr.bf16.mxu1 %v16408_v15  ;;  %v219_v15 = vld [vmem:[#allocation2 + $0x410] sm:$0xff] }
 0x1ef   :  { %5920 = vmatmul.mubr.f32.gmra.mrb[14].mxu1 %v16407_v43  ;;  %8647 = vmatpush1.bf16.msra.mxu0 %v16409_v45  ;;  %v223_v45 = vld [vmem:[#allocation2 + $0x430] sm:$0xff] }
 0x1f0   :  { %9127 = vmatpush1.bf16.msra.mxu1 %v16410_v61  ;;  %2304 = vmatprep.mubr.f32.mxu0 %v16411_v4  ;;  %v16446_v61 = vld [vmem:[#allocation172_spill] sm:$0xff] }
 0x1f1   :  { %5926 = vmatprep.mubr.f32.mxu1 %v16411_v4  ;;  %8649 = vmatprep.subr.bf16.mxu0 %v16412_v38  ;;  %v16447_v38 = vld [vmem:[#allocation170_spill] sm:$0xff] }
 0x1f2   :  { %2306 = vmatmul.mubr.f32.gmra.mrb[16].mxu0 %v16413_v36  ;;  %9129 = vmatprep.subr.bf16.mxu1 %v16414_v32  ;;  %v2627_v32 = vand.u32 4294901760, %v217_v62 }
 0x1f3   :  { %5928 = vmatmul.mubr.f32.gmra.mrb[16].mxu1 %v16413_v36  ;;  %8651 = vmatpush1.bf16.msra.mxu0 %v16415_v14  ;;  %v2631_v14 = vand.u32 4294901760, %v221_v48 }
 0x1f4   :  { %9131 = vmatpush1.bf16.msra.mxu1 %v16416_v11  ;;  %2312 = vmatprep.mubr.f32.mxu0 %v16417_v24  ;;  %v226_v11 = vld [vmem:[#allocation2 + $0x448] sm:$0xff] }
 0x1f5   :  { %5934 = vmatprep.mubr.f32.mxu1 %v16417_v24  ;;  %8653 = vmatprep.subr.bf16.mxu0 %v16418_v39  ;;  %v230_v39 = vld [vmem:[#allocation2 + $0x468] sm:$0xff] }
 0x1f6   :  { %2314 = vmatmul.mubr.f32.gmra.mrb[18].mxu0 %v16419_v12  ;;  %9133 = vmatprep.subr.bf16.mxu1 %v16420_v22  ;;  %v16448_v22 = vld [vmem:[#allocation175_spill] sm:$0xff] }
 0x1f7   :  { %5936 = vmatmul.mubr.f32.gmra.mrb[18].mxu1 %v16419_v12  ;;  %8655 = vmatpush1.bf16.msra.mxu0 %v16421_v52  ;;  %v16449_v52 = vld [vmem:[#allocation276_spill] sm:$0xff] }
 0x1f8   :  { %9135 = vmatpush1.bf16.msra.mxu1 %v16422_v41  ;;  %2320 = vmatprep.mubr.f32.mxu0 %v16423_v1  ;;  %v16450_v41 = vld [vmem:[#allocation179_spill] sm:$0xff] }
 0x1f9   :  { %5942 = vmatprep.mubr.f32.mxu1 %v16423_v1  ;;  %8657 = vmatprep.subr.bf16.mxu0 %v16424_v17  ;;  %v12590_v17 = vpack.c.bf16 %v2629_v34, %v2625_v55 }
 0x1fa   :  { %2322 = vmatmul.mubr.f32.gmra.mrb[20].mxu0 %v16425_v63  ;;  %9137 = vmatprep.subr.bf16.mxu1 %v16426_v42  ;;  %v12592_v42 = vsub.f32 %v218_v0, %v2625_v55  ;;  %v16457_v0 = vld [vmem:[#allocation184_spill] sm:$0xff]  ;;  %v12608_v55 = vsub.f32 %v224_v44, %v6251_v31  ;;  %v12625_v44 = vld [vmem:[#allocation2 + $0x488] sm:$0xff] }
 0x1fb   :  { %5944 = vmatmul.mubr.f32.gmra.mrb[20].mxu1 %v16425_v63  ;;  %8659 = vmatpush1.bf16.msra.mxu0 %v16427_v16  ;;  %16451 = vst [vmem:[#allocation9_spill] sm:$0xff] %v12590_v17  ;;  %v6249_v16 = vand.u32 4294901760, %v219_v15 }
 0x1fc   :  { %9139 = vmatpush1.bf16.msra.mxu1 %v16428_v21  ;;  %2328 = vmatprep.mubr.f32.mxu0 %v16429_v26  ;;  %16452 = vst [vmem:[#allocation10_spill] sm:$0xff] %v12592_v42  ;;  %v6253_v21 = vand.u32 4294901760, %v223_v45  ;;  %16459 = vst [vmem:[#allocation144_spill] sm:$0xff] %v12608_v55 }
 0x1fd   :  { %5950 = vmatprep.mubr.f32.mxu1 %v16429_v26  ;;  %8661 = vmatprep.subr.bf16.mxu0 %v16430_v49  ;;  %v228_v49 = vld [vmem:[#allocation2 + $0x458] sm:$0xff] }
 0x1fe   :  { %2330 = vmatmul.mubr.f32.gmra.mrb[22].mxu0 %v16431_v7  ;;  %9141 = vmatprep.subr.bf16.mxu1 %v16432_v51  ;;  %v12594_v51 = vld [vmem:[#allocation2 + $0x478] sm:$0xff] }
 0x1ff   :  { %5952 = vmatmul.mubr.f32.gmra.mrb[22].mxu1 %v16431_v7  ;;  %8663 = vmatpush1.bf16.msra.mxu0 %v16433_v19  ;;  %v16453_v19 = vld [vmem:[#allocation181_spill] sm:$0xff] }
 0x200   :  { %9143 = vmatpush1.bf16.msra.mxu1 %v16434_v54  ;;  %2336 = vmatprep.mubr.f32.mxu0 %v16435_v53  ;;  %v12598_v54 = vsub.f32 %v222_v18, %v2629_v34  ;;  %v12614_v18 = vld [vmem:[#allocation2 + $0x450] sm:$0xff]  ;;  %v16461_v34 = vld [vmem:[#allocation185_spill] sm:$0xff] }
 0x201   :  { %5958 = vmatprep.mubr.f32.mxu1 %v16435_v53  ;;  %8665 = vmatprep.subr.bf16.mxu0 %v16436_v6  ;;  %v12600_v6 = vpack.c.bf16 %v6251_v31, %v6247_v2  ;;  %v12627_v31 = vld [vmem:[#allocation2 + $0x4a8] sm:$0xff]  ;;  %v12731_v53 = vld [vmem:[#allocation2 + $0x4e0] sm:$0xff] }
 0x202   :  { %2338 = vmatmul.mubr.f32.gmra.mrb[24].mxu0 %v16437_v40  ;;  %9145 = vmatprep.subr.bf16.mxu1 %v16438_v56  ;;  %16454 = vst [vmem:[#allocation12_spill] sm:$0xff] %v12598_v54  ;;  %v2633_v56 = vand.u32 4294901760, %v226_v11 }
 0x203   :  { %5960 = vmatmul.mubr.f32.gmra.mrb[24].mxu1 %v16437_v40  ;;  %8667 = vmatpush1.bf16.msra.mxu0 %v16439_v57  ;;  %16455 = vst [vmem:[#allocation141_spill] sm:$0xff] %v12600_v6  ;;  %v2637_v57 = vand.u32 4294901760, %v230_v39  ;;  %v12720_v40 = vld [vmem:[#allocation2 + $0x4c0] sm:$0xff] }
 0x204   :  { %9147 = vmatpush1.bf16.msra.mxu1 %v16440_v20  ;;  %2344 = vmatprep.mubr.f32.mxu0 %v16441_v8  ;;  %v12602_v20 = vld [vmem:[#allocation2 + $0x440] sm:$0xff] }
 0x205   :  { %5966 = vmatprep.mubr.f32.mxu1 %v16441_v8  ;;  %8669 = vmatprep.subr.bf16.mxu0 %v16442_v60  ;;  %v16456_v60 = vld [vmem:[#allocation183_spill] sm:$0xff]  ;;  %v12675_v8 = vld [vmem:[#allocation2 + $0x4c8] sm:$0xff] }
 0x206   :  { %2346 = vmatmul.mubr.f32.gmra.mrb[26].mxu0 %v16443_v27  ;;  %9149 = vmatprep.subr.bf16.mxu1 %v16444_v37  ;;  %v12606_v37 = vsub.f32 %v220_v30, %v6247_v2  ;;  %v12623_v2 = vld [vmem:[#allocation2 + $0x470] sm:$0xff] }
 0x207   :  { %5968 = vmatmul.mubr.f32.gmra.mrb[26].mxu1 %v16443_v27  ;;  %8671 = vmatpush1.bf16.msra.mxu0 %v16445_v29  ;;  %v12610_v29 = vpack.c.bf16 %v2631_v14, %v2627_v32  ;;  %v16465_v30 = vld [vmem:[#allocation190_spill] sm:$0xff]  ;;  %v12646_v27 = vsub.f32 %v226_v11, %v2633_v56  ;;  %v16476_v11 = vand.u32 4294901760, %v12625_v44 }
 0x208   :  { %9151 = vmatpush1.bf16.msra.mxu1 %v16446_v61  ;;  %2352 = vmatprep.mubr.f32.mxu0 %v16447_v38  ;;  %16458 = vst [vmem:[#allocation142_spill] sm:$0xff] %v12606_v37  ;;  %v12612_v61 = vld [vmem:[#allocation2 + $0x460] sm:$0xff] }
 0x209   :  { %5974 = vmatprep.mubr.f32.mxu1 %v16447_v38  ;;  %8673 = vmatprep.subr.bf16.mxu0 %v16448_v22  ;;  %16460 = vst [vmem:[#allocation146_spill] sm:$0xff] %v12610_v29  ;;  %v12618_v22 = vsub.f32 %v217_v62, %v2627_v32  ;;  %v12635_v62 = vsub.f32 %v223_v45, %v6253_v21  ;;  %v12638_v32 = vld [vmem:[#allocation2 + $0x498] sm:$0xff]  ;;  %v12651_v45 = vld [vmem:[#allocation2 + $0x480] sm:$0xff] }
 0x20a   :  { %2354 = vmatmul.mubr.f32.gmra.mrb[28].mxu0 %v16449_v52  ;;  %9153 = vmatprep.subr.bf16.mxu1 %v16450_v41  ;;  %v12620_v41 = vsub.f32 %v221_v48, %v2631_v14  ;;  %v12640_v14 = vld [vmem:[#allocation2 + $0x4b8] sm:$0xff]  ;;  %v12644_v38 = vpack.c.bf16 %v2637_v57, %v2633_v56  ;;  %v16467_v48 = vld [vmem:[#allocation193_spill] sm:$0xff]  ;;  %v12663_v56 = vld [vmem:[#allocation2 + $0x4b0] sm:$0xff]  ;;  %v16483_v7 = vand.u32 4294901760, %v12651_v45 }
 0x20b   :  { %5976 = vmatmul.mubr.f32.gmra.mrb[28].mxu1 %v16449_v52  ;;  %8675 = vmatpush1.bf16.msra.mxu0 %v16453_v19  ;;  %v6255_v19 = vand.u32 4294901760, %v228_v49  ;;  %v16463_v52 = vld [vmem:[#allocation189_spill] sm:$0xff] }
 0x20c   :  { %9155 = vmatpush1.bf16.msra.mxu1 %v16456_v60  ;;  %2360 = vmatprep.mubr.f32.mxu0 %v16457_v0  ;;  %v16462_v60 = vld [vmem:[#allocation278_spill] sm:$0xff]  ;;  %16466 = vst [vmem:[#allocation149_spill] sm:$0xff] %v12644_v38 }
 0x20d   :  { %5982 = vmatprep.mubr.f32.mxu1 %v16457_v0  ;;  %8677 = vmatprep.subr.bf16.mxu0 %v16461_v34  ;;  %v12631_v0 = vpack.c.bf16 %v6253_v21, %v6249_v16  ;;  %v12633_v34 = vsub.f32 %v219_v15, %v6249_v16  ;;  %v12653_v16 = vld [vmem:[#allocation2 + $0x4a0] sm:$0xff]  ;;  %v12655_v21 = vld [vmem:[#allocation2 + $0x490] sm:$0xff] }
 0x20e   :  { %2362 = vmatmul.mubr.f32.gmra.mrb[30].mxu0 %v16462_v60  ;;  %9157 = vmatprep.subr.bf16.mxu1 %v16463_v52  ;;  %v12648_v52 = vsub.f32 %v230_v39, %v2637_v57  ;;  %v16468_v57 = vand.u32 4294901760, %v12594_v51  ;;  %v16474_v39 = vand.u32 4294901760, %v12623_v2 }
 0x20f   :  { %16464 = vst [vmem:[#allocation147_spill] sm:$0xff] %v12631_v0  ;;  %5984 = vmatmul.mubr.f32.gmra.mrb[30].mxu1 %v16462_v60  ;;  %8679 = vmatpush1.bf16.msra.mxu0 %v16465_v30  ;;  %v12689_v60 = vld [vmem:[#allocation2 + $0x4d8] sm:$0xff] }
 0x210   :  { %9159 = vmatpush1.bf16.msra.mxu1 %v16467_v48  ;;  %2497 = vmatprep.mubr.f32.mxu0 %v16363_v59  ;;  %v12669_v15 = vpack.c.bf16 %v16468_v57, %v6255_v19  ;;  %v12671_v48 = vsub.f32 %v228_v49, %v6255_v19  ;;  %v12682_v57 = vld [vmem:[#allocation2 + $0x4e8] sm:$0xff]  ;;  %v12691_v30 = vld [vmem:[#allocation2 + $0x4f8] sm:$0xff]  ;;  %v16471_v49 = vand.u32 4294901760, %v12612_v61 }
 0x211   :  { %6119 = vmatprep.mubr.f32.mxu1 %v16363_v59  ;;  %8681 = vmatprep.subr.bf16.mxu0 %v12590_v17  ;;  %v16477_v59 = vand.u32 4294901760, %v12627_v31 }
 0x212   :  { %16469 = vst [vmem:[#allocation150_spill] sm:$0xff] %v12669_v15  ;;  %2499 = vmatmul.mubr.f32.vlgmr.msra.gmra.mrb[0].mxu0 %v16365_v28  ;;  %9161 = vmatprep.subr.bf16.mxu1 %v12600_v6 }
 0x213   :  { %6121 = vmatmul.mubr.f32.vlgmr.msra.gmra.mrb[0].mxu1 %v16365_v28  ;;  %8683 = vmatpush1.bf16.msra.mxu0 %v12610_v29  ;;  %v16470_v28 = vand.u32 4294901760, %v12602_v20  ;;  %v16473_v29 = vand.u32 4294901760, %v12614_v18  ;;  %v12717_v17 = vpack.c.bf16 %v16477_v59, %v16476_v11  ;;  %v12733_v11 = vld [vmem:[#allocation2 + $0x4d0] sm:$0xff] }
 0x214   :  { %9163 = vmatpush1.bf16.msra.mxu1 %v12631_v0  ;;  %2505 = vmatprep.mubr.f32.mxu0 %v16369_v35  ;;  %v12735_v59 = vld [vmem:[#allocation2 + $0x4f0] sm:$0xff]  ;;  %v16482_v0 = vand.u32 4294901760, %v12594_v51 }
 0x215   :  { %v12705_v19 = vpack.c.bf16 %v16471_v49, %v16470_v28  ;;  %v12711_v6 = vpack.c.bf16 %v16474_v39, %v16473_v29  ;;  %16478 = vst [vmem:[#allocation154_spill] sm:$0xff] %v12717_v17  ;;  %6127 = vmatprep.mubr.f32.mxu1 %v16369_v35  ;;  %8685 = vmatprep.subr.bf16.mxu0 %v12644_v38  ;;  %v16479_v49 = vand.u32 4294901760, %v12638_v32  ;;  %v16480_v28 = vand.u32 4294901760, %v12640_v14 }
 0x216   :  { %2507 = vmatmul.mubr.f32.gmra.mrb[2].mxu0 %v16371_v5  ;;  %9165 = vmatprep.subr.bf16.mxu1 %v12669_v15  ;;  %v12750_v35 = vsub.f32 %v12594_v51, %v16482_v0  ;;  %v16484_v15 = vand.u32 4294901760, %v12653_v16  ;;  %v16493_v0 = vand.u32 4294901760, %v12598_v54 }
 0x217   :  { %16472 = vst [vmem:[#allocation152_spill] sm:$0xff] %v12705_v19  ;;  %16475 = vst [vmem:[#allocation153_spill] sm:$0xff] %v12711_v6  ;;  %v12728_v29 = vpack.c.bf16 %v16480_v28, %v16479_v49  ;;  %6129 = vmatmul.mubr.f32.gmra.mrb[2].mxu1 %v16371_v5  ;;  %2513 = vmatprep.mubr.f32.mxu0 %v16375_v47  ;;  %v16486_v49 = vand.u32 4294901760, %v12655_v21  ;;  %v16487_v28 = vand.u32 4294901760, %v12663_v56  ;;  %v250_v5 = vld [vmem:[#allocation2 + $0x508] sm:$0xf] }
 0x218   :  { %v12756_v38 = vpack.c.bf16 %v16484_v15, %v16483_v7  ;;  %6135 = vmatprep.mubr.f32.mxu1 %v16375_v47  ;;  %8687 = vmatpush1.bf16.msra.mxu0 %v12705_v19  ;;  %v252_v15 = vld [vmem:[#allocation2 + $0x518] sm:$0xf]  ;;  %v16492_v19 = vand.u32 4294901760, %v12592_v42  ;;  %v2899_v26 = vsub.f32 %v12598_v54, %v16493_v0  ;;  %v16494_v7 = vand.u32 4294901760, %v12689_v60 }
 0x219   :  { %16481 = vst [vmem:[#allocation156_spill] sm:$0xff] %v12728_v29  ;;  %v12762_v39 = vpack.c.bf16 %v16487_v28, %v16486_v49  ;;  %9167 = vmatpush1.bf16.msra.mxu1 %v12711_v6  ;;  %8689 = vmatprep.subr.bf16.mxu0 %v12717_v17  ;;  %v16489_v49 = vand.u32 4294901760, %v12675_v8  ;;  %v16490_v28 = vand.u32 4294901760, %v12682_v57  ;;  %v16495_v17 = vand.u32 4294901760, %v12691_v30 }
 0x21a   :  { %16485 = vst [vmem:[#allocation158_spill] sm:$0xff] %v12756_v38  ;;  %v2887_v51 = vsub.f32 %v12592_v42, %v16492_v19  ;;  %2515 = vmatmul.mubr.f32.gmra.mrb[4].mxu0 %v16377_v33  ;;  %9169 = vmatprep.subr.bf16.mxu1 %v12728_v29  ;;  %v16497_v19 = vand.u32 4294901760, %v12606_v37  ;;  %v16498_v0 = vand.u32 4294901760, %v12608_v55  ;;  %v16499_v29 = vand.u32 4294901760, %v12602_v20 }
 0x21b   :  { %16488 = vst [vmem:[#allocation161_spill] sm:$0xff] %v12762_v39  ;;  %v12776_v47 = vpack.c.bf16 %v16490_v28, %v16489_v49  ;;  %v12790_v6 = vpack.c.bf16 %v16495_v17, %v16494_v7  ;;  %v12793_v49 = vsel %vm398_vm0, %v250_v5, 0  ;;  %v249_v28 = vld [vmem:[#allocation2 + $0x500] sm:$0xf]  ;;  %6137 = vmatmul.mubr.f32.gmra.mrb[4].mxu1 %v16377_v33  ;;  %2521 = vmatprep.mubr.f32.mxu0 %v16381_v58  ;;  %v16500_v5 = vand.u32 4294901760, %v12612_v61 }
 0x21c   :  { %v6509_v42 = vsub.f32 %v12606_v37, %v16497_v19  ;;  %v6521_v54 = vsub.f32 %v12608_v55, %v16498_v0  ;;  %v12806_v17 = vsub.f32 %v12602_v20, %v16499_v29  ;;  %v16501_v19 = vand.u32 4294901760, %v12614_v18  ;;  %v251_v33 = vld [vmem:[#allocation2 + $0x510] sm:$0xf]  ;;  %6143 = vmatprep.mubr.f32.mxu1 %v16381_v58  ;;  %8691 = vmatpush1.bf16.msra.mxu0 %v12756_v38 }
 0x21d   :  { %16491 = vst [vmem:[#allocation162_spill] sm:$0xff] %v12776_v47  ;;  %16496 = vst [vmem:[#allocation164_spill] sm:$0xff] %v12790_v6  ;;  %v12811_v7 = vsub.f32 %v12612_v61, %v16500_v5  ;;  %v12819_v0 = vsel %vm398_vm0, %v252_v15, 0  ;;  %v16503_v55 = vand.u32 4294901760, %v12623_v2  ;;  %v16504_v61 = vand.u32 4294901760, %v12720_v40  ;;  %9171 = vmatpush1.bf16.msra.mxu1 %v12762_v39  ;;  %8693 = vmatprep.subr.bf16.mxu0 %v12776_v47 }
 0x21e   :  { %v12816_v37 = vsub.f32 %v12614_v18, %v16501_v19  ;;  %v16505_v29 = vand.u32 4294901760, %v12731_v53  ;;  %v16507_v18 = vand.u32 4294901760, %v12733_v11  ;;  %v16508_v15 = vand.u32 4294901760, %v12735_v59  ;;  %2523 = vmatmul.mubr.f32.gmra.mrb[6].mxu0 %v16383_v10  ;;  %9173 = vmatprep.subr.bf16.mxu1 %v12790_v6 }
 0x21f   :  { %v12825_v20 = vsub.f32 %v12623_v2, %v16503_v55  ;;  %v12843_v58 = vand.u32 4294901760, %v12793_v49  ;;  %v12846_v55 = vsel %vm398_vm0, %v249_v28, 0  ;;  %v2888_v2 = vand.u32 4294901760, %v2887_v51  ;;  %6145 = vmatmul.mubr.f32.gmra.mrb[6].mxu1 %v16383_v10  ;;  %2529 = vmatprep.mubr.f32.mxu0 %v16387_v3  ;;  %v16545_v10 = vld [vmem:[#allocation260_spill] sm:$0xff] }
 0x220   :  { %16502 = vst [vmem:[#allocation165_spill] sm:$0xff] %v12816_v37  ;;  %v12832_v5 = vpack.c.bf16 %v16505_v29, %v16504_v61  ;;  %v12838_v19 = vpack.c.bf16 %v16508_v15, %v16507_v18  ;;  %v2900_v38 = vand.u32 4294901760, %v2899_v26  ;;  %v12851_v61 = vand.u32 4294901760, %v12819_v0  ;;  %6151 = vmatprep.mubr.f32.mxu1 %v16387_v3 }
 0x221   :  { %16510 = vst [vmem:[#allocation171_spill] sm:$0xff] %v12843_v58  ;;  %v12854_v29 = vsel %vm398_vm0, %v251_v33, 0  ;;  %v6510_v18 = vand.u32 4294901760, %v6509_v42  ;;  %v6522_v15 = vand.u32 4294901760, %v6521_v54  ;;  %v12867_v42 = vand.u32 4294901760, %v12846_v55 }
 0x222   :  { %16506 = vst [vmem:[#allocation166_spill] sm:$0xff] %v12832_v5  ;;  %16509 = vst [vmem:[#allocation168_spill] sm:$0xff] %v12838_v19  ;;  %8695 = vmatpush1.bf16.msra.mxu0 %v12832_v5  ;;  %9175 = vmatpush1.bf16.msra.mxu1 %v12838_v19  ;;  %v12874_v54 = vand.u32 4294901760, %v12854_v29  ;;  %v8696_v33 = vpack.c.bf16 %v2900_v38, %v2888_v2 }
 0x223   :  { %16511 = vst [vmem:[#allocation173_spill] sm:$0xff] %v12867_v42  ;;  %2658 = vmatprep.subr.mxu0 %v12843_v58  ;;  %2531 = vmatmul.mubr.f32.gmra.mrb[8].mxu0 %v16389_v46  ;;  %v9176_v3 = vpack.c.bf16 %v6522_v15, %v6510_v18  ;;  %v16516_v18 = vand.u32 4294901760, %v12638_v32 }
 0x224   :  { %16512 = vst [vmem:[#allocation174_spill] sm:$0xff] %v12874_v54  ;;  %6280 = vmatprep.subr.mxu1 %v12851_v61  ;;  %6153 = vmatmul.mubr.f32.gmra.mrb[8].mxu1 %v16389_v46  ;;  %v16513_v46 = vand.u32 4294901760, %v12625_v44 }
 0x225   :  { %2537 = vmatprep.mubr.f32.mxu0 %v16393_v23  ;;  %6159 = vmatprep.mubr.f32.mxu1 %v16393_v23  ;;  %v16515_v23 = vand.u32 4294901760, %v12627_v31  ;;  %v12900_v15 = vsub.f32 %v12638_v32, %v16516_v18  ;;  %v16524_v32 = vand.u32 4294901760, %v12655_v21 }
 0x226   :  { %2660 = vmatpush1.msra.mxu0 %v12867_v42  ;;  %6282 = vmatpush1.msra.mxu1 %v12874_v54  ;;  %v12890_v38 = vsub.f32 %v12625_v44, %v16513_v46 }
 0x227   :  { %8697 = vmatprep.subr.bf16.mxu0 %v8696_v33  ;;  %2539 = vmatmul.mubr.f32.gmra.mrb[10].mxu0 %v16395_v13  ;;  %v12895_v2 = vsub.f32 %v12627_v31, %v16515_v23  ;;  %16517 = vst [vmem:[#allocation182_spill] sm:$0xff] %v12900_v15  ;;  %v12921_v46 = vsub.f32 %v12655_v21, %v16524_v32  ;;  %v16528_v32 = vand.u32 4294901760, %v12675_v8  ;;  %v16541_v21 = vand.u32 4294901760, %v12735_v59 }
 0x228   :  { %9177 = vmatprep.subr.bf16.mxu1 %v9176_v3  ;;  %6161 = vmatmul.mubr.f32.gmra.mrb[10].mxu1 %v16395_v13  ;;  %16514 = vst [vmem:[#allocation180_spill] sm:$0xff] %v12890_v38  ;;  %v16518_v13 = vand.u32 4294901760, %v12640_v14  ;;  %v16522_v3 = vand.u32 4294901760, %v12653_v16 }
 0x229   :  { %2545 = vmatprep.mubr.f32.mxu0 %v16399_v25  ;;  %6167 = vmatprep.mubr.f32.mxu1 %v16399_v25  ;;  %v16520_v25 = vand.u32 4294901760, %v12651_v45  ;;  %16525 = vst [vmem:[#allocation130_spill] sm:$0xff] %v12921_v46 }
 0x22a   :  { %v12905_v33 = vsub.f32 %v12640_v14, %v16518_v13  ;;  %v12915_v31 = vsub.f32 %v12653_v16, %v16522_v3  ;;  %v16526_v14 = vand.u32 4294901760, %v12663_v56  ;;  %v46_v13 = vld [vmem:[%s14673_s1 + $0x28] sm:$0xff]  ;;  %v52_v3 = vld [vmem:[%s14673_s1 + $0x58] sm:$0xff]  ;;  %v13020_v16 = vsub.f32 %v12735_v59, %v16541_v21  ;;  %v55_v59 = vld [vmem:[%s14673_s1 + $0x70] sm:$0xff] }
 0x22b   :  { %v12910_v44 = vsub.f32 %v12651_v45, %v16520_v25  ;;  %2547 = vmatmul.mubr.f32.gmra.mrb[12].mxu0 %v16401_v50  ;;  %v43_v45 = vld [vmem:[%s14673_s1 + $0x10] sm:$0xff] }
 0x22c   :  { %16519 = vst [vmem:[#allocation186_spill] sm:$0xff] %v12905_v33  ;;  %16523 = vst [vmem:[#allocation128_spill] sm:$0xff] %v12915_v31  ;;  %v12926_v23 = vsub.f32 %v12663_v56, %v16526_v14  ;;  %6169 = vmatmul.mubr.f32.gmra.mrb[12].mxu1 %v16401_v50  ;;  %2553 = vmatprep.mubr.f32.mxu0 %v16405_v9  ;;  %v351_v56 = vsel %vm349_vm1, %v43_v45, 0  ;;  %v12967_v14 = vsub.f32 %v12675_v8, %v16528_v32 }
 0x22d   :  { %16521 = vst [vmem:[#allocation118_spill] sm:$0xff] %v12910_v44  ;;  %6175 = vmatprep.mubr.f32.mxu1 %v16405_v9  ;;  %v49_v9 = vld [vmem:[%s14673_s1 + $0x40] sm:$0xff]  ;;  %v12953_v25 = vand.u32 4294901760, %v351_v56  ;;  %v360_v45 = vsel %vm349_vm1, %v52_v3, 0  ;;  %v16529_v50 = vand.u32 4294901760, %v12682_v57  ;;  %v16534_v8 = vand.u32 4294901760, %v12691_v30 }
 0x22f   :  { %2555 = vmatmul.mubr.f32.gmra.mrb[14].mxu0 %v16407_v43  ;;  %16527 = vst [vmem:[#allocation132_spill] sm:$0xff] %v12953_v25  ;;  %v12973_v18 = vsub.f32 %v12682_v57, %v16529_v50  ;;  %v12989_v3 = vsub.f32 %v12691_v30, %v16534_v8  ;;  %v16536_v57 = vand.u32 4294901760, %v12720_v40  ;;  %v15390_v30 = vand.u32 4294901760, %v12620_v41 }
 0x230   :  { %6177 = vmatmul.mubr.f32.gmra.mrb[14].mxu1 %v16407_v43  ;;  %2561 = vmatprep.mubr.f32.mxu0 %v16411_v4  ;;  %v354_v43 = vsel %vm349_vm1, %v46_v13, 0  ;;  %v13007_v8 = vand.u32 4294901760, %v360_v45 }
 0x231   :  { %6183 = vmatprep.mubr.f32.mxu1 %v16411_v4  ;;  %v357_v4 = vsel %vm349_vm1, %v49_v9, 0  ;;  %v12981_v9 = vsub.f32 %v351_v56, %v12953_v25  ;;  %16535 = vst [vmem:[#allocation138_spill] sm:$0xff] %v12989_v3  ;;  %v12994_v50 = vsub.f32 %v12720_v40, %v16536_v57  ;;  %v16538_v56 = vand.u32 4294901760, %v12731_v53 }
 0x232   :  { %v12997_v32 = vand.u32 4294901760, %v357_v4  ;;  %16539 = vst [vmem:[#allocation197_spill] sm:$0xff] %v13007_v8  ;;  %v16540_v57 = vand.u32 4294901760, %v12733_v11  ;;  %v2905_v28 = vsub.f32 %v12620_v41, %v15390_v30 }
 0x233   :  { %2563 = vmatmul.mubr.f32.gmra.mrb[16].mxu0 %v16413_v36  ;;  %16532 = vst [vmem:[#allocation135_spill] sm:$0xff] %v12981_v9  ;;  %v13029_v40 = vand.u32 4294901760, %v12981_v9 }
 0x234   :  { %6185 = vmatmul.mubr.f32.gmra.mrb[16].mxu1 %v16413_v36  ;;  %2569 = vmatprep.mubr.f32.mxu0 %v16417_v24  ;;  %v16530_v36 = vand.u32 4294901760, %v12689_v60  ;;  %16537 = vst [vmem:[#allocation196_spill] sm:$0xff] %v12997_v32 }
 0x235   :  { %6191 = vmatprep.mubr.f32.mxu1 %v16417_v24  ;;  %v12983_v24 = vand.u32 4294901760, %v354_v43  ;;  %16542 = vst [vmem:[#allocation202_spill] sm:$0xff] %v13029_v40  ;;  %v2711_v26 = vsub.f32 %v12981_v9, %v13029_v40  ;;  %v2906_v40 = vand.u32 4294901760, %v2905_v28  ;;  %v16556_v28 = vand.u32 4294901760, %v12671_v48 }
 0x236   :  { %v12978_v13 = vsub.f32 %v12689_v60, %v16530_v36  ;;  %v15389_v60 = vand.u32 4294901760, %v12618_v22  ;;  %v13004_v36 = vsub.f32 %v12731_v53, %v16538_v56  ;;  %v13024_v53 = vsub.f32 %v12846_v55, %v12867_v42 }
 0x237   :  { %16533 = vst [vmem:[#allocation137_spill] sm:$0xff] %v12983_v24  ;;  %2571 = vmatmul.mubr.f32.gmra.mrb[18].mxu0 %v16419_v12  ;;  %v13042_v55 = vsub.f32 %v12854_v29, %v12874_v54  ;;  %v13048_v56 = vsub.f32 %v357_v4, %v12997_v32  ;;  %v13058_v29 = vsub.f32 %v360_v45, %v13007_v8  ;;  %v16554_v4 = vand.u32 4294901760, %v12648_v52  ;;  %v58_v54 = vld [vmem:[%s14673_s1 + $0x88] sm:$0xff] }
 0x238   :  { %16531 = vst [vmem:[#allocation134_spill] sm:$0xff] %v12978_v13  ;;  %6193 = vmatmul.mubr.f32.gmra.mrb[18].mxu1 %v16419_v12  ;;  %2577 = vmatprep.mubr.f32.mxu0 %v16423_v1  ;;  %v13015_v12 = vsub.f32 %v12733_v11, %v16540_v57  ;;  %v15394_v11 = vand.u32 4294901760, %v12635_v62  ;;  %v13034_v57 = vsub.f32 %v354_v43, %v12983_v24  ;;  %v13107_v39 = vand.u32 4294901760, %v2711_v26 }
 0x239   :  { %6199 = vmatprep.mubr.f32.mxu1 %v16423_v1  ;;  %v15391_v1 = vand.u32 4294901760, %v12633_v34  ;;  %v2893_v21 = vsub.f32 %v12618_v22, %v15389_v60  ;;  %16544 = vst [vmem:[#allocation208_spill] sm:$0xff] %v13048_v56  ;;  %16546 = vst [vmem:[#allocation209_spill] sm:$0xff] %v13058_v29  ;;  %v13079_v43 = vand.u32 4294901760, %v13048_v56  ;;  %v6533_v19 = vsub.f32 %v12671_v48, %v16556_v28 }
 0x23a   :  { %16543 = vst [vmem:[#allocation203_spill] sm:$0xff] %v13034_v57  ;;  %v6527_v45 = vsub.f32 %v12635_v62, %v15394_v11  ;;  %v13075_v60 = vand.u32 4294901760, %v13034_v57  ;;  %v13086_v11 = vand.u32 4294901760, %v13058_v29  ;;  %v16557_v9 = vand.u32 4294901760, %v12750_v35 }
 0x23b   :  { %2579 = vmatmul.mubr.f32.gmra.mrb[20].mxu0 %v16425_v63  ;;  %v6515_v30 = vsub.f32 %v12633_v34, %v15391_v1  ;;  %v2894_v51 = vand.u32 4294901760, %v2893_v21  ;;  %16549 = vst [vmem:[#allocation215_spill] sm:$0xff] %v13079_v43  ;;  %v16550_v1 = vld [vmem:[#allocation265_spill] sm:$0xff]  ;;  %v16553_v21 = vand.u32 4294901760, %v12646_v27  ;;  %v16559_v26 = vand.u32 4294901760, %v12806_v17 }
 0x23c   :  { %6201 = vmatmul.mubr.f32.gmra.mrb[20].mxu1 %v16425_v63  ;;  %2585 = vmatprep.mubr.f32.mxu0 %v16545_v10  ;;  %v363_v63 = vsel %vm349_vm1, %v55_v59, 0  ;;  %16547 = vst [vmem:[#allocation214_spill] sm:$0xff] %v13075_v60  ;;  %16551 = vst [vmem:[#allocation220_spill] sm:$0xff] %v13086_v11  ;;  %v6528_v6 = vand.u32 4294901760, %v6527_v45  ;;  %v16558_v45 = vld [vmem:[#allocation159_spill] sm:$0xff]  ;;  %v2744_v47 = vsub.f32 %v13058_v29, %v13086_v11  ;;  %v366_v28 = vsel %vm349_vm1, %v58_v54, 0 }
 0x23d   :  { %6207 = vmatprep.mubr.f32.mxu1 %v16545_v10  ;;  %v16548_v10 = vld [vmem:[#allocation261_spill] sm:$0xff]  ;;  %v13089_v42 = vand.u32 4294901760, %v363_v63  ;;  %v2911_v59 = vsub.f32 %v12646_v27, %v16553_v21  ;;  %v6516_v5 = vand.u32 4294901760, %v6515_v30  ;;  %v16555_v21 = vld [vmem:[#allocation266_spill] sm:$0xff]  ;;  %v6545_v30 = vsub.f32 %v12750_v35, %v16557_v9 }
 0x23e   :  { %v16561_v8 = vand.u32 4294901760, %v12816_v37  ;;  %v13135_v29 = vpack.c.bf16 %v2906_v40, %v2894_v51  ;;  %v16562_v54 = vand.u32 4294901760, %v12825_v20  ;;  %v13145_v32 = vand.u32 4294901760, %v366_v28 }
 0x23f   :  { %2587 = vmatmul.mubr.f32.gmra.mrb[22].mxu0 %v16548_v10  ;;  %16552 = vst [vmem:[#allocation221_spill] sm:$0xff] %v13089_v42  ;;  %v13155_v40 = vand.u32 4294901760, %v2744_v47 }
 0x240   :  { %6209 = vmatmul.mubr.f32.gmra.mrb[22].mxu1 %v16548_v10  ;;  %2593 = vmatprep.mubr.f32.mxu0 %v16550_v1  ;;  %v2923_v10 = vsub.f32 %v12648_v52, %v16554_v4  ;;  %v2733_v4 = vsub.f32 %v13048_v56, %v13079_v43  ;;  %v13125_v43 = vsub.f32 %v363_v63, %v13089_v42  ;;  %v2912_v56 = vand.u32 4294901760, %v2911_v59  ;;  %v16563_v59 = vld [vmem:[#allocation271_spill] sm:$0xff] }
 0x241   :  { %6215 = vmatprep.mubr.f32.mxu1 %v16550_v1  ;;  %v2722_v1 = vsub.f32 %v13034_v57, %v13075_v60  ;;  %v2917_v60 = vsub.f32 %v12806_v17, %v16559_v26  ;;  %v6539_v11 = vsub.f32 %v12816_v37, %v16561_v8  ;;  %v13137_v26 = vpack.c.bf16 %v6528_v6, %v6516_v5  ;;  %v61_v8 = vld [vmem:[%s14673_s1 + $0xa0] sm:$0xff]  ;;  %v16565_v6 = vld [vmem:[#allocation170_spill] sm:$0xff] }
 0x242   :  { %v2924_v9 = vand.u32 4294901760, %v2923_v10  ;;  %v6534_v10 = vand.u32 4294901760, %v6533_v19  ;;  %v6546_v42 = vand.u32 4294901760, %v6545_v30  ;;  %16564 = vst [vmem:[#allocation226_spill] sm:$0xff] %v13145_v32  ;;  %v13153_v5 = vand.u32 4294901760, %v2733_v4 }
 0x243   :  { %2595 = vmatmul.mubr.f32.gmra.mrb[24].mxu0 %v16555_v21  ;;  %v13139_v63 = vand.u32 4294901760, %v2722_v1  ;;  %v2918_v1 = vand.u32 4294901760, %v2917_v60  ;;  %v13162_v37 = vand.u32 4294901760, %v13125_v43  ;;  %v16567_v60 = vld [vmem:[#allocation276_spill] sm:$0xff] }
 0x244   :  { %6217 = vmatmul.mubr.f32.gmra.mrb[24].mxu1 %v16555_v21  ;;  %2601 = vmatprep.mubr.f32.mxu0 %v16558_v45  ;;  %v16560_v21 = vand.u32 4294901760, %v12811_v7  ;;  %v13159_v30 = vpack.c.bf16 %v2924_v9, %v2912_v56  ;;  %v13170_v19 = vpack.c.bf16 %v6546_v42, %v6534_v10  ;;  %v13173_v56 = vsub.f32 %v366_v28, %v13145_v32 }
 0x245   :  { %6223 = vmatprep.mubr.f32.mxu1 %v16558_v45  ;;  %v6551_v45 = vsub.f32 %v12825_v20, %v16562_v54  ;;  %v6540_v54 = vand.u32 4294901760, %v6539_v11  ;;  %16566 = vst [vmem:[#allocation227_spill] sm:$0xff] %v13162_v37  ;;  %v16568_v11 = vand.u32 4294901760, %v12890_v38  ;;  %v16570_v42 = vand.u32 4294901760, %v12895_v2 }
 0x246   :  { %v2929_v57 = vsub.f32 %v12811_v7, %v16560_v21 }
 0x247   :  { %2603 = vmatmul.mubr.f32.gmra.mrb[26].mxu0 %v16563_v59  ;;  %v6552_v51 = vand.u32 4294901760, %v6551_v45  ;;  %v64_v45 = vld [vmem:[%s14673_s1 + $0xb8] sm:$0xff]  ;;  %v2947_v10 = vsub.f32 %v12895_v2, %v16570_v42  ;;  %v16572_v42 = vand.u32 4294901760, %v12900_v15 }
 0x248   :  { %6225 = vmatmul.mubr.f32.gmra.mrb[26].mxu1 %v16563_v59  ;;  %2609 = vmatprep.mubr.f32.mxu0 %v16565_v6  ;;  %v2930_v21 = vand.u32 4294901760, %v2929_v57  ;;  %v13165_v59 = vsel %vm349_vm1, %v61_v8, 0  ;;  %v2935_v57 = vsub.f32 %v12890_v38, %v16568_v11  ;;  %v16569_v8 = vld [vmem:[#allocation184_spill] sm:$0xff] }
 0x249   :  { %6231 = vmatprep.mubr.f32.mxu1 %v16565_v6  ;;  %v13194_v47 = vand.u32 4294901760, %v13165_v59  ;;  %v13198_v32 = vpack.c.bf16 %v6552_v51, %v6540_v54  ;;  %v6557_v28 = vsub.f32 %v12900_v15, %v16572_v42  ;;  %v16573_v6 = vand.u32 4294901760, %v12905_v33 }
 0x24a   :  { %v13191_v9 = vpack.c.bf16 %v2930_v21, %v2918_v1  ;;  %v13207_v1 = vsel %vm349_vm1, %v64_v45, 0  ;;  %v16574_v21 = vld [vmem:[#allocation278_spill] sm:$0xff]  ;;  %v15445_v42 = vmov 0.0   ;;  %v16576_v45 = vand.u32 4294901760, %v12915_v31 }
 0x24b   :  { %2611 = vmatmul.mubr.f32.gmra.mrb[28].mxu0 %v16567_v60  ;;  %16571 = vst [vmem:[#allocation232_spill] sm:$0xff] %v13194_v47  ;;  %v6569_v11 = vsub.f32 %v12905_v33, %v16573_v6  ;;  %v2948_v6 = vand.u32 4294901760, %v2947_v10  ;;  %v16580_v10 = vand.u32 4294901760, %v12973_v18  ;;  %v6558_v38 = vand.u32 4294901760, %v6557_v28 }
 0x24c   :  { %6233 = vmatmul.mubr.f32.gmra.mrb[28].mxu1 %v16567_v60  ;;  %2617 = vmatprep.mubr.f32.mxu0 %v16569_v8  ;;  %v16575_v60 = vand.u32 4294901760, %v12910_v44  ;;  %v2953_v15 = vsub.f32 %v12915_v31, %v16576_v45  ;;  %v16582_v45 = vand.u32 4294901760, %v12989_v3  ;;  %v13250_v28 = vsub.f32 %v12819_v0, %v12851_v61 }
 0x24d   :  { %6239 = vmatprep.mubr.f32.mxu1 %v16569_v8  ;;  %v2936_v8 = vand.u32 4294901760, %v2935_v57  ;;  %v16577_v57 = vand.u32 4294901760, %v12921_v46  ;;  %v16585_v0 = vand.u32 4294901760, %v13004_v36 }
 0x24e   :  { %v2941_v4 = vsub.f32 %v12910_v44, %v16575_v60  ;;  %v16578_v60 = vand.u32 4294901760, %v12926_v23  ;;  %v2971_v44 = vsub.f32 %v12973_v18, %v16580_v10  ;;  %v6593_v31 = vsub.f32 %v12989_v3, %v16582_v45 }
 0x24f   :  { %2619 = vmatmul.mubr.f32.gmra.mrb[30].mxu0 %v16574_v21  ;;  %v6563_v33 = vsub.f32 %v12921_v46, %v16577_v57  ;;  %v2954_v46 = vand.u32 4294901760, %v2953_v15  ;;  %v16584_v45 = vand.u32 4294901760, %v12994_v50  ;;  %v8704_v15 = vpack.c.bf16 %v2948_v6, %v2936_v8 }
 0x250   :  { %6241 = vmatmul.mubr.f32.gmra.mrb[30].mxu1 %v16574_v21  ;;  %2707 = vmatprep.mubr.f32.mxu0 %v15445_v42  ;;  %v6575_v51 = vsub.f32 %v12926_v23, %v16578_v60  ;;  %v16579_v21 = vand.u32 4294901760, %v12967_v14  ;;  %v13239_v60 = vsub.f32 %v12793_v49, %v12843_v58  ;;  %v2942_v49 = vand.u32 4294901760, %v2941_v4 }
 0x251   :  { %6329 = vmatprep.mubr.f32.mxu1 %v15445_v42  ;;  %v16581_v42 = vand.u32 4294901760, %v12978_v13  ;;  %v6564_v57 = vand.u32 4294901760, %v6563_v33  ;;  %v16583_v58 = vmov 0.0   ;;  %v2965_v3 = vsub.f32 %v12994_v50, %v16584_v45 }
 0x252   :  { %v2959_v54 = vsub.f32 %v12967_v14, %v16579_v21  ;;  %v6570_v21 = vand.u32 4294901760, %v6569_v11  ;;  %v6576_v11 = vand.u32 4294901760, %v6575_v51  ;;  %v16586_v33 = vand.u32 4294901760, %v13015_v12 }
 0x253   :  { %2713 = vmatmul.mubr.f32.vlgmr.msra.gmra.mrb[0].mxu0 %v13107_v39  ;;  %v6581_v10 = vsub.f32 %v12978_v13, %v16581_v42  ;;  %v2972_v13 = vand.u32 4294901760, %v2971_v44  ;;  %v15456_v4 = vand.u32 4294901760, %v13239_v60  ;;  %v6594_v45 = vand.u32 4294901760, %v6593_v31 }
 0x254   :  { %6335 = vmatmul.mubr.f32.vlgmr.msra.gmra.mrb[0].mxu1 %v13107_v39  ;;  %8699 = vmatpush1.bf16.msra.mxu0 %v13135_v29  ;;  %v2960_v42 = vand.u32 4294901760, %v2959_v54  ;;  %v2977_v39 = vsub.f32 %v13004_v36, %v16585_v0  ;;  %v6587_v29 = vsub.f32 %v13015_v12, %v16586_v33  ;;  %v9184_v51 = vpack.c.bf16 %v6570_v21, %v6558_v38  ;;  %v67_v38 = vld [vmem:[%s14673_s1 + $0xd0] sm:$0xff] }
 0x255   :  { %9179 = vmatpush1.bf16.msra.mxu1 %v13137_v26  ;;  %2718 = vmatprep.mubr.f32.mxu0 %v16583_v58  ;;  %v16587_v26 = vand.u32 4294901760, %v13020_v16  ;;  %v6582_v54 = vand.u32 4294901760, %v6581_v10  ;;  %v13278_v8 = vsub.f32 %v13165_v59, %v13194_v47  ;;  %v8706_v6 = vpack.c.bf16 %v2954_v46, %v2942_v49 }
 0x256   :  { %6340 = vmatprep.mubr.f32.mxu1 %v16583_v58  ;;  %8701 = vmatprep.subr.bf16.mxu0 %v13159_v30  ;;  %v15455_v30 = vand.u32 4294901760, %v13250_v28  ;;  %v9186_v0 = vpack.c.bf16 %v6576_v11, %v6564_v57  ;;  %v13281_v33 = vand.u32 4294901760, %v13207_v1  ;;  %v8708_v31 = vpack.c.bf16 %v2972_v13, %v2960_v42  ;;  %v70_v42 = vld [vmem:[%s14673_s1 + $0xe8] sm:$0xff] }
 0x257   :  { %v6599_v44 = vsub.f32 %v13020_v16, %v16587_v26  ;;  %2724 = vmatmul.mubr.f32.gmra.mrb[2].mxu0 %v13139_v63  ;;  %9181 = vmatprep.subr.bf16.mxu1 %v13170_v19  ;;  %v2978_v19 = vand.u32 4294901760, %v2977_v39  ;;  %v15454_v21 = vand.u32 4294901760, %v13024_v53  ;;  %v6588_v46 = vand.u32 4294901760, %v6587_v29 }
 0x258   :  { %6346 = vmatmul.mubr.f32.gmra.mrb[2].mxu1 %v13139_v63  ;;  %2729 = vmatprep.mubr.f32.mxu0 %v16583_v58  ;;  %16588 = vst [vmem:[#allocation233_spill] sm:$0xff] %v13281_v33  ;;  %v2966_v63 = vand.u32 4294901760, %v2965_v3  ;;  %v2983_v57 = vsub.f32 %v13239_v60, %v15456_v4  ;;  %v2755_v13 = vsub.f32 %v13125_v43, %v13162_v37  ;;  %v13298_v3 = vand.u32 4294901760, %v13173_v56  ;;  %v16633_v37 = vld [vmem:[#allocation197_spill] sm:$0xff] }
 0x259   :  { %6351 = vmatprep.mubr.f32.mxu1 %v16583_v58  ;;  %8703 = vmatpush1.bf16.msra.mxu0 %v13191_v9  ;;  %v6600_v59 = vand.u32 4294901760, %v6599_v44  ;;  %v15453_v9 = vand.u32 4294901760, %v13042_v55  ;;  %v9188_v10 = vpack.c.bf16 %v6594_v45, %v6582_v54  ;;  %v375_v49 = vsel %vm349_vm1, %v67_v38, 0 }
 0x25a   :  { %9183 = vmatpush1.bf16.msra.mxu1 %v13198_v32  ;;  %8705 = vmatprep.subr.bf16.mxu0 %v8704_v15  ;;  %16589 = vst [vmem:[#allocation238_spill] sm:$0xff] %v13298_v3  ;;  %v6605_v32 = vsub.f32 %v13250_v28, %v15455_v30  ;;  %v13309_v11 = vsub.f32 %v13207_v1, %v13281_v33  ;;  %v13318_v15 = vand.u32 4294901760, %v13278_v8  ;;  %v2984_v26 = vand.u32 4294901760, %v2983_v57 }
 0x25b   :  { %2735 = vmatmul.mubr.f32.gmra.mrb[4].mxu0 %v13153_v5  ;;  %9185 = vmatprep.subr.bf16.mxu1 %v9184_v51  ;;  %v8710_v39 = vpack.c.bf16 %v2978_v19, %v2966_v63  ;;  %v9190_v29 = vpack.c.bf16 %v6600_v59, %v6588_v46  ;;  %v6611_v1 = vsub.f32 %v13042_v55, %v15453_v9  ;;  %v2756_v44 = vand.u32 4294901760, %v2755_v13  ;;  %v76_v13 = vld [vmem:[%s14673_s1 + $0x118] sm:$0xff] }
 0x25c   :  { %6357 = vmatmul.mubr.f32.gmra.mrb[4].mxu1 %v13153_v5  ;;  %2740 = vmatprep.mubr.f32.mxu0 %v16583_v58  ;;  %v2989_v5 = vsub.f32 %v13024_v53, %v15454_v21  ;;  %16590 = vst [vmem:[#allocation239_spill] sm:$0xff] %v13318_v15  ;;  %v2766_v51 = vsub.f32 %v13173_v56, %v13298_v3  ;;  %v13326_v54 = vand.u32 4294901760, %v375_v49  ;;  %v6606_v45 = vand.u32 4294901760, %v6605_v32 }
 0x25d   :  { %6362 = vmatprep.mubr.f32.mxu1 %v16583_v58  ;;  %8707 = vmatpush1.bf16.msra.mxu0 %v8706_v6  ;;  %v378_v6 = vsel %vm349_vm1, %v70_v42, 0  ;;  %v13338_v63 = vand.u32 4294901760, %v13309_v11  ;;  %v16595_v42 = vld [vmem:[#allocation10_spill] sm:$0xff] }
 0x25e   :  { %9187 = vmatpush1.bf16.msra.mxu1 %v9186_v0  ;;  %8709 = vmatprep.subr.bf16.mxu0 %v8708_v31  ;;  %16591 = vst [vmem:[#allocation244_spill] sm:$0xff] %v13326_v54  ;;  %v73_v0 = vld [vmem:[%s14673_s1 + $0x100] sm:$0xff]  ;;  %v2990_v38 = vand.u32 4294901760, %v2989_v5  ;;  %v2777_v31 = vsub.f32 %v13278_v8, %v13318_v15  ;;  %v2767_v19 = vand.u32 4294901760, %v2766_v51  ;;  %v13341_v46 = vsub.f32 %v375_v49, %v13326_v54  ;;  %v16600_v51 = vld [vmem:[#allocation142_spill] sm:$0xff] }
 0x25f   :  { %2746 = vmatmul.mubr.f32.gmra.mrb[6].mxu0 %v13155_v40  ;;  %9189 = vmatprep.subr.bf16.mxu1 %v9188_v10  ;;  %16592 = vst [vmem:[#allocation245_spill] sm:$0xff] %v13338_v63  ;;  %v13343_v59 = vand.u32 4294901760, %v378_v6  ;;  %v381_v57 = vsel %vm349_vm1, %v73_v0, 0  ;;  %v2788_v32 = vsub.f32 %v13309_v11, %v13338_v63  ;;  %v16594_v49 = vld [vmem:[#allocation12_spill] sm:$0xff]  ;;  %v79_v0 = vld [vmem:[%s14673_s1 + $0x130] sm:$0xff] }
 0x260   :  { %6368 = vmatmul.mubr.f32.gmra.mrb[6].mxu1 %v13155_v40  ;;  %2751 = vmatprep.mubr.f32.mxu0 %v16583_v58  ;;  %v6612_v40 = vand.u32 4294901760, %v6611_v1  ;;  %v2778_v10 = vand.u32 4294901760, %v2777_v31  ;;  %v13357_v5 = vand.u32 4294901760, %v13341_v46  ;;  %v384_v1 = vsel %vm349_vm1, %v76_v13, 0 }
 0x261   :  { %6373 = vmatprep.mubr.f32.mxu1 %v16583_v58  ;;  %8711 = vmatpush1.bf16.msra.mxu0 %v8710_v39  ;;  %16593 = vst [vmem:[#allocation250_spill] sm:$0xff] %v13343_v59  ;;  %v16596_v39 = vpack.c.bf16 %v16594_v49, %v16595_v42  ;;  %v387_v13 = vsel %vm349_vm1, %v79_v0, 0 }
 0x262   :  { %9191 = vmatpush1.bf16.msra.mxu1 %v9190_v29  ;;  %2985 = vmatprep.subr.mxu0 %v2984_v26  ;;  %16597 = vst [vmem:[#allocation251_spill] sm:$0xff] %v13357_v5  ;;  %v13360_v29 = vsub.f32 %v378_v6, %v13343_v59  ;;  %v13362_v26 = vand.u32 4294901760, %v381_v57  ;;  %v2789_v6 = vand.u32 4294901760, %v2788_v32  ;;  %v2799_v31 = vsub.f32 %v13341_v46, %v13357_v5  ;;  %v82_v32 = vld [vmem:[%s14673_s1 + $0x148] sm:$0xff] }
 0x263   :  { %2757 = vmatmul.mubr.f32.gmra.mrb[8].mxu0 %v2756_v44  ;;  %6607 = vmatprep.subr.mxu1 %v6606_v45  ;;  %v13397_v9 = vand.u32 4294901760, %v387_v13  ;;  %v390_v0 = vsel %vm349_vm1, %v82_v32, 0 }
 0x264   :  { %6379 = vmatmul.mubr.f32.gmra.mrb[8].mxu1 %v2756_v44  ;;  %2762 = vmatprep.mubr.f32.mxu0 %v16583_v58  ;;  %16598 = vst [vmem:[#allocation256_spill] sm:$0xff] %v13362_v26  ;;  %v16599_v44 = vld [vmem:[#allocation144_spill] sm:$0xff]  ;;  %v13413_v4 = vand.u32 4294901760, %v390_v0 }
 0x265   :  { %6384 = vmatprep.mubr.f32.mxu1 %v16583_v58  ;;  %2991 = vmatpush1.msra.mxu0 %v2990_v38  ;;  %v16601_v45 = vpack.c.bf16 %v16599_v44, %v16600_v51  ;;  %v13373_v38 = vand.u32 4294901760, %v384_v1  ;;  %16605 = vst [vmem:[#allocation267_spill] sm:$0xff] %v13397_v9 }
 0x266   :  { %6613 = vmatpush1.msra.mxu1 %v6612_v40  ;;  %8713 = vmatprep.subr.bf16.mxu0 %v16596_v39  ;;  %v13378_v40 = vand.u32 4294901760, %v13360_v29  ;;  %16607 = vst [vmem:[#allocation272_spill] sm:$0xff] %v13413_v4 }
 0x267   :  { %2768 = vmatmul.mubr.f32.gmra.mrb[10].mxu0 %v2767_v19  ;;  %9193 = vmatprep.subr.bf16.mxu1 %v16601_v45  ;;  %16602 = vst [vmem:[#allocation257_spill] sm:$0xff] %v13373_v38  ;;  %v13390_v39 = vsub.f32 %v384_v1, %v13373_v38  ;;  %v2800_v45 = vand.u32 4294901760, %v2799_v31  ;;  %v85_v1 = vld [vmem:[%s14673_s1 + $0x160] sm:$0xff] }
 0x268   :  { %6390 = vmatmul.mubr.f32.gmra.mrb[10].mxu1 %v2767_v19  ;;  %2773 = vmatprep.mubr.f32.mxu0 %v16583_v58  ;;  %16603 = vst [vmem:[#allocation140_spill] sm:$0xff] %v13378_v40  ;;  %v13381_v19 = vsub.f32 %v381_v57, %v13362_v26  ;;  %v2810_v57 = vsub.f32 %v13360_v29, %v13378_v40  ;;  %v393_v32 = vsel %vm349_vm1, %v85_v1, 0  ;;  %v88_v40 = vld [vmem:[%s14673_s1 + $0x178] sm:$0xff] }
 0x269   :  { %6395 = vmatprep.mubr.f32.mxu1 %v16583_v58  ;;  %v13406_v31 = vand.u32 4294901760, %v13390_v39  ;;  %v13429_v5 = vand.u32 4294901760, %v393_v32  ;;  %v396_v1 = vsel %vm349_vm1, %v88_v40, 0 }
 0x26a   :  { %v2811_v21 = vand.u32 4294901760, %v2810_v57  ;;  %v13442_v15 = vand.u32 4294901760, %v396_v1 }
 0x26b   :  { %2779 = vmatmul.mubr.f32.gmra.mrb[12].mxu0 %v2778_v10  ;;  %16606 = vst [vmem:[#allocation268_spill] sm:$0xff] %v13406_v31  ;;  %v2832_v57 = vsub.f32 %v13390_v39, %v13406_v31  ;;  %16609 = vst [vmem:[#allocation277_spill] sm:$0xff] %v13429_v5 }
 0x26c   :  { %6401 = vmatmul.mubr.f32.gmra.mrb[12].mxu1 %v2778_v10  ;;  %2784 = vmatprep.mubr.f32.mxu0 %v16583_v58  ;;  %v13395_v10 = vand.u32 4294901760, %v13381_v19  ;;  %16611 = vst [vmem:[#allocation14_spill] sm:$0xff] %v13442_v15 }
 0x26d   :  { %6406 = vmatprep.mubr.f32.mxu1 %v16583_v58  ;;  %v2833_v63 = vand.u32 4294901760, %v2832_v57 }
 0x26e   :  { %16604 = vst [vmem:[#allocation262_spill] sm:$0xff] %v13395_v10  ;;  %v2821_v30 = vsub.f32 %v13381_v19, %v13395_v10 }
 0x26f   :  { %2790 = vmatmul.mubr.f32.gmra.mrb[14].mxu0 %v2789_v6 }
 0x270   :  { %6412 = vmatmul.mubr.f32.gmra.mrb[14].mxu1 %v2789_v6  ;;  %2795 = vmatprep.mubr.f32.mxu0 %v16583_v58  ;;  %v13411_v6 = vsub.f32 %v387_v13, %v13397_v9  ;;  %v2822_v10 = vand.u32 4294901760, %v2821_v30 }
 0x271   :  { %6417 = vmatprep.mubr.f32.mxu1 %v16583_v58 }
 0x272   :  { %v13424_v13 = vand.u32 4294901760, %v13411_v6 }
 0x273   :  { %2801 = vmatmul.mubr.f32.gmra.mrb[16].mxu0 %v2800_v45 }
 0x274   :  { %6423 = vmatmul.mubr.f32.gmra.mrb[16].mxu1 %v2800_v45  ;;  %2806 = vmatprep.mubr.f32.mxu0 %v16583_v58  ;;  %16608 = vst [vmem:[#allocation273_spill] sm:$0xff] %v13424_v13  ;;  %v13427_v45 = vsub.f32 %v390_v0, %v13413_v4  ;;  %v2843_v30 = vsub.f32 %v13411_v6, %v13424_v13 }
 0x275   :  { %6428 = vmatprep.mubr.f32.mxu1 %v16583_v58  ;;  %v13440_v0 = vsub.f32 %v393_v32, %v13429_v5  ;;  %v13452_v13 = vsub.f32 %v396_v1, %v13442_v15 }
 0x276   :  { %v13437_v31 = vand.u32 4294901760, %v13427_v45 }
 0x277   :  { %2812 = vmatmul.mubr.f32.gmra.mrb[18].mxu0 %v2811_v21  ;;  %v13449_v57 = vand.u32 4294901760, %v13440_v0 }
 0x278   :  { %6434 = vmatmul.mubr.f32.gmra.mrb[18].mxu1 %v2811_v21  ;;  %2817 = vmatprep.mubr.f32.mxu0 %v16583_v58  ;;  %16610 = vst [vmem:[#allocation176_spill] sm:$0xff] %v13437_v31  ;;  %v2844_v21 = vand.u32 4294901760, %v2843_v30  ;;  %v2854_v40 = vsub.f32 %v13427_v45, %v13437_v31  ;;  %v13459_v30 = vand.u32 4294901760, %v13452_v13 }
 0x279   :  { %6439 = vmatprep.mubr.f32.mxu1 %v16583_v58  ;;  %16612 = vst [vmem:[#allocation15_spill] sm:$0xff] %v13449_v57  ;;  %v2865_v32 = vsub.f32 %v13440_v0, %v13449_v57  ;;  %v16628_v57 = vld [vmem:[#allocation118_spill] sm:$0xff] }
 0x27a   :  { %16613 = vst [vmem:[#allocation198_spill] sm:$0xff] %v13459_v30 }
 0x27b   :  { %2823 = vmatmul.mubr.f32.gmra.mrb[20].mxu0 %v2822_v10  ;;  %v2866_v1 = vand.u32 4294901760, %v2865_v32  ;;  %v16616_v32 = vpack.c.bf16 %v12648_v52, %v12646_v27 }
 0x27c   :  { %6445 = vmatmul.mubr.f32.gmra.mrb[20].mxu1 %v2822_v10  ;;  %2828 = vmatprep.mubr.f32.mxu0 %v16583_v58  ;;  %v2855_v10 = vand.u32 4294901760, %v2854_v40 }
 0x27d   :  { %6450 = vmatprep.mubr.f32.mxu1 %v16583_v58 }
 0x27f   :  { %2834 = vmatmul.mubr.f32.gmra.mrb[22].mxu0 %v2833_v63 }
 0x280   :  { %6456 = vmatmul.mubr.f32.gmra.mrb[22].mxu1 %v2833_v63  ;;  %2839 = vmatprep.mubr.f32.mxu0 %v16583_v58  ;;  %v2876_v63 = vsub.f32 %v13452_v13, %v13459_v30 }
 0x281   :  { %6461 = vmatprep.mubr.f32.mxu1 %v16583_v58 }
 0x282   :  { %v2877_v40 = vand.u32 4294901760, %v2876_v63  ;;  %v16618_v63 = vpack.c.bf16 %v12811_v7, %v12806_v17 }
 0x283   :  { %2845 = vmatmul.mubr.f32.gmra.mrb[24].mxu0 %v2844_v21 }
 0x284   :  { %6467 = vmatmul.mubr.f32.gmra.mrb[24].mxu1 %v2844_v21  ;;  %2850 = vmatprep.mubr.f32.mxu0 %v16583_v58  ;;  %v16614_v21 = vpack.c.bf16 %v12620_v41, %v12618_v22 }
 0x285   :  { %6472 = vmatprep.mubr.f32.mxu1 %v16583_v58 }
 0x287   :  { %2856 = vmatmul.mubr.f32.gmra.mrb[26].mxu0 %v2855_v10 }
 0x288   :  { %6478 = vmatmul.mubr.f32.gmra.mrb[26].mxu1 %v2855_v10  ;;  %2861 = vmatprep.mubr.f32.mxu0 %v16583_v58  ;;  %v16615_v10 = vpack.c.bf16 %v12635_v62, %v12633_v34 }
 0x289   :  { %6483 = vmatprep.mubr.f32.mxu1 %v16583_v58 }
 0x28b   :  { %2867 = vmatmul.mubr.f32.gmra.mrb[28].mxu0 %v2866_v1 }
 0x28c   :  { %6489 = vmatmul.mubr.f32.gmra.mrb[28].mxu1 %v2866_v1  ;;  %2872 = vmatprep.mubr.f32.mxu0 %v16583_v58  ;;  %v16617_v1 = vpack.c.bf16 %v12750_v35, %v12671_v48 }
 0x28d   :  { %6494 = vmatprep.mubr.f32.mxu1 %v16583_v58 }
 0x28f   :  { %2878 = vmatmul.mubr.f32.gmra.mrb[30].mxu0 %v2877_v40 }
 0x290   :  { %6500 = vmatmul.mubr.f32.gmra.mrb[30].mxu1 %v2877_v40  ;;  %3038 = vmatprep.mubr.f32.mxu0 %v16583_v58  ;;  %v16619_v40 = vld [vmem:[#allocation165_spill] sm:$0xff] }
 0x291   :  { %6660 = vmatprep.mubr.f32.mxu1 %v16583_v58 }
 0x293   :  { %3040 = vmatmul.mubr.f32.vlgmr.msra.gmra.mrb[0].mxu0 %v12953_v25 }
 0x294   :  { %6662 = vmatmul.mubr.f32.vlgmr.msra.gmra.mrb[0].mxu1 %v12953_v25  ;;  %8715 = vmatpush1.bf16.msra.mxu0 %v16614_v21  ;;  %v16620_v21 = vpack.c.bf16 %v12825_v20, %v16619_v40  ;;  %v16623_v25 = vld [vmem:[#allocation196_spill] sm:$0xff] }
 0x295   :  { %9195 = vmatpush1.bf16.msra.mxu1 %v16615_v10  ;;  %3045 = vmatprep.mubr.f32.mxu0 %v16583_v58  ;;  %v16621_v10 = vld [vmem:[#allocation180_spill] sm:$0xff] }
 0x296   :  { %6667 = vmatprep.mubr.f32.mxu1 %v16583_v58  ;;  %8717 = vmatprep.subr.bf16.mxu0 %v16616_v32  ;;  %v16622_v32 = vpack.c.bf16 %v12895_v2, %v16621_v10 }
 0x297   :  { %3047 = vmatmul.mubr.f32.gmra.mrb[2].mxu0 %v12983_v24  ;;  %9197 = vmatprep.subr.bf16.mxu1 %v16617_v1  ;;  %v16624_v1 = vld [vmem:[#allocation186_spill] sm:$0xff] }
 0x298   :  { %6669 = vmatmul.mubr.f32.gmra.mrb[2].mxu1 %v12983_v24  ;;  %3052 = vmatprep.mubr.f32.mxu0 %v16583_v58  ;;  %v16625_v24 = vld [vmem:[#allocation182_spill] sm:$0xff] }
 0x299   :  { %6674 = vmatprep.mubr.f32.mxu1 %v16583_v58  ;;  %8719 = vmatpush1.bf16.msra.mxu0 %v16618_v63  ;;  %v16626_v30 = vpack.c.bf16 %v16624_v1, %v16625_v24  ;;  %v16627_v63 = vld [vmem:[#allocation128_spill] sm:$0xff] }
 0x29a   :  { %9199 = vmatpush1.bf16.msra.mxu1 %v16620_v21  ;;  %8721 = vmatprep.subr.bf16.mxu0 %v16622_v32  ;;  %v16629_v31 = vpack.c.bf16 %v16627_v63, %v16628_v57  ;;  %v16630_v21 = vld [vmem:[#allocation130_spill] sm:$0xff]  ;;  %v16632_v32 = vpack.c.bf16 %v12973_v18, %v12967_v14 }
 0x29b   :  { %3054 = vmatmul.mubr.f32.gmra.mrb[4].mxu0 %v16623_v25  ;;  %9201 = vmatprep.subr.bf16.mxu1 %v16626_v30  ;;  %v16631_v3 = vpack.c.bf16 %v12926_v23, %v16630_v21  ;;  %v16634_v30 = vld [vmem:[#allocation138_spill] sm:$0xff] }
 0x29c   :  { %6676 = vmatmul.mubr.f32.gmra.mrb[4].mxu1 %v16623_v25  ;;  %3059 = vmatprep.mubr.f32.mxu0 %v16583_v58  ;;  %v16635_v25 = vld [vmem:[#allocation134_spill] sm:$0xff] }
 0x29d   :  { %6681 = vmatprep.mubr.f32.mxu1 %v16583_v58  ;;  %8723 = vmatpush1.bf16.msra.mxu0 %v16629_v31  ;;  %v16636_v1 = vpack.c.bf16 %v16634_v30, %v16635_v25  ;;  %v16637_v31 = vpack.c.bf16 %v13004_v36, %v12994_v50 }
 0x29e   :  { %9203 = vmatpush1.bf16.msra.mxu1 %v16631_v3  ;;  %8725 = vmatprep.subr.bf16.mxu0 %v16632_v32  ;;  %v16638_v3 = vpack.c.bf16 %v13020_v16, %v13015_v12  ;;  %v16639_v32 = vld [vmem:[#allocation221_spill] sm:$0xff] }
 0x29f   :  { %3061 = vmatmul.mubr.f32.gmra.mrb[6].mxu0 %v16633_v37  ;;  %9205 = vmatprep.subr.bf16.mxu1 %v16636_v1  ;;  %v16640_v1 = vld [vmem:[#allocation9_spill] sm:$0xff] }
 0x2a0   :  { %6683 = vmatmul.mubr.f32.gmra.mrb[6].mxu1 %v16633_v37  ;;  %3066 = vmatprep.mubr.f32.mxu0 %v16583_v58  ;;  %v16657_v37 = vld [vmem:[#allocation209_spill] sm:$0xff] }
 0x2a1   :  { %6688 = vmatprep.mubr.f32.mxu1 %v16583_v58  ;;  %8727 = vmatpush1.bf16.msra.mxu0 %v16637_v31  ;;  %v16641_v31 = vld [vmem:[#allocation226_spill] sm:$0xff] }
 0x2a2   :  { %9207 = vmatpush1.bf16.msra.mxu1 %v16638_v3  ;;  %3201 = vmatprep.subr.mxu0 %v13239_v60  ;;  %v16642_v3 = vld [vmem:[#allocation141_spill] sm:$0xff] }
 0x2a3   :  { %3068 = vmatmul.mubr.f32.gmra.mrb[8].mxu0 %v16639_v32  ;;  %6823 = vmatprep.subr.mxu1 %v13250_v28 }
 0x2a4   :  { %6690 = vmatmul.mubr.f32.gmra.mrb[8].mxu1 %v16639_v32  ;;  %3073 = vmatprep.mubr.f32.mxu0 %v16583_v58  ;;  %v16656_v32 = vld [vmem:[#allocation162_spill] sm:$0xff] }
 0x2a5   :  { %6695 = vmatprep.mubr.f32.mxu1 %v16583_v58  ;;  %3204 = vmatpush1.msra.mxu0 %v13024_v53 }
 0x2a6   :  { %6826 = vmatpush1.msra.mxu1 %v13042_v55  ;;  %8729 = vmatprep.subr.bf16.mxu0 %v16640_v1 }
 0x2a7   :  { %3075 = vmatmul.mubr.f32.gmra.mrb[10].mxu0 %v16641_v31  ;;  %9209 = vmatprep.subr.bf16.mxu1 %v16642_v3 }
 0x2a8   :  { %6697 = vmatmul.mubr.f32.gmra.mrb[10].mxu1 %v16641_v31  ;;  %3080 = vmatprep.mubr.f32.mxu0 %v16583_v58  ;;  %v16655_v31 = vld [vmem:[#allocation161_spill] sm:$0xff] }
 0x2a9   :  { %6702 = vmatprep.mubr.f32.mxu1 %v16583_v58 }
 0x2ab   :  { %3082 = vmatmul.mubr.f32.gmra.mrb[12].mxu0 %v13194_v47 }
 0x2ac   :  { %6704 = vmatmul.mubr.f32.gmra.mrb[12].mxu1 %v13194_v47  ;;  %3087 = vmatprep.mubr.f32.mxu0 %v16583_v58  ;;  %v16653_v47 = vld [vmem:[#allocation156_spill] sm:$0xff] }
 0x2ad   :  { %6709 = vmatprep.mubr.f32.mxu1 %v16583_v58 }
 0x2af   :  { %3089 = vmatmul.mubr.f32.gmra.mrb[14].mxu0 %v13281_v33 }
 0x2b0   :  { %6711 = vmatmul.mubr.f32.gmra.mrb[14].mxu1 %v13281_v33  ;;  %3094 = vmatprep.mubr.f32.mxu0 %v16583_v58  ;;  %v16652_v33 = vld [vmem:[#allocation208_spill] sm:$0xff] }
 0x2b1   :  { %6716 = vmatprep.mubr.f32.mxu1 %v16583_v58 }
 0x2b3   :  { %3096 = vmatmul.mubr.f32.gmra.mrb[16].mxu0 %v13326_v54 }
 0x2b4   :  { %6718 = vmatmul.mubr.f32.gmra.mrb[16].mxu1 %v13326_v54  ;;  %3101 = vmatprep.mubr.f32.mxu0 %v16583_v58  ;;  %v16651_v54 = vld [vmem:[#allocation154_spill] sm:$0xff] }
 0x2b5   :  { %6723 = vmatprep.mubr.f32.mxu1 %v16583_v58 }
 0x2b7   :  { %3103 = vmatmul.mubr.f32.gmra.mrb[18].mxu0 %v13343_v59 }
 0x2b8   :  { %6725 = vmatmul.mubr.f32.gmra.mrb[18].mxu1 %v13343_v59  ;;  %3108 = vmatprep.mubr.f32.mxu0 %v16583_v58  ;;  %v16650_v59 = vld [vmem:[#allocation153_spill] sm:$0xff] }
 0x2b9   :  { %6730 = vmatprep.mubr.f32.mxu1 %v16583_v58 }
 0x2bb   :  { %3110 = vmatmul.mubr.f32.gmra.mrb[20].mxu0 %v13362_v26 }
 0x2bc   :  { %6732 = vmatmul.mubr.f32.gmra.mrb[20].mxu1 %v13362_v26  ;;  %3115 = vmatprep.mubr.f32.mxu0 %v16583_v58  ;;  %v16647_v26 = vld [vmem:[#allocation203_spill] sm:$0xff] }
 0x2bd   :  { %6737 = vmatprep.mubr.f32.mxu1 %v16583_v58 }
 0x2bf   :  { %3117 = vmatmul.mubr.f32.gmra.mrb[22].mxu0 %v13373_v38 }
 0x2c0   :  { %6739 = vmatmul.mubr.f32.gmra.mrb[22].mxu1 %v13373_v38  ;;  %3122 = vmatprep.mubr.f32.mxu0 %v16583_v58  ;;  %v16645_v38 = vld [vmem:[#allocation147_spill] sm:$0xff] }
 0x2c1   :  { %6744 = vmatprep.mubr.f32.mxu1 %v16583_v58 }
 0x2c3   :  { %3124 = vmatmul.mubr.f32.gmra.mrb[24].mxu0 %v13397_v9 }
 0x2c4   :  { %6746 = vmatmul.mubr.f32.gmra.mrb[24].mxu1 %v13397_v9  ;;  %3129 = vmatprep.mubr.f32.mxu0 %v16583_v58  ;;  %v16644_v9 = vld [vmem:[#allocation146_spill] sm:$0xff] }
 0x2c5   :  { %6751 = vmatprep.mubr.f32.mxu1 %v16583_v58 }
 0x2c7   :  { %3131 = vmatmul.mubr.f32.gmra.mrb[26].mxu0 %v13413_v4 }
 0x2c8   :  { %6753 = vmatmul.mubr.f32.gmra.mrb[26].mxu1 %v13413_v4  ;;  %3136 = vmatprep.mubr.f32.mxu0 %v16583_v58  ;;  %v16643_v4 = vld [vmem:[#allocation135_spill] sm:$0xff] }
 0x2c9   :  { %6758 = vmatprep.mubr.f32.mxu1 %v16583_v58 }
 0x2cb   :  { %3138 = vmatmul.mubr.f32.gmra.mrb[28].mxu0 %v13429_v5 }
 0x2cc   :  { %6760 = vmatmul.mubr.f32.gmra.mrb[28].mxu1 %v13429_v5  ;;  %3143 = vmatprep.mubr.f32.mxu0 %v16583_v58  ;;  %v16646_v5 = vld [vmem:[#allocation149_spill] sm:$0xff] }
 0x2cd   :  { %6765 = vmatprep.mubr.f32.mxu1 %v16583_v58 }
 0x2cf   :  { %3145 = vmatmul.mubr.f32.gmra.mrb[30].mxu0 %v13442_v15 }
 0x2d0   :  { %6767 = vmatmul.mubr.f32.gmra.mrb[30].mxu1 %v13442_v15  ;;  %3251 = vmatprep.mubr.f32.mxu0 %v16583_v58  ;;  %v16648_v15 = vld [vmem:[#allocation150_spill] sm:$0xff] }
 0x2d1   :  { %6873 = vmatprep.mubr.f32.mxu1 %v16583_v58 }
 0x2d3   :  { %3254 = vmatmul.mubr.f32.vlgmr.msra.gmra.mrb[0].mxu0 %v16643_v4 }
 0x2d4   :  { %6876 = vmatmul.mubr.f32.vlgmr.msra.gmra.mrb[0].mxu1 %v16643_v4  ;;  %8731 = vmatpush1.bf16.msra.mxu0 %v16644_v9  ;;  %v16649_v4 = vld [vmem:[#allocation152_spill] sm:$0xff] }
 0x2d5   :  { %9211 = vmatpush1.bf16.msra.mxu1 %v16645_v38  ;;  %3259 = vmatprep.mubr.f32.mxu0 %v16583_v58 }
 0x2d6   :  { %6881 = vmatprep.mubr.f32.mxu1 %v16583_v58  ;;  %8733 = vmatprep.subr.bf16.mxu0 %v16646_v5 }
 0x2d7   :  { %3262 = vmatmul.mubr.f32.gmra.mrb[2].mxu0 %v16647_v26  ;;  %9213 = vmatprep.subr.bf16.mxu1 %v16648_v15 }
 0x2d8   :  { %6884 = vmatmul.mubr.f32.gmra.mrb[2].mxu1 %v16647_v26  ;;  %3267 = vmatprep.mubr.f32.mxu0 %v16583_v58  ;;  %v16654_v26 = vld [vmem:[#allocation158_spill] sm:$0xff] }
 0x2d9   :  { %6889 = vmatprep.mubr.f32.mxu1 %v16583_v58  ;;  %8735 = vmatpush1.bf16.msra.mxu0 %v16649_v4 }
 0x2da   :  { %9215 = vmatpush1.bf16.msra.mxu1 %v16650_v59  ;;  %8737 = vmatprep.subr.bf16.mxu0 %v16651_v54  ;;  %v16658_v59 = vld [vmem:[#allocation164_spill] sm:$0xff]  ;;  %v16661_v54 = vld [vmem:[#allocation171_spill] sm:$0xff] }
 0x2db   :  { %3270 = vmatmul.mubr.f32.gmra.mrb[4].mxu0 %v16652_v33  ;;  %9217 = vmatprep.subr.bf16.mxu1 %v16653_v47  ;;  %v16660_v47 = vld [vmem:[#allocation168_spill] sm:$0xff] }
 0x2dc   :  { %6892 = vmatmul.mubr.f32.gmra.mrb[4].mxu1 %v16652_v33  ;;  %3275 = vmatprep.mubr.f32.mxu0 %v16583_v58  ;;  %v16659_v33 = vld [vmem:[#allocation166_spill] sm:$0xff] }
 0x2dd   :  { %6897 = vmatprep.mubr.f32.mxu1 %v16583_v58  ;;  %8739 = vmatpush1.bf16.msra.mxu0 %v16654_v26 }
 0x2de   :  { %9219 = vmatpush1.bf16.msra.mxu1 %v16655_v31  ;;  %8741 = vmatprep.subr.bf16.mxu0 %v16656_v32  ;;  %v16662_v31 = vand.u32 4294901760, %v16595_v42  ;;  %v16663_v32 = vand.u32 4294901760, %v16594_v49  ;;  %v16667_v42 = vld [vmem:[#allocation174_spill] sm:$0xff]  ;;  %v16672_v49 = vand.u32 4294901760, %v12646_v27  ;;  %v16678_v27 = vand.u32 4294901760, %v12811_v7 }
 0x2df   :  { %3278 = vmatmul.mubr.f32.gmra.mrb[6].mxu0 %v16657_v37  ;;  %9221 = vmatprep.subr.bf16.mxu1 %v16658_v59  ;;  %v16665_v59 = vand.u32 4294901760, %v16599_v44  ;;  %v16685_v7 = vld [vmem:[#allocation186_spill] sm:$0xff] }
 0x2e0   :  { %6900 = vmatmul.mubr.f32.gmra.mrb[6].mxu1 %v16657_v37  ;;  %3283 = vmatprep.mubr.f32.mxu0 %v16583_v58  ;;  %v8744_v26 = vpack.c.bf16 %v16663_v32, %v16662_v31  ;;  %v16664_v37 = vand.u32 4294901760, %v16600_v51  ;;  %v16674_v51 = vld [vmem:[#allocation202_spill] sm:$0xff] }
 0x2e1   :  { %6905 = vmatprep.mubr.f32.mxu1 %v16583_v58  ;;  %8743 = vmatpush1.bf16.msra.mxu0 %v16659_v33 }
 0x2e2   :  { %9223 = vmatpush1.bf16.msra.mxu1 %v16660_v47  ;;  %3413 = vmatprep.subr.mxu0 %v16661_v54  ;;  %v9224_v4 = vpack.c.bf16 %v16665_v59, %v16664_v37  ;;  %v16666_v54 = vld [vmem:[#allocation173_spill] sm:$0xff] }
 0x2e3   :  { %3286 = vmatmul.mubr.f32.gmra.mrb[8].mxu0 %v13125_v43  ;;  %7035 = vmatprep.subr.mxu1 %v12851_v61 }
 0x2e4   :  { %6908 = vmatmul.mubr.f32.gmra.mrb[8].mxu1 %v13125_v43  ;;  %3291 = vmatprep.mubr.f32.mxu0 %v16583_v58  ;;  %v16668_v43 = vand.u32 4294901760, %v12618_v22  ;;  %v16676_v22 = vand.u32 4294901760, %v12750_v35 }
 0x2e5   :  { %6913 = vmatprep.mubr.f32.mxu1 %v16583_v58  ;;  %3415 = vmatpush1.msra.mxu0 %v16666_v54 }
 0x2e6   :  { %7037 = vmatpush1.msra.mxu1 %v16667_v42  ;;  %8745 = vmatprep.subr.bf16.mxu0 %v8744_v26  ;;  %v16692_v26 = vand.u32 4294901760, %v12973_v18  ;;  %v16697_v18 = vand.u32 4294901760, %v13004_v36  ;;  %v16702_v36 = vld [vmem:[#allocation227_spill] sm:$0xff] }
 0x2e7   :  { %3294 = vmatmul.mubr.f32.gmra.mrb[10].mxu0 %v13173_v56  ;;  %9225 = vmatprep.subr.bf16.mxu1 %v9224_v4  ;;  %v16691_v4 = vand.u32 4294901760, %v12967_v14 }
 0x2e8   :  { %6916 = vmatmul.mubr.f32.gmra.mrb[10].mxu1 %v13173_v56  ;;  %3299 = vmatprep.mubr.f32.mxu0 %v16583_v58  ;;  %v16669_v56 = vand.u32 4294901760, %v12620_v41 }
 0x2e9   :  { %6921 = vmatprep.mubr.f32.mxu1 %v16583_v58  ;;  %v8756_v37 = vpack.c.bf16 %v16692_v26, %v16691_v4  ;;  %v265_v4 = vld [vmem:[%s14674_s2 + $0x60] sm:$0xff] }
 0x2ea   :  { %v16736_v26 = vld [vmem:[#allocation256_spill] sm:$0xff] }
 0x2eb   :  { %3302 = vmatmul.mubr.f32.gmra.mrb[12].mxu0 %v13278_v8 }
 0x2ec   :  { %6924 = vmatmul.mubr.f32.gmra.mrb[12].mxu1 %v13278_v8  ;;  %3307 = vmatprep.mubr.f32.mxu0 %v16583_v58  ;;  %v8746_v8 = vpack.c.bf16 %v16669_v56, %v16668_v43  ;;  %v16693_v43 = vld [vmem:[#allocation215_spill] sm:$0xff] }
 0x2ed   :  { %6929 = vmatprep.mubr.f32.mxu1 %v16583_v58 }
 0x2ef   :  { %3310 = vmatmul.mubr.f32.gmra.mrb[14].mxu0 %v13309_v11 }
 0x2f0   :  { %6932 = vmatmul.mubr.f32.gmra.mrb[14].mxu1 %v13309_v11  ;;  %3315 = vmatprep.mubr.f32.mxu0 %v16583_v58  ;;  %v16670_v11 = vand.u32 4294901760, %v12633_v34  ;;  %v16677_v34 = vand.u32 4294901760, %v12806_v17  ;;  %v16684_v17 = vand.u32 4294901760, %v16625_v24  ;;  %v16690_v24 = vand.u32 4294901760, %v12926_v23 }
 0x2f1   :  { %6937 = vmatprep.mubr.f32.mxu1 %v16583_v58  ;;  %v16696_v23 = vand.u32 4294901760, %v12994_v50  ;;  %v16701_v50 = vand.u32 4294901760, %v13239_v60  ;;  %v16706_v60 = vld [vmem:[#allocation238_spill] sm:$0xff] }
 0x2f3   :  { %3318 = vmatmul.mubr.f32.gmra.mrb[16].mxu0 %v13341_v46  ;;  %v8758_v14 = vpack.c.bf16 %v16697_v18, %v16696_v23  ;;  %v16740_v23 = vld [vmem:[#allocation277_spill] sm:$0xff]  ;;  %v16741_v18 = vld [vmem:[#allocation14_spill] sm:$0xff] }
 0x2f4   :  { %6940 = vmatmul.mubr.f32.gmra.mrb[16].mxu1 %v13341_v46  ;;  %3323 = vmatprep.mubr.f32.mxu0 %v16583_v58  ;;  %v16671_v46 = vand.u32 4294901760, %v12635_v62  ;;  %v8750_v62 = vpack.c.bf16 %v16678_v27, %v16677_v34  ;;  %v16718_v34 = vld [vmem:[#allocation137_spill] sm:$0xff]  ;;  %v16719_v27 = vld [vmem:[#allocation152_spill] sm:$0xff] }
 0x2f5   :  { %6945 = vmatprep.mubr.f32.mxu1 %v16583_v58 }
 0x2f6   :  { %v9226_v59 = vpack.c.bf16 %v16671_v46, %v16670_v11  ;;  %v16705_v11 = vand.u32 4294901760, %v13042_v55  ;;  %v16709_v55 = vld [vmem:[#allocation251_spill] sm:$0xff]  ;;  %v16712_v46 = vld [vmem:[#allocation268_spill] sm:$0xff] }
 0x2f7   :  { %3326 = vmatmul.mubr.f32.gmra.mrb[18].mxu0 %v13360_v29 }
 0x2f8   :  { %6948 = vmatmul.mubr.f32.gmra.mrb[18].mxu1 %v13360_v29  ;;  %3331 = vmatprep.mubr.f32.mxu0 %v16583_v58  ;;  %v16673_v29 = vand.u32 4294901760, %v12648_v52  ;;  %v16679_v52 = vand.u32 4294901760, %v16619_v40 }
 0x2f9   :  { %6953 = vmatprep.mubr.f32.mxu1 %v16583_v58 }
 0x2fa   :  { %v8748_v44 = vpack.c.bf16 %v16673_v29, %v16672_v49  ;;  %v16714_v49 = vld [vmem:[#allocation176_spill] sm:$0xff]  ;;  %v16715_v29 = vld [vmem:[#allocation15_spill] sm:$0xff] }
 0x2fb   :  { %3334 = vmatmul.mubr.f32.gmra.mrb[20].mxu0 %v13381_v19 }
 0x2fc   :  { %6956 = vmatmul.mubr.f32.gmra.mrb[20].mxu1 %v13381_v19  ;;  %3339 = vmatprep.mubr.f32.mxu0 %v16583_v58  ;;  %v16675_v19 = vand.u32 4294901760, %v12671_v48  ;;  %v16680_v48 = vand.u32 4294901760, %v12825_v20  ;;  %v16687_v20 = vand.u32 4294901760, %v16628_v57  ;;  %v16694_v57 = vand.u32 4294901760, %v16635_v25 }
 0x2fd   :  { %6961 = vmatprep.mubr.f32.mxu1 %v16583_v58  ;;  %v16699_v25 = vand.u32 4294901760, %v13020_v16  ;;  %v16704_v16 = vand.u32 4294901760, %v13024_v53  ;;  %v16708_v53 = vld [vmem:[#allocation245_spill] sm:$0xff] }
 0x2fe   :  { %v9228_v41 = vpack.c.bf16 %v16676_v22, %v16675_v19  ;;  %v9230_v35 = vpack.c.bf16 %v16680_v48, %v16679_v52  ;;  %v253_v19 = vld [vmem:[%s14674_s2] sm:$0xff]  ;;  %v10340_v22 = vmov 0   ;;  %v16726_v48 = vld [vmem:[#allocation162_spill] sm:$0xff] }
 0x2ff   :  { %3342 = vmatmul.mubr.f32.gmra.mrb[22].mxu0 %v13390_v39  ;;  %10031 = vset.pattern.permute.xlu1 %v10340_v22  ;;  %v16723_v52 = vld [vmem:[#allocation156_spill] sm:$0xff] }
 0x300   :  { %6964 = vmatmul.mubr.f32.gmra.mrb[22].mxu1 %v13390_v39  ;;  %3347 = vmatprep.mubr.f32.mxu0 %v16583_v58  ;;  %v16681_v39 = vand.u32 4294901760, %v16621_v10  ;;  %v16689_v10 = vand.u32 4294901760, %v16630_v21  ;;  %v16698_v21 = vand.u32 4294901760, %v13015_v12  ;;  %v16703_v12 = vand.u32 4294901760, %v13250_v28  ;;  %v16707_v28 = vld [vmem:[#allocation239_spill] sm:$0xff] }
 0x301   :  { %6969 = vmatprep.mubr.f32.mxu1 %v16583_v58  ;;  %10030 = vset.pattern.permute.xlu0 %v10340_v22 }
 0x302   :  { %v9234_v31 = vpack.c.bf16 %v16690_v24, %v16689_v10  ;;  %271 = vperm.xlu0 %10030, %v253_v19   ;;  %v263_v10 = vld [vmem:[%s14674_s2 + $0x50] sm:$0xff] }
 0x303   :  { %3350 = vmatmul.mubr.f32.gmra.mrb[24].mxu0 %v13411_v6  ;;  %v16735_v24 = vld [vmem:[#allocation250_spill] sm:$0xff] }
 0x304   :  { %6972 = vmatmul.mubr.f32.gmra.mrb[24].mxu1 %v13411_v6  ;;  %3355 = vmatprep.mubr.f32.mxu0 %v16583_v58  ;;  %v16682_v6 = vand.u32 4294901760, %v12895_v2  ;;  %v16688_v2 = vand.u32 4294901760, %v16627_v63  ;;  %v16695_v63 = vand.u32 4294901760, %v16634_v30  ;;  %v9238_v30 = vpack.c.bf16 %v16699_v25, %v16698_v21  ;;  %v7671_v21 = vld [vmem:[%s14675_s3] sm:$0xff]  ;;  %v14006_v25 = vld [vmem:[%s14678_s6 + $0x10] sm:$0xff] }
 0x305   :  { %6977 = vmatprep.mubr.f32.mxu1 %v16583_v58  ;;  %v14073_v19 = vld [vmem:[%s14678_s6 + $0x50] sm:$0xff] }
 0x306   :  { %v8754_v40 = vpack.c.bf16 %v16688_v2, %v16687_v20  ;;  %v9236_v56 = vpack.c.bf16 %v16695_v63, %v16694_v57  ;;  %v261_v20 = vld [vmem:[%s14674_s2 + $0x40] sm:$0xff]  ;;  %v16737_v57 = vld [vmem:[#allocation257_spill] sm:$0xff]  ;;  %v16738_v63 = vld [vmem:[#allocation267_spill] sm:$0xff]  ;;  %16744 = vst [vmem:[#allocation19_spill] sm:$0xff] %v14073_v19 }
 0x307   :  { %3358 = vmatmul.mubr.f32.gmra.mrb[26].mxu0 %v13427_v45  ;;  %v16734_v2 = vld [vmem:[#allocation244_spill] sm:$0xff] }
 0x308   :  { %6980 = vmatmul.mubr.f32.gmra.mrb[26].mxu1 %v13427_v45  ;;  %3363 = vmatprep.mubr.f32.mxu0 %v16583_v58  ;;  %v16683_v45 = vld [vmem:[#allocation214_spill] sm:$0xff] }
 0x309   :  { %6985 = vmatprep.mubr.f32.mxu1 %v16583_v58 }
 0x30b   :  { %3366 = vmatmul.mubr.f32.gmra.mrb[28].mxu0 %v13440_v0 }
 0x30c   :  { %6988 = vmatmul.mubr.f32.gmra.mrb[28].mxu1 %v13440_v0  ;;  %3371 = vmatprep.mubr.f32.mxu0 %v16583_v58  ;;  %v16686_v0 = vand.u32 4294901760, %v16685_v7  ;;  %v259_v7 = vld [vmem:[%s14674_s2 + $0x30] sm:$0xff] }
 0x30d   :  { %6993 = vmatprep.mubr.f32.mxu1 %v16583_v58 }
 0x30e   :  { %v9232_v32 = vpack.c.bf16 %v16686_v0, %v16684_v17  ;;  %v257_v17 = vld [vmem:[%s14674_s2 + $0x20] sm:$0xff]  ;;  %v16733_v0 = vld [vmem:[#allocation233_spill] sm:$0xff] }
 0x30f   :  { %3374 = vmatmul.mubr.f32.gmra.mrb[30].mxu0 %v13452_v13 }
 0x310   :  { %6996 = vmatmul.mubr.f32.gmra.mrb[30].mxu1 %v13452_v13  ;;  %3462 = vmatprep.mubr.f32.mxu0 %v16583_v58  ;;  %v8752_v13 = vpack.c.bf16 %v16682_v6, %v16681_v39  ;;  %v16728_v39 = vld [vmem:[#allocation164_spill] sm:$0xff]  ;;  %v16729_v6 = vld [vmem:[#allocation171_spill] sm:$0xff] }
 0x311   :  { %7084 = vmatprep.mubr.f32.mxu1 %v16583_v58 }
 0x313   :  { %3466 = vmatmul.mubr.f32.vlgmr.msra.gmra.mrb[0].mxu0 %v16674_v51 }
 0x314   :  { %7088 = vmatmul.mubr.f32.vlgmr.msra.gmra.mrb[0].mxu1 %v16674_v51  ;;  %8747 = vmatpush1.bf16.msra.mxu0 %v8746_v8  ;;  %v16700_v8 = vld [vmem:[#allocation220_spill] sm:$0xff]  ;;  %v255_v51 = vld [vmem:[%s14674_s2 + $0x10] sm:$0xff] }
 0x315   :  { %9227 = vmatpush1.bf16.msra.mxu1 %v9226_v59  ;;  %3471 = vmatprep.mubr.f32.mxu0 %v16583_v58  ;;  %v16713_v59 = vld [vmem:[#allocation273_spill] sm:$0xff] }
 0x316   :  { %7093 = vmatprep.mubr.f32.mxu1 %v16583_v58  ;;  %8749 = vmatprep.subr.bf16.mxu0 %v8748_v44  ;;  %v16716_v44 = vld [vmem:[#allocation198_spill] sm:$0xff] }
 0x317   :  { %3475 = vmatmul.mubr.f32.gmra.mrb[2].mxu0 %v16683_v45  ;;  %9229 = vmatprep.subr.bf16.mxu1 %v9228_v41  ;;  %v16717_v41 = vld [vmem:[#allocation132_spill] sm:$0xff] }
 0x318   :  { %7097 = vmatmul.mubr.f32.gmra.mrb[2].mxu1 %v16683_v45  ;;  %3480 = vmatprep.mubr.f32.mxu0 %v16583_v58  ;;  %v256_v45 = vld [vmem:[%s14674_s2 + $0x18] sm:$0xff] }
 0x319   :  { %7102 = vmatprep.mubr.f32.mxu1 %v16583_v58  ;;  %8751 = vmatpush1.bf16.msra.mxu0 %v8750_v62  ;;  %v16722_v62 = vld [vmem:[#allocation196_spill] sm:$0xff] }
 0x31a   :  { %9231 = vmatpush1.bf16.msra.mxu1 %v9230_v35  ;;  %8753 = vmatprep.subr.bf16.mxu0 %v8752_v13  ;;  %v16727_v35 = vld [vmem:[#allocation197_spill] sm:$0xff] }
 0x31b   :  { %3484 = vmatmul.mubr.f32.gmra.mrb[4].mxu0 %v16693_v43  ;;  %9233 = vmatprep.subr.bf16.mxu1 %v9232_v32  ;;  %v16730_v13 = vld [vmem:[#allocation221_spill] sm:$0xff] }
 0x31c   :  { %7106 = vmatmul.mubr.f32.gmra.mrb[4].mxu1 %v16693_v43  ;;  %3489 = vmatprep.mubr.f32.mxu0 %v16583_v58  ;;  %v262_v32 = vld [vmem:[%s14674_s2 + $0x48] sm:$0xff]  ;;  %v267_v43 = vld [vmem:[%s14674_s2 + $0x70] sm:$0xff] }
 0x31d   :  { %7111 = vmatprep.mubr.f32.mxu1 %v16583_v58  ;;  %8755 = vmatpush1.bf16.msra.mxu0 %v8754_v40  ;;  %v264_v40 = vld [vmem:[%s14674_s2 + $0x58] sm:$0xff] }
 0x31e   :  { %9235 = vmatpush1.bf16.msra.mxu1 %v9234_v31  ;;  %8757 = vmatprep.subr.bf16.mxu0 %v8756_v37  ;;  %v266_v31 = vld [vmem:[%s14674_s2 + $0x68] sm:$0xff]  ;;  %v268_v37 = vld [vmem:[%s14674_s2 + $0x78] sm:$0xff] }
 0x31f   :  { %3493 = vmatmul.mubr.f32.gmra.mrb[6].mxu0 %v16700_v8  ;;  %9237 = vmatprep.subr.bf16.mxu1 %v9236_v56  ;;  %v16739_v56 = vld [vmem:[#allocation272_spill] sm:$0xff] }
 0x320   :  { %7115 = vmatmul.mubr.f32.gmra.mrb[6].mxu1 %v16700_v8  ;;  %3498 = vmatprep.mubr.f32.mxu0 %v16583_v58  ;;  %v7672_v8 = vld [vmem:[%s14675_s3 + $0x8] sm:$0xff] }
 0x321   :  { %7120 = vmatprep.mubr.f32.mxu1 %v16583_v58  ;;  %8759 = vmatpush1.bf16.msra.mxu0 %v8758_v14  ;;  %v13998_v14 = vld [vmem:[%s14678_s6] sm:$0xff] }
 0x322   :  { %9239 = vmatpush1.bf16.msra.mxu1 %v9238_v30  ;;  %3674 = vmatprep.subr.mxu0 %v16701_v50  ;;  %v14014_v30 = vld [vmem:[%s14678_s6 + $0x8] sm:$0xff]  ;;  %v14022_v50 = vld [vmem:[%s14678_s6 + $0x18] sm:$0xff] }
 0x323   :  { %3502 = vmatmul.mubr.f32.gmra.mrb[8].mxu0 %v16702_v36  ;;  %7296 = vmatprep.subr.mxu1 %v16703_v12  ;;  %v14030_v12 = vld [vmem:[%s14678_s6 + $0x20] sm:$0xff] }
 0x324   :  { %7124 = vmatmul.mubr.f32.gmra.mrb[8].mxu1 %v16702_v36  ;;  %3507 = vmatprep.mubr.f32.mxu0 %v16583_v58  ;;  %v7674_v36 = vld [vmem:[%s14675_s3 + $0x18] sm:$0xff] }
 0x325   :  { %7129 = vmatprep.mubr.f32.mxu1 %v16583_v58  ;;  %3678 = vmatpush1.msra.mxu0 %v16704_v16  ;;  %v7675_v16 = vld [vmem:[%s14675_s3 + $0x20] sm:$0xff] }
 0x326   :  { %7300 = vmatpush1.msra.mxu1 %v16705_v11  ;;  %8761 = vmatprep.subr.bf16.mxu0 %v16640_v1  ;;  %v16710_v1 = vld [vmem:[#allocation140_spill] sm:$0xff] }
 0x327   :  { %3511 = vmatmul.mubr.f32.gmra.mrb[10].mxu0 %v16706_v60  ;;  %9241 = vmatprep.subr.bf16.mxu1 %v16642_v3  ;;  %v16711_v3 = vld [vmem:[#allocation262_spill] sm:$0xff] }
 0x328   :  { %7133 = vmatmul.mubr.f32.gmra.mrb[10].mxu1 %v16706_v60  ;;  %3516 = vmatprep.mubr.f32.mxu0 %v16583_v58  ;;  %v14038_v60 = vld [vmem:[%s14678_s6 + $0x30] sm:$0xff] }
 0x329   :  { %7138 = vmatprep.mubr.f32.mxu1 %v16583_v58  ;;  %281 = vperm.xlu1 %10031, %v255_v51   ;;  %v7679_v51 = vld [vmem:[%s14675_s3 + $0x40] sm:$0xff] }
 0x32b   :  { %3520 = vmatmul.mubr.f32.gmra.mrb[12].mxu0 %v16707_v28 }
 0x32c   :  { %7142 = vmatmul.mubr.f32.gmra.mrb[12].mxu1 %v16707_v28  ;;  %3525 = vmatprep.mubr.f32.mxu0 %v16583_v58  ;;  %v7677_v28 = vld [vmem:[%s14675_s3 + $0x30] sm:$0xff] }
 0x32d   :  { %7147 = vmatprep.mubr.f32.mxu1 %v16583_v58  ;;  %286 = vperm.xlu1 %10031, %v256_v45  }
 0x32f   :  { %3529 = vmatmul.mubr.f32.gmra.mrb[14].mxu0 %v16708_v53 }
 0x330   :  { %7151 = vmatmul.mubr.f32.gmra.mrb[14].mxu1 %v16708_v53  ;;  %3534 = vmatprep.mubr.f32.mxu0 %v16583_v58  ;;  %v14046_v53 = vld [vmem:[%s14678_s6 + $0x28] sm:$0xff] }
 0x331   :  { %7156 = vmatprep.mubr.f32.mxu1 %v16583_v58 }
 0x333   :  { %3538 = vmatmul.mubr.f32.gmra.mrb[16].mxu0 %v16709_v55 }
 0x334   :  { %7160 = vmatmul.mubr.f32.gmra.mrb[16].mxu1 %v16709_v55  ;;  %3543 = vmatprep.mubr.f32.mxu0 %v16583_v58  ;;  %v7687_v55 = vmul.f32 %v7671_v21, %v13998_v14 }
 0x335   :  { %7165 = vmatprep.mubr.f32.mxu1 %v16583_v58 }
 0x337   :  { %3547 = vmatmul.mubr.f32.gmra.mrb[18].mxu0 %v16710_v1 }
 0x338   :  { %7169 = vmatmul.mubr.f32.gmra.mrb[18].mxu1 %v16710_v1  ;;  %3552 = vmatprep.mubr.f32.mxu0 %v16583_v58  ;;  %v7676_v1 = vld [vmem:[%s14675_s3 + $0x28] sm:$0xff] }
 0x339   :  { %7174 = vmatprep.mubr.f32.mxu1 %v16583_v58 }
 0x33b   :  { %3556 = vmatmul.mubr.f32.gmra.mrb[20].mxu0 %v16711_v3 }
 0x33c   :  { %7178 = vmatmul.mubr.f32.gmra.mrb[20].mxu1 %v16711_v3  ;;  %3561 = vmatprep.mubr.f32.mxu0 %v16583_v58  ;;  %v14055_v3 = vld [vmem:[%s14678_s6 + $0x38] sm:$0xff] }
 0x33d   :  { %7183 = vmatprep.mubr.f32.mxu1 %v16583_v58  ;;  %16742 = vst [vmem:[#allocation17_spill] sm:$0xff] %v14055_v3 }
 0x33f   :  { %3565 = vmatmul.mubr.f32.gmra.mrb[22].mxu0 %v16712_v46 }
 0x340   :  { %7187 = vmatmul.mubr.f32.gmra.mrb[22].mxu1 %v16712_v46  ;;  %3570 = vmatprep.mubr.f32.mxu0 %v16583_v58  ;;  %v7678_v46 = vld [vmem:[%s14675_s3 + $0x38] sm:$0xff] }
 0x341   :  { %7192 = vmatprep.mubr.f32.mxu1 %v16583_v58 }
 0x343   :  { %3574 = vmatmul.mubr.f32.gmra.mrb[24].mxu0 %v16713_v59 }
 0x344   :  { %7196 = vmatmul.mubr.f32.gmra.mrb[24].mxu1 %v16713_v59  ;;  %3579 = vmatprep.mubr.f32.mxu0 %v16583_v58 }
 0x345   :  { %7201 = vmatprep.mubr.f32.mxu1 %v16583_v58 }
 0x347   :  { %3583 = vmatmul.mubr.f32.gmra.mrb[26].mxu0 %v16714_v49 }
 0x348   :  { %7205 = vmatmul.mubr.f32.gmra.mrb[26].mxu1 %v16714_v49  ;;  %3588 = vmatprep.mubr.f32.mxu0 %v16583_v58 }
 0x349   :  { %7210 = vmatprep.mubr.f32.mxu1 %v16583_v58 }
 0x34b   :  { %3592 = vmatmul.mubr.f32.gmra.mrb[28].mxu0 %v16715_v29 }
 0x34c   :  { %7214 = vmatmul.mubr.f32.gmra.mrb[28].mxu1 %v16715_v29  ;;  %3597 = vmatprep.mubr.f32.mxu0 %v16583_v58  ;;  %v7688_v29 = vmul.f32 %v7672_v8, %v14014_v30 }
 0x34d   :  { %7219 = vmatprep.mubr.f32.mxu1 %v16583_v58 }
 0x34f   :  { %3601 = vmatmul.mubr.f32.gmra.mrb[30].mxu0 %v16716_v44 }
 0x350   :  { %7223 = vmatmul.mubr.f32.gmra.mrb[30].mxu1 %v16716_v44  ;;  %3725 = vmatprep.mubr.f32.mxu0 %v16583_v58  ;;  %v14065_v44 = vld [vmem:[%s14678_s6 + $0x40] sm:$0xff] }
 0x351   :  { %7347 = vmatprep.mubr.f32.mxu1 %v16583_v58  ;;  %16743 = vst [vmem:[#allocation18_spill] sm:$0xff] %v14065_v44 }
 0x353   :  { %3727 = vmatmul.mubr.f32.vlgmr.msra.gmra.mrb[0].mxu0 %v16717_v41 }
 0x354   :  { %7349 = vmatmul.mubr.f32.vlgmr.msra.gmra.mrb[0].mxu1 %v16717_v41  ;;  %8763 = vmatpush1.bf16.msra.mxu0 %v16644_v9  ;;  %v16720_v9 = vld [vmem:[#allocation153_spill] sm:$0xff] }
 0x355   :  { %9243 = vmatpush1.bf16.msra.mxu1 %v16645_v38  ;;  %3732 = vmatprep.mubr.f32.mxu0 %v16583_v58  ;;  %v16721_v38 = vld [vmem:[#allocation154_spill] sm:$0xff] }
 0x356   :  { %7354 = vmatprep.mubr.f32.mxu1 %v16583_v58  ;;  %8765 = vmatprep.subr.bf16.mxu0 %v16646_v5  ;;  %v16725_v5 = vld [vmem:[#allocation161_spill] sm:$0xff] }
 0x357   :  { %3734 = vmatmul.mubr.f32.gmra.mrb[2].mxu0 %v16718_v34  ;;  %9245 = vmatprep.subr.bf16.mxu1 %v16648_v15  ;;  %v16724_v15 = vld [vmem:[#allocation158_spill] sm:$0xff] }
 0x358   :  { %7356 = vmatmul.mubr.f32.gmra.mrb[2].mxu1 %v16718_v34  ;;  %3739 = vmatprep.mubr.f32.mxu0 %v16583_v58 }
 0x359   :  { %7361 = vmatprep.mubr.f32.mxu1 %v16583_v58  ;;  %8767 = vmatpush1.bf16.msra.mxu0 %v16719_v27  ;;  %v7690_v27 = vmul.f32 %v7674_v36, %v14022_v50 }
 0x35a   :  { %9247 = vmatpush1.bf16.msra.mxu1 %v16720_v9  ;;  %8769 = vmatprep.subr.bf16.mxu0 %v16721_v38  ;;  %v7691_v9 = vmul.f32 %v7675_v16, %v14030_v12  ;;  %v7681_v38 = vld [vmem:[%s14675_s3 + $0x50] sm:$0xff] }
 0x35b   :  { %3741 = vmatmul.mubr.f32.gmra.mrb[4].mxu0 %v16722_v62  ;;  %9249 = vmatprep.subr.bf16.mxu1 %v16723_v52  ;;  %v7680_v52 = vld [vmem:[%s14675_s3 + $0x48] sm:$0xff] }
 0x35c   :  { %7363 = vmatmul.mubr.f32.gmra.mrb[4].mxu1 %v16722_v62  ;;  %3746 = vmatprep.mubr.f32.mxu0 %v16583_v58 }
 0x35d   :  { %7368 = vmatprep.mubr.f32.mxu1 %v16583_v58  ;;  %8771 = vmatpush1.bf16.msra.mxu0 %v16724_v15 }
 0x35e   :  { %9251 = vmatpush1.bf16.msra.mxu1 %v16725_v5  ;;  %8773 = vmatprep.subr.bf16.mxu0 %v16726_v48 }
 0x35f   :  { %3748 = vmatmul.mubr.f32.gmra.mrb[6].mxu0 %v16727_v35  ;;  %9253 = vmatprep.subr.bf16.mxu1 %v16728_v39  ;;  %v7692_v39 = vmul.f32 %v7676_v1, %v14046_v53 }
 0x360   :  { %7370 = vmatmul.mubr.f32.gmra.mrb[6].mxu1 %v16727_v35  ;;  %3753 = vmatprep.mubr.f32.mxu0 %v16583_v58 }
 0x361   :  { %7375 = vmatprep.mubr.f32.mxu1 %v16583_v58  ;;  %8775 = vmatpush1.bf16.msra.mxu0 %v16659_v33  ;;  %v254_v33 = vld [vmem:[%s14674_s2 + $0x8] sm:$0xff] }
 0x362   :  { %9255 = vmatpush1.bf16.msra.mxu1 %v16660_v47  ;;  %3871 = vmatprep.subr.mxu0 %v16729_v6  ;;  %v258_v47 = vld [vmem:[%s14674_s2 + $0x28] sm:$0xff]  ;;  %v14093_v6 = vld [vmem:[%s14678_s6 + $0x58] sm:$0xff] }
 0x363   :  { %3755 = vmatmul.mubr.f32.gmra.mrb[8].mxu0 %v16730_v13  ;;  %7493 = vmatprep.subr.mxu1 %v12851_v61  ;;  %v16731_v61 = vld [vmem:[#allocation226_spill] sm:$0xff]  ;;  %16746 = vst [vmem:[#allocation199_spill] sm:$0xff] %v14093_v6 }
 0x364   :  { %7377 = vmatmul.mubr.f32.gmra.mrb[8].mxu1 %v16730_v13  ;;  %3760 = vmatprep.mubr.f32.mxu0 %v16583_v58 }
 0x365   :  { %7382 = vmatprep.mubr.f32.mxu1 %v16583_v58  ;;  %3873 = vmatpush1.msra.mxu0 %v16666_v54  ;;  %v16732_v54 = vld [vmem:[#allocation232_spill] sm:$0xff] }
 0x366   :  { %7495 = vmatpush1.msra.mxu1 %v16667_v42  ;;  %276 = vperm.xlu0 %10030, %v254_v33   ;;  %v260_v42 = vld [vmem:[%s14674_s2 + $0x38] sm:$0xff] }
 0x367   :  { %3762 = vmatmul.mubr.f32.gmra.mrb[10].mxu0 %v16731_v61  ;;  %296 = vperm.xlu1 %10031, %v258_v47   ;;  %v7695_v47 = vmul.f32 %v7679_v51, %v14065_v44 }
 0x368   :  { %7384 = vmatmul.mubr.f32.gmra.mrb[10].mxu1 %v16731_v61  ;;  %3767 = vmatprep.mubr.f32.mxu0 %v16583_v58 }
 0x369   :  { %7389 = vmatprep.mubr.f32.mxu1 %v16583_v58 }
 0x36a   :  { %291 = vperm.xlu0 %10030, %v257_v17  }
 0x36b   :  { %3769 = vmatmul.mubr.f32.gmra.mrb[12].mxu0 %v16732_v54  ;;  %306 = vperm.xlu1 %10031, %v260_v42  }
 0x36c   :  { %7391 = vmatmul.mubr.f32.gmra.mrb[12].mxu1 %v16732_v54  ;;  %3774 = vmatprep.mubr.f32.mxu0 %v16583_v58 }
 0x36d   :  { %7396 = vmatprep.mubr.f32.mxu1 %v16583_v58 }
 0x36e   :  { %301 = vperm.xlu0 %10030, %v259_v7  }
 0x36f   :  { %3776 = vmatmul.mubr.f32.gmra.mrb[14].mxu0 %v16733_v0  ;;  %316 = vperm.xlu1 %10031, %v262_v32  }
 0x370   :  { %7398 = vmatmul.mubr.f32.gmra.mrb[14].mxu1 %v16733_v0  ;;  %3781 = vmatprep.mubr.f32.mxu0 %v16583_v58 }
 0x371   :  { %7403 = vmatprep.mubr.f32.mxu1 %v16583_v58 }
 0x372   :  { %311 = vperm.xlu0 %10030, %v261_v20  }
 0x373   :  { %3783 = vmatmul.mubr.f32.gmra.mrb[16].mxu0 %v16734_v2  ;;  %326 = vperm.xlu1 %10031, %v264_v40  }
 0x374   :  { %7405 = vmatmul.mubr.f32.gmra.mrb[16].mxu1 %v16734_v2  ;;  %3788 = vmatprep.mubr.f32.mxu0 %v16583_v58 }
 0x375   :  { %7410 = vmatprep.mubr.f32.mxu1 %v16583_v58 }
 0x376   :  { %321 = vperm.xlu0 %10030, %v263_v10  }
 0x377   :  { %3790 = vmatmul.mubr.f32.gmra.mrb[18].mxu0 %v16735_v24  ;;  %336 = vperm.xlu1 %10031, %v266_v31  }
 0x378   :  { %7412 = vmatmul.mubr.f32.gmra.mrb[18].mxu1 %v16735_v24  ;;  %3795 = vmatprep.mubr.f32.mxu0 %v16583_v58 }
 0x379   :  { %7417 = vmatprep.mubr.f32.mxu1 %v16583_v58 }
 0x37a   :  { %331 = vperm.xlu0 %10030, %v265_v4   ;;  %v14106_v4 = vld [vmem:[%s14678_s6 + $0x60] sm:$0xff] }
 0x37b   :  { %3797 = vmatmul.mubr.f32.gmra.mrb[20].mxu0 %v16736_v26  ;;  %346 = vperm.xlu1 %10031, %v268_v37   ;;  %16747 = vst [vmem:[#allocation23_spill] sm:$0xff] %v14106_v4 }
 0x37c   :  { %7419 = vmatmul.mubr.f32.gmra.mrb[20].mxu1 %v16736_v26  ;;  %3802 = vmatprep.mubr.f32.mxu0 %v16583_v58 }
 0x37d   :  { %7424 = vmatprep.mubr.f32.mxu1 %v16583_v58 }
 0x37e   :  { %341 = vperm.xlu0 %10030, %v267_v43  }
 0x37f   :  { %3804 = vmatmul.mubr.f32.gmra.mrb[22].mxu0 %v16737_v57 }
 0x380   :  { %7426 = vmatmul.mubr.f32.gmra.mrb[22].mxu1 %v16737_v57  ;;  %3809 = vmatprep.mubr.f32.mxu0 %v16583_v58 }
 0x381   :  { %7431 = vmatprep.mubr.f32.mxu1 %v16583_v58  ;;  %v272_v11 = vpop.permute.xlu0 %271 }
 0x383   :  { %3811 = vmatmul.mubr.f32.gmra.mrb[24].mxu0 %v16738_v63 }
 0x384   :  { %7433 = vmatmul.mubr.f32.gmra.mrb[24].mxu1 %v16738_v63  ;;  %3816 = vmatprep.mubr.f32.mxu0 %v16583_v58 }
 0x385   :  { %7438 = vmatprep.mubr.f32.mxu1 %v16583_v58 }
 0x387   :  { %3818 = vmatmul.mubr.f32.gmra.mrb[26].mxu0 %v16739_v56 }
 0x388   :  { %7440 = vmatmul.mubr.f32.gmra.mrb[26].mxu1 %v16739_v56  ;;  %3823 = vmatprep.mubr.f32.mxu0 %v16583_v58 }
 0x389   :  { %7445 = vmatprep.mubr.f32.mxu1 %v16583_v58 }
 0x38b   :  { %3825 = vmatmul.mubr.f32.gmra.mrb[28].mxu0 %v16740_v23 }
 0x38c   :  { %7447 = vmatmul.mubr.f32.gmra.mrb[28].mxu1 %v16740_v23  ;;  %3830 = vmatprep.mubr.f32.mxu0 %v16583_v58 }
 0x38d   :  { %7452 = vmatprep.mubr.f32.mxu1 %v16583_v58 }
 0x38f   :  { %3832 = vmatmul.mubr.f32.gmra.mrb[30].mxu0 %v16741_v18 }
 0x390   :  { %7454 = vmatmul.mubr.f32.gmra.mrb[30].mxu1 %v16741_v18  ;;  %3920 = vmatprep.mubr.f32.mxu0 %v16583_v58 }
 0x391   :  { %7542 = vmatprep.mubr.f32.mxu1 %v16583_v58 }
 0x393   :  { %3922 = vmatmul.mubr.f32.vlgmr.msra.gmra.mrb[0].mxu0 %v16717_v41 }
 0x394   :  { %7544 = vmatmul.mubr.f32.vlgmr.msra.gmra.mrb[0].mxu1 %v16717_v41  ;;  %3927 = vmatprep.mubr.f32.mxu0 %v16583_v58 }
 0x395   :  { %7549 = vmatprep.mubr.f32.mxu1 %v16583_v58 }
 0x397   :  { %3929 = vmatmul.mubr.f32.gmra.mrb[2].mxu0 %v16718_v34 }
 0x398   :  { %7551 = vmatmul.mubr.f32.gmra.mrb[2].mxu1 %v16718_v34  ;;  %3934 = vmatprep.mubr.f32.mxu0 %v16583_v58 }
 0x399   :  { %7556 = vmatprep.mubr.f32.mxu1 %v16583_v58 }
 0x39b   :  { %3936 = vmatmul.mubr.f32.gmra.mrb[4].mxu0 %v16722_v62 }
 0x39c   :  { %7558 = vmatmul.mubr.f32.gmra.mrb[4].mxu1 %v16722_v62  ;;  %3941 = vmatprep.mubr.f32.mxu0 %v16583_v58  ;;  %v14083_v62 = vld [vmem:[%s14678_s6 + $0x48] sm:$0xff] }
 0x39d   :  { %7563 = vmatprep.mubr.f32.mxu1 %v16583_v58  ;;  %16745 = vst [vmem:[#allocation21_spill] sm:$0xff] %v14083_v62  ;;  %v7696_v32 = vmul.f32 %v7680_v52, %v14083_v62 }
 0x39f   :  { %3943 = vmatmul.mubr.f32.gmra.mrb[6].mxu0 %v16727_v35 }
 0x3a0   :  { %7565 = vmatmul.mubr.f32.gmra.mrb[6].mxu1 %v16727_v35  ;;  %3948 = vmatprep.mubr.f32.mxu0 %v16583_v58  ;;  %v7693_v35 = vmul.f32 %v7677_v28, %v14038_v60 }
 0x3a1   :  { %7570 = vmatprep.mubr.f32.mxu1 %v16583_v58 }
 0x3a3   :  { %3950 = vmatmul.mubr.f32.gmra.mrb[8].mxu0 %v16730_v13 }
 0x3a4   :  { %7572 = vmatmul.mubr.f32.gmra.mrb[8].mxu1 %v16730_v13  ;;  %3955 = vmatprep.mubr.f32.mxu0 %v16583_v58  ;;  %v7682_v13 = vld [vmem:[%s14675_s3 + $0x58] sm:$0xff] }
 0x3a5   :  { %7577 = vmatprep.mubr.f32.mxu1 %v16583_v58  ;;  %v7698_v31 = vmul.f32 %v7682_v13, %v14093_v6 }
 0x3a7   :  { %3957 = vmatmul.mubr.f32.gmra.mrb[10].mxu0 %v16731_v61 }
 0x3a8   :  { %7579 = vmatmul.mubr.f32.gmra.mrb[10].mxu1 %v16731_v61  ;;  %3962 = vmatprep.mubr.f32.mxu0 %v16583_v58  ;;  %v7694_v61 = vmul.f32 %v7678_v46, %v14055_v3  ;;  %v282_v37 = vpop.permute.xlu1 %281 }
 0x3a9   :  { %7584 = vmatprep.mubr.f32.mxu1 %v16583_v58 }
 0x3ab   :  { %3964 = vmatmul.mubr.f32.gmra.mrb[12].mxu0 %v16732_v54 }
 0x3ac   :  { %7586 = vmatmul.mubr.f32.gmra.mrb[12].mxu1 %v16732_v54  ;;  %3969 = vmatprep.mubr.f32.mxu0 %v16583_v58 }
 0x3ad   :  { %7591 = vmatprep.mubr.f32.mxu1 %v16583_v58 }
 0x3af   :  { %3971 = vmatmul.mubr.f32.gmra.mrb[14].mxu0 %v16733_v0 }
 0x3b0   :  { %7593 = vmatmul.mubr.f32.gmra.mrb[14].mxu1 %v16733_v0  ;;  %3976 = vmatprep.mubr.f32.mxu0 %v16583_v58  ;;  %v7697_v0 = vmul.f32 %v7681_v38, %v14073_v19  ;;  %v14117_v38 = vpop.permute.xlu1 %286 }
 0x3b1   :  { %7598 = vmatprep.mubr.f32.mxu1 %v16583_v58 }
 0x3b3   :  { %3978 = vmatmul.mubr.f32.gmra.mrb[16].mxu0 %v16734_v2 }
 0x3b4   :  { %7600 = vmatmul.mubr.f32.gmra.mrb[16].mxu1 %v16734_v2  ;;  %3983 = vmatprep.mubr.f32.mxu0 %v16583_v58 }
 0x3b5   :  { %7605 = vmatprep.mubr.f32.mxu1 %v16583_v58 }
 0x3b7   :  { %3985 = vmatmul.mubr.f32.gmra.mrb[18].mxu0 %v16735_v24 }
 0x3b8   :  { %7607 = vmatmul.mubr.f32.gmra.mrb[18].mxu1 %v16735_v24  ;;  %3990 = vmatprep.mubr.f32.mxu0 %v16583_v58 }
 0x3b9   :  { %7612 = vmatprep.mubr.f32.mxu1 %v16583_v58 }
 0x3bb   :  { %3992 = vmatmul.mubr.f32.gmra.mrb[20].mxu0 %v16736_v26 }
 0x3bc   :  { %7614 = vmatmul.mubr.f32.gmra.mrb[20].mxu1 %v16736_v26  ;;  %3997 = vmatprep.mubr.f32.mxu0 %v16583_v58  ;;  %v7683_v26 = vld [vmem:[%s14675_s3 + $0x60] sm:$0xff] }
 0x3bd   :  { %7619 = vmatprep.mubr.f32.mxu1 %v16583_v58 }
 0x3bf   :  { %3999 = vmatmul.mubr.f32.gmra.mrb[22].mxu0 %v16737_v57 }
 0x3c0   :  { %7621 = vmatmul.mubr.f32.gmra.mrb[22].mxu1 %v16737_v57  ;;  %4004 = vmatprep.mubr.f32.mxu0 %v16583_v58 }
 0x3c1   :  { %7626 = vmatprep.mubr.f32.mxu1 %v16583_v58 }
 0x3c3   :  { %4006 = vmatmul.mubr.f32.gmra.mrb[24].mxu0 %v16738_v63 }
 0x3c4   :  { %7628 = vmatmul.mubr.f32.gmra.mrb[24].mxu1 %v16738_v63  ;;  %4011 = vmatprep.mubr.f32.mxu0 %v16583_v58 }
 0x3c5   :  { %7633 = vmatprep.mubr.f32.mxu1 %v16583_v58 }
 0x3c7   :  { %4013 = vmatmul.mubr.f32.gmra.mrb[26].mxu0 %v16739_v56 }
 0x3c8   :  { %7635 = vmatmul.mubr.f32.gmra.mrb[26].mxu1 %v16739_v56  ;;  %4018 = vmatprep.mubr.f32.mxu0 %v16583_v58 }
 0x3c9   :  { %7640 = vmatprep.mubr.f32.mxu1 %v16583_v58 }
 0x3cb   :  { %4020 = vmatmul.mubr.f32.gmra.mrb[28].mxu0 %v16740_v23 }
 0x3cc   :  { %7642 = vmatmul.mubr.f32.gmra.mrb[28].mxu1 %v16740_v23  ;;  %4025 = vmatprep.mubr.f32.mxu0 %v16583_v58 }
 0x3cd   :  { %7647 = vmatprep.mubr.f32.mxu1 %v16583_v58  ;;  %v7673_v58 = vld [vmem:[%s14675_s3 + $0x10] sm:$0xff] }
 0x3ce   :  { %v7689_v49 = vmul.f32 %v7673_v58, %v14006_v25 }
 0x3cf   :  { %4027 = vmatmul.mubr.f32.gmra.mrb[30].mxu0 %v16741_v18 }
 0x3d0   :  { %7649 = vmatmul.mubr.f32.gmra.mrb[30].mxu1 %v16741_v18 }
 0x3e5   :  { %v277_v17 = vpop.permute.xlu0 %276 }
 0x466   :  { %v3923_v59 = vpop.f32.mrb[0].mxu0 }
 0x467   :  { %v9256_v22 = vadd.f32 %v3923_v59, %v272_v11  ;;  %v7545_v41 = vpop.f32.mrb[0].mxu1  ;;  %v3925_v34 = vpop.f32.mrb[1].mxu0 }
 0x468   :  { %v9288_v15 = vadd.f32 %v7545_v41, %v272_v11  ;;  %v9257_v5 = vadd.f32 %v3925_v34, %v272_v11  ;;  %v7547_v48 = vpop.f32.mrb[1].mxu1 }
 0x469   :  { %v7703_v45 = vadd.f32 %v9256_v22, %v7687_v55  ;;  %v9289_v33 = vadd.f32 %v7547_v48, %v272_v11  ;;  %v7699_v11 = vmul.f32 %v7683_v26, %v14106_v4  ;;  %v7685_v48 = vld [vmem:[%s14675_s3 + $0x70] sm:$0xff] }
 0x46a   :  { %v7705_v54 = vadd.f32 %v9288_v15, %v7689_v49  ;;  %v7704_v42 = vadd.f32 %v9257_v5, %v7688_v29  ;;  %v3930_v7 = vpop.f32.mrb[2].mxu0 }
 0x46b   :  { %v8248_v20 = vmul.f32 -1.442695, %v7703_v45  ;;  %v7706_v2 = vadd.f32 %v9289_v33, %v7690_v27  ;;  %v9258_v40 = vadd.f32 %v3930_v7, %v277_v17  ;;  %v7552_v10 = vpop.f32.mrb[2].mxu1  ;;  %v3932_v24 = vpop.f32.mrb[3].mxu0 }
 0x46c   :  { %v8250_v43 = vmul.f32 -1.442695, %v7705_v54  ;;  %v8249_v57 = vmul.f32 -1.442695, %v7704_v42  ;;  %v9290_v63 = vadd.f32 %v7552_v10, %v277_v17  ;;  %v9259_v56 = vadd.f32 %v3932_v24, %v277_v17  ;;  %v7554_v23 = vpop.f32.mrb[3].mxu1  ;;  %v7686_v54 = vld [vmem:[%s14675_s3 + $0x78] sm:$0xff] }
 0x46d   :  { %10032 = vpow2.f32 %v8248_v20  ;;  %v8251_v18 = vmul.f32 -1.442695, %v7706_v2  ;;  %v7707_v21 = vadd.f32 %v9258_v40, %v7691_v9  ;;  %v9291_v58 = vadd.f32 %v7554_v23, %v277_v17  ;;  %v14115_v9 = vld [vmem:[%s14678_s6 + $0x70] sm:$0xff]  ;;  %v14134_v17 = vld [vmem:[%s14678_s6 + $0x78] sm:$0xff]  ;;  %v7816_v24 = vld [vmem:[%s14676_s4 + $0x8] sm:$0xff] }
 0x46e   :  { %10034 = vpow2.f32 %v8250_v43  ;;  %v7709_v8 = vadd.f32 %v9290_v63, %v7693_v35  ;;  %v7708_v36 = vadd.f32 %v9259_v56, %v7692_v39  ;;  %v3937_v16 = vpop.f32.mrb[4].mxu0  ;;  %16748 = vst [vmem:[#allocation24_spill] sm:$0xff] %v14115_v9  ;;  %v14125_v35 = vld [vmem:[%s14678_s6 + $0x68] sm:$0xff]  ;;  %16750 = vst [vmem:[#allocation27_spill] sm:$0xff] %v14134_v17  ;;  %v7701_v40 = vmul.f32 %v7685_v48, %v14115_v9  ;;  %v7817_v10 = vld [vmem:[%s14676_s4 + $0x10] sm:$0xff] }
 0x46f   :  { %10036 = vpow2.f32 %v8249_v57  ;;  %v8252_v28 = vmul.f32 -1.442695, %v7707_v21  ;;  %v7710_v55 = vadd.f32 %v9291_v58, %v7694_v61  ;;  %v9260_v1 = vadd.f32 %v3937_v16, %v282_v37  ;;  %v7559_v46 = vpop.f32.mrb[4].mxu1  ;;  %v3939_v59 = vpop.f32.mrb[5].mxu0  ;;  %16749 = vst [vmem:[#allocation25_spill] sm:$0xff] %v14125_v35  ;;  %v7684_v39 = vld [vmem:[%s14675_s3 + $0x68] sm:$0xff] }
 0x470   :  { %10038 = vpow2.f32 %v8251_v18  ;;  %v8254_v49 = vmul.f32 -1.442695, %v7709_v8  ;;  %v8253_v29 = vmul.f32 -1.442695, %v7708_v36  ;;  %v9292_v51 = vadd.f32 %v7559_v46, %v282_v37  ;;  %v7561_v22 = vpop.f32.mrb[5].mxu1  ;;  %v7818_v57 = vld [vmem:[%s14676_s4 + $0x18] sm:$0xff] }
 0x471   :  { %10040 = vpow2.f32 %v8252_v28  ;;  %v8255_v41 = vmul.f32 -1.442695, %v7710_v55  ;;  %v7711_v34 = vadd.f32 %v9260_v1, %v7695_v47  ;;  %v9261_v27 = vadd.f32 %v3939_v59, %v282_v37  ;;  %v7819_v8 = vld [vmem:[%s14676_s4 + $0x20] sm:$0xff]  ;;  %v7821_v36 = vld [vmem:[%s14676_s4 + $0x30] sm:$0xff]  ;;  %v7820_v46 = vld [vmem:[%s14676_s4 + $0x28] sm:$0xff] }
 0x472   :  { %10042 = vpow2.f32 %v8254_v49  ;;  %v7713_v52 = vadd.f32 %v9292_v51, %v7697_v0  ;;  %v9293_v15 = vadd.f32 %v7561_v22, %v282_v37  ;;  %v3944_v5 = vpop.f32.mrb[6].mxu0  ;;  %v7700_v26 = vmul.f32 %v7684_v39, %v14125_v35  ;;  %v7822_v22 = vld [vmem:[%s14676_s4 + $0x38] sm:$0xff] }
 0x473   :  { %10044 = vpow2.f32 %v8253_v29  ;;  %v8256_v13 = vmul.f32 -1.442695, %v7711_v34  ;;  %v7712_v45 = vadd.f32 %v9261_v27, %v7696_v32  ;;  %v9262_v33 = vadd.f32 %v3944_v5, %v14117_v38  ;;  %v7566_v61 = vpop.f32.mrb[6].mxu1  ;;  %v3946_v47 = vpop.f32.mrb[7].mxu0  ;;  %v7815_v32 = vld [vmem:[%s14676_s4] sm:$0xff] }
 0x474   :  { %10046 = vpow2.f32 %v8255_v41  ;;  %v8258_v42 = vmul.f32 -1.442695, %v7713_v52  ;;  %v7714_v7 = vadd.f32 %v9293_v15, %v7698_v31  ;;  %v7568_v0 = vpop.f32.mrb[7].mxu1  ;;  %v14151_v37 = vmul.f32 %v7686_v54, %v14134_v17  ;;  %v7823_v5 = vld [vmem:[%s14676_s4 + $0x40] sm:$0xff] }
 0x475   :  { %10048 = vpow2.f32 %v8256_v13  ;;  %v8257_v20 = vmul.f32 -1.442695, %v7712_v45  ;;  %v7715_v2 = vadd.f32 %v9262_v33, %v7699_v11  ;;  %v9294_v23 = vadd.f32 %v7566_v61, %v14117_v38 }
 0x476   :  { %10050 = vpow2.f32 %v8258_v42  ;;  %v8259_v31 = vmul.f32 -1.442695, %v7714_v7  ;;  %v3951_v43 = vpop.f32.mrb[8].mxu0  ;;  %v14158_v18 = vmul.f32 %v7815_v32, %v13998_v14  ;;  %v14167_v28 = vmul.f32 %v7817_v10, %v14006_v25 }
 0x477   :  { %v10033_v63 = vpop.eup %10032  ;;  %10052 = vpow2.f32 %v8257_v20  ;;  %v8260_v56 = vmul.f32 -1.442695, %v7715_v2  ;;  %v7573_v21 = vpop.f32.mrb[8].mxu1  ;;  %v14170_v55 = vmul.f32 %v7816_v24, %v14014_v30  ;;  %v9263_v29 = vadd.f32 %v3946_v47, %v14117_v38  ;;  %v7825_v47 = vld [vmem:[%s14676_s4 + $0x50] sm:$0xff] }
 0x478   :  { %v3953_v58 = vpop.f32.mrb[9].mxu0  ;;  %v10035_v16 = vpop.eup %10034  ;;  %v7767_v11 = vadd.f32 1.0, %v10033_v63  ;;  %10054 = vpow2.f32 %v8259_v31  ;;  %v14177_v51 = vmul.f32 %v7818_v57, %v14022_v50  ;;  %v14183_v52 = vmul.f32 %v7819_v8, %v14030_v12 }
 0x479   :  { %v7575_v1 = vpop.f32.mrb[9].mxu1  ;;  %v10037_v59 = vpop.eup %10036  ;;  %v7769_v49 = vadd.f32 1.0, %v10035_v16  ;;  %10056 = vpow2.f32 %v8260_v56  ;;  %v14186_v15 = vmul.f32 %v7821_v36, %v14038_v60  ;;  %v7717_v13 = vadd.f32 %v9294_v23, %v7701_v40 }
 0x47a   :  { %v10039_v41 = vpop.eup %10038  ;;  %10058 = vrcp.f32 %v7767_v11  ;;  %v7768_v34 = vadd.f32 1.0, %v10037_v59  ;;  %v3958_v27 = vpop.f32.mrb[10].mxu0  ;;  %v14192_v61 = vmul.f32 %v7820_v46, %v14046_v53  ;;  %v9295_v7 = vadd.f32 %v7568_v0, %v14117_v38 }
 0x47b   :  { %v10041_v48 = vpop.eup %10040  ;;  %10060 = vrcp.f32 %v7769_v49  ;;  %v7770_v39 = vadd.f32 1.0, %v10039_v41  ;;  %v7580_v45 = vpop.f32.mrb[10].mxu1  ;;  %v14199_v20 = vmul.f32 %v7822_v22, %v14055_v3  ;;  %v7716_v24 = vadd.f32 %v9263_v29, %v7700_v26 }
 0x47c   :  { %v3960_v33 = vpop.f32.mrb[11].mxu0  ;;  %v10043_v54 = vpop.eup %10042  ;;  %10062 = vrcp.f32 %v7768_v34  ;;  %v7771_v42 = vadd.f32 1.0, %v10041_v48  ;;  %v14202_v31 = vmul.f32 %v7823_v5, %v14065_v44  ;;  %v14205_v8 = vmul.f32 %v7825_v47, %v14073_v19 }
 0x47d   :  { %v7582_v32 = vpop.f32.mrb[11].mxu1  ;;  %v10045_v2 = vpop.eup %10044  ;;  %10064 = vrcp.f32 %v7770_v39  ;;  %v7773_v10 = vadd.f32 1.0, %v10043_v54  ;;  %v8262_v36 = vmul.f32 -1.442695, %v7717_v13  ;;  %v7718_v49 = vadd.f32 %v9295_v7, %v14151_v37 }
 0x47e   :  { %v292_v40 = vpop.permute.xlu0 %291  ;;  %v10047_v57 = vpop.eup %10046  ;;  %10066 = vrcp.f32 %v7771_v42  ;;  %v7772_v63 = vadd.f32 1.0, %v10045_v2  ;;  %v8261_v5 = vmul.f32 -1.442695, %v7716_v24 }
 0x47f   :  { %v9264_v56 = vadd.f32 %v3951_v43, %v292_v40  ;;  %v3965_v23 = vpop.f32.mrb[12].mxu0  ;;  %v10049_v38 = vpop.eup %10048  ;;  %10068 = vrcp.f32 %v7773_v10  ;;  %v7774_v0 = vadd.f32 1.0, %v10047_v57  ;;  %v9296_v16 = vadd.f32 %v7573_v21, %v292_v40 }
 0x480   :  { %v7587_v11 = vpop.f32.mrb[12].mxu1  ;;  %v14207_v46 = vpop.f32.mrb[13].mxu0  ;;  %10070 = vrcp.f32 %v7772_v63  ;;  %v7775_v59 = vadd.f32 1.0, %v10049_v38  ;;  %v9265_v29 = vadd.f32 %v3953_v58, %v292_v40  ;;  %v9297_v48 = vadd.f32 %v7575_v1, %v292_v40 }
 0x481   :  { %v10051_v26 = vpop.eup %10050  ;;  %v14210_v22 = vpop.f32.mrb[13].mxu1  ;;  %10072 = vrcp.f32 %v7774_v0  ;;  %v7847_v13 = vadd.f32 %v9264_v56, %v14158_v18  ;;  %v7849_v58 = vadd.f32 %v9296_v16, %v14167_v28  ;;  %v8263_v28 = vmul.f32 -1.442695, %v7718_v49 }
 0x482   :  { %v10053_v43 = vpop.eup %10052  ;;  %v297_v41 = vpop.permute.xlu1 %296  ;;  %v7777_v34 = vadd.f32 1.0, %v10051_v26  ;;  %10074 = vrcp.f32 %v7775_v59  ;;  %v7848_v40 = vadd.f32 %v9265_v29, %v14170_v55 }
 0x483   :  { %v10055_v39 = vpop.eup %10054  ;;  %v7776_v21 = vadd.f32 1.0, %v10053_v43  ;;  %v9266_v47 = vadd.f32 %v3958_v27, %v297_v41  ;;  %v14213_v54 = vpop.f32.mrb[14].mxu0  ;;  %v9298_v7 = vadd.f32 %v7580_v45, %v297_v41  ;;  %v9267_v18 = vadd.f32 %v3960_v33, %v297_v41 }
 0x484   :  { %v10057_v42 = vpop.eup %10056  ;;  %10076 = vrcp.f32 %v7777_v34  ;;  %v7778_v37 = vadd.f32 1.0, %v10055_v39  ;;  %v14216_v2 = vpop.f32.mrb[14].mxu1  ;;  %v7850_v45 = vadd.f32 %v9297_v48, %v14177_v51  ;;  %v9299_v56 = vadd.f32 %v7582_v32, %v297_v41 }
 0x485   :  { %v14218_v10 = vpop.f32.mrb[15].mxu0  ;;  %v14220_v24 = vpop.eup %10058  ;;  %10078 = vrcp.f32 %v7776_v21  ;;  %v7779_v1 = vadd.f32 1.0, %v10057_v42  ;;  %v8264_v0 = vmul.f32 -1.442695, %v7847_v13  ;;  %v7851_v16 = vadd.f32 %v9266_v47, %v14183_v52 }
 0x486   :  { %v14223_v27 = vpop.f32.mrb[15].mxu1  ;;  %v14225_v57 = vpop.eup %10060  ;;  %10080 = vrcp.f32 %v7778_v37  ;;  %v8266_v59 = vmul.f32 -1.442695, %v7849_v58  ;;  %v7853_v29 = vadd.f32 %v9298_v7, %v14186_v15  ;;  %v8265_v52 = vmul.f32 -1.442695, %v7848_v40 }
 0x487   :  { %v14227_v63 = vpop.permute.xlu0 %301  ;;  %v14230_v38 = vpop.eup %10062  ;;  %10082 = vrcp.f32 %v7779_v1  ;;  %v7854_v15 = vadd.f32 %v9299_v56, %v14199_v20 }
 0x488   :  { %v9268_v55 = vadd.f32 %v3965_v23, %v14227_v63  ;;  %v14234_v33 = vpop.f32.mrb[16].mxu0  ;;  %v14236_v26 = vpop.eup %10064  ;;  %10084 = vpow2.f32 %v8262_v36  ;;  %v9300_v49 = vadd.f32 %v7587_v11, %v14227_v63  ;;  %v7852_v23 = vadd.f32 %v9267_v18, %v14192_v61 }
 0x489   :  { %v14240_v51 = vpop.f32.mrb[16].mxu1  ;;  %v14242_v32 = vpop.f32.mrb[17].mxu0  ;;  %10086 = vpow2.f32 %v8261_v5  ;;  %v8267_v36 = vmul.f32 -1.442695, %v7850_v45  ;;  %v8268_v11 = vmul.f32 -1.442695, %v7851_v16 }
 0x48a   :  { %v14244_v43 = vpop.eup %10066  ;;  %v14247_v41 = vpop.f32.mrb[17].mxu1  ;;  %10088 = vpow2.f32 %v8263_v28  ;;  %v7855_v39 = vadd.f32 %v9268_v55, %v14202_v31  ;;  %v8270_v61 = vmul.f32 -1.442695, %v7853_v29  ;;  %v7857_v13 = vadd.f32 %v9300_v49, %v14205_v8  ;;  %v7826_v29 = vld [vmem:[%s14676_s4 + $0x58] sm:$0xff] }
 0x48b   :  { %v14249_v34 = vpop.eup %10068  ;;  %10090 = vpow2.f32 %v8264_v0  ;;  %v14255_v21 = vpop.f32.mrb[18].mxu0  ;;  %v8269_v20 = vmul.f32 -1.442695, %v7852_v23  ;;  %v8271_v31 = vmul.f32 -1.442695, %v7854_v15  ;;  %v7827_v23 = vld [vmem:[%s14676_s4 + $0x60] sm:$0xff] }
 0x48c   :  { %v14252_v48 = vpop.eup %10070  ;;  %10092 = vpow2.f32 %v8266_v59  ;;  %v14260_v47 = vpop.f32.mrb[18].mxu1  ;;  %v8272_v40 = vmul.f32 -1.442695, %v7855_v39  ;;  %v8274_v28 = vmul.f32 -1.442695, %v7857_v13  ;;  %v7824_v59 = vld [vmem:[%s14676_s4 + $0x48] sm:$0xff] }
 0x48d   :  { %v14257_v5 = vpop.eup %10072  ;;  %v14262_v42 = vpop.f32.mrb[19].mxu0  ;;  %10094 = vpow2.f32 %v8265_v52  ;;  %v7829_v39 = vld [vmem:[%s14676_s4 + $0x70] sm:$0xff] }
 0x48e   :  { %16751 = vst [vmem:[#allocation204_spill] sm:$0xff] %v14257_v5  ;;  %v14264_v37 = vpop.eup %10074  ;;  %v14266_v58 = vpop.f32.mrb[19].mxu1  ;;  %10096 = vpow2.f32 %v8267_v36 }
 0x48f   :  { %16752 = vst [vmem:[#allocation28_spill] sm:$0xff] %v14264_v37  ;;  %v14268_v7 = vpop.eup %10076  ;;  %10098 = vpow2.f32 %v8268_v11  ;;  %v14272_v18 = vpop.f32.mrb[20].mxu0  ;;  %v7845_v37 = vmul.f32 %v7829_v39, %v14115_v9 }
 0x490   :  { %16753 = vst [vmem:[#allocation30_spill] sm:$0xff] %v14268_v7  ;;  %v14270_v1 = vpop.eup %10078  ;;  %10100 = vpow2.f32 %v8270_v61  ;;  %v14276_v45 = vpop.f32.mrb[20].mxu1  ;;  %v7843_v7 = vmul.f32 %v7827_v23, %v14106_v4 }
 0x491   :  { %16754 = vst [vmem:[#allocation32_spill] sm:$0xff] %v14270_v1  ;;  %v14274_v8 = vpop.eup %10080  ;;  %v14278_v56 = vpop.f32.mrb[21].mxu0  ;;  %10102 = vpow2.f32 %v8269_v20  ;;  %v9269_v1 = vadd.f32 %v14207_v46, %v14227_v63 }
 0x492   :  { %16755 = vst [vmem:[#allocation33_spill] sm:$0xff] %v14274_v8  ;;  %v14280_v0 = vpop.eup %10082  ;;  %v14282_v16 = vpop.f32.mrb[21].mxu1  ;;  %10104 = vpow2.f32 %v8271_v31 }
 0x493   :  { %16756 = vst [vmem:[#allocation205_spill] sm:$0xff] %v14280_v0  ;;  %v10085_v55 = vpop.eup %10084  ;;  %10106 = vpow2.f32 %v8272_v40  ;;  %v14293_v36 = vpop.f32.mrb[22].mxu0  ;;  %v7840_v40 = vmul.f32 %v7824_v59, %v14083_v62  ;;  %v7830_v59 = vld [vmem:[%s14676_s4 + $0x78] sm:$0xff] }
 0x494   :  { %v10087_v49 = vpop.eup %10086  ;;  %v7781_v52 = vadd.f32 1.0, %v10085_v55  ;;  %10108 = vpow2.f32 %v8274_v28  ;;  %v14298_v61 = vpop.f32.mrb[22].mxu1  ;;  %v7842_v55 = vmul.f32 %v7826_v29, %v14093_v6  ;;  %v9301_v6 = vadd.f32 %v14210_v22, %v14227_v63 }
 0x495   :  { %v10089_v15 = vpop.eup %10088  ;;  %v7780_v11 = vadd.f32 1.0, %v10087_v49  ;;  %v14300_v13 = vpop.f32.mrb[23].mxu0  ;;  %v7828_v49 = vld [vmem:[%s14676_s4 + $0x68] sm:$0xff]  ;;  %v7846_v63 = vmul.f32 %v7830_v59, %v14134_v17 }
 0x496   :  { %v10091_v20 = vpop.eup %10090  ;;  %10110 = vrcp.f32 %v7781_v52  ;;  %v7782_v31 = vadd.f32 1.0, %v10089_v15  ;;  %v14307_v28 = vpop.f32.mrb[23].mxu1  ;;  %v7844_v4 = vmul.f32 %v7828_v49, %v14125_v35  ;;  %v7858_v19 = vadd.f32 %v9301_v6, %v7842_v55 }
 0x497   :  { %v10093_v0 = vpop.eup %10092  ;;  %10112 = vrcp.f32 %v7780_v11  ;;  %v7911_v8 = vadd.f32 1.0, %v10091_v20  ;;  %v307_v29 = vpop.permute.xlu1 %306 }
 0x498   :  { %v10095_v52 = vpop.eup %10094  ;;  %10114 = vrcp.f32 %v7782_v31  ;;  %v7913_v15 = vadd.f32 1.0, %v10093_v0  ;;  %v14318_v11 = vpop.f32.mrb[24].mxu0  ;;  %v9270_v23 = vadd.f32 %v14213_v54, %v307_v29  ;;  %v9302_v22 = vadd.f32 %v14216_v2, %v307_v29 }
 0x499   :  { %v10097_v20 = vpop.eup %10096  ;;  %10116 = vrcp.f32 %v7911_v8  ;;  %v7912_v46 = vadd.f32 1.0, %v10095_v52  ;;  %v14322_v62 = vpop.f32.mrb[24].mxu1  ;;  %v7856_v52 = vadd.f32 %v9269_v1, %v7840_v40  ;;  %v9271_v54 = vadd.f32 %v14218_v10, %v307_v29 }
 0x49a   :  { %v14324_v5 = vpop.f32.mrb[25].mxu0  ;;  %v10099_v31 = vpop.eup %10098  ;;  %10118 = vrcp.f32 %v7913_v15  ;;  %v7914_v0 = vadd.f32 1.0, %v10097_v20  ;;  %v9303_v44 = vadd.f32 %v14223_v27, %v307_v29  ;;  %v7859_v59 = vadd.f32 %v9270_v23, %v7843_v7 }
 0x49b   :  { %v14328_v39 = vpop.f32.mrb[25].mxu1  ;;  %v10101_v9 = vpop.eup %10100  ;;  %10120 = vrcp.f32 %v7912_v46  ;;  %v7915_v8 = vadd.f32 1.0, %v10099_v31  ;;  %v7861_v40 = vadd.f32 %v9302_v22, %v7845_v37  ;;  %v8273_v27 = vmul.f32 -1.442695, %v7856_v52 }
 0x49c   :  { %v10103_v49 = vpop.eup %10102  ;;  %10122 = vrcp.f32 %v7914_v0  ;;  %v7917_v35 = vadd.f32 1.0, %v10101_v9  ;;  %v14332_v15 = vpop.f32.mrb[26].mxu0  ;;  %v7860_v55 = vadd.f32 %v9271_v54, %v7844_v4  ;;  %v8275_v23 = vmul.f32 -1.442695, %v7858_v19 }
 0x49d   :  { %v10105_v20 = vpop.eup %10104  ;;  %10124 = vrcp.f32 %v7915_v8  ;;  %v7916_v2 = vadd.f32 1.0, %v10103_v49  ;;  %v14334_v17 = vpop.f32.mrb[26].mxu1  ;;  %v7862_v0 = vadd.f32 %v9303_v44, %v7846_v63  ;;  %v8278_v4 = vmul.f32 -1.442695, %v7861_v40 }
 0x49e   :  { %v14336_v3 = vpop.f32.mrb[27].mxu0  ;;  %v10107_v46 = vpop.eup %10106  ;;  %10126 = vrcp.f32 %v7917_v35  ;;  %v7918_v10 = vadd.f32 1.0, %v10105_v20  ;;  %v8276_v35 = vmul.f32 -1.442695, %v7859_v59  ;;  %v8277_v44 = vmul.f32 -1.442695, %v7860_v55 }
 0x49f   :  { %v312_v1 = vpop.permute.xlu0 %311  ;;  %v14338_v31 = vpop.f32.mrb[27].mxu1  ;;  %10128 = vrcp.f32 %v7916_v2  ;;  %v7919_v9 = vadd.f32 1.0, %v10107_v46  ;;  %v8279_v59 = vmul.f32 -1.442695, %v7862_v0 }
 0x4a0   :  { %v10109_v6 = vpop.eup %10108  ;;  %10130 = vrcp.f32 %v7918_v10  ;;  %v14342_v8 = vpop.f32.mrb[28].mxu0  ;;  %v9273_v0 = vadd.f32 %v14242_v32, %v312_v1 }
 0x4a1   :  { %v14340_v29 = vpop.eup %10110  ;;  %v7921_v7 = vadd.f32 1.0, %v10109_v6  ;;  %10132 = vrcp.f32 %v7919_v9  ;;  %v14346_v37 = vpop.f32.mrb[28].mxu1  ;;  %v9272_v6 = vadd.f32 %v14234_v33, %v312_v1  ;;  %v9305_v33 = vadd.f32 %v14247_v41, %v312_v1 }
 0x4a2   :  { %v14344_v49 = vpop.eup %10112  ;;  %v14348_v22 = vpop.f32.mrb[29].mxu0 }
 0x4a3   :  { %v14350_v20 = vpop.eup %10114  ;;  %10134 = vrcp.f32 %v7921_v7  ;;  %v14352_v52 = vpop.f32.mrb[29].mxu1 }
 0x4a4   :  { %16757 = vst [vmem:[#allocation35_spill] sm:$0xff] %v14350_v20  ;;  %v14354_v54 = vpop.eup %10116  ;;  %v317_v19 = vpop.permute.xlu1 %316  ;;  %10136 = vpow2.f32 %v8273_v27  ;;  %v9304_v27 = vadd.f32 %v14240_v51, %v312_v1 }
 0x4a5   :  { %v14356_v63 = vpop.eup %10118  ;;  %v322_v2 = vpop.permute.xlu0 %321  ;;  %10138 = vpow2.f32 %v8275_v23  ;;  %v9306_v51 = vadd.f32 %v14260_v47, %v317_v19 }
 0x4a6   :  { %v14358_v46 = vpop.f32.mrb[30].mxu0  ;;  %v14360_v10 = vpop.eup %10120  ;;  %10140 = vpow2.f32 %v8276_v35  ;;  %v9276_v41 = vadd.f32 %v14272_v18, %v322_v2  ;;  %v14390_v1 = vadd.f32 %v14276_v45, %v322_v2  ;;  %v14398_v47 = vadd.f32 %v14282_v16, %v322_v2 }
 0x4a7   :  { %v14363_v40 = vpop.f32.mrb[30].mxu1  ;;  %v14365_v9 = vpop.f32.mrb[31].mxu0  ;;  %10142 = vpow2.f32 %v8278_v4  ;;  %v9274_v4 = vadd.f32 %v14255_v21, %v317_v19  ;;  %v14395_v21 = vadd.f32 %v14278_v56, %v322_v2 }
 0x4a8   :  { %16758 = vst [vmem:[#allocation36_spill] sm:$0xff] %v14363_v40  ;;  %16759 = vst [vmem:[#allocation38_spill] sm:$0xff] %v14365_v9  ;;  %v14367_v7 = vpop.eup %10122  ;;  %v14370_v55 = vpop.f32.mrb[31].mxu1  ;;  %10144 = vpow2.f32 %v8277_v44  ;;  %v9275_v44 = vadd.f32 %v14262_v42, %v317_v19 }
 0x4a9   :  { %16760 = vst [vmem:[#allocation39_spill] sm:$0xff] %v14370_v55  ;;  %v14372_v23 = vpop.eup %10124  ;;  %10146 = vpow2.f32 %v8279_v59  ;;  %v327_v9 = vpop.permute.xlu1 %326  ;;  %v9307_v59 = vadd.f32 %v14266_v58, %v317_v19 }
 0x4aa   :  { %v14375_v20 = vpop.eup %10126  ;;  %10148 = vtanh.f32 %v9272_v6  ;;  %v332_v32 = vpop.permute.xlu0 %331  ;;  %v14401_v42 = vadd.f32 %v14293_v36, %v327_v9  ;;  %v14404_v58 = vadd.f32 %v14298_v61, %v327_v9  ;;  %v14407_v18 = vadd.f32 %v14300_v13, %v327_v9 }
 0x4ab   :  { %v14378_v35 = vpop.eup %10128  ;;  %10150 = vtanh.f32 %v9304_v27  ;;  %v14410_v45 = vadd.f32 %v14307_v28, %v327_v9  ;;  %v14413_v16 = vadd.f32 %v14318_v11, %v332_v32  ;;  %v14416_v36 = vadd.f32 %v14322_v62, %v332_v32 }
 0x4ac   :  { %v14381_v40 = vpop.eup %10130  ;;  %10152 = vtanh.f32 %v9273_v0  ;;  %v14419_v61 = vadd.f32 %v14324_v5, %v332_v32  ;;  %v14422_v13 = vadd.f32 %v14328_v39, %v332_v32 }
 0x4ad   :  { %v14385_v55 = vpop.eup %10132  ;;  %10154 = vtanh.f32 %v9305_v33  ;;  %v337_v0 = vpop.permute.xlu1 %336 }
 0x4ae   :  { %v14392_v6 = vpop.eup %10134  ;;  %10156 = vtanh.f32 %v9274_v4  ;;  %v14425_v4 = vadd.f32 %v14332_v15, %v337_v0  ;;  %v14428_v11 = vadd.f32 %v14334_v17, %v337_v0  ;;  %v14433_v5 = vadd.f32 %v14336_v3, %v337_v0 }
 0x4af   :  { %v10137_v27 = vpop.eup %10136  ;;  %10158 = vtanh.f32 %v9306_v51  ;;  %v14430_v51 = vpop.permute.xlu0 %341  ;;  %v14436_v39 = vadd.f32 %v14338_v31, %v337_v0  ;;  %v7959_v15 = vmul.f32 %v14354_v54, %v13998_v14  ;;  %v7961_v3 = vmul.f32 %v14356_v63, %v14006_v25  ;;  %v8023_v25 = vld [vmem:[%s14677_s5] sm:$0xff] }
 0x4b0   :  { %v10139_v19 = vpop.eup %10138  ;;  %v7920_v56 = vadd.f32 1.0, %v10137_v27  ;;  %10160 = vtanh.f32 %v9275_v44  ;;  %v14442_v17 = vadd.f32 %v14342_v8, %v14430_v51  ;;  %v14448_v31 = vadd.f32 %v14346_v37, %v14430_v51 }
 0x4b1   :  { %v10141_v2 = vpop.eup %10140  ;;  %v7922_v33 = vadd.f32 1.0, %v10139_v19  ;;  %v7960_v14 = vmul.f32 %v14360_v10, %v14014_v30  ;;  %v14455_v8 = vadd.f32 %v14348_v22, %v14430_v51  ;;  %v7962_v63 = vmul.f32 %v14367_v7, %v14022_v50  ;;  %v8025_v22 = vld [vmem:[%s14677_s5 + $0x10] sm:$0xff]  ;;  %v8024_v50 = vld [vmem:[%s14677_s5 + $0x8] sm:$0xff] }
 0x4b2   :  { %v10143_v28 = vpop.eup %10142  ;;  %10162 = vrcp.f32 %v7920_v56  ;;  %v7923_v9 = vadd.f32 1.0, %v10141_v2  ;;  %v7964_v7 = vmul.f32 %v14378_v35, %v14046_v53  ;;  %v8027_v35 = vld [vmem:[%s14677_s5 + $0x20] sm:$0xff] }
 0x4b3   :  { %v10145_v62 = vpop.eup %10144  ;;  %10164 = vrcp.f32 %v7922_v33  ;;  %v7925_v44 = vadd.f32 1.0, %v10143_v28  ;;  %v7965_v28 = vmul.f32 %v14375_v20, %v14038_v60  ;;  %v8026_v60 = vld [vmem:[%s14677_s5 + $0x18] sm:$0xff] }
 0x4b4   :  { %v10147_v32 = vpop.eup %10146  ;;  %10166 = vrcp.f32 %v7923_v9  ;;  %v7924_v27 = vadd.f32 1.0, %v10145_v62 }
 0x4b5   :  { %v10149_v19 = vpop.eup %10148  ;;  %10168 = vrcp.f32 %v7925_v44  ;;  %v7926_v56 = vadd.f32 1.0, %v10147_v32  ;;  %v8029_v32 = vld [vmem:[%s14677_s5 + $0x30] sm:$0xff] }
 0x4b6   :  { %v10151_v2 = vpop.eup %10150  ;;  %10170 = vrcp.f32 %v7924_v27  ;;  %v7991_v0 = vmul.f32 %v10149_v19, %v14220_v24  ;;  %v7963_v24 = vmul.f32 %v14372_v23, %v14030_v12 }
 0x4b7   :  { %v10153_v54 = vpop.eup %10152  ;;  %10172 = vrcp.f32 %v7926_v56  ;;  %v7993_v37 = vmul.f32 %v10151_v2, %v14225_v57 }
 0x4b8   :  { %v10155_v33 = vpop.eup %10154  ;;  %10174 = vtanh.f32 %v9307_v59  ;;  %v8007_v30 = vadd.f32 %v7991_v0, %v7959_v15  ;;  %v7992_v10 = vmul.f32 %v10153_v54, %v14230_v38  ;;  %v14527_v54 = vadd.f32 %v14352_v52, %v14430_v51  ;;  %v16763_v51 = vld [vmem:[#allocation19_spill] sm:$0xff] }
 0x4b9   :  { %v10157_v9 = vpop.eup %10156  ;;  %10176 = vtanh.f32 %v9276_v41  ;;  %v14471_v57 = vadd.f32 %v7993_v37, %v7961_v3  ;;  %v7994_v12 = vmul.f32 %v10155_v33, %v14236_v26  ;;  %v8028_v37 = vld [vmem:[%s14677_s5 + $0x28] sm:$0xff]  ;;  %v7969_v33 = vmul.f32 %v14392_v6, %v16763_v51  ;;  %v16767_v6 = vld [vmem:[#allocation199_spill] sm:$0xff] }
 0x4ba   :  { %v10159_v23 = vpop.eup %10158  ;;  %10178 = vtanh.f32 %v14390_v1  ;;  %v8039_v38 = vmul.f32 %v8023_v25, %v8007_v30  ;;  %8215 = vst [vmem:[#allocation5 + $0x80] sm:$0xff] %v8007_v30  ;;  %v14480_v59 = vadd.f32 %v7992_v10, %v7960_v14  ;;  %v7995_v20 = vmul.f32 %v10157_v9, %v14244_v43  ;;  %v16764_v10 = vld [vmem:[#allocation204_spill] sm:$0xff]  ;;  %v16765_v9 = vld [vmem:[#allocation21_spill] sm:$0xff] }
 0x4bb   :  { %v10161_v41 = vpop.eup %10160  ;;  %10180 = vtanh.f32 %v14395_v21  ;;  %v8041_v26 = vmul.f32 %v8025_v22, %v14471_v57  ;;  %8217 = vst [vmem:[#allocation5 + $0x90] sm:$0xff] %v14471_v57  ;;  %v14489_v53 = vadd.f32 %v7994_v12, %v7962_v63  ;;  %v7997_v1 = vmul.f32 %v10159_v23, %v14249_v34  ;;  %v16761_v63 = vld [vmem:[#allocation17_spill] sm:$0xff] }
 0x4bc   :  { %v10163_v62 = vpop.eup %10162  ;;  %10182 = vtanh.f32 %v14398_v47  ;;  %v8055_v43 = vadd.f32 %v14413_v16, %v8039_v38  ;;  %v8040_v44 = vmul.f32 %v8024_v50, %v14480_v59  ;;  %8216 = vst [vmem:[#allocation5 + $0x88] sm:$0xff] %v14480_v59  ;;  %v14499_v21 = vadd.f32 %v7995_v20, %v7963_v24  ;;  %v16762_v24 = vld [vmem:[#allocation18_spill] sm:$0xff]  ;;  %v16772_v51 = vld [vmem:[#allocation205_spill] sm:$0xff] }
 0x4bd   :  { %v10165_v27 = vpop.eup %10164  ;;  %10184 = vtanh.f32 %v14401_v42  ;;  %v8057_v34 = vadd.f32 %v14416_v36, %v8041_v26  ;;  %v8042_v15 = vmul.f32 %v8026_v60, %v14489_v53  ;;  %8218 = vst [vmem:[#allocation5 + $0x98] sm:$0xff] %v14489_v53  ;;  %v14508_v47 = vadd.f32 %v7997_v1, %v7965_v28  ;;  %v8031_v26 = vld [vmem:[%s14677_s5 + $0x40] sm:$0xff] }
 0x4be   :  { %v10167_v16 = vpop.eup %10166  ;;  %10186 = vtanh.f32 %v14404_v58  ;;  %v8280_v19 = vmul.f32 -1.442695, %v8055_v43  ;;  %v8056_v56 = vadd.f32 %v14419_v61, %v8040_v44  ;;  %v8043_v3 = vmul.f32 %v8027_v35, %v14499_v21  ;;  %8219 = vst [vmem:[#allocation5 + $0xa0] sm:$0xff] %v14499_v21  ;;  %v16768_v35 = vld [vmem:[#allocation30_spill] sm:$0xff] }
 0x4bf   :  { %v14514_v2 = vpop.eup %10168  ;;  %10188 = vtanh.f32 %v14407_v18  ;;  %v8282_v42 = vmul.f32 -1.442695, %v8057_v34  ;;  %v8058_v36 = vadd.f32 %v14422_v13, %v8042_v15  ;;  %v8045_v0 = vmul.f32 %v8029_v32, %v14508_v47  ;;  %8221 = vst [vmem:[#allocation5 + $0xb0] sm:$0xff] %v14508_v47  ;;  %v8033_v32 = vld [vmem:[%s14677_s5 + $0x50] sm:$0xff]  ;;  %v16770_v15 = vld [vmem:[#allocation23_spill] sm:$0xff] }
 0x4c0   :  { %v14520_v14 = vpop.eup %10170  ;;  %10190 = vtanh.f32 %v14410_v45  ;;  %v8059_v58 = vadd.f32 %v14425_v4, %v8043_v3  ;;  %v7996_v61 = vmul.f32 %v10161_v41, %v14252_v48  ;;  %v8281_v13 = vmul.f32 -1.442695, %v8056_v56 }
 0x4c1   :  { %v14529_v18 = vpop.eup %10172  ;;  %10192 = vpow2.f32 %v8280_v19  ;;  %v8061_v25 = vadd.f32 %v14428_v11, %v8045_v0  ;;  %v7966_v45 = vmul.f32 %v14381_v40, %v16761_v63  ;;  %v7967_v52 = vmul.f32 %v14385_v55, %v16762_v24  ;;  %v8030_v55 = vld [vmem:[%s14677_s5 + $0x38] sm:$0xff] }
 0x4c2   :  { %v10175_v4 = vpop.eup %10174  ;;  %10194 = vtanh.f32 %v8007_v30  ;;  %v14537_v48 = vadd.f32 %v7996_v61, %v7964_v7  ;;  %v8283_v11 = vmul.f32 -1.442695, %v8058_v36  ;;  %v7968_v50 = vmul.f32 %v10163_v62, %v16765_v9  ;;  %v16766_v30 = vld [vmem:[#allocation28_spill] sm:$0xff]  ;;  %v16771_v36 = vld [vmem:[#allocation33_spill] sm:$0xff] }
 0x4c3   :  { %v10177_v22 = vpop.eup %10176  ;;  %10196 = vpow2.f32 %v8282_v42  ;;  %v7998_v28 = vmul.f32 %v10175_v4, %v16764_v10  ;;  %v8284_v23 = vmul.f32 -1.442695, %v8059_v58  ;;  %v7970_v38 = vmul.f32 %v10165_v27, %v16767_v6  ;;  %v16769_v27 = vld [vmem:[#allocation32_spill] sm:$0xff] }
 0x4c4   :  { %v10179_v12 = vpop.eup %10178  ;;  %v8044_v40 = vmul.f32 %v8028_v37, %v14537_v48  ;;  %8220 = vst [vmem:[#allocation5 + $0xa8] sm:$0xff] %v14537_v48  ;;  %v7999_v7 = vmul.f32 %v10177_v22, %v16766_v30  ;;  %10198 = vpow2.f32 %v8281_v13  ;;  %v8286_v20 = vmul.f32 -1.442695, %v8061_v25  ;;  %v8034_v25 = vld [vmem:[%s14677_s5 + $0x58] sm:$0xff]  ;;  %v16773_v10 = vld [vmem:[#allocation24_spill] sm:$0xff] }
 0x4c5   :  { %v10181_v60 = vpop.eup %10180  ;;  %v14552_v41 = vadd.f32 %v7998_v28, %v7966_v45  ;;  %v8001_v1 = vmul.f32 %v10179_v12, %v16768_v35  ;;  %v7971_v19 = vmul.f32 %v10167_v16, %v16770_v15  ;;  %10200 = vpow2.f32 %v8283_v11  ;;  %v16774_v12 = vld [vmem:[#allocation25_spill] sm:$0xff] }
 0x4c6   :  { %v10183_v62 = vpop.eup %10182  ;;  %v8060_v43 = vadd.f32 %v14433_v5, %v8044_v40  ;;  %v14559_v44 = vadd.f32 %v7999_v7, %v7967_v52  ;;  %v8000_v34 = vmul.f32 %v10181_v60, %v16769_v27  ;;  %v8032_v5 = vld [vmem:[%s14677_s5 + $0x48] sm:$0xff]  ;;  %10202 = vtanh.f32 %v14471_v57  ;;  %v347_v40 = vpop.permute.xlu1 %346 }
 0x4c7   :  { %v10185_v56 = vpop.eup %10184  ;;  %v8046_v3 = vmul.f32 %v8030_v55, %v14552_v41  ;;  %8222 = vst [vmem:[#allocation5 + $0xb8] sm:$0xff] %v14552_v41  ;;  %v14568_v42 = vadd.f32 %v8001_v1, %v7969_v33  ;;  %v8002_v0 = vmul.f32 %v10183_v62, %v16771_v36  ;;  %10204 = vpow2.f32 %v8284_v23 }
 0x4c8   :  { %v10187_v58 = vpop.eup %10186  ;;  %v8285_v61 = vmul.f32 -1.442695, %v8060_v43  ;;  %v8047_v16 = vmul.f32 %v8031_v26, %v14559_v44  ;;  %8223 = vst [vmem:[#allocation5 + $0xc0] sm:$0xff] %v14559_v44  ;;  %v14577_v13 = vadd.f32 %v8000_v34, %v7968_v50  ;;  %10206 = vtanh.f32 %v14480_v59  ;;  %v8035_v50 = vld [vmem:[%s14677_s5 + $0x60] sm:$0xff]  ;;  %v16776_v43 = vld [vmem:[#allocation35_spill] sm:$0xff] }
 0x4c9   :  { %v10189_v37 = vpop.eup %10188  ;;  %v8062_v63 = vadd.f32 %v14436_v39, %v8046_v3  ;;  %v8049_v45 = vmul.f32 %v8033_v32, %v14568_v42  ;;  %8225 = vst [vmem:[#allocation5 + $0xd0] sm:$0xff] %v14568_v42  ;;  %v14585_v57 = vadd.f32 %v8002_v0, %v7970_v38  ;;  %v8003_v33 = vmul.f32 %v10185_v56, %v16772_v51  ;;  %v16777_v34 = vld [vmem:[#allocation36_spill] sm:$0xff]  ;;  %v16778_v3 = vld [vmem:[#allocation38_spill] sm:$0xff] }
 0x4ca   :  { %v10191_v4 = vpop.eup %10190  ;;  %v8063_v24 = vadd.f32 %v14442_v17, %v8047_v16  ;;  %v8048_v52 = vmul.f32 %v8032_v5, %v14577_v13  ;;  %8224 = vst [vmem:[#allocation5 + $0xc8] sm:$0xff] %v14577_v13  ;;  %10208 = vpow2.f32 %v8286_v20  ;;  %v7973_v28 = vmul.f32 %v14514_v2, %v16773_v10 }
 0x4cb   :  { %v10193_v22 = vpop.eup %10192  ;;  %v8065_v39 = vadd.f32 %v14448_v31, %v8049_v45  ;;  %v8050_v11 = vmul.f32 %v8034_v25, %v14585_v57  ;;  %8226 = vst [vmem:[#allocation5 + $0xd8] sm:$0xff] %v14585_v57  ;;  %10210 = vtanh.f32 %v14489_v53  ;;  %v7972_v31 = vmul.f32 %v14520_v14, %v16774_v12  ;;  %v16779_v25 = vld [vmem:[#allocation39_spill] sm:$0xff] }
 0x4cc   :  { %v14597_v59 = vpop.eup %10194  ;;  %v8119_v17 = vadd.f32 1.0, %v10193_v22  ;;  %v8064_v9 = vadd.f32 %v14455_v8, %v8048_v52  ;;  %10212 = vpow2.f32 %v8285_v61  ;;  %v8287_v55 = vmul.f32 -1.442695, %v8062_v63 }
 0x4cd   :  { %v10197_v23 = vpop.eup %10196  ;;  %v14607_v2 = vadd.f32 %v14527_v54, %v8050_v11  ;;  %v14609_v30 = vadd.f32 %v8003_v33, %v7971_v19  ;;  %v9286_v8 = vadd.f32 %v14358_v46, %v347_v40  ;;  %v8005_v7 = vmul.f32 %v10187_v58, %v14340_v29  ;;  %v8037_v54 = vld [vmem:[%s14677_s5 + $0x70] sm:$0xff]  ;;  %v8036_v29 = vld [vmem:[%s14677_s5 + $0x68] sm:$0xff]  ;;  %v16775_v46 = vld [vmem:[#allocation27_spill] sm:$0xff] }
 0x4ce   :  { %10214 = vrcp.f32 %v8119_v17  ;;  %v8121_v53 = vadd.f32 1.0, %v10197_v23  ;;  %v10199_v6 = vpop.eup %10198  ;;  %v8288_v38 = vmul.f32 -1.442695, %v8063_v24  ;;  %v8004_v60 = vmul.f32 %v10189_v37, %v14344_v49 }
 0x4cf   :  { %10216 = vtanh.f32 %v14499_v21  ;;  %v8051_v14 = vmul.f32 %v8035_v50, %v14609_v30  ;;  %8227 = vst [vmem:[#allocation5 + $0xe0] sm:$0xff] %v14609_v30  ;;  %v8120_v20 = vadd.f32 1.0, %v10199_v6  ;;  %v14620_v26 = vadd.f32 %v8005_v7, %v7973_v28  ;;  %v10201_v35 = vpop.eup %10200 }
 0x4d0   :  { %10218 = vrcp.f32 %v8121_v53  ;;  %v7974_v21 = vmul.f32 %v14529_v18, %v16775_v46  ;;  %v14627_v62 = vadd.f32 %v8004_v60, %v7972_v31  ;;  %v8006_v32 = vmul.f32 %v10191_v4, %v16776_v43  ;;  %v10203_v27 = vpop.eup %10202  ;;  %v8038_v18 = vld [vmem:[%s14677_s5 + $0x78] sm:$0xff]  ;;  %s10341_s5 = smov [#allocation5]  }
 0x4d1   :  { %10220 = vpow2.f32 %v8287_v55  ;;  %v8067_v1 = vadd.f32 %v9286_v8, %v8051_v14  ;;  %v8122_v49 = vadd.f32 1.0, %v10201_v35  ;;  %v9318_v15 = vadd.f32 %v16777_v34, %v347_v40  ;;  %8229 = vst [vmem:[#allocation5 + $0xf0] sm:$0xff] %v14620_v26  ;;  %v10205_v56 = vpop.eup %10204  ;;  %s8236_s2 = sshll.u32 %s10341_s5, 4  ;;  %s8237_s2 = int_to_ptr.vmem [resolvable:$true] %s8236_s2 }
 0x4d2   :  { %10222 = vrcp.f32 %v8120_v20  ;;  %v8053_v19 = vmul.f32 %v8037_v54, %v14620_v26  ;;  %v9287_v5 = vadd.f32 %v16778_v3, %v347_v40  ;;  %v8052_v36 = vmul.f32 %v8036_v29, %v14627_v62  ;;  %8228 = vst [vmem:[#allocation5 + $0xe8] sm:$0xff] %v14627_v62  ;;  %v10207_v58 = vpop.eup %10206  ;;  %s10310_s30 = scalar_lea.vmem %s8237_s2, 4096  ;;  %p10315_p9 = scmp.lt.s32.totalorder %s8237_s2, %s8237_s2 }
 0x4d3   :  { %10224 = vtanh.f32 %v14508_v47  ;;  %v14640_v0 = vadd.f32 %v8006_v32, %v7974_v21  ;;  %v8123_v61 = vadd.f32 1.0, %v10205_v56  ;;  %v9319_v37 = vadd.f32 %v16779_v25, %v347_v40  ;;  %p10311_p8 = scmp.ne.s32.totalorder %s8237_s2, %s10310_s30  ;;  %p10316_p10 = scmp.lt.s32.totalorder %s10310_s30, %s10310_s30 }
 0x4d4   :  { %10226 = vrcp.f32 %v8122_v49  ;;  %v8069_v16 = vadd.f32 %v9318_v15, %v8053_v19  ;;  %v10209_v63 = vpop.eup %10208  ;;  %v8290_v45 = vmul.f32 -1.442695, %v8065_v39  ;;  %v8068_v4 = vadd.f32 %v9287_v5, %v8052_v36 }
 0x4d5   :  { %10228 = vpow2.f32 %v8288_v38  ;;  %v8054_v47 = vmul.f32 %v8038_v18, %v14640_v0  ;;  %8230 = vst [vmem:[#allocation5 + $0xf8] sm:$0xff] %v14640_v0  ;;  %v10211_v24 = vpop.eup %10210  ;;  %v8125_v52 = vadd.f32 1.0, %v10209_v63  ;;  %v8289_v10 = vmul.f32 -1.442695, %v8064_v9  ;;  %p10317_p11 = por %p10316_p10, %p10315_p9 }
 0x4d6   :  { %10230 = vrcp.f32 %v8123_v61  ;;  %v10213_v51 = vpop.eup %10212  ;;  %v8291_v31 = vmul.f32 -1.442695, %v14607_v2  ;;  %v8292_v9 = vmul.f32 -1.442695, %v8067_v1  ;;  %v8294_v2 = vmul.f32 -1.442695, %v8069_v16 }
 0x4d7   :  { %10232 = vtanh.f32 %v14537_v48  ;;  %v8070_v33 = vadd.f32 %v9319_v37, %v8054_v47  ;;  %v8124_v11 = vadd.f32 1.0, %v10213_v51  ;;  %v8293_v20 = vmul.f32 -1.442695, %v8068_v4  ;;  %p10318_p12 = pnand %p10317_p11, %p10311_p8 }
 0x4d8   :  { %v10215_v22 = vpop.eup %10214  ;;  %10234 = vrcp.f32 %v8125_v52 }
 0x4d9   :  { %v10217_v28 = vpop.eup %10216  ;;  %v8183_v17 = vmul.f32 %v10215_v22, %v14597_v59  ;;  %10236 = vpow2.f32 %v8290_v45 }
 0x4da   :  { %v10219_v39 = vpop.eup %10218  ;;  %10238 = vrcp.f32 %v8124_v11 }
 0x4db   :  { %v10221_v50 = vpop.eup %10220  ;;  %8199 = vst [vmem:[#allocation5] sm:$0xff] %v8183_v17  ;;  %v8185_v12 = vmul.f32 %v10219_v39, %v10203_v27  ;;  %10240 = vpow2.f32 %v8289_v10 }
 0x4dc   :  { %v10223_v23 = vpop.eup %10222  ;;  %v8126_v40 = vadd.f32 1.0, %v10221_v50  ;;  %10242 = vtanh.f32 %v14552_v41 }
 0x4dd   :  { %v10225_v48 = vpop.eup %10224  ;;  %8201 = vst [vmem:[#allocation5 + $0x10] sm:$0xff] %v8185_v12  ;;  %v8184_v55 = vmul.f32 %v10223_v23, %v10207_v58 }
 0x4de   :  { %v10227_v53 = vpop.eup %10226  ;;  %10244 = vrcp.f32 %v8126_v40 }
 0x4df   :  { %v10229_v59 = vpop.eup %10228  ;;  %8200 = vst [vmem:[#allocation5 + $0x8] sm:$0xff] %v8184_v55  ;;  %v8186_v8 = vmul.f32 %v10227_v53, %v10211_v24  ;;  %10246 = vpow2.f32 %v8291_v31 }
 0x4e0   :  { %v10231_v7 = vpop.eup %10230  ;;  %v8127_v6 = vadd.f32 1.0, %v10229_v59  ;;  %10248 = vtanh.f32 %v14559_v44  ;;  %v8295_v44 = vmul.f32 -1.442695, %v8070_v33 }
 0x4e1   :  { %v10233_v38 = vpop.eup %10232  ;;  %8202 = vst [vmem:[#allocation5 + $0x18] sm:$0xff] %v8186_v8  ;;  %v8187_v14 = vmul.f32 %v10231_v7, %v10217_v28  ;;  %10250 = vpow2.f32 %v8292_v9 }
 0x4e2   :  { %v10235_v54 = vpop.eup %10234  ;;  %10252 = vrcp.f32 %v8127_v6 }
 0x4e3   :  { %v10237_v60 = vpop.eup %10236  ;;  %8203 = vst [vmem:[#allocation5 + $0x20] sm:$0xff] %v8187_v14  ;;  %v8189_v41 = vmul.f32 %v10235_v54, %v10225_v48  ;;  %10254 = vpow2.f32 %v8294_v2 }
 0x4e4   :  { %v10239_v29 = vpop.eup %10238  ;;  %v8129_v46 = vadd.f32 1.0, %v10237_v60  ;;  %10256 = vtanh.f32 %v14568_v42 }
 0x4e5   :  { %8205 = vst [vmem:[#allocation5 + $0x30] sm:$0xff] %v8189_v41  ;;  %v8188_v21 = vmul.f32 %v10239_v29, %v10233_v38  ;;  %v10241_v35 = vpop.eup %10240 }
 0x4e6   :  { %10258 = vrcp.f32 %v8129_v46  ;;  %v10243_v1 = vpop.eup %10242  ;;  %v8128_v43 = vadd.f32 1.0, %v10241_v35 }
 0x4e7   :  { %8204 = vst [vmem:[#allocation5 + $0x28] sm:$0xff] %v8188_v21  ;;  %10260 = vpow2.f32 %v8293_v20 }
 0x4e8   :  { %v10245_v32 = vpop.eup %10244  ;;  %10262 = vtanh.f32 %v14577_v13 }
 0x4e9   :  { %v10247_v27 = vpop.eup %10246  ;;  %v8190_v49 = vmul.f32 %v10245_v32, %v10243_v1  ;;  %10264 = vrcp.f32 %v8128_v43 }
 0x4ea   :  { %v10249_v34 = vpop.eup %10248  ;;  %v8130_v15 = vadd.f32 1.0, %v10247_v27  ;;  %10266 = vpow2.f32 %v8295_v44 }
 0x4eb   :  { %v10251_v19 = vpop.eup %10250  ;;  %8206 = vst [vmem:[#allocation5 + $0x38] sm:$0xff] %v8190_v49  ;;  %10268 = vtanh.f32 %v14585_v57 }
 0x4ec   :  { %v10253_v42 = vpop.eup %10252  ;;  %10270 = vrcp.f32 %v8130_v15  ;;  %v8131_v18 = vadd.f32 1.0, %v10251_v19 }
 0x4ed   :  { %v8191_v56 = vmul.f32 %v10253_v42, %v10249_v34  ;;  %10272 = vtanh.f32 %v14609_v30  ;;  %v10255_v3 = vpop.eup %10254 }
 0x4ee   :  { %10274 = vrcp.f32 %v8131_v18  ;;  %v10257_v5 = vpop.eup %10256  ;;  %v8133_v13 = vadd.f32 1.0, %v10255_v3 }
 0x4ef   :  { %8207 = vst [vmem:[#allocation5 + $0x40] sm:$0xff] %v8191_v56  ;;  %10276 = vtanh.f32 %v14620_v26 }
 0x4f0   :  { %v10259_v36 = vpop.eup %10258  ;;  %10278 = vrcp.f32 %v8133_v13 }
 0x4f1   :  { %v10261_v58 = vpop.eup %10260  ;;  %v8193_v61 = vmul.f32 %v10259_v36, %v10257_v5  ;;  %10280 = vtanh.f32 %v14627_v62 }
 0x4f2   :  { %v10263_v16 = vpop.eup %10262  ;;  %v8132_v25 = vadd.f32 1.0, %v10261_v58 }
 0x4f3   :  { %v10265_v57 = vpop.eup %10264  ;;  %8209 = vst [vmem:[#allocation5 + $0x50] sm:$0xff] %v8193_v61 }
 0x4f4   :  { %v10267_v37 = vpop.eup %10266  ;;  %v8192_v63 = vmul.f32 %v10265_v57, %v10263_v16  ;;  %10282 = vrcp.f32 %v8132_v25 }
 0x4f5   :  { %v10269_v30 = vpop.eup %10268  ;;  %v8134_v45 = vadd.f32 1.0, %v10267_v37  ;;  %10284 = vtanh.f32 %v14640_v0 }
 0x4f6   :  { %v10271_v4 = vpop.eup %10270  ;;  %8208 = vst [vmem:[#allocation5 + $0x48] sm:$0xff] %v8192_v63 }
 0x4f7   :  { %v10273_v47 = vpop.eup %10272  ;;  %v8194_v26 = vmul.f32 %v10271_v4, %v10269_v30  ;;  %10286 = vrcp.f32 %v8134_v45 }
 0x4f8   :  { %v10275_v24 = vpop.eup %10274 }
 0x4f9   :  { %8210 = vst [vmem:[#allocation5 + $0x58] sm:$0xff] %v8194_v26  ;;  %v8195_v52 = vmul.f32 %v10275_v24, %v10273_v47  ;;  %v10277_v51 = vpop.eup %10276 }
 0x4fa   :  { %v10279_v33 = vpop.eup %10278 }
 0x4fb   :  { %8211 = vst [vmem:[#allocation5 + $0x60] sm:$0xff] %v8195_v52  ;;  %v8197_v22 = vmul.f32 %v10279_v33, %v10277_v51  ;;  %v10281_v62 = vpop.eup %10280 }
 0x4fd   :  { %8213 = vst [vmem:[#allocation5 + $0x70] sm:$0xff] %v8197_v22 }
 0x4fe   :  { %v10283_v11 = vpop.eup %10282 }
 0x4ff   :  { %v8196_v10 = vmul.f32 %v10283_v11, %v10281_v62  ;;  %v10285_v28 = vpop.eup %10284 }
 0x501   :  { %v10287_v17 = vpop.eup %10286  ;;  %8212 = vst [vmem:[#allocation5 + $0x68] sm:$0xff] %v8196_v10 }
 0x502   :  { %v8198_v0 = vmul.f32 %v10287_v17, %v10285_v28 }
 0x504   :  { %8214 = vst [vmem:[#allocation5 + $0x78] sm:$0xff] %v8198_v0 }
 0x505   :  { %10321 = shalt.err (!%p10318_p12)
}
 0x506   :  { %s10322_s10 = scalar_lea.hbm %s14679_s7, 4096 }
 0x507   :  { %p10323_p13 = scmp.ne.s32.totalorder %s14679_s7, %s10322_s10  ;;  %p10326_p0 = scmp.lt.u32.totalorder %s10322_s10, %s14679_s7 }
 0x509   :  { %p10328_p1 = pnand %p10326_p0, %p10323_p13 }
 0x50b   :  { %10331 = shalt.err (!%p10328_p1)
}
 0x50c   :  { %8242 = dma.vmem_to_hbm [thread:$0]  %s8237_s2, 4096, %s14679_s7, [#allocation4], %s10337_s11, %s10337_s11, %s10338_s12  }
 0x50d   :  { %10334 = dma.done.wait [#allocation4], 4096  }
 0x50e   :  { %10335 = vsyncadd [#allocation4], 4294963200 }
 0x50f   :  { %8246 = vsyncpa [#allocation3], 1 }
 0x510   :  { %8247 = vsyncpa [#allocation4], 1 }

</bundles_post_ra>
